<compile_context>
chip_gen: v7x
topology: tpu7x:2x2x1
jax: 0.10.0
libtpu: 0.0.40
codegen_flags: <defaults>
</compile_context>

<pallas_src>
import functools
import math

import jax
import jax.numpy as jnp
from jax.experimental import pallas as pl
from jax.experimental.pallas import tpu as pltpu


# Architecture constants of the 'simple-cnn' head (CIFAR input 3x32x32).
_K = 5        # conv kernel size
_C_IN = 3     # input channels
_C1 = 6       # conv1 out channels
_C2 = 16      # conv2 out channels
_P1 = 14      # spatial side after conv1 (28x28) + 2x2 pool
_P2C = 10     # conv2 output side (valid 5x5 conv on 14x14)
_P2 = 5       # spatial side after pool2
_FC1 = 120
_FC2 = 84


def _round8(v):
  return (v + 7) // 8 * 8


def _weight_layout(out_dim):
  """Static row offsets of every weight matrix inside the packed [rows,128] buffer.

  All row starts are multiples of 8 (sublane aligned); all lane slices start at 0.
  """
  lay, r = {}, 0
  lay["w1"] = r;    r += _round8(_C_IN * _K * _K)   # conv1   [75, 6]
  lay["w2"] = r;    r += _K * _K * 8                # conv2   25 taps x [6, 16] (8 rows/tap)
  lay["wfc1"] = r;  r += _P2 * _P2 * 16             # fc1     25 taps x [16, 120]
  lay["wfc2"] = r;  r += _round8(_FC1)              # fc2     [120, 84]
  lay["wl1"] = r;   r += _round8(_FC2)              # l1      [84, 84]
  lay["wl2"] = r;   r += _round8(_FC2)              # l2      [84, out_dim]
  lay["proto"] = r; r += _round8(out_dim)           # head    [out_dim, n_proto] (pre-scaled/normalized)
  lay["rows"] = r
  return lay


def _tree_sum(parts):
  """Balanced pairwise reduction (no long serial add chain)."""
  parts = list(parts)
  while len(parts) > 1:
    nxt = [parts[i] + parts[i + 1] for i in range(0, len(parts) - 1, 2)]
    if len(parts) % 2:
      nxt.append(parts[-1])
    parts = nxt
  return parts[0]


# ---------------------------------------------------------------------------
# Fused Pallas kernel (whole forward pass for one batch tile)
# ---------------------------------------------------------------------------

def _fedcon_fused_kernel(pats_ref, w_ref, b_ref, out_ref, s1_ref, s2_ref, s3_ref,
                         *, b_tile, out_dim, n_proto, lay):
  f32 = jnp.float32
  rows1 = _P1 * _P1                       # 196 pooled1 rows per image
  R = b_tile * rows1                      # pooled1 rows per batch tile

  # ---- conv1: ONE matmul over all four pooling-corner patch blocks, then a 4-way
  # max over the corner row blocks (max commutes with the shared bias and ReLU).
  w1 = w_ref[lay["w1"]:lay["w1"] + _C_IN * _K * _K, 0:_C1]            # bf16 [75, 6]
  y = jnp.dot(pats_ref[0], w1, preferred_element_type=f32)            # [4R, 6]
  y = jnp.maximum(jnp.maximum(y[0:R], y[R:2 * R]),
                  jnp.maximum(y[2 * R:3 * R], y[3 * R:4 * R]))
  # pooled1[n_local*196 + i*14 + j, ic]  (channels last, 14x14 grid per image)
  s1_ref[...] = jnp.maximum(y + b_ref[0:1, 0:_C1], 0.0)

  # ---- conv2 as 25 row-shifted K=6 matmuls over the flattened 14x14 grid.
  # Anchor row r = n_local*196 + i2*14 + j2 carries conv2 output pixel (i2, j2)
  # (valid for i2, j2 < 10); tap (di, dj) reads pooled1 row r + di*14 + dj.
  # NOTE: the index arithmetic below fits the scratch extents *exactly* (the last
  # tap read touches pooled1 row b_tile*196 - 1, the last pool read touches
  # s2 row n_anchor - 1); Pallas does no runtime bounds check on VMEM refs, so
  # re-derive n_anchor/n_base if any layout constant changes.
  # TODO(synk): a K=150 lane-slab + single matmul may beat the 25-dot tree; it
  # needs a v6e measurement of the 25 masked lane-offset stores it requires.
  n_anchor = (b_tile - 1) * rows1 + (_P2C - 1) * _P1 + _P2C
  for di in range(_K):
    parts = []
    for dj in range(_K):
      t = di * _K + dj
      x_tap = s1_ref[pl.ds(di * _P1 + dj, n_anchor), :]               # [n_anchor, 6]
      w_tap = w_ref[lay["w2"] + 8 * t: lay["w2"] + 8 * t + _C1, 0:_C2]
      parts.append(jnp.dot(x_tap, w_tap, preferred_element_type=f32))
    g = _tree_sum(parts)                                              # [n_anchor, 16]
    if di == 0:
      s2_ref[...] = g
    else:
      s2_ref[...] += g

  # ---- conv2 ReLU + 2x2 max-pool: elementwise max over row offsets {0,1,14,15}.
  n_base = (b_tile - 1) * rows1 + 2 * (_P2 - 1) * _P1 + 2 * (_P2 - 1) + 1
  m = jnp.maximum(
      jnp.maximum(s2_ref[pl.ds(0, n_base), :], s2_ref[pl.ds(1, n_base), :]),
      jnp.maximum(s2_ref[pl.ds(_P1, n_base), :], s2_ref[pl.ds(_P1 + 1, n_base), :]))
  # pooled2 lives at rows n_local*196 + 2p*14 + 2q, channels last.
  s3_ref[...] = jnp.maximum(m + b_ref[1:2, 0:_C2], 0.0)

  # ---- fc1, batched over the image tile via strided row gathers (torch's
  # channel-major flatten order is folded into the pre-permuted fc1 weight taps).
  parts = []
  for p in range(_P2):
    for q in range(_P2):
      t = p * _P2 + q
      rows = s3_ref[pl.ds(2 * p * _P1 + 2 * q, b_tile, stride=rows1), :]   # [b_tile, 16]
      w_tap = w_ref[lay["wfc1"] + 16 * t: lay["wfc1"] + 16 * t + _C2, 0:_FC1]
      parts.append(jnp.dot(rows, w_tap, preferred_element_type=f32))
  h = jnp.maximum(_tree_sum(parts) + b_ref[2:3, 0:_FC1], 0.0)              # [b_tile, 120]

  # ---- fc2 / l1 / l2 / CLIP head, batched over the tile.
  wfc2 = w_ref[lay["wfc2"]:lay["wfc2"] + _FC1, 0:_FC2]
  h = jnp.maximum(jnp.dot(h, wfc2, preferred_element_type=f32)
                  + b_ref[3:4, 0:_FC2], 0.0)
  wl1 = w_ref[lay["wl1"]:lay["wl1"] + _FC2, 0:_FC2]
  x1 = jnp.maximum(jnp.dot(h, wl1, preferred_element_type=f32)
                   + b_ref[4:5, 0:_FC2], 0.0)
  wl2 = w_ref[lay["wl2"]:lay["wl2"] + _FC2, 0:out_dim]
  x2 = jnp.dot(x1, wl2, preferred_element_type=f32) + b_ref[5:6, 0:out_dim]
  # L2-normalize with a tiny clamp so an all-zero row cannot produce NaN/Inf
  # (intentional, documented divergence from the reference for that corner case).
  img = x2 * jax.lax.rsqrt(
      jnp.maximum(jnp.sum(x2 * x2, axis=-1, keepdims=True), 1e-24))
  # Prototype head is pre-folded: exp(logit_scale) * l2_normalize(prototypes).T
  proto = w_ref[lay["proto"]:lay["proto"] + out_dim, 0:n_proto]
  out_ref[0] = jnp.dot(img, proto, preferred_element_type=f32)             # [b_tile, P]


# ---------------------------------------------------------------------------
# Wrapper glue (runs once per forward under jit, input-side only)
# ---------------------------------------------------------------------------

def _build_patch_tiles(x, b_tile):
  """x: [N,3,32,32] -> bf16 [N//b_tile, 4*b_tile*196, 75].

  Per batch tile, rows are corner-major then image-local then spatial; row
  (c, n_local, p, q) holds the 3x5x5 patch feeding conv1 output pixel
  (2p+a, 2q+b') for corner c=(a,b'); columns are ordered (ic, di, dj) to match
  torch's conv weight flatten.
  """
  N, C = x.shape[0], x.shape[1]
  # gg[s, t, n, c, p, q] = x[n, c, s + 2p, t + 2q],  s,t in [0,6), p,q in [0,14)
  gg = jnp.stack([
      jnp.stack([x[:, :, s:s + 2 * _P1:2, t:t + 2 * _P1:2] for t in range(_K + 1)],
                axis=0)
      for s in range(_K + 1)], axis=0)
  corners = []
  for a in range(2):
    for b in range(2):
      sub = gg[a:a + _K, b:b + _K]                    # (di, dj, n, c, p, q)
      sub = jnp.transpose(sub, (2, 4, 5, 3, 0, 1))    # (n, p, q, c, di, dj)
      corners.append(sub.reshape(N, _P1 * _P1, C * _K * _K))
  pats = jnp.stack(corners, axis=0)                   # [4, N, 196, 75]
  nt = N // b_tile
  pats = pats.reshape(4, nt, b_tile, _P1 * _P1, C * _K * _K)
  pats = jnp.transpose(pats, (1, 0, 2, 3, 4))         # [nt, 4, b_tile, 196, 75]
  return pats.reshape(nt, 4 * b_tile * _P1 * _P1, C * _K * _K).astype(jnp.bfloat16)


def prepare_params(p):
  """One-time conversion of torch-layout parameters into one packed bf16 weight
  buffer + one packed f32 bias buffer (no per-forward transposes, 3 DMAs total)."""
  out_dim = p["l2_w"].shape[0]
  n_proto = p["prototypes"].shape[0]
  assert out_dim <= 128 and n_proto <= 128 and _FC1 <= 128
  lay = _weight_layout(out_dim)

  w = jnp.zeros((lay["rows"], 128), jnp.float32)
  w = w.at[lay["w1"]:lay["w1"] + _C_IN * _K * _K, 0:_C1].set(
      p["conv1_w"].reshape(_C1, _C_IN * _K * _K).T)
  # conv2 taps: w2t[di*5+dj, ic, oc] = conv2_w[oc, ic, di, dj]
  w2t = jnp.transpose(p["conv2_w"], (2, 3, 1, 0)).reshape(_K * _K, _C1, _C2)
  for t in range(_K * _K):
    w = w.at[lay["w2"] + 8 * t: lay["w2"] + 8 * t + _C1, 0:_C2].set(w2t[t])
  # fc1 taps: wfc1[p*5+q, oc, h] = fc1_w[h, oc*25 + p*5 + q] (torch channel-major flatten)
  wfc1 = jnp.transpose(p["fc1_w"].reshape(_FC1, _C2, _P2 * _P2), (2, 1, 0))
  for t in range(_P2 * _P2):
    w = w.at[lay["wfc1"] + 16 * t: lay["wfc1"] + 16 * t + _C2, 0:_FC1].set(wfc1[t])
  w = w.at[lay["wfc2"]:lay["wfc2"] + _FC1, 0:_FC2].set(p["fc2_w"].T)
  w = w.at[lay["wl1"]:lay["wl1"] + _FC2, 0:_FC2].set(p["l1_w"].T)
  w = w.at[lay["wl2"]:lay["wl2"] + _FC2, 0:out_dim].set(p["l2_w"].T)
  # Constant-folded CLIP head: exp(logit_scale) * l2_normalize(prototypes).T
  protos = p["prototypes"]
  proto_head = (jnp.exp(p["logit_scale"])
                * (protos / jnp.linalg.norm(protos, axis=-1, keepdims=True)).T)
  w = w.at[lay["proto"]:lay["proto"] + out_dim, 0:n_proto].set(proto_head)

  b = jnp.zeros((8, 128), jnp.float32)
  b = b.at[0, 0:_C1].set(p["conv1_b"])
  b = b.at[1, 0:_C2].set(p["conv2_b"])
  b = b.at[2, 0:_FC1].set(p["fc1_b"])
  b = b.at[3, 0:_FC2].set(p["fc2_b"])
  b = b.at[4, 0:_FC2].set(p["l1_b"])
  b = b.at[5, 0:out_dim].set(p["l2_b"])

  return {"wbig": w.astype(jnp.bfloat16), "bias": b}


@functools.partial(jax.jit, static_argnames=("out_dim", "n_proto", "b_tile"))
def model_fedcon_text_forward(kparams, x, *, out_dim, n_proto, b_tile=2):
  """Fused Pallas forward, gridded over batch tiles.

  Returns logits_per_image [N, n_proto].
  """
  N = x.shape[0]
  assert N % b_tile == 0, "batch must be a multiple of b_tile"
  assert (b_tile * _P1 * _P1) % 8 == 0, "b_tile must be even (sublane alignment)"
  nt = N // b_tile
  lay = _weight_layout(out_dim)
  rows1 = _P1 * _P1
  n_anchor = (b_tile - 1) * rows1 + (_P2C - 1) * _P1 + _P2C
  n_base = (b_tile - 1) * rows1 + 2 * (_P2 - 1) * _P1 + 2 * (_P2 - 1) + 1

  pats = _build_patch_tiles(x, b_tile)    # bf16 [nt, 4*b_tile*196, 75]

  flops = int(2 * (4 * N * rows1 * (_C_IN * _K * _K) * _C1
                   + (_K * _K) * nt * n_anchor * _C1 * _C2
                   + (_P2 * _P2) * N * _C2 * _FC1
                   + N * (_FC1 * _FC2 + _FC2 * _FC2 + _FC2 * out_dim
                          + out_dim * n_proto)))
  bytes_accessed = int(pats.size * 2 + kparams["wbig"].size * 2
                       + kparams["bias"].size * 4 + N * n_proto * 4)
  cost = pl.CostEstimate(flops=flops, transcendentals=N,
                         bytes_accessed=bytes_accessed)

  grid_spec = pltpu.PrefetchScalarGridSpec(
      num_scalar_prefetch=0,
      grid=(nt,),
      in_specs=[
          # Per-tile patch slab (blocked over batch tiles).
          pl.BlockSpec((1, 4 * b_tile * rows1, _C_IN * _K * _K),
                       lambda b: (b, 0, 0)),
          # Packed weights / biases: constant block -> DMA'd once, resident in VMEM.
          pl.BlockSpec(kparams["wbig"].shape, lambda b: (0, 0)),
          pl.BlockSpec(kparams["bias"].shape, lambda b: (0, 0)),
      ],
      out_specs=pl.BlockSpec((1, b_tile, n_proto), lambda b: (b, 0, 0)),
      scratch_shapes=[
          pltpu.VMEM((b_tile * rows1, _C1), jnp.float32),   # pooled1
          pltpu.VMEM((n_anchor, _C2), jnp.float32),         # conv2 pre-activation
          pltpu.VMEM((n_base, _C2), jnp.float32),           # pooled2 (at anchor rows)
      ])

  # Per-tile VMEM is ~2 MB at b_tile=2; on v7x (64 MiB) keep b_tile <~ 24-32 or
  # raise vmem_limit_bytes explicitly; v6e can go larger (128 MiB physical).
  out = pl.pallas_call(
      functools.partial(_fedcon_fused_kernel, b_tile=b_tile, out_dim=out_dim,
                        n_proto=n_proto, lay=lay),
      out_shape=jax.ShapeDtypeStruct((nt, b_tile, n_proto), jnp.float32),
      grid_spec=grid_spec,
      compiler_params=pltpu.CompilerParams(dimension_semantics=("parallel",)),
      cost_estimate=cost,
  )(pats, kparams["wbig"], kparams["bias"])
  return out.reshape(N, n_proto)


# ---------------------------------------------------------------------------
# Deterministic torch-like parameter init (uniform(-1/sqrt(fan_in), +1/sqrt(fan_in)))
# ---------------------------------------------------------------------------

def _uniform(key, shape, fan_in):
  bound = 1.0 / math.sqrt(fan_in)
  return jax.random.uniform(key, shape, jnp.float32, -bound, bound)


def init_params(key, out_dim, num_prototypes):
  keys = jax.random.split(key, 16)
  p = {}
  p["conv1_w"] = _uniform(keys[0], (_C1, _C_IN, _K, _K), _C_IN * _K * _K)
  p["conv1_b"] = _uniform(keys[1], (_C1,), _C_IN * _K * _K)
  p["conv2_w"] = _uniform(keys[2], (_C2, _C1, _K, _K), _C1 * _K * _K)
  p["conv2_b"] = _uniform(keys[3], (_C2,), _C1 * _K * _K)
  p["fc1_w"] = _uniform(keys[4], (_FC1, _C2 * _P2 * _P2), _C2 * _P2 * _P2)  # torch [out, in]
  p["fc1_b"] = _uniform(keys[5], (_FC1,), _C2 * _P2 * _P2)
  p["fc2_w"] = _uniform(keys[6], (_FC2, _FC1), _FC1)
  p["fc2_b"] = _uniform(keys[7], (_FC2,), _FC1)
  p["l1_w"] = _uniform(keys[8], (_FC2, _FC2), _FC2)
  p["l1_b"] = _uniform(keys[9], (_FC2,), _FC2)
  p["l2_w"] = _uniform(keys[10], (out_dim, _FC2), _FC2)
  p["l2_b"] = _uniform(keys[11], (out_dim,), _FC2)
  p["logit_scale"] = jnp.asarray(math.log(1.0 / 0.07), jnp.float32)
  p["prototypes"] = jax.random.normal(keys[12], (num_prototypes, out_dim), jnp.float32)
  return p


# ---------------------------------------------------------------------------
# Plain-XLA reference of the PyTorch module (for numerical self-check only)
# ---------------------------------------------------------------------------

def _reference_forward(params, x):
  hp = jax.lax.Precision.HIGHEST

  def conv(h, w, b):
    y = jax.lax.conv_general_dilated(
        h, w, (1, 1), "VALID",
        dimension_numbers=("NCHW", "OIHW", "NCHW"), precision=hp)
    return y + b[None, :, None, None]

  def pool(h):
    return jax.lax.reduce_window(h, -jnp.inf, jax.lax.max,
                                 (1, 1, 2, 2), (1, 1, 2, 2), "VALID")

  h = pool(jax.nn.relu(conv(x, params["conv1_w"], params["conv1_b"])))
  h = pool(jax.nn.relu(conv(h, params["conv2_w"], params["conv2_b"])))
  h = h.reshape(h.shape[0], -1)
  h = jax.nn.relu(jnp.dot(h, params["fc1_w"].T, precision=hp) + params["fc1_b"])
  h = jax.nn.relu(jnp.dot(h, params["fc2_w"].T, precision=hp) + params["fc2_b"])
  x1 = jax.nn.relu(jnp.dot(h, params["l1_w"].T, precision=hp) + params["l1_b"])
  x2 = jnp.dot(x1, params["l2_w"].T, precision=hp) + params["l2_b"]
  img = x2 / jnp.linalg.norm(x2, axis=-1, keepdims=True)
  txt = params["prototypes"] / jnp.linalg.norm(params["prototypes"], axis=-1, keepdims=True)
  return jnp.exp(params["logit_scale"]) * jnp.dot(img, txt.T, precision=hp)


# ---------------------------------------------------------------------------
# Main
# ---------------------------------------------------------------------------

if __name__ == "__main__":
  key = jax.random.PRNGKey(0)
  k_param, k_x = jax.random.split(key)

  OUT_DIM = 32
  NUM_PROTOTYPES = 10
  params = init_params(k_param, OUT_DIM, NUM_PROTOTYPES)
  kparams = prepare_params(params)   # one-time layout prep; no per-forward transposes

  # CIFAR-sized input is required by the simple-cnn head (32x32 -> 16*5*5 = 400).
  N, B_TILE = 4, 2                   # grid=(2,), two images per batch tile
  x = jax.random.normal(k_x, (N, _C_IN, 32, 32), jnp.float32)

  logits = jax.block_until_ready(model_fedcon_text_forward(
      kparams, x, out_dim=OUT_DIM, n_proto=NUM_PROTOTYPES, b_tile=B_TILE))
  assert logits.shape == (N, NUM_PROTOTYPES), logits.shape
  assert bool(jnp.all(jnp.isfinite(logits)))

  # Numerical self-check against a plain-XLA reference of the PyTorch module.
  ref = jax.block_until_ready(_reference_forward(params, x))
  max_err = float(jnp.max(jnp.abs(logits - ref)))
  assert jnp.allclose(logits, ref, rtol=5e-2, atol=5e-2), max_err

  print("KERNEL_OK")
</pallas_src>

<mosaic_0001>
module attributes {stable_mosaic.version = 11 : i64} {
  func.func @_fedcon_fused_kernel(%arg0: i32, %arg1: memref<1x1568x75xbf16, #tpu.memory_space<vmem>>, %arg2: memref<1008x128xbf16, #tpu.memory_space<vmem>>, %arg3: memref<8x128xf32, #tpu.memory_space<vmem>>, %arg4: memref<1x2x10xf32, #tpu.memory_space<vmem>>, %arg5: memref<392x6xf32, #tpu.memory_space<vmem>>, %arg6: memref<332x16xf32, #tpu.memory_space<vmem>>, %arg7: memref<317x16xf32, #tpu.memory_space<vmem>>) attributes {dimension_semantics = [#tpu.dimension_semantics<parallel>], iteration_bounds = array<i64: 2>, scalar_prefetch = 0 : i64, scratch_operands = 3 : i64, tpu.core_type = #tpu.core_type<tc>, window_params = [{transform_indices = @transform_0, window_bounds = array<i64: 1, 1568, 75>}, {pipeline_mode = #tpu.pipeline_mode<synchronous>, transform_indices = @transform_1, window_bounds = array<i64: 1008, 128>}, {pipeline_mode = #tpu.pipeline_mode<synchronous>, transform_indices = @transform_2, window_bounds = array<i64: 8, 128>}, {transform_indices = @transform_3, window_bounds = array<i64: 1, 2, 10>}]} {
    %c0 = arith.constant 0 : index
    %c0_0 = arith.constant 0 : index
    %0 = vector.load %arg2[%c0, %c0_0] : memref<1008x128xbf16, #tpu.memory_space<vmem>>, vector<75x6xbf16>
    %c0_1 = arith.constant 0 : index
    %c0_2 = arith.constant 0 : index
    %c0_3 = arith.constant 0 : index
    %1 = vector.load %arg1[%c0_1, %c0_2, %c0_3] : memref<1x1568x75xbf16, #tpu.memory_space<vmem>>, vector<1x1568x75xbf16>
    %2 = vector.shape_cast %1 : vector<1x1568x75xbf16> to vector<1568x75xbf16>
    %cst = arith.constant dense<0.000000e+00> : vector<1568x6xf32>
    %3 = tpu.matmul %2, %0, %cst {dimension_numbers = #tpu.dot_dimension_numbers<[1], [0], [0], [1], [0, 0, 1, 1], [], []>} : vector<1568x75xbf16>, vector<75x6xbf16>, vector<1568x6xf32> -> vector<1568x6xf32>
    %4 = vector.extract_strided_slice %3 {offsets = [0, 0], sizes = [392, 6], strides = [1, 1]} : vector<1568x6xf32> to vector<392x6xf32>
    %5 = vector.extract_strided_slice %3 {offsets = [392, 0], sizes = [392, 6], strides = [1, 1]} : vector<1568x6xf32> to vector<392x6xf32>
    %6 = arith.maximumf %4, %5 : vector<392x6xf32>
    %7 = vector.extract_strided_slice %3 {offsets = [784, 0], sizes = [392, 6], strides = [1, 1]} : vector<1568x6xf32> to vector<392x6xf32>
    %8 = vector.extract_strided_slice %3 {offsets = [1176, 0], sizes = [392, 6], strides = [1, 1]} : vector<1568x6xf32> to vector<392x6xf32>
    %9 = arith.maximumf %7, %8 : vector<392x6xf32>
    %10 = arith.maximumf %6, %9 : vector<392x6xf32>
    %c0_4 = arith.constant 0 : index
    %c0_5 = arith.constant 0 : index
    %11 = vector.load %arg3[%c0_4, %c0_5] : memref<8x128xf32, #tpu.memory_space<vmem>>, vector<1x6xf32>
    %12 = vector.broadcast %11 : vector<1x6xf32> to vector<392x6xf32>
    %13 = arith.addf %10, %12 : vector<392x6xf32>
    %cst_6 = arith.constant 0.000000e+00 : f32
    %14 = vector.broadcast %cst_6 : f32 to vector<392x6xf32>
    %15 = arith.maximumf %13, %14 : vector<392x6xf32>
    %c0_7 = arith.constant 0 : index
    %c0_8 = arith.constant 0 : index
    %16 = vector.load %arg5[%c0_7, %c0_8] : memref<392x6xf32, #tpu.memory_space<vmem>>, vector<392x6xf32>
    tpu.vector_store %arg5[%c0_7, %c0_8], %15 {strides = array<i32>} : memref<392x6xf32, #tpu.memory_space<vmem>>, vector<392x6xf32>,
    %c0_9 = arith.constant 0 : index
    %c0_10 = arith.constant 0 : index
    %17 = vector.load %arg5[%c0_9, %c0_10] : memref<392x6xf32, #tpu.memory_space<vmem>>, vector<332x6xf32>
    %c80 = arith.constant 80 : index
    %c0_11 = arith.constant 0 : index
    %18 = vector.load %arg2[%c80, %c0_11] : memref<1008x128xbf16, #tpu.memory_space<vmem>>, vector<6x16xbf16>
    %cst_12 = arith.constant dense<0.000000e+00> : vector<332x16xf32>
    %19 = tpu.matmul %17, %18, %cst_12 {dimension_numbers = #tpu.dot_dimension_numbers<[1], [0], [0], [1], [0, 0, 1, 1], [], []>} : vector<332x6xf32>, vector<6x16xbf16>, vector<332x16xf32> -> vector<332x16xf32>
    %c1 = arith.constant 1 : index
    %c0_13 = arith.constant 0 : index
    %20 = vector.load %arg5[%c1, %c0_13] : memref<392x6xf32, #tpu.memory_space<vmem>>, vector<332x6xf32>
    %c88 = arith.constant 88 : index
    %c0_14 = arith.constant 0 : index
    %21 = vector.load %arg2[%c88, %c0_14] : memref<1008x128xbf16, #tpu.memory_space<vmem>>, vector<6x16xbf16>
    %cst_15 = arith.constant dense<0.000000e+00> : vector<332x16xf32>
    %22 = tpu.matmul %20, %21, %cst_15 {dimension_numbers = #tpu.dot_dimension_numbers<[1], [0], [0], [1], [0, 0, 1, 1], [], []>} : vector<332x6xf32>, vector<6x16xbf16>, vector<332x16xf32> -> vector<332x16xf32>
    %c2 = arith.constant 2 : index
    %c0_16 = arith.constant 0 : index
    %23 = vector.load %arg5[%c2, %c0_16] : memref<392x6xf32, #tpu.memory_space<vmem>>, vector<332x6xf32>
    %c96 = arith.constant 96 : index
    %c0_17 = arith.constant 0 : index
    %24 = vector.load %arg2[%c96, %c0_17] : memref<1008x128xbf16, #tpu.memory_space<vmem>>, vector<6x16xbf16>
    %cst_18 = arith.constant dense<0.000000e+00> : vector<332x16xf32>
    %25 = tpu.matmul %23, %24, %cst_18 {dimension_numbers = #tpu.dot_dimension_numbers<[1], [0], [0], [1], [0, 0, 1, 1], [], []>} : vector<332x6xf32>, vector<6x16xbf16>, vector<332x16xf32> -> vector<332x16xf32>
    %c3 = arith.constant 3 : index
    %c0_19 = arith.constant 0 : index
    %26 = vector.load %arg5[%c3, %c0_19] : memref<392x6xf32, #tpu.memory_space<vmem>>, vector<332x6xf32>
    %c104 = arith.constant 104 : index
    %c0_20 = arith.constant 0 : index
    %27 = vector.load %arg2[%c104, %c0_20] : memref<1008x128xbf16, #tpu.memory_space<vmem>>, vector<6x16xbf16>
    %cst_21 = arith.constant dense<0.000000e+00> : vector<332x16xf32>
    %28 = tpu.matmul %26, %27, %cst_21 {dimension_numbers = #tpu.dot_dimension_numbers<[1], [0], [0], [1], [0, 0, 1, 1], [], []>} : vector<332x6xf32>, vector<6x16xbf16>, vector<332x16xf32> -> vector<332x16xf32>
    %c4 = arith.constant 4 : index
    %c0_22 = arith.constant 0 : index
    %29 = vector.load %arg5[%c4, %c0_22] : memref<392x6xf32, #tpu.memory_space<vmem>>, vector<332x6xf32>
    %c112 = arith.constant 112 : index
    %c0_23 = arith.constant 0 : index
    %30 = vector.load %arg2[%c112, %c0_23] : memref<1008x128xbf16, #tpu.memory_space<vmem>>, vector<6x16xbf16>
    %cst_24 = arith.constant dense<0.000000e+00> : vector<332x16xf32>
    %31 = tpu.matmul %29, %30, %cst_24 {dimension_numbers = #tpu.dot_dimension_numbers<[1], [0], [0], [1], [0, 0, 1, 1], [], []>} : vector<332x6xf32>, vector<6x16xbf16>, vector<332x16xf32> -> vector<332x16xf32>
    %32 = arith.addf %19, %22 : vector<332x16xf32>
    %33 = arith.addf %25, %28 : vector<332x16xf32>
    %34 = arith.addf %32, %33 : vector<332x16xf32>
    %35 = arith.addf %34, %31 : vector<332x16xf32>
    %c0_25 = arith.constant 0 : index
    %c0_26 = arith.constant 0 : index
    %36 = vector.load %arg6[%c0_25, %c0_26] : memref<332x16xf32, #tpu.memory_space<vmem>>, vector<332x16xf32>
    tpu.vector_store %arg6[%c0_25, %c0_26], %35 {strides = array<i32>} : memref<332x16xf32, #tpu.memory_space<vmem>>, vector<332x16xf32>,
    %c14 = arith.constant 14 : index
    %c0_27 = arith.constant 0 : index
    %37 = vector.load %arg5[%c14, %c0_27] : memref<392x6xf32, #tpu.memory_space<vmem>>, vector<332x6xf32>
    %c120 = arith.constant 120 : index
    %c0_28 = arith.constant 0 : index
    %38 = vector.load %arg2[%c120, %c0_28] : memref<1008x128xbf16, #tpu.memory_space<vmem>>, vector<6x16xbf16>
    %cst_29 = arith.constant dense<0.000000e+00> : vector<332x16xf32>
    %39 = tpu.matmul %37, %38, %cst_29 {dimension_numbers = #tpu.dot_dimension_numbers<[1], [0], [0], [1], [0, 0, 1, 1], [], []>} : vector<332x6xf32>, vector<6x16xbf16>, vector<332x16xf32> -> vector<332x16xf32>
    %c15 = arith.constant 15 : index
    %c0_30 = arith.constant 0 : index
    %40 = vector.load %arg5[%c15, %c0_30] : memref<392x6xf32, #tpu.memory_space<vmem>>, vector<332x6xf32>
    %c128 = arith.constant 128 : index
    %c0_31 = arith.constant 0 : index
    %41 = vector.load %arg2[%c128, %c0_31] : memref<1008x128xbf16, #tpu.memory_space<vmem>>, vector<6x16xbf16>
    %cst_32 = arith.constant dense<0.000000e+00> : vector<332x16xf32>
    %42 = tpu.matmul %40, %41, %cst_32 {dimension_numbers = #tpu.dot_dimension_numbers<[1], [0], [0], [1], [0, 0, 1, 1], [], []>} : vector<332x6xf32>, vector<6x16xbf16>, vector<332x16xf32> -> vector<332x16xf32>
    %c16 = arith.constant 16 : index
    %c0_33 = arith.constant 0 : index
    %43 = vector.load %arg5[%c16, %c0_33] : memref<392x6xf32, #tpu.memory_space<vmem>>, vector<332x6xf32>
    %c136 = arith.constant 136 : index
    %c0_34 = arith.constant 0 : index
    %44 = vector.load %arg2[%c136, %c0_34] : memref<1008x128xbf16, #tpu.memory_space<vmem>>, vector<6x16xbf16>
    %cst_35 = arith.constant dense<0.000000e+00> : vector<332x16xf32>
    %45 = tpu.matmul %43, %44, %cst_35 {dimension_numbers = #tpu.dot_dimension_numbers<[1], [0], [0], [1], [0, 0, 1, 1], [], []>} : vector<332x6xf32>, vector<6x16xbf16>, vector<332x16xf32> -> vector<332x16xf32>
    %c17 = arith.constant 17 : index
    %c0_36 = arith.constant 0 : index
    %46 = vector.load %arg5[%c17, %c0_36] : memref<392x6xf32, #tpu.memory_space<vmem>>, vector<332x6xf32>
    %c144 = arith.constant 144 : index
    %c0_37 = arith.constant 0 : index
    %47 = vector.load %arg2[%c144, %c0_37] : memref<1008x128xbf16, #tpu.memory_space<vmem>>, vector<6x16xbf16>
    %cst_38 = arith.constant dense<0.000000e+00> : vector<332x16xf32>
    %48 = tpu.matmul %46, %47, %cst_38 {dimension_numbers = #tpu.dot_dimension_numbers<[1], [0], [0], [1], [0, 0, 1, 1], [], []>} : vector<332x6xf32>, vector<6x16xbf16>, vector<332x16xf32> -> vector<332x16xf32>
    %c18 = arith.constant 18 : index
    %c0_39 = arith.constant 0 : index
    %49 = vector.load %arg5[%c18, %c0_39] : memref<392x6xf32, #tpu.memory_space<vmem>>, vector<332x6xf32>
    %c152 = arith.constant 152 : index
    %c0_40 = arith.constant 0 : index
    %50 = vector.load %arg2[%c152, %c0_40] : memref<1008x128xbf16, #tpu.memory_space<vmem>>, vector<6x16xbf16>
    %cst_41 = arith.constant dense<0.000000e+00> : vector<332x16xf32>
    %51 = tpu.matmul %49, %50, %cst_41 {dimension_numbers = #tpu.dot_dimension_numbers<[1], [0], [0], [1], [0, 0, 1, 1], [], []>} : vector<332x6xf32>, vector<6x16xbf16>, vector<332x16xf32> -> vector<332x16xf32>
    %52 = arith.addf %39, %42 : vector<332x16xf32>
    %53 = arith.addf %45, %48 : vector<332x16xf32>
    %54 = arith.addf %52, %53 : vector<332x16xf32>
    %55 = arith.addf %54, %51 : vector<332x16xf32>
    %c0_42 = arith.constant 0 : index
    %c0_43 = arith.constant 0 : index
    %56 = vector.load %arg6[%c0_42, %c0_43] : memref<332x16xf32, #tpu.memory_space<vmem>>, vector<332x16xf32>
    %57 = arith.addf %56, %55 : vector<332x16xf32>
    %c0_44 = arith.constant 0 : index
    %c0_45 = arith.constant 0 : index
    %58 = vector.load %arg6[%c0_44, %c0_45] : memref<332x16xf32, #tpu.memory_space<vmem>>, vector<332x16xf32>
    tpu.vector_store %arg6[%c0_44, %c0_45], %57 {strides = array<i32>} : memref<332x16xf32, #tpu.memory_space<vmem>>, vector<332x16xf32>,
    %c28 = arith.constant 28 : index
    %c0_46 = arith.constant 0 : index
    %59 = vector.load %arg5[%c28, %c0_46] : memref<392x6xf32, #tpu.memory_space<vmem>>, vector<332x6xf32>
    %c160 = arith.constant 160 : index
    %c0_47 = arith.constant 0 : index
    %60 = vector.load %arg2[%c160, %c0_47] : memref<1008x128xbf16, #tpu.memory_space<vmem>>, vector<6x16xbf16>
    %cst_48 = arith.constant dense<0.000000e+00> : vector<332x16xf32>
    %61 = tpu.matmul %59, %60, %cst_48 {dimension_numbers = #tpu.dot_dimension_numbers<[1], [0], [0], [1], [0, 0, 1, 1], [], []>} : vector<332x6xf32>, vector<6x16xbf16>, vector<332x16xf32> -> vector<332x16xf32>
    %c29 = arith.constant 29 : index
    %c0_49 = arith.constant 0 : index
    %62 = vector.load %arg5[%c29, %c0_49] : memref<392x6xf32, #tpu.memory_space<vmem>>, vector<332x6xf32>
    %c168 = arith.constant 168 : index
    %c0_50 = arith.constant 0 : index
    %63 = vector.load %arg2[%c168, %c0_50] : memref<1008x128xbf16, #tpu.memory_space<vmem>>, vector<6x16xbf16>
    %cst_51 = arith.constant dense<0.000000e+00> : vector<332x16xf32>
    %64 = tpu.matmul %62, %63, %cst_51 {dimension_numbers = #tpu.dot_dimension_numbers<[1], [0], [0], [1], [0, 0, 1, 1], [], []>} : vector<332x6xf32>, vector<6x16xbf16>, vector<332x16xf32> -> vector<332x16xf32>
    %c30 = arith.constant 30 : index
    %c0_52 = arith.constant 0 : index
    %65 = vector.load %arg5[%c30, %c0_52] : memref<392x6xf32, #tpu.memory_space<vmem>>, vector<332x6xf32>
    %c176 = arith.constant 176 : index
    %c0_53 = arith.constant 0 : index
    %66 = vector.load %arg2[%c176, %c0_53] : memref<1008x128xbf16, #tpu.memory_space<vmem>>, vector<6x16xbf16>
    %cst_54 = arith.constant dense<0.000000e+00> : vector<332x16xf32>
    %67 = tpu.matmul %65, %66, %cst_54 {dimension_numbers = #tpu.dot_dimension_numbers<[1], [0], [0], [1], [0, 0, 1, 1], [], []>} : vector<332x6xf32>, vector<6x16xbf16>, vector<332x16xf32> -> vector<332x16xf32>
    %c31 = arith.constant 31 : index
    %c0_55 = arith.constant 0 : index
    %68 = vector.load %arg5[%c31, %c0_55] : memref<392x6xf32, #tpu.memory_space<vmem>>, vector<332x6xf32>
    %c184 = arith.constant 184 : index
    %c0_56 = arith.constant 0 : index
    %69 = vector.load %arg2[%c184, %c0_56] : memref<1008x128xbf16, #tpu.memory_space<vmem>>, vector<6x16xbf16>
    %cst_57 = arith.constant dense<0.000000e+00> : vector<332x16xf32>
    %70 = tpu.matmul %68, %69, %cst_57 {dimension_numbers = #tpu.dot_dimension_numbers<[1], [0], [0], [1], [0, 0, 1, 1], [], []>} : vector<332x6xf32>, vector<6x16xbf16>, vector<332x16xf32> -> vector<332x16xf32>
    %c32 = arith.constant 32 : index
    %c0_58 = arith.constant 0 : index
    %71 = vector.load %arg5[%c32, %c0_58] : memref<392x6xf32, #tpu.memory_space<vmem>>, vector<332x6xf32>
    %c192 = arith.constant 192 : index
    %c0_59 = arith.constant 0 : index
    %72 = vector.load %arg2[%c192, %c0_59] : memref<1008x128xbf16, #tpu.memory_space<vmem>>, vector<6x16xbf16>
    %cst_60 = arith.constant dense<0.000000e+00> : vector<332x16xf32>
    %73 = tpu.matmul %71, %72, %cst_60 {dimension_numbers = #tpu.dot_dimension_numbers<[1], [0], [0], [1], [0, 0, 1, 1], [], []>} : vector<332x6xf32>, vector<6x16xbf16>, vector<332x16xf32> -> vector<332x16xf32>
    %74 = arith.addf %61, %64 : vector<332x16xf32>
    %75 = arith.addf %67, %70 : vector<332x16xf32>
    %76 = arith.addf %74, %75 : vector<332x16xf32>
    %77 = arith.addf %76, %73 : vector<332x16xf32>
    %c0_61 = arith.constant 0 : index
    %c0_62 = arith.constant 0 : index
    %78 = vector.load %arg6[%c0_61, %c0_62] : memref<332x16xf32, #tpu.memory_space<vmem>>, vector<332x16xf32>
    %79 = arith.addf %78, %77 : vector<332x16xf32>
    %c0_63 = arith.constant 0 : index
    %c0_64 = arith.constant 0 : index
    %80 = vector.load %arg6[%c0_63, %c0_64] : memref<332x16xf32, #tpu.memory_space<vmem>>, vector<332x16xf32>
    tpu.vector_store %arg6[%c0_63, %c0_64], %79 {strides = array<i32>} : memref<332x16xf32, #tpu.memory_space<vmem>>, vector<332x16xf32>,
    %c42 = arith.constant 42 : index
    %c0_65 = arith.constant 0 : index
    %81 = vector.load %arg5[%c42, %c0_65] : memref<392x6xf32, #tpu.memory_space<vmem>>, vector<332x6xf32>
    %c200 = arith.constant 200 : index
    %c0_66 = arith.constant 0 : index
    %82 = vector.load %arg2[%c200, %c0_66] : memref<1008x128xbf16, #tpu.memory_space<vmem>>, vector<6x16xbf16>
    %cst_67 = arith.constant dense<0.000000e+00> : vector<332x16xf32>
    %83 = tpu.matmul %81, %82, %cst_67 {dimension_numbers = #tpu.dot_dimension_numbers<[1], [0], [0], [1], [0, 0, 1, 1], [], []>} : vector<332x6xf32>, vector<6x16xbf16>, vector<332x16xf32> -> vector<332x16xf32>
    %c43 = arith.constant 43 : index
    %c0_68 = arith.constant 0 : index
    %84 = vector.load %arg5[%c43, %c0_68] : memref<392x6xf32, #tpu.memory_space<vmem>>, vector<332x6xf32>
    %c208 = arith.constant 208 : index
    %c0_69 = arith.constant 0 : index
    %85 = vector.load %arg2[%c208, %c0_69] : memref<1008x128xbf16, #tpu.memory_space<vmem>>, vector<6x16xbf16>
    %cst_70 = arith.constant dense<0.000000e+00> : vector<332x16xf32>
    %86 = tpu.matmul %84, %85, %cst_70 {dimension_numbers = #tpu.dot_dimension_numbers<[1], [0], [0], [1], [0, 0, 1, 1], [], []>} : vector<332x6xf32>, vector<6x16xbf16>, vector<332x16xf32> -> vector<332x16xf32>
    %c44 = arith.constant 44 : index
    %c0_71 = arith.constant 0 : index
    %87 = vector.load %arg5[%c44, %c0_71] : memref<392x6xf32, #tpu.memory_space<vmem>>, vector<332x6xf32>
    %c216 = arith.constant 216 : index
    %c0_72 = arith.constant 0 : index
    %88 = vector.load %arg2[%c216, %c0_72] : memref<1008x128xbf16, #tpu.memory_space<vmem>>, vector<6x16xbf16>
    %cst_73 = arith.constant dense<0.000000e+00> : vector<332x16xf32>
    %89 = tpu.matmul %87, %88, %cst_73 {dimension_numbers = #tpu.dot_dimension_numbers<[1], [0], [0], [1], [0, 0, 1, 1], [], []>} : vector<332x6xf32>, vector<6x16xbf16>, vector<332x16xf32> -> vector<332x16xf32>
    %c45 = arith.constant 45 : index
    %c0_74 = arith.constant 0 : index
    %90 = vector.load %arg5[%c45, %c0_74] : memref<392x6xf32, #tpu.memory_space<vmem>>, vector<332x6xf32>
    %c224 = arith.constant 224 : index
    %c0_75 = arith.constant 0 : index
    %91 = vector.load %arg2[%c224, %c0_75] : memref<1008x128xbf16, #tpu.memory_space<vmem>>, vector<6x16xbf16>
    %cst_76 = arith.constant dense<0.000000e+00> : vector<332x16xf32>
    %92 = tpu.matmul %90, %91, %cst_76 {dimension_numbers = #tpu.dot_dimension_numbers<[1], [0], [0], [1], [0, 0, 1, 1], [], []>} : vector<332x6xf32>, vector<6x16xbf16>, vector<332x16xf32> -> vector<332x16xf32>
    %c46 = arith.constant 46 : index
    %c0_77 = arith.constant 0 : index
    %93 = vector.load %arg5[%c46, %c0_77] : memref<392x6xf32, #tpu.memory_space<vmem>>, vector<332x6xf32>
    %c232 = arith.constant 232 : index
    %c0_78 = arith.constant 0 : index
    %94 = vector.load %arg2[%c232, %c0_78] : memref<1008x128xbf16, #tpu.memory_space<vmem>>, vector<6x16xbf16>
    %cst_79 = arith.constant dense<0.000000e+00> : vector<332x16xf32>
    %95 = tpu.matmul %93, %94, %cst_79 {dimension_numbers = #tpu.dot_dimension_numbers<[1], [0], [0], [1], [0, 0, 1, 1], [], []>} : vector<332x6xf32>, vector<6x16xbf16>, vector<332x16xf32> -> vector<332x16xf32>
    %96 = arith.addf %83, %86 : vector<332x16xf32>
    %97 = arith.addf %89, %92 : vector<332x16xf32>
    %98 = arith.addf %96, %97 : vector<332x16xf32>
    %99 = arith.addf %98, %95 : vector<332x16xf32>
    %c0_80 = arith.constant 0 : index
    %c0_81 = arith.constant 0 : index
    %100 = vector.load %arg6[%c0_80, %c0_81] : memref<332x16xf32, #tpu.memory_space<vmem>>, vector<332x16xf32>
    %101 = arith.addf %100, %99 : vector<332x16xf32>
    %c0_82 = arith.constant 0 : index
    %c0_83 = arith.constant 0 : index
    %102 = vector.load %arg6[%c0_82, %c0_83] : memref<332x16xf32, #tpu.memory_space<vmem>>, vector<332x16xf32>
    tpu.vector_store %arg6[%c0_82, %c0_83], %101 {strides = array<i32>} : memref<332x16xf32, #tpu.memory_space<vmem>>, vector<332x16xf32>,
    %c56 = arith.constant 56 : index
    %c0_84 = arith.constant 0 : index
    %103 = vector.load %arg5[%c56, %c0_84] : memref<392x6xf32, #tpu.memory_space<vmem>>, vector<332x6xf32>
    %c240 = arith.constant 240 : index
    %c0_85 = arith.constant 0 : index
    %104 = vector.load %arg2[%c240, %c0_85] : memref<1008x128xbf16, #tpu.memory_space<vmem>>, vector<6x16xbf16>
    %cst_86 = arith.constant dense<0.000000e+00> : vector<332x16xf32>
    %105 = tpu.matmul %103, %104, %cst_86 {dimension_numbers = #tpu.dot_dimension_numbers<[1], [0], [0], [1], [0, 0, 1, 1], [], []>} : vector<332x6xf32>, vector<6x16xbf16>, vector<332x16xf32> -> vector<332x16xf32>
    %c57 = arith.constant 57 : index
    %c0_87 = arith.constant 0 : index
    %106 = vector.load %arg5[%c57, %c0_87] : memref<392x6xf32, #tpu.memory_space<vmem>>, vector<332x6xf32>
    %c248 = arith.constant 248 : index
    %c0_88 = arith.constant 0 : index
    %107 = vector.load %arg2[%c248, %c0_88] : memref<1008x128xbf16, #tpu.memory_space<vmem>>, vector<6x16xbf16>
    %cst_89 = arith.constant dense<0.000000e+00> : vector<332x16xf32>
    %108 = tpu.matmul %106, %107, %cst_89 {dimension_numbers = #tpu.dot_dimension_numbers<[1], [0], [0], [1], [0, 0, 1, 1], [], []>} : vector<332x6xf32>, vector<6x16xbf16>, vector<332x16xf32> -> vector<332x16xf32>
    %c58 = arith.constant 58 : index
    %c0_90 = arith.constant 0 : index
    %109 = vector.load %arg5[%c58, %c0_90] : memref<392x6xf32, #tpu.memory_space<vmem>>, vector<332x6xf32>
    %c256 = arith.constant 256 : index
    %c0_91 = arith.constant 0 : index
    %110 = vector.load %arg2[%c256, %c0_91] : memref<1008x128xbf16, #tpu.memory_space<vmem>>, vector<6x16xbf16>
    %cst_92 = arith.constant dense<0.000000e+00> : vector<332x16xf32>
    %111 = tpu.matmul %109, %110, %cst_92 {dimension_numbers = #tpu.dot_dimension_numbers<[1], [0], [0], [1], [0, 0, 1, 1], [], []>} : vector<332x6xf32>, vector<6x16xbf16>, vector<332x16xf32> -> vector<332x16xf32>
    %c59 = arith.constant 59 : index
    %c0_93 = arith.constant 0 : index
    %112 = vector.load %arg5[%c59, %c0_93] : memref<392x6xf32, #tpu.memory_space<vmem>>, vector<332x6xf32>
    %c264 = arith.constant 264 : index
    %c0_94 = arith.constant 0 : index
    %113 = vector.load %arg2[%c264, %c0_94] : memref<1008x128xbf16, #tpu.memory_space<vmem>>, vector<6x16xbf16>
    %cst_95 = arith.constant dense<0.000000e+00> : vector<332x16xf32>
    %114 = tpu.matmul %112, %113, %cst_95 {dimension_numbers = #tpu.dot_dimension_numbers<[1], [0], [0], [1], [0, 0, 1, 1], [], []>} : vector<332x6xf32>, vector<6x16xbf16>, vector<332x16xf32> -> vector<332x16xf32>
    %c60 = arith.constant 60 : index
    %c0_96 = arith.constant 0 : index
    %115 = vector.load %arg5[%c60, %c0_96] : memref<392x6xf32, #tpu.memory_space<vmem>>, vector<332x6xf32>
    %c272 = arith.constant 272 : index
    %c0_97 = arith.constant 0 : index
    %116 = vector.load %arg2[%c272, %c0_97] : memref<1008x128xbf16, #tpu.memory_space<vmem>>, vector<6x16xbf16>
    %cst_98 = arith.constant dense<0.000000e+00> : vector<332x16xf32>
    %117 = tpu.matmul %115, %116, %cst_98 {dimension_numbers = #tpu.dot_dimension_numbers<[1], [0], [0], [1], [0, 0, 1, 1], [], []>} : vector<332x6xf32>, vector<6x16xbf16>, vector<332x16xf32> -> vector<332x16xf32>
    %118 = arith.addf %105, %108 : vector<332x16xf32>
    %119 = arith.addf %111, %114 : vector<332x16xf32>
    %120 = arith.addf %118, %119 : vector<332x16xf32>
    %121 = arith.addf %120, %117 : vector<332x16xf32>
    %c0_99 = arith.constant 0 : index
    %c0_100 = arith.constant 0 : index
    %122 = vector.load %arg6[%c0_99, %c0_100] : memref<332x16xf32, #tpu.memory_space<vmem>>, vector<332x16xf32>
    %123 = arith.addf %122, %121 : vector<332x16xf32>
    %c0_101 = arith.constant 0 : index
    %c0_102 = arith.constant 0 : index
    %124 = vector.load %arg6[%c0_101, %c0_102] : memref<332x16xf32, #tpu.memory_space<vmem>>, vector<332x16xf32>
    tpu.vector_store %arg6[%c0_101, %c0_102], %123 {strides = array<i32>} : memref<332x16xf32, #tpu.memory_space<vmem>>, vector<332x16xf32>,
    %c0_103 = arith.constant 0 : index
    %c0_104 = arith.constant 0 : index
    %125 = vector.load %arg6[%c0_103, %c0_104] : memref<332x16xf32, #tpu.memory_space<vmem>>, vector<317x16xf32>
    %c1_105 = arith.constant 1 : index
    %c0_106 = arith.constant 0 : index
    %126 = vector.load %arg6[%c1_105, %c0_106] : memref<332x16xf32, #tpu.memory_space<vmem>>, vector<317x16xf32>
    %127 = arith.maximumf %125, %126 : vector<317x16xf32>
    %c14_107 = arith.constant 14 : index
    %c0_108 = arith.constant 0 : index
    %128 = vector.load %arg6[%c14_107, %c0_108] : memref<332x16xf32, #tpu.memory_space<vmem>>, vector<317x16xf32>
    %c15_109 = arith.constant 15 : index
    %c0_110 = arith.constant 0 : index
    %129 = vector.load %arg6[%c15_109, %c0_110] : memref<332x16xf32, #tpu.memory_space<vmem>>, vector<317x16xf32>
    %130 = arith.maximumf %128, %129 : vector<317x16xf32>
    %131 = arith.maximumf %127, %130 : vector<317x16xf32>
    %c1_111 = arith.constant 1 : index
    %c0_112 = arith.constant 0 : index
    %132 = vector.load %arg3[%c1_111, %c0_112] : memref<8x128xf32, #tpu.memory_space<vmem>>, vector<1x16xf32>
    %133 = vector.broadcast %132 : vector<1x16xf32> to vector<317x16xf32>
    %134 = arith.addf %131, %133 : vector<317x16xf32>
    %cst_113 = arith.constant 0.000000e+00 : f32
    %135 = vector.broadcast %cst_113 : f32 to vector<317x16xf32>
    %136 = arith.maximumf %134, %135 : vector<317x16xf32>
    %c0_114 = arith.constant 0 : index
    %c0_115 = arith.constant 0 : index
    %137 = vector.load %arg7[%c0_114, %c0_115] : memref<317x16xf32, #tpu.memory_space<vmem>>, vector<317x16xf32>
    tpu.vector_store %arg7[%c0_114, %c0_115], %136 {strides = array<i32>} : memref<317x16xf32, #tpu.memory_space<vmem>>, vector<317x16xf32>,
    %c0_116 = arith.constant 0 : index
    %c0_117 = arith.constant 0 : index
    %138 = tpu.strided_load %arg7[%c0_116, %c0_117] {strides = array<i32: 196, 1>} : memref<317x16xf32, #tpu.memory_space<vmem>>, vector<2x16xf32>
    %c280 = arith.constant 280 : index
    %c0_118 = arith.constant 0 : index
    %139 = vector.load %arg2[%c280, %c0_118] : memref<1008x128xbf16, #tpu.memory_space<vmem>>, vector<16x120xbf16>
    %cst_119 = arith.constant dense<0.000000e+00> : vector<2x120xf32>
    %140 = tpu.matmul %138, %139, %cst_119 {dimension_numbers = #tpu.dot_dimension_numbers<[1], [0], [0], [1], [0, 0, 1, 1], [], []>} : vector<2x16xf32>, vector<16x120xbf16>, vector<2x120xf32> -> vector<2x120xf32>
    %c2_120 = arith.constant 2 : index
    %c0_121 = arith.constant 0 : index
    %141 = tpu.strided_load %arg7[%c2_120, %c0_121] {strides = array<i32: 196, 1>} : memref<317x16xf32, #tpu.memory_space<vmem>>, vector<2x16xf32>
    %c296 = arith.constant 296 : index
    %c0_122 = arith.constant 0 : index
    %142 = vector.load %arg2[%c296, %c0_122] : memref<1008x128xbf16, #tpu.memory_space<vmem>>, vector<16x120xbf16>
    %cst_123 = arith.constant dense<0.000000e+00> : vector<2x120xf32>
    %143 = tpu.matmul %141, %142, %cst_123 {dimension_numbers = #tpu.dot_dimension_numbers<[1], [0], [0], [1], [0, 0, 1, 1], [], []>} : vector<2x16xf32>, vector<16x120xbf16>, vector<2x120xf32> -> vector<2x120xf32>
    %c4_124 = arith.constant 4 : index
    %c0_125 = arith.constant 0 : index
    %144 = tpu.strided_load %arg7[%c4_124, %c0_125] {strides = array<i32: 196, 1>} : memref<317x16xf32, #tpu.memory_space<vmem>>, vector<2x16xf32>
    %c312 = arith.constant 312 : index
    %c0_126 = arith.constant 0 : index
    %145 = vector.load %arg2[%c312, %c0_126] : memref<1008x128xbf16, #tpu.memory_space<vmem>>, vector<16x120xbf16>
    %cst_127 = arith.constant dense<0.000000e+00> : vector<2x120xf32>
    %146 = tpu.matmul %144, %145, %cst_127 {dimension_numbers = #tpu.dot_dimension_numbers<[1], [0], [0], [1], [0, 0, 1, 1], [], []>} : vector<2x16xf32>, vector<16x120xbf16>, vector<2x120xf32> -> vector<2x120xf32>
    %c6 = arith.constant 6 : index
    %c0_128 = arith.constant 0 : index
    %147 = tpu.strided_load %arg7[%c6, %c0_128] {strides = array<i32: 196, 1>} : memref<317x16xf32, #tpu.memory_space<vmem>>, vector<2x16xf32>
    %c328 = arith.constant 328 : index
    %c0_129 = arith.constant 0 : index
    %148 = vector.load %arg2[%c328, %c0_129] : memref<1008x128xbf16, #tpu.memory_space<vmem>>, vector<16x120xbf16>
    %cst_130 = arith.constant dense<0.000000e+00> : vector<2x120xf32>
    %149 = tpu.matmul %147, %148, %cst_130 {dimension_numbers = #tpu.dot_dimension_numbers<[1], [0], [0], [1], [0, 0, 1, 1], [], []>} : vector<2x16xf32>, vector<16x120xbf16>, vector<2x120xf32> -> vector<2x120xf32>
    %c8 = arith.constant 8 : index
    %c0_131 = arith.constant 0 : index
    %150 = tpu.strided_load %arg7[%c8, %c0_131] {strides = array<i32: 196, 1>} : memref<317x16xf32, #tpu.memory_space<vmem>>, vector<2x16xf32>
    %c344 = arith.constant 344 : index
    %c0_132 = arith.constant 0 : index
    %151 = vector.load %arg2[%c344, %c0_132] : memref<1008x128xbf16, #tpu.memory_space<vmem>>, vector<16x120xbf16>
    %cst_133 = arith.constant dense<0.000000e+00> : vector<2x120xf32>
    %152 = tpu.matmul %150, %151, %cst_133 {dimension_numbers = #tpu.dot_dimension_numbers<[1], [0], [0], [1], [0, 0, 1, 1], [], []>} : vector<2x16xf32>, vector<16x120xbf16>, vector<2x120xf32> -> vector<2x120xf32>
    %c28_134 = arith.constant 28 : index
    %c0_135 = arith.constant 0 : index
    %153 = tpu.strided_load %arg7[%c28_134, %c0_135] {strides = array<i32: 196, 1>} : memref<317x16xf32, #tpu.memory_space<vmem>>, vector<2x16xf32>
    %c360 = arith.constant 360 : index
    %c0_136 = arith.constant 0 : index
    %154 = vector.load %arg2[%c360, %c0_136] : memref<1008x128xbf16, #tpu.memory_space<vmem>>, vector<16x120xbf16>
    %cst_137 = arith.constant dense<0.000000e+00> : vector<2x120xf32>
    %155 = tpu.matmul %153, %154, %cst_137 {dimension_numbers = #tpu.dot_dimension_numbers<[1], [0], [0], [1], [0, 0, 1, 1], [], []>} : vector<2x16xf32>, vector<16x120xbf16>, vector<2x120xf32> -> vector<2x120xf32>
    %c30_138 = arith.constant 30 : index
    %c0_139 = arith.constant 0 : index
    %156 = tpu.strided_load %arg7[%c30_138, %c0_139] {strides = array<i32: 196, 1>} : memref<317x16xf32, #tpu.memory_space<vmem>>, vector<2x16xf32>
    %c376 = arith.constant 376 : index
    %c0_140 = arith.constant 0 : index
    %157 = vector.load %arg2[%c376, %c0_140] : memref<1008x128xbf16, #tpu.memory_space<vmem>>, vector<16x120xbf16>
    %cst_141 = arith.constant dense<0.000000e+00> : vector<2x120xf32>
    %158 = tpu.matmul %156, %157, %cst_141 {dimension_numbers = #tpu.dot_dimension_numbers<[1], [0], [0], [1], [0, 0, 1, 1], [], []>} : vector<2x16xf32>, vector<16x120xbf16>, vector<2x120xf32> -> vector<2x120xf32>
    %c32_142 = arith.constant 32 : index
    %c0_143 = arith.constant 0 : index
    %159 = tpu.strided_load %arg7[%c32_142, %c0_143] {strides = array<i32: 196, 1>} : memref<317x16xf32, #tpu.memory_space<vmem>>, vector<2x16xf32>
    %c392 = arith.constant 392 : index
    %c0_144 = arith.constant 0 : index
    %160 = vector.load %arg2[%c392, %c0_144] : memref<1008x128xbf16, #tpu.memory_space<vmem>>, vector<16x120xbf16>
    %cst_145 = arith.constant dense<0.000000e+00> : vector<2x120xf32>
    %161 = tpu.matmul %159, %160, %cst_145 {dimension_numbers = #tpu.dot_dimension_numbers<[1], [0], [0], [1], [0, 0, 1, 1], [], []>} : vector<2x16xf32>, vector<16x120xbf16>, vector<2x120xf32> -> vector<2x120xf32>
    %c34 = arith.constant 34 : index
    %c0_146 = arith.constant 0 : index
    %162 = tpu.strided_load %arg7[%c34, %c0_146] {strides = array<i32: 196, 1>} : memref<317x16xf32, #tpu.memory_space<vmem>>, vector<2x16xf32>
    %c408 = arith.constant 408 : index
    %c0_147 = arith.constant 0 : index
    %163 = vector.load %arg2[%c408, %c0_147] : memref<1008x128xbf16, #tpu.memory_space<vmem>>, vector<16x120xbf16>
    %cst_148 = arith.constant dense<0.000000e+00> : vector<2x120xf32>
    %164 = tpu.matmul %162, %163, %cst_148 {dimension_numbers = #tpu.dot_dimension_numbers<[1], [0], [0], [1], [0, 0, 1, 1], [], []>} : vector<2x16xf32>, vector<16x120xbf16>, vector<2x120xf32> -> vector<2x120xf32>
    %c36 = arith.constant 36 : index
    %c0_149 = arith.constant 0 : index
    %165 = tpu.strided_load %arg7[%c36, %c0_149] {strides = array<i32: 196, 1>} : memref<317x16xf32, #tpu.memory_space<vmem>>, vector<2x16xf32>
    %c424 = arith.constant 424 : index
    %c0_150 = arith.constant 0 : index
    %166 = vector.load %arg2[%c424, %c0_150] : memref<1008x128xbf16, #tpu.memory_space<vmem>>, vector<16x120xbf16>
    %cst_151 = arith.constant dense<0.000000e+00> : vector<2x120xf32>
    %167 = tpu.matmul %165, %166, %cst_151 {dimension_numbers = #tpu.dot_dimension_numbers<[1], [0], [0], [1], [0, 0, 1, 1], [], []>} : vector<2x16xf32>, vector<16x120xbf16>, vector<2x120xf32> -> vector<2x120xf32>
    %c56_152 = arith.constant 56 : index
    %c0_153 = arith.constant 0 : index
    %168 = tpu.strided_load %arg7[%c56_152, %c0_153] {strides = array<i32: 196, 1>} : memref<317x16xf32, #tpu.memory_space<vmem>>, vector<2x16xf32>
    %c440 = arith.constant 440 : index
    %c0_154 = arith.constant 0 : index
    %169 = vector.load %arg2[%c440, %c0_154] : memref<1008x128xbf16, #tpu.memory_space<vmem>>, vector<16x120xbf16>
    %cst_155 = arith.constant dense<0.000000e+00> : vector<2x120xf32>
    %170 = tpu.matmul %168, %169, %cst_155 {dimension_numbers = #tpu.dot_dimension_numbers<[1], [0], [0], [1], [0, 0, 1, 1], [], []>} : vector<2x16xf32>, vector<16x120xbf16>, vector<2x120xf32> -> vector<2x120xf32>
    %c58_156 = arith.constant 58 : index
    %c0_157 = arith.constant 0 : index
    %171 = tpu.strided_load %arg7[%c58_156, %c0_157] {strides = array<i32: 196, 1>} : memref<317x16xf32, #tpu.memory_space<vmem>>, vector<2x16xf32>
    %c456 = arith.constant 456 : index
    %c0_158 = arith.constant 0 : index
    %172 = vector.load %arg2[%c456, %c0_158] : memref<1008x128xbf16, #tpu.memory_space<vmem>>, vector<16x120xbf16>
    %cst_159 = arith.constant dense<0.000000e+00> : vector<2x120xf32>
    %173 = tpu.matmul %171, %172, %cst_159 {dimension_numbers = #tpu.dot_dimension_numbers<[1], [0], [0], [1], [0, 0, 1, 1], [], []>} : vector<2x16xf32>, vector<16x120xbf16>, vector<2x120xf32> -> vector<2x120xf32>
    %c60_160 = arith.constant 60 : index
    %c0_161 = arith.constant 0 : index
    %174 = tpu.strided_load %arg7[%c60_160, %c0_161] {strides = array<i32: 196, 1>} : memref<317x16xf32, #tpu.memory_space<vmem>>, vector<2x16xf32>
    %c472 = arith.constant 472 : index
    %c0_162 = arith.constant 0 : index
    %175 = vector.load %arg2[%c472, %c0_162] : memref<1008x128xbf16, #tpu.memory_space<vmem>>, vector<16x120xbf16>
    %cst_163 = arith.constant dense<0.000000e+00> : vector<2x120xf32>
    %176 = tpu.matmul %174, %175, %cst_163 {dimension_numbers = #tpu.dot_dimension_numbers<[1], [0], [0], [1], [0, 0, 1, 1], [], []>} : vector<2x16xf32>, vector<16x120xbf16>, vector<2x120xf32> -> vector<2x120xf32>
    %c62 = arith.constant 62 : index
    %c0_164 = arith.constant 0 : index
    %177 = tpu.strided_load %arg7[%c62, %c0_164] {strides = array<i32: 196, 1>} : memref<317x16xf32, #tpu.memory_space<vmem>>, vector<2x16xf32>
    %c488 = arith.constant 488 : index
    %c0_165 = arith.constant 0 : index
    %178 = vector.load %arg2[%c488, %c0_165] : memref<1008x128xbf16, #tpu.memory_space<vmem>>, vector<16x120xbf16>
    %cst_166 = arith.constant dense<0.000000e+00> : vector<2x120xf32>
    %179 = tpu.matmul %177, %178, %cst_166 {dimension_numbers = #tpu.dot_dimension_numbers<[1], [0], [0], [1], [0, 0, 1, 1], [], []>} : vector<2x16xf32>, vector<16x120xbf16>, vector<2x120xf32> -> vector<2x120xf32>
    %c64 = arith.constant 64 : index
    %c0_167 = arith.constant 0 : index
    %180 = tpu.strided_load %arg7[%c64, %c0_167] {strides = array<i32: 196, 1>} : memref<317x16xf32, #tpu.memory_space<vmem>>, vector<2x16xf32>
    %c504 = arith.constant 504 : index
    %c0_168 = arith.constant 0 : index
    %181 = vector.load %arg2[%c504, %c0_168] : memref<1008x128xbf16, #tpu.memory_space<vmem>>, vector<16x120xbf16>
    %cst_169 = arith.constant dense<0.000000e+00> : vector<2x120xf32>
    %182 = tpu.matmul %180, %181, %cst_169 {dimension_numbers = #tpu.dot_dimension_numbers<[1], [0], [0], [1], [0, 0, 1, 1], [], []>} : vector<2x16xf32>, vector<16x120xbf16>, vector<2x120xf32> -> vector<2x120xf32>
    %c84 = arith.constant 84 : index
    %c0_170 = arith.constant 0 : index
    %183 = tpu.strided_load %arg7[%c84, %c0_170] {strides = array<i32: 196, 1>} : memref<317x16xf32, #tpu.memory_space<vmem>>, vector<2x16xf32>
    %c520 = arith.constant 520 : index
    %c0_171 = arith.constant 0 : index
    %184 = vector.load %arg2[%c520, %c0_171] : memref<1008x128xbf16, #tpu.memory_space<vmem>>, vector<16x120xbf16>
    %cst_172 = arith.constant dense<0.000000e+00> : vector<2x120xf32>
    %185 = tpu.matmul %183, %184, %cst_172 {dimension_numbers = #tpu.dot_dimension_numbers<[1], [0], [0], [1], [0, 0, 1, 1], [], []>} : vector<2x16xf32>, vector<16x120xbf16>, vector<2x120xf32> -> vector<2x120xf32>
    %c86 = arith.constant 86 : index
    %c0_173 = arith.constant 0 : index
    %186 = tpu.strided_load %arg7[%c86, %c0_173] {strides = array<i32: 196, 1>} : memref<317x16xf32, #tpu.memory_space<vmem>>, vector<2x16xf32>
    %c536 = arith.constant 536 : index
    %c0_174 = arith.constant 0 : index
    %187 = vector.load %arg2[%c536, %c0_174] : memref<1008x128xbf16, #tpu.memory_space<vmem>>, vector<16x120xbf16>
    %cst_175 = arith.constant dense<0.000000e+00> : vector<2x120xf32>
    %188 = tpu.matmul %186, %187, %cst_175 {dimension_numbers = #tpu.dot_dimension_numbers<[1], [0], [0], [1], [0, 0, 1, 1], [], []>} : vector<2x16xf32>, vector<16x120xbf16>, vector<2x120xf32> -> vector<2x120xf32>
    %c88_176 = arith.constant 88 : index
    %c0_177 = arith.constant 0 : index
    %189 = tpu.strided_load %arg7[%c88_176, %c0_177] {strides = array<i32: 196, 1>} : memref<317x16xf32, #tpu.memory_space<vmem>>, vector<2x16xf32>
    %c552 = arith.constant 552 : index
    %c0_178 = arith.constant 0 : index
    %190 = vector.load %arg2[%c552, %c0_178] : memref<1008x128xbf16, #tpu.memory_space<vmem>>, vector<16x120xbf16>
    %cst_179 = arith.constant dense<0.000000e+00> : vector<2x120xf32>
    %191 = tpu.matmul %189, %190, %cst_179 {dimension_numbers = #tpu.dot_dimension_numbers<[1], [0], [0], [1], [0, 0, 1, 1], [], []>} : vector<2x16xf32>, vector<16x120xbf16>, vector<2x120xf32> -> vector<2x120xf32>
    %c90 = arith.constant 90 : index
    %c0_180 = arith.constant 0 : index
    %192 = tpu.strided_load %arg7[%c90, %c0_180] {strides = array<i32: 196, 1>} : memref<317x16xf32, #tpu.memory_space<vmem>>, vector<2x16xf32>
    %c568 = arith.constant 568 : index
    %c0_181 = arith.constant 0 : index
    %193 = vector.load %arg2[%c568, %c0_181] : memref<1008x128xbf16, #tpu.memory_space<vmem>>, vector<16x120xbf16>
    %cst_182 = arith.constant dense<0.000000e+00> : vector<2x120xf32>
    %194 = tpu.matmul %192, %193, %cst_182 {dimension_numbers = #tpu.dot_dimension_numbers<[1], [0], [0], [1], [0, 0, 1, 1], [], []>} : vector<2x16xf32>, vector<16x120xbf16>, vector<2x120xf32> -> vector<2x120xf32>
    %c92 = arith.constant 92 : index
    %c0_183 = arith.constant 0 : index
    %195 = tpu.strided_load %arg7[%c92, %c0_183] {strides = array<i32: 196, 1>} : memref<317x16xf32, #tpu.memory_space<vmem>>, vector<2x16xf32>
    %c584 = arith.constant 584 : index
    %c0_184 = arith.constant 0 : index
    %196 = vector.load %arg2[%c584, %c0_184] : memref<1008x128xbf16, #tpu.memory_space<vmem>>, vector<16x120xbf16>
    %cst_185 = arith.constant dense<0.000000e+00> : vector<2x120xf32>
    %197 = tpu.matmul %195, %196, %cst_185 {dimension_numbers = #tpu.dot_dimension_numbers<[1], [0], [0], [1], [0, 0, 1, 1], [], []>} : vector<2x16xf32>, vector<16x120xbf16>, vector<2x120xf32> -> vector<2x120xf32>
    %c112_186 = arith.constant 112 : index
    %c0_187 = arith.constant 0 : index
    %198 = tpu.strided_load %arg7[%c112_186, %c0_187] {strides = array<i32: 196, 1>} : memref<317x16xf32, #tpu.memory_space<vmem>>, vector<2x16xf32>
    %c600 = arith.constant 600 : index
    %c0_188 = arith.constant 0 : index
    %199 = vector.load %arg2[%c600, %c0_188] : memref<1008x128xbf16, #tpu.memory_space<vmem>>, vector<16x120xbf16>
    %cst_189 = arith.constant dense<0.000000e+00> : vector<2x120xf32>
    %200 = tpu.matmul %198, %199, %cst_189 {dimension_numbers = #tpu.dot_dimension_numbers<[1], [0], [0], [1], [0, 0, 1, 1], [], []>} : vector<2x16xf32>, vector<16x120xbf16>, vector<2x120xf32> -> vector<2x120xf32>
    %c114 = arith.constant 114 : index
    %c0_190 = arith.constant 0 : index
    %201 = tpu.strided_load %arg7[%c114, %c0_190] {strides = array<i32: 196, 1>} : memref<317x16xf32, #tpu.memory_space<vmem>>, vector<2x16xf32>
    %c616 = arith.constant 616 : index
    %c0_191 = arith.constant 0 : index
    %202 = vector.load %arg2[%c616, %c0_191] : memref<1008x128xbf16, #tpu.memory_space<vmem>>, vector<16x120xbf16>
    %cst_192 = arith.constant dense<0.000000e+00> : vector<2x120xf32>
    %203 = tpu.matmul %201, %202, %cst_192 {dimension_numbers = #tpu.dot_dimension_numbers<[1], [0], [0], [1], [0, 0, 1, 1], [], []>} : vector<2x16xf32>, vector<16x120xbf16>, vector<2x120xf32> -> vector<2x120xf32>
    %c116 = arith.constant 116 : index
    %c0_193 = arith.constant 0 : index
    %204 = tpu.strided_load %arg7[%c116, %c0_193] {strides = array<i32: 196, 1>} : memref<317x16xf32, #tpu.memory_space<vmem>>, vector<2x16xf32>
    %c632 = arith.constant 632 : index
    %c0_194 = arith.constant 0 : index
    %205 = vector.load %arg2[%c632, %c0_194] : memref<1008x128xbf16, #tpu.memory_space<vmem>>, vector<16x120xbf16>
    %cst_195 = arith.constant dense<0.000000e+00> : vector<2x120xf32>
    %206 = tpu.matmul %204, %205, %cst_195 {dimension_numbers = #tpu.dot_dimension_numbers<[1], [0], [0], [1], [0, 0, 1, 1], [], []>} : vector<2x16xf32>, vector<16x120xbf16>, vector<2x120xf32> -> vector<2x120xf32>
    %c118 = arith.constant 118 : index
    %c0_196 = arith.constant 0 : index
    %207 = tpu.strided_load %arg7[%c118, %c0_196] {strides = array<i32: 196, 1>} : memref<317x16xf32, #tpu.memory_space<vmem>>, vector<2x16xf32>
    %c648 = arith.constant 648 : index
    %c0_197 = arith.constant 0 : index
    %208 = vector.load %arg2[%c648, %c0_197] : memref<1008x128xbf16, #tpu.memory_space<vmem>>, vector<16x120xbf16>
    %cst_198 = arith.constant dense<0.000000e+00> : vector<2x120xf32>
    %209 = tpu.matmul %207, %208, %cst_198 {dimension_numbers = #tpu.dot_dimension_numbers<[1], [0], [0], [1], [0, 0, 1, 1], [], []>} : vector<2x16xf32>, vector<16x120xbf16>, vector<2x120xf32> -> vector<2x120xf32>
    %c120_199 = arith.constant 120 : index
    %c0_200 = arith.constant 0 : index
    %210 = tpu.strided_load %arg7[%c120_199, %c0_200] {strides = array<i32: 196, 1>} : memref<317x16xf32, #tpu.memory_space<vmem>>, vector<2x16xf32>
    %c664 = arith.constant 664 : index
    %c0_201 = arith.constant 0 : index
    %211 = vector.load %arg2[%c664, %c0_201] : memref<1008x128xbf16, #tpu.memory_space<vmem>>, vector<16x120xbf16>
    %cst_202 = arith.constant dense<0.000000e+00> : vector<2x120xf32>
    %212 = tpu.matmul %210, %211, %cst_202 {dimension_numbers = #tpu.dot_dimension_numbers<[1], [0], [0], [1], [0, 0, 1, 1], [], []>} : vector<2x16xf32>, vector<16x120xbf16>, vector<2x120xf32> -> vector<2x120xf32>
    %213 = arith.addf %140, %143 : vector<2x120xf32>
    %214 = arith.addf %146, %149 : vector<2x120xf32>
    %215 = arith.addf %152, %155 : vector<2x120xf32>
    %216 = arith.addf %158, %161 : vector<2x120xf32>
    %217 = arith.addf %164, %167 : vector<2x120xf32>
    %218 = arith.addf %170, %173 : vector<2x120xf32>
    %219 = arith.addf %176, %179 : vector<2x120xf32>
    %220 = arith.addf %182, %185 : vector<2x120xf32>
    %221 = arith.addf %188, %191 : vector<2x120xf32>
    %222 = arith.addf %194, %197 : vector<2x120xf32>
    %223 = arith.addf %200, %203 : vector<2x120xf32>
    %224 = arith.addf %206, %209 : vector<2x120xf32>
    %225 = arith.addf %213, %214 : vector<2x120xf32>
    %226 = arith.addf %215, %216 : vector<2x120xf32>
    %227 = arith.addf %217, %218 : vector<2x120xf32>
    %228 = arith.addf %219, %220 : vector<2x120xf32>
    %229 = arith.addf %221, %222 : vector<2x120xf32>
    %230 = arith.addf %223, %224 : vector<2x120xf32>
    %231 = arith.addf %225, %226 : vector<2x120xf32>
    %232 = arith.addf %227, %228 : vector<2x120xf32>
    %233 = arith.addf %229, %230 : vector<2x120xf32>
    %234 = arith.addf %231, %232 : vector<2x120xf32>
    %235 = arith.addf %233, %212 : vector<2x120xf32>
    %236 = arith.addf %234, %235 : vector<2x120xf32>
    %c2_203 = arith.constant 2 : index
    %c0_204 = arith.constant 0 : index
    %237 = vector.load %arg3[%c2_203, %c0_204] : memref<8x128xf32, #tpu.memory_space<vmem>>, vector<1x120xf32>
    %238 = vector.broadcast %237 : vector<1x120xf32> to vector<2x120xf32>
    %239 = arith.addf %236, %238 : vector<2x120xf32>
    %cst_205 = arith.constant 0.000000e+00 : f32
    %240 = vector.broadcast %cst_205 : f32 to vector<2x120xf32>
    %241 = arith.maximumf %239, %240 : vector<2x120xf32>
    %c680 = arith.constant 680 : index
    %c0_206 = arith.constant 0 : index
    %242 = vector.load %arg2[%c680, %c0_206] : memref<1008x128xbf16, #tpu.memory_space<vmem>>, vector<120x84xbf16>
    %cst_207 = arith.constant dense<0.000000e+00> : vector<2x84xf32>
    %243 = tpu.matmul %241, %242, %cst_207 {dimension_numbers = #tpu.dot_dimension_numbers<[1], [0], [0], [1], [0, 0, 1, 1], [], []>} : vector<2x120xf32>, vector<120x84xbf16>, vector<2x84xf32> -> vector<2x84xf32>
    %c3_208 = arith.constant 3 : index
    %c0_209 = arith.constant 0 : index
    %244 = vector.load %arg3[%c3_208, %c0_209] : memref<8x128xf32, #tpu.memory_space<vmem>>, vector<1x84xf32>
    %245 = vector.broadcast %244 : vector<1x84xf32> to vector<2x84xf32>
    %246 = arith.addf %243, %245 : vector<2x84xf32>
    %cst_210 = arith.constant 0.000000e+00 : f32
    %247 = vector.broadcast %cst_210 : f32 to vector<2x84xf32>
    %248 = arith.maximumf %246, %247 : vector<2x84xf32>
    %c800 = arith.constant 800 : index
    %c0_211 = arith.constant 0 : index
    %249 = vector.load %arg2[%c800, %c0_211] : memref<1008x128xbf16, #tpu.memory_space<vmem>>, vector<84x84xbf16>
    %cst_212 = arith.constant dense<0.000000e+00> : vector<2x84xf32>
    %250 = tpu.matmul %248, %249, %cst_212 {dimension_numbers = #tpu.dot_dimension_numbers<[1], [0], [0], [1], [0, 0, 1, 1], [], []>} : vector<2x84xf32>, vector<84x84xbf16>, vector<2x84xf32> -> vector<2x84xf32>
    %c4_213 = arith.constant 4 : index
    %c0_214 = arith.constant 0 : index
    %251 = vector.load %arg3[%c4_213, %c0_214] : memref<8x128xf32, #tpu.memory_space<vmem>>, vector<1x84xf32>
    %252 = vector.broadcast %251 : vector<1x84xf32> to vector<2x84xf32>
    %253 = arith.addf %250, %252 : vector<2x84xf32>
    %cst_215 = arith.constant 0.000000e+00 : f32
    %254 = vector.broadcast %cst_215 : f32 to vector<2x84xf32>
    %255 = arith.maximumf %253, %254 : vector<2x84xf32>
    %c888 = arith.constant 888 : index
    %c0_216 = arith.constant 0 : index
    %256 = vector.load %arg2[%c888, %c0_216] : memref<1008x128xbf16, #tpu.memory_space<vmem>>, vector<84x32xbf16>
    %cst_217 = arith.constant dense<0.000000e+00> : vector<2x32xf32>
    %257 = tpu.matmul %255, %256, %cst_217 {dimension_numbers = #tpu.dot_dimension_numbers<[1], [0], [0], [1], [0, 0, 1, 1], [], []>} : vector<2x84xf32>, vector<84x32xbf16>, vector<2x32xf32> -> vector<2x32xf32>
    %c5 = arith.constant 5 : index
    %c0_218 = arith.constant 0 : index
    %258 = vector.load %arg3[%c5, %c0_218] : memref<8x128xf32, #tpu.memory_space<vmem>>, vector<1x32xf32>
    %259 = vector.broadcast %258 : vector<1x32xf32> to vector<2x32xf32>
    %260 = arith.addf %257, %259 : vector<2x32xf32>
    %261 = arith.mulf %260, %260 : vector<2x32xf32>
    %cst_219 = arith.constant dense<0.000000e+00> : vector<2xf32>
    %262 = vector.multi_reduction <add>, %261, %cst_219 [1] : vector<2x32xf32> to vector<2xf32>
    %263 = vector.shape_cast %262 : vector<2xf32> to vector<2x1xf32>
    %cst_220 = arith.constant 1.000000e-24 : f32
    %264 = vector.broadcast %cst_220 : f32 to vector<2x1xf32>
    %265 = arith.maximumf %263, %264 : vector<2x1xf32>
    %266 = math.rsqrt %265 : vector<2x1xf32>
    %267 = vector.broadcast %266 : vector<2x1xf32> to vector<2x32xf32>
    %268 = arith.mulf %260, %267 : vector<2x32xf32>
    %c976 = arith.constant 976 : index
    %c0_221 = arith.constant 0 : index
    %269 = vector.load %arg2[%c976, %c0_221] : memref<1008x128xbf16, #tpu.memory_space<vmem>>, vector<32x10xbf16>
    %cst_222 = arith.constant dense<0.000000e+00> : vector<2x10xf32>
    %270 = tpu.matmul %268, %269, %cst_222 {dimension_numbers = #tpu.dot_dimension_numbers<[1], [0], [0], [1], [0, 0, 1, 1], [], []>} : vector<2x32xf32>, vector<32x10xbf16>, vector<2x10xf32> -> vector<2x10xf32>
    %c0_223 = arith.constant 0 : index
    %c0_224 = arith.constant 0 : index
    %c0_225 = arith.constant 0 : index
    %271 = vector.load %arg4[%c0_223, %c0_224, %c0_225] : memref<1x2x10xf32, #tpu.memory_space<vmem>>, vector<1x2x10xf32>
    %272 = vector.shape_cast %271 : vector<1x2x10xf32> to vector<2x10xf32>
    %273 = vector.shape_cast %270 : vector<2x10xf32> to vector<1x2x10xf32>
    tpu.vector_store %arg4[%c0_223, %c0_224, %c0_225], %273 {strides = array<i32>} : memref<1x2x10xf32, #tpu.memory_space<vmem>>, vector<1x2x10xf32>,
    return
  }
  func.func @transform_0(%arg0: i32) -> (i32, i32, i32) {
    %c0_i32 = arith.constant 0 : i32
    %c0_i32_0 = arith.constant 0 : i32
    %c0_i32_1 = arith.constant 0 : i32
    return %arg0, %c0_i32, %c0_i32_0 : i32, i32, i32
  }
  func.func @transform_1(%arg0: i32) -> (i32, i32) {
    %c0_i32 = arith.constant 0 : i32
    %c0_i32_0 = arith.constant 0 : i32
    %c0_i32_1 = arith.constant 0 : i32
    return %c0_i32, %c0_i32_0 : i32, i32
  }
  func.func @transform_2(%arg0: i32) -> (i32, i32) {
    %c0_i32 = arith.constant 0 : i32
    %c0_i32_0 = arith.constant 0 : i32
    %c0_i32_1 = arith.constant 0 : i32
    return %c0_i32, %c0_i32_0 : i32, i32
  }
  func.func @transform_3(%arg0: i32) -> (i32, i32, i32) {
    %c0_i32 = arith.constant 0 : i32
    %c0_i32_0 = arith.constant 0 : i32
    %c0_i32_1 = arith.constant 0 : i32
    return %arg0, %c0_i32, %c0_i32_0 : i32, i32, i32
  }
}

</mosaic_0001>

<bundles_post_ra>
// kernel: model_fedcon_text_forward.1
= control target key start
LH: loop header
LB: loop body
LE: loop exit
PB: predicated region body
PF: predicated region fallthrough
CT: control target
= control target key end

     0   :  { %8 = vsyncpa [#allocation6], 0  ;;  %s25305_s0 = inlined_call_operand.vmem [shape: bf16[2,1568,75], index: 0, kind: input, shape index: {}]   ;;  %s25306_s1 = inlined_call_operand.vmem [shape: bf16[1008,128], index: 1, kind: input, shape index: {}]   ;;  %s25307_s2 = inlined_call_operand.vmem [shape: f32[8,128], index: 2, kind: input, shape index: {}]   ;;  %s25308_s3 = inlined_call_operand.hbm [shape: f32[2,2,10], index: 3, kind: output, shape index: {}]  }
   0x1   :  { %10 = vsyncpa [#allocation6 + $0x1], 0  ;;  %s21560_s12 = smov 0   ;;  %s21562_s13 = smov 0  }
   0x2   :  { %s21564_s14 = smov 0   ;;  %s21566_s15 = smov 0  }
   0x3 LB: > { %s21581_s16 = sadd.s32 4294967295, %s21534_s15   ;;  %s15799_s17 = sadd.s32 4294967294, %s21534_s15   ;;  %s21534_s15 = sphi %s21566_s15, %s25774_s15   ;;  %s21530_s14 = sphi %s21564_s14, %s25773_s14   ;;  %s21526_s13 = sphi %s21562_s13, %s25772_s13   ;;  %s21522_s12 = sphi %s21560_s12, %s25771_s12  }
   0x4   : > { %s21585_s18 = sadd.s32 1, %s21534_s15   ;;  %s91_s19 = sadd.s32 1, %s21530_s14 }
   0x5   : > { %s88_s20 = ssub.s32 %s21534_s15, %s21585_s18  ;;  %p101_p0 = scmp.ne.s32.totalorder %s21530_s14, %s21526_s13 }
   0x6   : > { %p89_p1 = scmp.eq.s32.totalorder %s88_s20, 0  ;;  %p102_p2 = scmp.eq.s32.totalorder %s21581_s16, 1 }
   0x7   : > { %p107_p3 = scmp.ne.s32.totalorder %s21526_s13, %s21522_s12  ;;  %p108_p4 = scmp.eq.s32.totalorder %s15799_s17, 1 }
   0x8   : > { %s21596_s21 = scalar_select %p89_p1, %s21530_s14, %s91_s19  }
   0x9   : > { %p21598_p5 = por %p102_p2, %p101_p0  ;;  %p21602_p6 = por %p108_p4, %p107_p3 }
   0xa   : > { %p15802_p7 = scmp.ge.s32.totalorder %s21534_s15, 1  ;;  %p140_p8 = scmp.lt.s32.totalorder %s21534_s15, 3 }
   0xc   : > { %p141_p9 = pnand %p15802_p7, %p140_p8 }
   0xe   : > { %144 = sbr.rel (%p141_p9) target bundleno = 3354 (0xd1a), region = 32 }
  0x15   : > { %v21319_v0 = vld [vmem:[%s25306_s1] sm:$0xff]   ;;  %v21320_v1 = vld [vmem:[%s25306_s1 + $0x8] sm:$0xff]   ;;  %vm1190_vm0 = vcmask 1044480   ;;  %vm1191_vm1 = vcmask 1045504   ;;  %v21321_v2 = vld [vmem:[%s25306_s1 + $0x10] sm:$0xff]   ;;  %v21536_v3 = vmov 65535  }
  0x16   : > { %18396 = vmatprep.subr.bf16.mxu0 %v21319_v0  ;;  %v1192_v4 = vsel %vm1190_vm0, 4294967295, %v21536_v3  ;;  %p164_p10 = scmp.lt.s32.totalorder %s21581_s16, 1  ;;  %v21322_v5 = vld [vmem:[%s25306_s1 + $0x18] sm:$0xff]   ;;  %v21323_v6 = vld [vmem:[%s25306_s1 + $0x20] sm:$0x3f]   ;;  %vm895_vm2 = vcmask 613376  }
  0x17   : > { %18397 = vmatpush3.bf16.msra.mxu0 %v21319_v0  ;;  %v1193_v7 = vsel %vm1191_vm1, %v1192_v4, 0  ;;  %vm2526_vm3 = vcmask 1042432   ;;  %vm2264_vm4 = vcmask 48128   ;;  %vm4474_vm5 = vcmask 130048   ;;  %s17139_s10 = sshll.u32 %s21581_s16, 5 }
  0x18   : > { %18398 = vmatprep.subr.bf16.mxu0 %v21320_v1  ;;  %s165_s7 = scalar_select %p164_p10, %s21581_s16, 1  ;;  %v1195_v8 = vand.u32 %v21323_v6, %v1193_v7  ;;  %vm4516_vm6 = vcmask 125952   ;;  %vm21538_vm7 = vmmov 0   ;;  %vm14062_vm8 = vcmask 126976  }
  0x19   : > { %vm15426_vm9 = vcmask 1043456   ;;  %vm15422_vm10 = vcmask 982016   ;;  %vm15522_vm11 = vcmask 1041408   ;;  %vm15518_vm12 = vcmask 687104   ;;  %s25263_s24 = scalar_lea.hbm %s25308_s3, %s17139_s10  ;;  %s21539_s16 = smov [#allocation5]  }
  0x1a   : > { %s21276_s8 = smul.u32 784, %s165_s7  ;;  %vm15659_vm13 = vcmask 254976   ;;  %vm15682_vm14 = vcmask 261120   ;;  %vm15724_vm15 = vcmask 74752   ;;  %s21476_s27 = sshll.u32 %s21539_s16, 4  ;;  %s21477_s27 = int_to_ptr.vmem [resolvable:$false] %s21476_s27 }
  0x1b   : > { %18399 = vmatpush3.bf16.msra.mxu0 %v21320_v1  ;;  %s21478_s28 = scalar_lea.vmem %s21477_s27, 64 }
  0x1c   : > { %18400 = vmatprep.subr.bf16.mxu0 %v21321_v2  ;;  %s21628_s11 = scalar_lea.vmem %s25305_s0, %s21276_s8  ;;  %s161_s8 = sand.u32 1, %s21526_s13  }
  0x1d   : > { %v21324_v9 = vld [vmem:[%s21628_s11] sm:$0xff]   ;;  %v21325_v10 = vld [vmem:[%s21628_s11 + $0x8] sm:$0xff]   ;;  %v21326_v11 = vld [vmem:[%s21628_s11 + $0x10] sm:$0xff]   ;;  %s15803_s9 = sshll.u32 %s161_s8, 1  ;;  %s15727_s25 = scalar_lea.sflag [#allocation6], %s161_s8 }
  0x1e   : > { %18406 = vmatprep.mubr.msk.bf16.mxu0 %vm895_vm2, %v21324_v9  ;;  %v21327_v12 = vld [vmem:[%s21628_s11 + $0x18] sm:$0xff]   ;;  %v21328_v13 = vld [vmem:[%s21628_s11 + $0x20] sm:$0xff]   ;;  %v21329_v14 = vld [vmem:[%s21628_s11 + $0x28] sm:$0xff]  }
  0x1f   : > { %18401 = vmatpush3.bf16.msra.mxu0 %v21321_v2  ;;  %v21330_v15 = vld [vmem:[%s21628_s11 + $0x30] sm:$0xff]   ;;  %v21331_v16 = vld [vmem:[%s21628_s11 + $0x38] sm:$0xff]   ;;  %v21332_v17 = vld [vmem:[%s21628_s11 + $0x40] sm:$0xff]  }
  0x20   : > { %18402 = vmatprep.subr.bf16.mxu0 %v21322_v5  ;;  %v21333_v18 = vld [vmem:[%s21628_s11 + $0x48] sm:$0xff]   ;;  %v21334_v19 = vld [vmem:[%s21628_s11 + $0x50] sm:$0xff]   ;;  %v21335_v20 = vld [vmem:[%s21628_s11 + $0x58] sm:$0xff]  }
  0x21   : > { %v21336_v21 = vld [vmem:[%s21628_s11 + $0x60] sm:$0xff]   ;;  %v21337_v22 = vld [vmem:[%s21628_s11 + $0x68] sm:$0xff]   ;;  %v21338_v23 = vld [vmem:[%s21628_s11 + $0x70] sm:$0xff]  }
  0x22   : > { %v21339_v24 = vld [vmem:[%s21628_s11 + $0x78] sm:$0xff]   ;;  %v21340_v25 = vld [vmem:[%s21628_s11 + $0x80] sm:$0xff]   ;;  %v21341_v26 = vld [vmem:[%s21628_s11 + $0x88] sm:$0xff]  }
  0x23   : > { %18403 = vmatpush3.bf16.msra.mxu0 %v21322_v5  ;;  %v21342_v27 = vld [vmem:[%s21628_s11 + $0x90] sm:$0xff]   ;;  %v21343_v28 = vld [vmem:[%s21628_s11 + $0x98] sm:$0xff]   ;;  %v21344_v29 = vld [vmem:[%s21628_s11 + $0xa0] sm:$0xff]  }
  0x24   : > { %18404 = vmatprep.subr.bf16.mxu0 %v1195_v8  ;;  %v21345_v30 = vld [vmem:[%s21628_s11 + $0xa8] sm:$0xff]   ;;  %v21346_v31 = vld [vmem:[%s21628_s11 + $0xb0] sm:$0xff]   ;;  %v21347_v32 = vld [vmem:[%s21628_s11 + $0xb8] sm:$0xff]  }
  0x25   : > { %v21348_v33 = vld [vmem:[%s21628_s11 + $0xc0] sm:$0xff]   ;;  %v21349_v34 = vld [vmem:[%s21628_s11 + $0xc8] sm:$0xff]   ;;  %v21350_v35 = vld [vmem:[%s21628_s11 + $0xd0] sm:$0xff]  }
  0x26   : > { %v21351_v36 = vld [vmem:[%s21628_s11 + $0xd8] sm:$0xff]   ;;  %v21352_v37 = vld [vmem:[%s21628_s11 + $0xe0] sm:$0xff]   ;;  %v21353_v38 = vld [vmem:[%s21628_s11 + $0xe8] sm:$0xff]  }
  0x27   : > { %18405 = vmatpush3.bf16.msra.mxu0 %v1195_v8  ;;  %v21354_v39 = vld [vmem:[%s21628_s11 + $0xf0] sm:$0xff]   ;;  %v21355_v40 = vld [vmem:[%s21628_s11 + $0xf8] sm:$0xff]   ;;  %v21356_v41 = vld [vmem:[%s21628_s11 + $0x100] sm:$0xff]  }
  0x28   : > { %v21357_v42 = vld [vmem:[%s21628_s11 + $0x108] sm:$0xff]   ;;  %v21358_v43 = vld [vmem:[%s21628_s11 + $0x110] sm:$0xff]   ;;  %v21359_v44 = vld [vmem:[%s21628_s11 + $0x118] sm:$0xff]  }
  0x29   : > { %v21360_v45 = vld [vmem:[%s21628_s11 + $0x120] sm:$0xff]   ;;  %v21361_v46 = vld [vmem:[%s21628_s11 + $0x128] sm:$0xff]   ;;  %v21362_v47 = vld [vmem:[%s21628_s11 + $0x130] sm:$0xff]  }
  0x2a   : > { %18407 = vmatmul.mubr.msk.bf16.vlgmr.msra.gmra.mrb[0].mxu0 %vm895_vm2, %v21325_v10  ;;  %v21363_v48 = vld [vmem:[%s21628_s11 + $0x138] sm:$0xff]   ;;  %v21364_v49 = vld [vmem:[%s21628_s11 + $0x140] sm:$0xff]   ;;  %v21365_v50 = vld [vmem:[%s21628_s11 + $0x148] sm:$0xff]  }
  0x2b   : > { %18410 = vmatprep.mubr.msk.bf16.mxu0 %vm895_vm2, %v21326_v11  ;;  %v21366_v51 = vld [vmem:[%s21628_s11 + $0x150] sm:$0xff]   ;;  %v21367_v52 = vld [vmem:[%s21628_s11 + $0x158] sm:$0xff]   ;;  %v21368_v53 = vld [vmem:[%s21628_s11 + $0x160] sm:$0xff]  }
  0x2c   : > { %v21369_v54 = vld [vmem:[%s21628_s11 + $0x168] sm:$0xff]   ;;  %v21370_v55 = vld [vmem:[%s21628_s11 + $0x170] sm:$0xff]   ;;  %v21371_v56 = vld [vmem:[%s21628_s11 + $0x178] sm:$0xff]  }
  0x2d   : > { %v21372_v57 = vld [vmem:[%s21628_s11 + $0x180] sm:$0xff]   ;;  %v21373_v58 = vld [vmem:[%s21628_s11 + $0x188] sm:$0xff]   ;;  %v21374_v59 = vld [vmem:[%s21628_s11 + $0x190] sm:$0xff]  }
  0x2e   : > { %v21375_v60 = vld [vmem:[%s21628_s11 + $0x198] sm:$0xff]   ;;  %v21376_v61 = vld [vmem:[%s21628_s11 + $0x1a0] sm:$0xff]   ;;  %v21377_v62 = vld [vmem:[%s21628_s11 + $0x1a8] sm:$0xff]  }
  0x2f   : > { %v21378_v63 = vld [vmem:[%s21628_s11 + $0x1b0] sm:$0xff]   ;;  %v21379_v2 = vld [vmem:[%s21628_s11 + $0x1b8] sm:$0xff]   ;;  %v21380_v4 = vld [vmem:[%s21628_s11 + $0x1c0] sm:$0xff]  }
  0x30   : > { %v21381_v8 = vld [vmem:[%s21628_s11 + $0x1c8] sm:$0xff]   ;;  %v21382_v10 = vld [vmem:[%s21628_s11 + $0x1d0] sm:$0xff]  }
  0x32   : > { %18411 = vmatmul.mubr.msk.bf16.gmra.mrb[4].mxu0 %vm895_vm2, %v21327_v12 }
  0x33   : > { %18414 = vmatprep.mubr.msk.bf16.mxu0 %vm895_vm2, %v21328_v13 }
  0x3a   : > { %18415 = vmatmul.mubr.msk.bf16.gmra.mrb[8].mxu0 %vm895_vm2, %v21329_v14  ;;  %v21383_v14 = vld [vmem:[%s21628_s11 + $0x1d8] sm:$0xff]  }
  0x3b   : > { %18418 = vmatprep.mubr.msk.bf16.mxu0 %vm895_vm2, %v21330_v15 }
  0x42   : > { %18419 = vmatmul.mubr.msk.bf16.gmra.mrb[12].mxu0 %vm895_vm2, %v21331_v16  ;;  %v21384_v16 = vld [vmem:[%s21628_s11 + $0x1e0] sm:$0xff]  }
  0x43   : > { %18422 = vmatprep.mubr.msk.bf16.mxu0 %vm895_vm2, %v21332_v17 }
  0x4a   : > { %18423 = vmatmul.mubr.msk.bf16.gmra.mrb[16].mxu0 %vm895_vm2, %v21333_v18 }
  0x4b   : > { %18426 = vmatprep.mubr.msk.bf16.mxu0 %vm895_vm2, %v21334_v19 }
  0x52   : > { %18427 = vmatmul.mubr.msk.bf16.gmra.mrb[20].mxu0 %vm895_vm2, %v21335_v20  ;;  %v21385_v20 = vld [vmem:[%s21628_s11 + $0x1e8] sm:$0xff]  }
  0x53   : > { %18430 = vmatprep.mubr.msk.bf16.mxu0 %vm895_vm2, %v21336_v21 }
  0x5a   : > { %18431 = vmatmul.mubr.msk.bf16.gmra.mrb[24].mxu0 %vm895_vm2, %v21337_v22  ;;  %v21386_v22 = vld [vmem:[%s21628_s11 + $0x1f0] sm:$0xff]  }
  0x5b   : > { %18434 = vmatprep.mubr.msk.bf16.mxu0 %vm895_vm2, %v21338_v23 }
  0x62   : > { %18435 = vmatmul.mubr.msk.bf16.gmra.mrb[28].mxu0 %vm895_vm2, %v21339_v24 }
  0x63   : > { %18438 = vmatprep.mubr.msk.bf16.mxu0 %vm895_vm2, %v21340_v25 }
  0x6a   : > { %18439 = vmatmul.mubr.msk.bf16.gmra.mrb[32].mxu0 %vm895_vm2, %v21341_v26  ;;  %v21387_v26 = vld [vmem:[%s21628_s11 + $0x1f8] sm:$0xff]  }
  0x6b   : > { %18442 = vmatprep.mubr.msk.bf16.mxu0 %vm895_vm2, %v21342_v27 }
  0x72   : > { %18443 = vmatmul.mubr.msk.bf16.gmra.mrb[36].mxu0 %vm895_vm2, %v21343_v28  ;;  %v21388_v28 = vld [vmem:[%s21628_s11 + $0x200] sm:$0xff]  }
  0x73   : > { %18446 = vmatprep.mubr.msk.bf16.mxu0 %vm895_vm2, %v21344_v29 }
  0x7a   : > { %18447 = vmatmul.mubr.msk.bf16.gmra.mrb[40].mxu0 %vm895_vm2, %v21345_v30 }
  0x7b   : > { %18450 = vmatprep.mubr.msk.bf16.mxu0 %vm895_vm2, %v21346_v31 }
  0x82   : > { %18451 = vmatmul.mubr.msk.bf16.gmra.mrb[44].mxu0 %vm895_vm2, %v21347_v32  ;;  %v21389_v32 = vld [vmem:[%s21628_s11 + $0x208] sm:$0xff]  }
  0x83   : > { %18454 = vmatprep.mubr.msk.bf16.mxu0 %vm895_vm2, %v21348_v33 }
  0x8a   : > { %18455 = vmatmul.mubr.msk.bf16.gmra.mrb[48].mxu0 %vm895_vm2, %v21349_v34  ;;  %v21390_v34 = vld [vmem:[%s21628_s11 + $0x210] sm:$0xff]  }
  0x8b   : > { %18458 = vmatprep.mubr.msk.bf16.mxu0 %vm895_vm2, %v21350_v35 }
  0x92   : > { %18459 = vmatmul.mubr.msk.bf16.gmra.mrb[52].mxu0 %vm895_vm2, %v21351_v36 }
  0x93   : > { %18462 = vmatprep.mubr.msk.bf16.mxu0 %vm895_vm2, %v21352_v37 }
  0x9a   : > { %18463 = vmatmul.mubr.msk.bf16.gmra.mrb[56].mxu0 %vm895_vm2, %v21353_v38  ;;  %v21391_v38 = vld [vmem:[%s21628_s11 + $0x218] sm:$0xff]  }
  0x9b   : > { %18466 = vmatprep.mubr.msk.bf16.mxu0 %vm895_vm2, %v21354_v39 }
  0xa2   : > { %18467 = vmatmul.mubr.msk.bf16.gmra.mrb[60].mxu0 %vm895_vm2, %v21355_v40  ;;  %v21392_v40 = vld [vmem:[%s21628_s11 + $0x220] sm:$0xff]  }
  0xa3   : > { %18470 = vmatprep.mubr.msk.bf16.mxu0 %vm895_vm2, %v21356_v41 }
  0xaa   : > { %18471 = vmatmul.mubr.msk.bf16.gmra.mrb[64].mxu0 %vm895_vm2, %v21357_v42 }
  0xab   : > { %18474 = vmatprep.mubr.msk.bf16.mxu0 %vm895_vm2, %v21358_v43 }
  0xb2   : > { %18475 = vmatmul.mubr.msk.bf16.gmra.mrb[68].mxu0 %vm895_vm2, %v21359_v44  ;;  %v21393_v44 = vld [vmem:[%s21628_s11 + $0x228] sm:$0xff]  }
  0xb3   : > { %18478 = vmatprep.mubr.msk.bf16.mxu0 %vm895_vm2, %v21360_v45 }
  0xba   : > { %18479 = vmatmul.mubr.msk.bf16.gmra.mrb[72].mxu0 %vm895_vm2, %v21361_v46  ;;  %v21394_v46 = vld [vmem:[%s21628_s11 + $0x230] sm:$0xff]  }
  0xbb   : > { %18482 = vmatprep.mubr.msk.bf16.mxu0 %vm895_vm2, %v21362_v47 }
  0xc2   : > { %18483 = vmatmul.mubr.msk.bf16.gmra.mrb[76].mxu0 %vm895_vm2, %v21363_v48 }
  0xc3   : > { %18486 = vmatprep.mubr.msk.bf16.mxu0 %vm895_vm2, %v21364_v49 }
  0xca   : > { %18487 = vmatmul.mubr.msk.bf16.gmra.mrb[80].mxu0 %vm895_vm2, %v21365_v50  ;;  %v21395_v50 = vld [vmem:[%s21628_s11 + $0x238] sm:$0xff]  }
  0xcb   : > { %18490 = vmatprep.mubr.msk.bf16.mxu0 %vm895_vm2, %v21366_v51 }
  0xd2   : > { %18491 = vmatmul.mubr.msk.bf16.gmra.mrb[84].mxu0 %vm895_vm2, %v21367_v52  ;;  %v21396_v52 = vld [vmem:[%s21628_s11 + $0x240] sm:$0xff]  }
  0xd3   : > { %18494 = vmatprep.mubr.msk.bf16.mxu0 %vm895_vm2, %v21368_v53 }
  0xda   : > { %18495 = vmatmul.mubr.msk.bf16.gmra.mrb[88].mxu0 %vm895_vm2, %v21369_v54 }
  0xdb   : > { %18498 = vmatprep.mubr.msk.bf16.mxu0 %vm895_vm2, %v21370_v55 }
  0xe2   : > { %18499 = vmatmul.mubr.msk.bf16.gmra.mrb[92].mxu0 %vm895_vm2, %v21371_v56  ;;  %v21397_v56 = vld [vmem:[%s21628_s11 + $0x248] sm:$0xff]  }
  0xe3   : > { %18502 = vmatprep.mubr.msk.bf16.mxu0 %vm895_vm2, %v21372_v57 }
  0xea   : > { %18503 = vmatmul.mubr.msk.bf16.gmra.mrb[96].mxu0 %vm895_vm2, %v21373_v58  ;;  %v21398_v58 = vld [vmem:[%s21628_s11 + $0x250] sm:$0xff]  }
  0xeb   : > { %18506 = vmatprep.mubr.msk.bf16.mxu0 %vm895_vm2, %v21374_v59 }
  0xf2   : > { %18507 = vmatmul.mubr.msk.bf16.gmra.mrb[100].mxu0 %vm895_vm2, %v21375_v60 }
  0xf3   : > { %18510 = vmatprep.mubr.msk.bf16.mxu0 %vm895_vm2, %v21376_v61 }
  0xfa   : > { %18511 = vmatmul.mubr.msk.bf16.gmra.mrb[104].mxu0 %vm895_vm2, %v21377_v62  ;;  %v21399_v62 = vld [vmem:[%s21628_s11 + $0x258] sm:$0xff]  }
  0xfb   : > { %18514 = vmatprep.mubr.msk.bf16.mxu0 %vm895_vm2, %v21378_v63 }
  0xfd   : > { %v21740_v0 = vpop.f32.mrb[0].mxu0 }
  0xfe   : > { %v21742_v1 = vpop.f32.mrb[1].mxu0 }
  0xff   : > { %v21745_v3 = vpop.f32.mrb[2].mxu0 }
 0x100   : > { %v21748_v5 = vpop.f32.mrb[3].mxu0 }
 0x102   : > { %18515 = vmatmul.mubr.msk.bf16.gmra.mrb[108].mxu0 %vm895_vm2, %v21379_v2  ;;  %v21400_v2 = vld [vmem:[%s21628_s11 + $0x260] sm:$0xff]  }
 0x103   : > { %18518 = vmatprep.mubr.msk.bf16.mxu0 %vm895_vm2, %v21380_v4 }
 0x105   : > { %v21752_v6 = vpop.f32.mrb[4].mxu0 }
 0x106   : > { %25428 = vst [vmem:[#allocation8_spill] sm:$0xff] %v21752_v6  ;;  %v21754_v7 = vpop.f32.mrb[5].mxu0  ;;  %v21410_v6 = vld [vmem:[%s21628_s11 + $0x2b0] sm:$0xff]  }
 0x107   : > { %v21757_v9 = vpop.f32.mrb[6].mxu0 }
 0x108   : > { %v21760_v11 = vpop.f32.mrb[7].mxu0 }
 0x10a   : > { %18519 = vmatmul.mubr.msk.bf16.gmra.mrb[112].mxu0 %vm895_vm2, %v21381_v8 }
 0x10b   : > { %18522 = vmatprep.mubr.msk.bf16.mxu0 %vm895_vm2, %v21382_v10 }
 0x10d   : > { %v21764_v12 = vpop.f32.mrb[8].mxu0 }
 0x10e   : > { %25429 = vst [vmem:[#allocation9_spill] sm:$0xff] %v21764_v12  ;;  %v21766_v13 = vpop.f32.mrb[9].mxu0  ;;  %v21412_v12 = vld [vmem:[%s21628_s11 + $0x2c0] sm:$0xff]  }
 0x10f   : > { %v21769_v15 = vpop.f32.mrb[10].mxu0 }
 0x110   : > { %v21772_v17 = vpop.f32.mrb[11].mxu0 }
 0x111   : > { %25430 = vst [vmem:[#allocation10_spill] sm:$0xff] %v21772_v17  ;;  %v21409_v17 = vld [vmem:[%s21628_s11 + $0x2a8] sm:$0xff]  }
 0x112   : > { %18523 = vmatmul.mubr.msk.bf16.gmra.mrb[116].mxu0 %vm895_vm2, %v21383_v14  ;;  %v21401_v14 = vld [vmem:[%s21628_s11 + $0x268] sm:$0xff]  }
 0x113   : > { %18526 = vmatprep.mubr.msk.bf16.mxu0 %vm895_vm2, %v21384_v16 }
 0x115   : > { %v21776_v18 = vpop.f32.mrb[12].mxu0 }
 0x116   : > { %25431 = vst [vmem:[#allocation11_spill] sm:$0xff] %v21776_v18  ;;  %v21778_v19 = vpop.f32.mrb[13].mxu0  ;;  %v21414_v18 = vld [vmem:[%s21628_s11 + $0x2d0] sm:$0xff]  }
 0x117   : > { %v21781_v21 = vpop.f32.mrb[14].mxu0 }
 0x118   : > { %v21784_v23 = vpop.f32.mrb[15].mxu0 }
 0x119   : > { %25432 = vst [vmem:[#allocation12_spill] sm:$0xff] %v21784_v23  ;;  %v21411_v23 = vld [vmem:[%s21628_s11 + $0x2b8] sm:$0xff]  }
 0x11a   : > { %18527 = vmatmul.mubr.msk.bf16.gmra.mrb[120].mxu0 %vm895_vm2, %v21385_v20  ;;  %v21402_v20 = vld [vmem:[%s21628_s11 + $0x270] sm:$0xff]  }
 0x11b   : > { %18530 = vmatprep.mubr.msk.bf16.mxu0 %vm895_vm2, %v21386_v22 }
 0x11d   : > { %v21788_v24 = vpop.f32.mrb[16].mxu0 }
 0x11e   : > { %25433 = vst [vmem:[#allocation13_spill] sm:$0xff] %v21788_v24  ;;  %v21790_v25 = vpop.f32.mrb[17].mxu0  ;;  %v21416_v24 = vld [vmem:[%s21628_s11 + $0x2e0] sm:$0xff]  }
 0x11f   : > { %v21793_v27 = vpop.f32.mrb[18].mxu0 }
 0x120   : > { %v21796_v29 = vpop.f32.mrb[19].mxu0 }
 0x121   : > { %25434 = vst [vmem:[#allocation14_spill] sm:$0xff] %v21796_v29  ;;  %v21413_v29 = vld [vmem:[%s21628_s11 + $0x2c8] sm:$0xff]  }
 0x122   : > { %18531 = vmatmul.mubr.msk.bf16.gmra.mrb[124].mxu0 %vm895_vm2, %v21387_v26 }
 0x123   : > { %18534 = vmatprep.mubr.msk.bf16.mxu0 %vm895_vm2, %v21388_v28 }
 0x125   : > { %v21800_v30 = vpop.f32.mrb[20].mxu0 }
 0x126   : > { %25435 = vst [vmem:[#allocation15_spill] sm:$0xff] %v21800_v30  ;;  %v21802_v31 = vpop.f32.mrb[21].mxu0  ;;  %v21418_v30 = vld [vmem:[%s21628_s11 + $0x2f0] sm:$0xff]  }
 0x127   : > { %v21805_v33 = vpop.f32.mrb[22].mxu0 }
 0x128   : > { %25436 = vst [vmem:[#allocation16_spill] sm:$0xff] %v21805_v33  ;;  %v21808_v35 = vpop.f32.mrb[23].mxu0 }
 0x129   : > { %25437 = vst [vmem:[#allocation17_spill] sm:$0xff] %v21808_v35  ;;  %v21415_v35 = vld [vmem:[%s21628_s11 + $0x2d8] sm:$0xff]  }
 0x12a   : > { %18535 = vmatmul.mubr.msk.bf16.gmra.mrb[128].mxu0 %vm895_vm2, %v21389_v32 }
 0x12b   : > { %18538 = vmatprep.mubr.msk.bf16.mxu0 %vm895_vm2, %v21390_v34  ;;  %v21403_v34 = vld [vmem:[%s21628_s11 + $0x278] sm:$0xff]  }
 0x12d   : > { %v21812_v36 = vpop.f32.mrb[24].mxu0 }
 0x12e   : > { %25438 = vst [vmem:[#allocation18_spill] sm:$0xff] %v21812_v36  ;;  %v21814_v37 = vpop.f32.mrb[25].mxu0 }
 0x12f   : > { %25439 = vst [vmem:[#allocation19_spill] sm:$0xff] %v21814_v37  ;;  %v21817_v39 = vpop.f32.mrb[26].mxu0 }
 0x130   : > { %25440 = vst [vmem:[#allocation20_spill] sm:$0xff] %v21817_v39  ;;  %v21820_v41 = vpop.f32.mrb[27].mxu0 }
 0x131   : > { %25441 = vst [vmem:[#allocation21_spill] sm:$0xff] %v21820_v41  ;;  %v21417_v41 = vld [vmem:[%s21628_s11 + $0x2e8] sm:$0xff]  }
 0x132   : > { %18539 = vmatmul.mubr.msk.bf16.gmra.mrb[132].mxu0 %vm895_vm2, %v21391_v38 }
 0x133   : > { %18542 = vmatprep.mubr.msk.bf16.mxu0 %vm895_vm2, %v21392_v40  ;;  %v21404_v40 = vld [vmem:[%s21628_s11 + $0x280] sm:$0xff]  }
 0x135   : > { %v21824_v42 = vpop.f32.mrb[28].mxu0 }
 0x136   : > { %25442 = vst [vmem:[#allocation22_spill] sm:$0xff] %v21824_v42  ;;  %v21826_v43 = vpop.f32.mrb[29].mxu0  ;;  %v21420_v42 = vld [vmem:[%s21628_s11 + $0x300] sm:$0xff]  }
 0x137   : > { %25443 = vst [vmem:[#allocation23_spill] sm:$0xff] %v21826_v43  ;;  %v21829_v45 = vpop.f32.mrb[30].mxu0 }
 0x138   : > { %25444 = vst [vmem:[#allocation24_spill] sm:$0xff] %v21829_v45  ;;  %v21832_v47 = vpop.f32.mrb[31].mxu0 }
 0x139   : > { %25445 = vst [vmem:[#allocation25_spill] sm:$0xff] %v21832_v47  ;;  %v21419_v47 = vld [vmem:[%s21628_s11 + $0x2f8] sm:$0xff]  }
 0x13a   : > { %18543 = vmatmul.mubr.msk.bf16.gmra.mrb[136].mxu0 %vm895_vm2, %v21393_v44  ;;  %v21408_v44 = vld [vmem:[%s21628_s11 + $0x2a0] sm:$0xff]  }
 0x13b   : > { %18546 = vmatprep.mubr.msk.bf16.mxu0 %vm895_vm2, %v21394_v46 }
 0x13d   : > { %v21836_v48 = vpop.f32.mrb[32].mxu0 }
 0x13e   : > { %25446 = vst [vmem:[#allocation26_spill] sm:$0xff] %v21836_v48  ;;  %v21838_v49 = vpop.f32.mrb[33].mxu0 }
 0x13f   : > { %25447 = vst [vmem:[#allocation27_spill] sm:$0xff] %v21838_v49  ;;  %v21841_v51 = vpop.f32.mrb[34].mxu0 }
 0x140   : > { %25448 = vst [vmem:[#allocation28_spill] sm:$0xff] %v21841_v51  ;;  %v21844_v53 = vpop.f32.mrb[35].mxu0 }
 0x141   : > { %25449 = vst [vmem:[#allocation29_spill] sm:$0xff] %v21844_v53  ;;  %v21421_v53 = vld [vmem:[%s21628_s11 + $0x308] sm:$0xff]  }
 0x142   : > { %18547 = vmatmul.mubr.msk.bf16.gmra.mrb[140].mxu0 %vm895_vm2, %v21395_v50  ;;  %v21407_v50 = vld [vmem:[%s21628_s11 + $0x298] sm:$0xff]  }
 0x143   : > { %18550 = vmatprep.mubr.msk.bf16.mxu0 %vm895_vm2, %v21396_v52 }
 0x145   : > { %v21848_v54 = vpop.f32.mrb[36].mxu0 }
 0x146   : > { %25450 = vst [vmem:[#allocation30_spill] sm:$0xff] %v21848_v54  ;;  %v21850_v55 = vpop.f32.mrb[37].mxu0 }
 0x147   : > { %25451 = vst [vmem:[#allocation31_spill] sm:$0xff] %v21850_v55  ;;  %v21853_v57 = vpop.f32.mrb[38].mxu0 }
 0x148   : > { %25452 = vst [vmem:[#allocation32_spill] sm:$0xff] %v21853_v57  ;;  %v21856_v59 = vpop.f32.mrb[39].mxu0 }
 0x149   : > { %25453 = vst [vmem:[#allocation33_spill] sm:$0xff] %v21856_v59 }
 0x14a   : > { %18551 = vmatmul.mubr.msk.bf16.gmra.mrb[144].mxu0 %vm895_vm2, %v21397_v56 }
 0x14b   : > { %18554 = vmatprep.mubr.msk.bf16.mxu0 %vm895_vm2, %v21398_v58 }
 0x14d   : > { %v21860_v60 = vpop.f32.mrb[40].mxu0 }
 0x14e   : > { %25454 = vst [vmem:[#allocation34_spill] sm:$0xff] %v21860_v60  ;;  %v21862_v61 = vpop.f32.mrb[41].mxu0 }
 0x14f   : > { %25455 = vst [vmem:[#allocation35_spill] sm:$0xff] %v21862_v61  ;;  %v21865_v63 = vpop.f32.mrb[42].mxu0 }
 0x150   : > { %25456 = vst [vmem:[#allocation36_spill] sm:$0xff] %v21865_v63  ;;  %v21868_v4 = vpop.f32.mrb[43].mxu0 }
 0x151   : > { %25457 = vst [vmem:[#allocation37_spill] sm:$0xff] %v21868_v4 }
 0x152   : > { %18555 = vmatmul.mubr.msk.bf16.gmra.mrb[148].mxu0 %vm895_vm2, %v21399_v62  ;;  %v21405_v62 = vld [vmem:[%s21628_s11 + $0x288] sm:$0xff]  }
 0x153   : > { %18558 = vmatprep.mubr.msk.bf16.mxu0 %vm895_vm2, %v21400_v2 }
 0x155   : > { %v21872_v8 = vpop.f32.mrb[44].mxu0 }
 0x156   : > { %25458 = vst [vmem:[#allocation38_spill] sm:$0xff] %v21872_v8  ;;  %v21874_v10 = vpop.f32.mrb[45].mxu0 }
 0x157   : > { %25459 = vst [vmem:[#allocation39_spill] sm:$0xff] %v21874_v10  ;;  %v21877_v16 = vpop.f32.mrb[46].mxu0 }
 0x158   : > { %25460 = vst [vmem:[#allocation40_spill] sm:$0xff] %v21877_v16  ;;  %v21880_v22 = vpop.f32.mrb[47].mxu0 }
 0x159   : > { %25461 = vst [vmem:[#allocation41_spill] sm:$0xff] %v21880_v22 }
 0x15a   : > { %18559 = vmatmul.mubr.msk.bf16.gmra.mrb[152].mxu0 %vm895_vm2, %v21401_v14 }
 0x15b   : > { %18562 = vmatprep.mubr.msk.bf16.mxu0 %vm895_vm2, %v21402_v20  ;;  %v21406_v20 = vld [vmem:[%s21628_s11 + $0x290] sm:$0xff]   ;;  %s163_s11 = scalar_lea.vmem [#allocation5], %s15803_s9 }
 0x15c   : > { %s15740_s17 = sshll.u32 %s163_s11, 4  ;;  %s25265_s17 = int_to_ptr.vmem [resolvable:$true] %s15740_s17 }
 0x15d   : > { %v21884_v26 = vpop.f32.mrb[48].mxu0  ;;  %s21472_s26 = scalar_lea.vmem %s25265_s17, 32  ;;  %p21479_p0 = scmp.lt.s32.totalorder %s25265_s17, %s21477_s27 }
 0x15e   : > { %v21888_v32 = vpop.f32.mrb[49].mxu0  ;;  %p21473_p11 = scmp.ne.s32.totalorder %s25265_s17, %s21472_s26  ;;  %p21480_p1 = scmp.lt.s32.totalorder %s21478_s28, %s21472_s26 }
 0x15f   : > { %25462 = vst [vmem:[#allocation42_spill] sm:$0xff] %v21888_v32  ;;  %v21891_v38 = vpop.f32.mrb[50].mxu0 }
 0x160   : > { %v21896_v46 = vpop.f32.mrb[51].mxu0  ;;  %p21474_p12 = pnand %p21473_p11, %p21598_p5  ;;  %p21481_p2 = por %p21480_p1, %p21479_p0 }
 0x162   : > { %18563 = vmatmul.mubr.msk.bf16.gmra.mrb[156].mxu0 %vm895_vm2, %v21403_v34  ;;  %p21475_p13 = pneg %p21474_p12 }
 0x163   : > { %18566 = vmatprep.mubr.msk.bf16.mxu0 %vm895_vm2, %v21404_v40 }
 0x164   : > { %p21482_p3 = pnand %p21481_p2, %p21475_p13 }
 0x165   : > { %v21902_v52 = vpop.f32.mrb[52].mxu0 }
 0x166   : > { %v21906_v58 = vpop.f32.mrb[53].mxu0 }
 0x167   : > { %v21911_v14 = vpop.f32.mrb[54].mxu0 }
 0x168   : > { %25463 = vst [vmem:[#allocation43_spill] sm:$0xff] %v21911_v14  ;;  %v21916_v40 = vpop.f32.mrb[55].mxu0 }
 0x16a   : > { %18567 = vmatmul.mubr.msk.bf16.gmra.mrb[160].mxu0 %vm895_vm2, %v21405_v62 }
 0x16b   : > { %18570 = vmatprep.mubr.msk.bf16.mxu0 %vm895_vm2, %v21406_v20 }
 0x16d   : > { %v21922_v56 = vpop.f32.mrb[56].mxu0 }
 0x16e   : > { %25464 = vst [vmem:[#allocation44_spill] sm:$0xff] %v21922_v56  ;;  %v21926_v2 = vpop.f32.mrb[57].mxu0 }
 0x16f   : > { %v21931_v14 = vpop.f32.mrb[58].mxu0 }
 0x170   : > { %25465 = vst [vmem:[#allocation45_spill] sm:$0xff] %v21931_v14  ;;  %v21936_v20 = vpop.f32.mrb[59].mxu0 }
 0x172   : > { %18571 = vmatmul.mubr.msk.bf16.gmra.mrb[164].mxu0 %vm895_vm2, %v21407_v50 }
 0x173   : > { %18574 = vmatprep.mubr.msk.bf16.mxu0 %vm895_vm2, %v21408_v44 }
 0x175   : > { %v21942_v28 = vpop.f32.mrb[60].mxu0 }
 0x176   : > { %25466 = vst [vmem:[#allocation46_spill] sm:$0xff] %v21942_v28  ;;  %v21946_v56 = vpop.f32.mrb[61].mxu0 }
 0x177   : > { %v21951_v14 = vpop.f32.mrb[62].mxu0 }
 0x178   : > { %25467 = vst [vmem:[#allocation47_spill] sm:$0xff] %v21951_v14  ;;  %v21956_v44 = vpop.f32.mrb[63].mxu0 }
 0x17a   : > { %18575 = vmatmul.mubr.msk.bf16.gmra.mrb[168].mxu0 %vm895_vm2, %v21409_v17 }
 0x17b   : > { %18578 = vmatprep.mubr.msk.bf16.mxu0 %vm895_vm2, %v21410_v6 }
 0x17d   : > { %v21962_v34 = vpop.f32.mrb[64].mxu0 }
 0x17e   : > { %25468 = vst [vmem:[#allocation48_spill] sm:$0xff] %v21962_v34  ;;  %v21966_v28 = vpop.f32.mrb[65].mxu0 }
 0x17f   : > { %v21971_v14 = vpop.f32.mrb[66].mxu0 }
 0x180   : > { %25469 = vst [vmem:[#allocation49_spill] sm:$0xff] %v21971_v14  ;;  %v21976_v6 = vpop.f32.mrb[67].mxu0 }
 0x182   : > { %18579 = vmatmul.mubr.msk.bf16.gmra.mrb[172].mxu0 %vm895_vm2, %v21411_v23 }
 0x183   : > { %18582 = vmatprep.mubr.msk.bf16.mxu0 %vm895_vm2, %v21412_v12 }
 0x185   : > { %v21982_v62 = vpop.f32.mrb[68].mxu0 }
 0x186   : > { %25470 = vst [vmem:[#allocation50_spill] sm:$0xff] %v21982_v62  ;;  %v21986_v34 = vpop.f32.mrb[69].mxu0 }
 0x187   : > { %v21991_v14 = vpop.f32.mrb[70].mxu0 }
 0x188   : > { %25471 = vst [vmem:[#allocation51_spill] sm:$0xff] %v21991_v14  ;;  %v21996_v12 = vpop.f32.mrb[71].mxu0 }
 0x18a   : > { %18583 = vmatmul.mubr.msk.bf16.gmra.mrb[176].mxu0 %vm895_vm2, %v21413_v29 }
 0x18b   : > { %18586 = vmatprep.mubr.msk.bf16.mxu0 %vm895_vm2, %v21414_v18 }
 0x18d   : > { %v22002_v50 = vpop.f32.mrb[72].mxu0 }
 0x18e   : > { %25472 = vst [vmem:[#allocation52_spill] sm:$0xff] %v22002_v50  ;;  %v22006_v62 = vpop.f32.mrb[73].mxu0 }
 0x18f   : > { %25473 = vst [vmem:[#allocation53_spill] sm:$0xff] %v22006_v62  ;;  %v22011_v14 = vpop.f32.mrb[74].mxu0 }
 0x190   : > { %25474 = vst [vmem:[#allocation54_spill] sm:$0xff] %v22011_v14  ;;  %v22016_v18 = vpop.f32.mrb[75].mxu0 }
 0x191   : > { %25475 = vst [vmem:[#allocation55_spill] sm:$0xff] %v22016_v18 }
 0x192   : > { %18587 = vmatmul.mubr.msk.bf16.gmra.mrb[180].mxu0 %vm895_vm2, %v21415_v35 }
 0x193   : > { %18590 = vmatprep.mubr.msk.bf16.mxu0 %vm895_vm2, %v21416_v24 }
 0x195   : > { %v22022_v17 = vpop.f32.mrb[76].mxu0 }
 0x196   : > { %25476 = vst [vmem:[#allocation56_spill] sm:$0xff] %v22022_v17  ;;  %v22026_v50 = vpop.f32.mrb[77].mxu0 }
 0x197   : > { %25477 = vst [vmem:[#allocation57_spill] sm:$0xff] %v22026_v50  ;;  %v22031_v14 = vpop.f32.mrb[78].mxu0 }
 0x198   : > { %25478 = vst [vmem:[#allocation58_spill] sm:$0xff] %v22031_v14  ;;  %v22036_v24 = vpop.f32.mrb[79].mxu0 }
 0x199   : > { %25479 = vst [vmem:[#allocation59_spill] sm:$0xff] %v22036_v24 }
 0x19a   : > { %18591 = vmatmul.mubr.msk.bf16.gmra.mrb[184].mxu0 %vm895_vm2, %v21417_v41 }
 0x19b   : > { %18594 = vmatprep.mubr.msk.bf16.mxu0 %vm895_vm2, %v21418_v30  ;;  %v22138_v30 = vld [vmem:[%s25306_s1 + $0x34] sm:$0x7] }
 0x19d   : > { %v22042_v23 = vpop.f32.mrb[80].mxu0 }
 0x19e   : > { %25480 = vst [vmem:[#allocation60_spill] sm:$0xff] %v22042_v23  ;;  %v22046_v17 = vpop.f32.mrb[81].mxu0 }
 0x19f   : > { %25481 = vst [vmem:[#allocation61_spill] sm:$0xff] %v22046_v17  ;;  %v22051_v14 = vpop.f32.mrb[82].mxu0 }
 0x1a0   : > { %25482 = vst [vmem:[#allocation62_spill] sm:$0xff] %v22051_v14  ;;  %v22056_v36 = vpop.f32.mrb[83].mxu0 }
 0x1a1   : > { %25483 = vst [vmem:[#allocation63_spill] sm:$0xff] %v22056_v36 }
 0x1a2   : > { %18595 = vmatmul.mubr.msk.bf16.gmra.mrb[188].mxu0 %vm895_vm2, %v21419_v47 }
 0x1a3   : > { %18598 = vmatprep.mubr.msk.bf16.mxu0 %vm895_vm2, %v21420_v42  ;;  %v2399_v42 = vld [vmem:[%s25306_s1 + $0x2c] sm:$0x7] }
 0x1a4   : > { %21250 = vmatprep.subr.msk.bf16.mxu0 %vm2526_vm3, %v2399_v42  ;;  %21251 = vmatprep.subr.msk.bf16.mxu1 %vm2526_vm3, %v2399_v42  ;;  %v2528_v41 = vsel %vm2526_vm3, %v2399_v42, 0  ;;  %v22119_v42 = vld [vmem:[%s25306_s1 + $0x40] sm:$0x7] }
 0x1a5   : > { %v22062_v29 = vpop.f32.mrb[84].mxu0  ;;  %18603 = vmatpush3.bf16.msra.mxu0 %v2528_v41  ;;  %20409 = vmatpush3.bf16.msra.mxu1 %v2528_v41 }
 0x1a6   : > { %25484 = vst [vmem:[#allocation64_spill] sm:$0xff] %v22062_v29  ;;  %v22066_v23 = vpop.f32.mrb[85].mxu0  ;;  %21256 = vmatprep.subr.msk.bf16.mxu0 %vm2526_vm3, %v22119_v42  ;;  %21252 = vmatprep.subr.msk.bf16.mxu1 %vm2526_vm3, %v22138_v30 }
 0x1a7   : > { %25485 = vst [vmem:[#allocation65_spill] sm:$0xff] %v22066_v23  ;;  %v22071_v14 = vpop.f32.mrb[86].mxu0 }
 0x1a8   : > { %25486 = vst [vmem:[#allocation66_spill] sm:$0xff] %v22071_v14  ;;  %v22075_v48 = vpop.f32.mrb[87].mxu0 }
 0x1a9   : > { %25487 = vst [vmem:[#allocation67_spill] sm:$0xff] %v22075_v48 }
 0x1aa   : > { %18599 = vmatmul.mubr.msk.bf16.gmra.mrb[192].mxu0 %vm895_vm2, %v21421_v53 }
 0x1ad   : > { %v22080_v47 = vpop.f32.mrb[88].mxu0 }
 0x1ae   : > { %25488 = vst [vmem:[#allocation68_spill] sm:$0xff] %v22080_v47  ;;  %v22084_v29 = vpop.f32.mrb[89].mxu0 }
 0x1af   : > { %25489 = vst [vmem:[#allocation69_spill] sm:$0xff] %v22084_v29  ;;  %v22088_v59 = vpop.f32.mrb[90].mxu0 }
 0x1b0   : > { %25490 = vst [vmem:[#allocation70_spill] sm:$0xff] %v22088_v59  ;;  %v22092_v14 = vpop.f32.mrb[91].mxu0 }
 0x1b1   : > { %25491 = vst [vmem:[#allocation71_spill] sm:$0xff] %v22092_v14 }
 0x1b5   : > { %v22099_v35 = vpop.f32.mrb[92].mxu0 }
 0x1b6   : > { %25492 = vst [vmem:[#allocation72_spill] sm:$0xff] %v22099_v35  ;;  %v22106_v59 = vpop.f32.mrb[93].mxu0 }
 0x1b7   : > { %25493 = vst [vmem:[#allocation73_spill] sm:$0xff] %v22106_v59  ;;  %v22110_v60 = vpop.f32.mrb[94].mxu0 }
 0x1b8   : > { %25494 = vst [vmem:[#allocation74_spill] sm:$0xff] %v22110_v60  ;;  %v22114_v4 = vpop.f32.mrb[95].mxu0 }
 0x1b9   : > { %25495 = vst [vmem:[#allocation75_spill] sm:$0xff] %v22114_v4 }
 0x1bd   : > { %v18504_v41 = vpop.f32.mrb[96].mxu0 }
 0x1be   : > { %v22125_v53 = vpop.f32.mrb[97].mxu0 }
 0x1bf   : > { %25496 = vst [vmem:[#allocation76_spill] sm:$0xff] %v22125_v53  ;;  %v22129_v47 = vpop.f32.mrb[98].mxu0 }
 0x1c0   : > { %v22131_v60 = vpop.f32.mrb[99].mxu0 }
 0x1c1   : > { %25497 = vst [vmem:[#allocation77_spill] sm:$0xff] %v22131_v60 }
 0x1c5   : > { %v22142_v22 = vpop.f32.mrb[100].mxu0 }
 0x1c6   : > { %v22144_v4 = vpop.f32.mrb[101].mxu0 }
 0x1c7   : > { %v22146_v35 = vpop.f32.mrb[102].mxu0 }
 0x1c8   : > { %v1634_v53 = vpop.f32.mrb[103].mxu0 }
 0x1cd   : > { %v22148_v16 = vpop.f32.mrb[104].mxu0 }
 0x1ce   : > { %v22150_v10 = vpop.f32.mrb[105].mxu0 }
 0x1cf   : > { %v22152_v8 = vpop.f32.mrb[106].mxu0 }
 0x1d0   : > { %v22154_v60 = vpop.f32.mrb[107].mxu0 }
 0x1d5   : > { %v22156_v32 = vpop.f32.mrb[108].mxu0 }
 0x1d6   : > { %v22158_v59 = vpop.f32.mrb[109].mxu0 }
 0x1d7   : > { %v22160_v63 = vpop.f32.mrb[110].mxu0 }
 0x1d8   : > { %v22162_v54 = vpop.f32.mrb[111].mxu0 }
 0x1dd   : > { %v22164_v14 = vpop.f32.mrb[112].mxu0 }
 0x1de   : > { %v22166_v61 = vpop.f32.mrb[113].mxu0 }
 0x1df   : > { %v22168_v29 = vpop.f32.mrb[114].mxu0 }
 0x1e0   : > { %v22170_v57 = vpop.f32.mrb[115].mxu0 }
 0x1e5   : > { %v22172_v48 = vpop.f32.mrb[116].mxu0 }
 0x1e6   : > { %v22174_v55 = vpop.f32.mrb[117].mxu0 }
 0x1e7   : > { %v22176_v23 = vpop.f32.mrb[118].mxu0 }
 0x1e8   : > { %25498 = vst [vmem:[#allocation78_spill] sm:$0xff] %v22176_v23  ;;  %v22178_v51 = vpop.f32.mrb[119].mxu0 }
 0x1ed   : > { %v22180_v36 = vpop.f32.mrb[120].mxu0 }
 0x1ee   : > { %25499 = vst [vmem:[#allocation79_spill] sm:$0xff] %v22180_v36  ;;  %v22182_v49 = vpop.f32.mrb[121].mxu0 }
 0x1ef   : > { %25500 = vst [vmem:[#allocation80_spill] sm:$0xff] %v22182_v49  ;;  %v22184_v17 = vpop.f32.mrb[122].mxu0 }
 0x1f0   : > { %25501 = vst [vmem:[#allocation81_spill] sm:$0xff] %v22184_v17  ;;  %v22186_v45 = vpop.f32.mrb[123].mxu0 }
 0x1f1   : > { %25502 = vst [vmem:[#allocation82_spill] sm:$0xff] %v22186_v45 }
 0x1f5   : > { %v22188_v24 = vpop.f32.mrb[124].mxu0 }
 0x1f6   : > { %25503 = vst [vmem:[#allocation83_spill] sm:$0xff] %v22188_v24  ;;  %v22190_v43 = vpop.f32.mrb[125].mxu0 }
 0x1f7   : > { %25504 = vst [vmem:[#allocation84_spill] sm:$0xff] %v22190_v43  ;;  %v22192_v50 = vpop.f32.mrb[126].mxu0 }
 0x1f8   : > { %25505 = vst [vmem:[#allocation85_spill] sm:$0xff] %v22192_v50  ;;  %v22194_v39 = vpop.f32.mrb[127].mxu0 }
 0x1f9   : > { %25506 = vst [vmem:[#allocation86_spill] sm:$0xff] %v22194_v39 }
 0x1fd   : > { %v22196_v18 = vpop.f32.mrb[128].mxu0 }
 0x1fe   : > { %25507 = vst [vmem:[#allocation87_spill] sm:$0xff] %v22196_v18  ;;  %v22198_v37 = vpop.f32.mrb[129].mxu0 }
 0x1ff   : > { %25508 = vst [vmem:[#allocation88_spill] sm:$0xff] %v22198_v37  ;;  %v22200_v62 = vpop.f32.mrb[130].mxu0 }
 0x200   : > { %25509 = vst [vmem:[#allocation89_spill] sm:$0xff] %v22200_v62  ;;  %v22202_v36 = vpop.f32.mrb[131].mxu0 }
 0x201   : > { %25510 = vst [vmem:[#allocation90_spill] sm:$0xff] %v22202_v36 }
 0x205   : > { %v22204_v49 = vpop.f32.mrb[132].mxu0 }
 0x206   : > { %25511 = vst [vmem:[#allocation91_spill] sm:$0xff] %v22204_v49  ;;  %v22206_v17 = vpop.f32.mrb[133].mxu0 }
 0x207   : > { %25512 = vst [vmem:[#allocation92_spill] sm:$0xff] %v22206_v17  ;;  %v22208_v33 = vpop.f32.mrb[134].mxu0 }
 0x208   : > { %25513 = vst [vmem:[#allocation93_spill] sm:$0xff] %v22208_v33  ;;  %v22210_v24 = vpop.f32.mrb[135].mxu0 }
 0x209   : > { %25514 = vst [vmem:[#allocation94_spill] sm:$0xff] %v22210_v24 }
 0x20d   : > { %v22212_v43 = vpop.f32.mrb[136].mxu0 }
 0x20e   : > { %25515 = vst [vmem:[#allocation95_spill] sm:$0xff] %v22212_v43  ;;  %v22214_v50 = vpop.f32.mrb[137].mxu0 }
 0x20f   : > { %25516 = vst [vmem:[#allocation96_spill] sm:$0xff] %v22214_v50  ;;  %v22216_v39 = vpop.f32.mrb[138].mxu0 }
 0x210   : > { %25517 = vst [vmem:[#allocation97_spill] sm:$0xff] %v22216_v39  ;;  %v22218_v18 = vpop.f32.mrb[139].mxu0  ;;  %v22237_v39 = vld [vmem:[%s25307_s2] ss:$0 sm:$0xff] }
 0x211   : > { %25518 = vst [vmem:[#allocation98_spill] sm:$0xff] %v22218_v18 }
 0x215   : > { %v22220_v37 = vpop.f32.mrb[140].mxu0 }
 0x216   : > { %25519 = vst [vmem:[#allocation99_spill] sm:$0xff] %v22220_v37  ;;  %v22222_v62 = vpop.f32.mrb[141].mxu0 }
 0x217   : > { %25520 = vst [vmem:[#allocation100_spill] sm:$0xff] %v22222_v62  ;;  %v22224_v36 = vpop.f32.mrb[142].mxu0  ;;  %v25526_v62 = vmax.f32 %v21742_v1, %v21896_v46 }
 0x218   : > { %25521 = vst [vmem:[#allocation101_spill] sm:$0xff] %v22224_v36  ;;  %v22226_v49 = vpop.f32.mrb[143].mxu0 }
 0x219   : > { %25522 = vst [vmem:[#allocation102_spill] sm:$0xff] %v22226_v49 }
 0x21d   : > { %v22228_v17 = vpop.f32.mrb[144].mxu0 }
 0x21e   : > { %25523 = vst [vmem:[#allocation103_spill] sm:$0xff] %v22228_v17  ;;  %v22230_v33 = vpop.f32.mrb[145].mxu0 }
 0x21f   : > { %25524 = vst [vmem:[#allocation104_spill] sm:$0xff] %v22230_v33  ;;  %v18553_v24 = vpop.f32.mrb[146].mxu0 }
 0x220   : > { %v2063_v43 = vmax.f32 %v18504_v41, %v18553_v24  ;;  %v22232_v23 = vpop.f32.mrb[147].mxu0 }
 0x221   : > { %25525 = vst [vmem:[#allocation105_spill] sm:$0xff] %v22232_v23  ;;  %v25527_v23 = vmax.f32 %v21745_v3, %v21906_v58  ;;  %v25530_v3 = vmax.f32 %v21740_v0, %v21891_v38  ;;  %v25531_v38 = vmax.f32 %v21757_v9, %v21926_v2  ;;  %v25534_v2 = vld [vmem:[#allocation8_spill] sm:$0xff] }
 0x222   : > { %v2112_v37 = vmax.f32 %v25526_v62, %v2063_v43 }
 0x224   : > { %v2166_v36 = vadd.f32 %v22237_v39, %v2112_v37  ;;  %v25528_v37 = vmax.f32 %v21748_v5, %v21884_v26 }
 0x225   : > { %v18556_v49 = vpop.f32.mrb[148].mxu0 }
 0x226   : > { %v2215_v17 = vmax.f32 %v2166_v36, 0.0  ;;  %v2066_v50 = vmax.f32 %v1634_v53, %v18556_v49  ;;  %v1823_v33 = vpop.f32.mrb[149].mxu0 }
 0x227   : > { %v2064_v24 = vmax.f32 %v22129_v47, %v1823_v33  ;;  %v18557_v41 = vpop.f32.mrb[150].mxu0  ;;  %v25529_v33 = vmax.f32 %v21754_v7, %v21916_v40 }
 0x228   : > { %2265 = vst.msk [vmem:[#allocation2] sm:$0xff] %vm2264_vm4, %v2215_v17  ;;  %v2115_v18 = vmax.f32 %v25527_v23, %v2066_v50  ;;  %v2067_v45 = vmax.f32 %v22142_v22, %v18557_v41  ;;  %v1826_v1 = vpop.f32.mrb[151].mxu0 }
 0x229   : > { %v2113_v43 = vmax.f32 %v25528_v37, %v2064_v24  ;;  %v2065_v36 = vmax.f32 %v22144_v4, %v1826_v1  ;;  %v25533_v1 = vmax.f32 %v21766_v13, %v21936_v20 }
 0x22a   : > { %v2169_v49 = vadd.f32 %v22237_v39, %v2115_v18  ;;  %v2116_v46 = vmax.f32 %v25529_v33, %v2067_v45 }
 0x22b   : > { %v2167_v62 = vadd.f32 %v22237_v39, %v2113_v43  ;;  %v2114_v58 = vmax.f32 %v25530_v3, %v2065_v36  ;;  %v25535_v43 = vld [vmem:[#allocation43_spill] sm:$0xff] }
 0x22c   : > { %v2218_v22 = vmax.f32 %v2169_v49, 0.0  ;;  %v2170_v50 = vadd.f32 %v22237_v39, %v2116_v46 }
 0x22d   : > { %v2216_v17 = vmax.f32 %v2167_v62, 0.0  ;;  %v2168_v5 = vadd.f32 %v22237_v39, %v2114_v58  ;;  %v18560_v26 = vpop.f32.mrb[152].mxu0 }
 0x22e   : > { %2268 = vst.msk [vmem:[#allocation2 + $0x18] sm:$0xff] %vm2264_vm4, %v2218_v22  ;;  %v2219_v4 = vmax.f32 %v2170_v50, 0.0  ;;  %v2070_v23 = vmax.f32 %v22154_v60, %v18560_v26  ;;  %v1839_v7 = vpop.f32.mrb[153].mxu0  ;;  %v25532_v60 = vmax.f32 %v21760_v11, %v21902_v52  ;;  %v4731_v50 = vsel %vm2526_vm3, %v22119_v42, 0 }
 0x22f   : > { %2266 = vst.msk [vmem:[#allocation2 + $0x8] sm:$0xff] %vm2264_vm4, %v2216_v17  ;;  %v2217_v45 = vmax.f32 %v2168_v5, 0.0  ;;  %v2068_v40 = vmax.f32 %v22146_v35, %v1839_v7  ;;  %v18561_v0 = vpop.f32.mrb[154].mxu0  ;;  %v5061_v17 = vld [vmem:[%s25306_s1 + $0x48] sm:$0x7]  ;;  %v2986_v42 = vsel %vm2526_vm3, %v22138_v30, 0  ;;  %v25541_v30 = vmax.f32 %v21778_v19, %v21956_v44 }
 0x230   : > { %2269 = vst.msk [vmem:[#allocation2 + $0x20] sm:$0xff] %vm2264_vm4, %v2219_v4  ;;  %v2119_v18 = vmax.f32 %v25531_v38, %v2070_v23  ;;  %v2071_v47 = vmax.f32 %v22148_v16, %v18561_v0  ;;  %v1842_v53 = vpop.f32.mrb[155].mxu0  ;;  %v25536_v16 = vmax.f32 %v25534_v2, %v25535_v43 }
 0x231   : > { %2267 = vst.msk [vmem:[#allocation2 + $0x10] sm:$0xff] %vm2264_vm4, %v2217_v45  ;;  %v2117_v24 = vmax.f32 %v25532_v60, %v2068_v40  ;;  %v2069_v41 = vmax.f32 %v22150_v10, %v1842_v53  ;;  %v25538_v45 = vld [vmem:[#allocation10_spill] sm:$0xff]  ;;  %v25539_v40 = vld [vmem:[#allocation44_spill] sm:$0xff]  ;;  %v25542_v53 = vld [vmem:[#allocation9_spill] sm:$0xff] }
 0x232   : > { %v2173_v35 = vadd.f32 %v22237_v39, %v2119_v18  ;;  %v2120_v37 = vmax.f32 %v25533_v1, %v2071_v47  ;;  %v25540_v0 = vmax.f32 %v25538_v45, %v25539_v40  ;;  %v25543_v60 = vld [vmem:[#allocation45_spill] sm:$0xff] }
 0x233   : > { %v2171_v9 = vadd.f32 %v22237_v39, %v2117_v24  ;;  %v2118_v36 = vmax.f32 %v25536_v16, %v2069_v41  ;;  %v25544_v24 = vmax.f32 %v25542_v53, %v25543_v60 }
 0x234   : > { %v2222_v49 = vmax.f32 %v2173_v35, 0.0  ;;  %v2174_v33 = vadd.f32 %v22237_v39, %v2120_v37  ;;  %v5189_v35 = vsel %vm2526_vm3, %v5061_v17, 0 }
 0x235   : > { %v2220_v46 = vmax.f32 %v2171_v9, 0.0  ;;  %v2172_v11 = vadd.f32 %v22237_v39, %v2118_v36  ;;  %v18564_v52 = vpop.f32.mrb[156].mxu0 }
 0x236   : > { %2272 = vst.msk [vmem:[#allocation2 + $0x38] sm:$0xff] %vm2264_vm4, %v2222_v49  ;;  %v2223_v10 = vmax.f32 %v2174_v33, 0.0  ;;  %v2074_v62 = vmax.f32 %v22162_v54, %v18564_v52  ;;  %v1855_v13 = vpop.f32.mrb[157].mxu0  ;;  %v2357_v20 = vld [vmem:[#allocation2 + $0x1] sm:$0xff]  ;;  %v25537_v54 = vmax.f32 %v21769_v15, %v21946_v56 }
 0x237   : > { %2270 = vst.msk [vmem:[#allocation2 + $0x28] sm:$0xff] %vm2264_vm4, %v2220_v46  ;;  %v2221_v3 = vmax.f32 %v2172_v11, 0.0  ;;  %v2072_v58 = vmax.f32 %v22152_v8, %v1855_v13  ;;  %v18565_v22 = vpop.f32.mrb[158].mxu0  ;;  %18604 = vmatprep.mubr.msk.f32.mxu0 %vm2264_vm4, %v2357_v20  ;;  %v22314_v15 = vld [vmem:[#allocation2 + $0x19] sm:$0xff] }
 0x238   : > { %2273 = vst.msk [vmem:[#allocation2 + $0x40] sm:$0xff] %vm2264_vm4, %v2223_v10  ;;  %v2123_v5 = vmax.f32 %v25537_v54, %v2074_v62  ;;  %v2075_v26 = vmax.f32 %v22156_v32, %v18565_v22  ;;  %v1858_v4 = vpop.f32.mrb[159].mxu0  ;;  %v2358_v8 = vld [vmem:[#allocation2 + $0x9] sm:$0xff]  ;;  %v22302_v23 = vld [vmem:[#allocation2 + $0x11] sm:$0xff]  ;;  %v4563_v43 = vld [vmem:[#allocation2 + $0x1f] sm:$0xff] }
 0x239   : > { %v4561_v7 = vld [vmem:[#allocation2 + $0xf] sm:$0xff]  ;;  %2271 = vst.msk [vmem:[#allocation2 + $0x30] sm:$0xff] %vm2264_vm4, %v2221_v3  ;;  %v2121_v38 = vmax.f32 %v25540_v0, %v2072_v58  ;;  %v2073_v18 = vmax.f32 %v22158_v59, %v1858_v4  ;;  %18605 = vmatmul.mubr.msk.f32.vlgmr.msra.gmra.mrb[196].mxu0 %vm2264_vm4, %v2358_v8  ;;  %18607 = vmatprep.mubr.msk.f32.mxu1 %vm2264_vm4, %v22302_v23  ;;  %v22319_v32 = vld [vmem:[%s25306_s1 + $0x38] sm:$0x7] }
 0x23a   : > { %v2177_v56 = vadd.f32 %v22237_v39, %v2123_v5  ;;  %v2124_v47 = vmax.f32 %v25541_v30, %v2075_v26  ;;  %18608 = vmatmul.mubr.msk.f32.vlgmr.msra.gmra.mrb[0].mxu1 %vm2264_vm4, %v22314_v15  ;;  %18928 = vmatpush3.bf16.msra.mxu0 %v4731_v50  ;;  %v4562_v19 = vld [vmem:[#allocation2 + $0x17] sm:$0xff]  ;;  %v25547_v50 = vld [vmem:[#allocation46_spill] sm:$0xff] }
 0x23b   : > { %v2175_v59 = vadd.f32 %v22237_v39, %v2121_v38  ;;  %v2122_v41 = vmax.f32 %v25544_v24, %v2073_v18  ;;  %18929 = vmatprep.mubr.msk.f32.mxu0 %vm2264_vm4, %v4561_v7  ;;  %18668 = vmatpush3.bf16.msra.mxu1 %v2986_v42  ;;  %v25550_v4 = vld [vmem:[#allocation11_spill] sm:$0xff] }
 0x23c   : > { %v2226_v1 = vmax.f32 %v2177_v56, 0.0  ;;  %v2178_v37 = vadd.f32 %v22237_v39, %v2124_v47  ;;  %21253 = vmatprep.subr.msk.bf16.mxu1 %vm2526_vm3, %v22319_v32  ;;  %21257 = vmatprep.subr.msk.bf16.mxu0 %vm2526_vm3, %v5061_v17 }
 0x23d   : > { %v2224_v44 = vmax.f32 %v2175_v59, 0.0  ;;  %v2176_v9 = vadd.f32 %v22237_v39, %v2122_v41  ;;  %v18568_v2 = vpop.f32.mrb[160].mxu0  ;;  %18930 = vmatmul.mubr.msk.f32.vlgmr.msra.gmra.mrb[198].mxu0 %vm2264_vm4, %v4562_v19 }
 0x23e   : > { %2276 = vst.msk [vmem:[#allocation2 + $0x58] sm:$0xff] %vm2264_vm4, %v2226_v1  ;;  %v2227_v16 = vmax.f32 %v2178_v37, 0.0  ;;  %v2078_v36 = vmax.f32 %v22170_v57, %v18568_v2  ;;  %v1871_v49 = vpop.f32.mrb[161].mxu0  ;;  %18932 = vmatprep.mubr.msk.f32.mxu0 %vm2264_vm4, %v4563_v43  ;;  %v22342_v33 = vld [vmem:[#allocation2 + $0x21] sm:$0xff]  ;;  %18993 = vmatpush3.bf16.msra.mxu0 %v5189_v35  ;;  %v25545_v57 = vmax.f32 %v21781_v21, %v21966_v28 }
 0x23f   : > { %2274 = vst.msk [vmem:[#allocation2 + $0x48] sm:$0xff] %vm2264_vm4, %v2224_v44  ;;  %v2225_v46 = vmax.f32 %v2176_v9, 0.0  ;;  %v2076_v11 = vmax.f32 %v22160_v63, %v1871_v49  ;;  %v18569_v52 = vpop.f32.mrb[162].mxu0  ;;  %18610 = vmatprep.mubr.msk.f32.mxu1 %vm2264_vm4, %v22342_v33  ;;  %v4564_v10 = vld [vmem:[#allocation2 + $0x27] sm:$0xff]  ;;  %v25546_v63 = vld [vmem:[#allocation12_spill] sm:$0xff]  ;;  %v25549_v28 = vmax.f32 %v21790_v25, %v21976_v6 }
 0x240   : > { %2277 = vst.msk [vmem:[#allocation2 + $0x60] sm:$0xff] %vm2264_vm4, %v2227_v16  ;;  %v2127_v62 = vmax.f32 %v25545_v57, %v2078_v36  ;;  %v2079_v13 = vmax.f32 %v22164_v14, %v18569_v52  ;;  %v1874_v20 = vpop.f32.mrb[163].mxu0  ;;  %v22353_v3 = vld [vmem:[#allocation2 + $0x29] sm:$0xff]  ;;  %v22355_v58 = vld [vmem:[#allocation2 + $0x31] sm:$0xff]  ;;  %v25548_v17 = vmax.f32 %v25546_v63, %v25547_v50  ;;  %v22377_v40 = vld [vmem:[#allocation2 + $0x39] sm:$0xff] }
 0x241   : > { %v4565_v22 = vld [vmem:[#allocation2 + $0x2f] sm:$0xff]  ;;  %2275 = vst.msk [vmem:[#allocation2 + $0x50] sm:$0xff] %vm2264_vm4, %v2225_v46  ;;  %v2077_v5 = vmax.f32 %v22166_v61, %v1874_v20  ;;  %18611 = vmatmul.mubr.msk.f32.gmra.mrb[2].mxu1 %vm2264_vm4, %v22353_v3  ;;  %18933 = vmatmul.mubr.msk.f32.gmra.mrb[200].mxu0 %vm2264_vm4, %v4564_v10  ;;  %v4566_v0 = vld [vmem:[#allocation2 + $0x37] sm:$0xff]  ;;  %v4567_v18 = vld [vmem:[#allocation2 + $0x3f] sm:$0xff] }
 0x242   : > { %v2125_v54 = vmax.f32 %v25548_v17, %v2076_v11  ;;  %v2181_v21 = vadd.f32 %v22237_v39, %v2127_v62  ;;  %v2128_v14 = vmax.f32 %v25549_v28, %v2079_v13  ;;  %18613 = vmatprep.mubr.msk.f32.mxu1 %vm2264_vm4, %v22355_v58  ;;  %18935 = vmatprep.mubr.msk.f32.mxu0 %vm2264_vm4, %v4565_v22  ;;  %v25551_v61 = vld [vmem:[#allocation47_spill] sm:$0xff]  ;;  %v25555_v2 = vld [vmem:[#allocation48_spill] sm:$0xff]  ;;  %v25558_v46 = vld [vmem:[#allocation13_spill] sm:$0xff] }
 0x243   : > { %v25552_v8 = vmax.f32 %v25550_v4, %v25551_v61  ;;  %v25561_v50 = vld [vmem:[#allocation82_spill] sm:$0xff]  ;;  %v25563_v61 = vld [vmem:[#allocation16_spill] sm:$0xff] }
 0x244   : > { %v2179_v26 = vadd.f32 %v22237_v39, %v2125_v54  ;;  %v2230_v42 = vmax.f32 %v2181_v21, 0.0  ;;  %v2182_v45 = vadd.f32 %v22237_v39, %v2128_v14  ;;  %v25562_v28 = vld [vmem:[#allocation78_spill] sm:$0xff] }
 0x245   : > { %v2126_v7 = vmax.f32 %v25552_v8, %v2077_v5  ;;  %v18572_v6 = vpop.f32.mrb[164].mxu0  ;;  %18614 = vmatmul.mubr.msk.f32.gmra.mrb[4].mxu1 %vm2264_vm4, %v22377_v40  ;;  %18936 = vmatmul.mubr.msk.f32.gmra.mrb[202].mxu0 %vm2264_vm4, %v4566_v0  ;;  %v25564_v8 = vld [vmem:[#allocation53_spill] sm:$0xff] }
 0x246   : > { %v2228_v38 = vmax.f32 %v2179_v26, 0.0  ;;  %2280 = vst.msk [vmem:[#allocation2 + $0x78] sm:$0xff] %vm2264_vm4, %v2230_v42  ;;  %v2231_v56 = vmax.f32 %v2182_v45, 0.0  ;;  %v2082_v30 = vmax.f32 %v22178_v51, %v18572_v6  ;;  %v1887_v47 = vpop.f32.mrb[165].mxu0  ;;  %18938 = vmatprep.mubr.msk.f32.mxu0 %vm2264_vm4, %v4567_v18  ;;  %v22386_v59 = vld [vmem:[#allocation2 + $0x41] sm:$0xff]  ;;  %v25553_v51 = vmax.f32 %v21793_v27, %v21986_v34  ;;  %v25566_v45 = vld [vmem:[#allocation79_spill] sm:$0xff] }
 0x247   : > { %v2180_v25 = vadd.f32 %v22237_v39, %v2126_v7  ;;  %v2080_v60 = vmax.f32 %v22168_v29, %v1887_v47  ;;  %v18573_v24 = vpop.f32.mrb[166].mxu0  ;;  %18616 = vmatprep.mubr.msk.f32.mxu1 %vm2264_vm4, %v22386_v59  ;;  %v4568_v41 = vld [vmem:[#allocation2 + $0x47] sm:$0xff]  ;;  %v22421_v62 = vld [vmem:[#allocation2 + $0x59] sm:$0xff]  ;;  %v25565_v7 = vmax.f32 %v25563_v61, %v25564_v8 }
 0x248   : > { %2278 = vst.msk [vmem:[#allocation2 + $0x68] sm:$0xff] %vm2264_vm4, %v2228_v38  ;;  %2281 = vst.msk [vmem:[#allocation2 + $0x80] sm:$0xff] %vm2264_vm4, %v2231_v56  ;;  %v2131_v35 = vmax.f32 %v25553_v51, %v2082_v30  ;;  %v2083_v1 = vmax.f32 %v22172_v48, %v18573_v24  ;;  %v1890_v37 = vpop.f32.mrb[167].mxu0  ;;  %v22397_v19 = vld [vmem:[#allocation2 + $0x49] sm:$0xff]  ;;  %v22399_v44 = vld [vmem:[#allocation2 + $0x51] sm:$0xff]  ;;  %v25557_v48 = vmax.f32 %v21802_v31, %v21996_v12 }
 0x249   : > { %v2229_v53 = vmax.f32 %v2180_v25, 0.0  ;;  %v4569_v9 = vld [vmem:[#allocation2 + $0x4f] sm:$0xff]  ;;  %v2081_v36 = vmax.f32 %v22174_v55, %v1890_v37  ;;  %18617 = vmatmul.mubr.msk.f32.gmra.mrb[6].mxu1 %vm2264_vm4, %v22397_v19  ;;  %18939 = vmatmul.mubr.msk.f32.gmra.mrb[204].mxu0 %vm2264_vm4, %v4568_v41  ;;  %v25559_v55 = vld [vmem:[#allocation49_spill] sm:$0xff]  ;;  %v4570_v13 = vld [vmem:[#allocation2 + $0x57] sm:$0xff] }
 0x24a   : > { %v25554_v29 = vld [vmem:[#allocation14_spill] sm:$0xff]  ;;  %v2185_v27 = vadd.f32 %v22237_v39, %v2131_v35  ;;  %v2132_v34 = vmax.f32 %v25557_v48, %v2083_v1  ;;  %18619 = vmatprep.mubr.msk.f32.mxu1 %vm2264_vm4, %v22399_v44  ;;  %18941 = vmatprep.mubr.msk.f32.mxu0 %vm2264_vm4, %v4569_v9  ;;  %v25560_v11 = vmax.f32 %v25558_v46, %v25559_v55  ;;  %v4571_v22 = vld [vmem:[#allocation2 + $0x5f] sm:$0xff]  ;;  %v25571_v51 = vld [vmem:[#allocation19_spill] sm:$0xff] }
 0x24b   : > { %2279 = vst.msk [vmem:[#allocation2 + $0x70] sm:$0xff] %vm2264_vm4, %v2229_v53  ;;  %v25556_v43 = vmax.f32 %v25554_v29, %v25555_v2  ;;  %v25567_v56 = vld [vmem:[#allocation17_spill] sm:$0xff]  ;;  %v25568_v30 = vld [vmem:[#allocation50_spill] sm:$0xff]  ;;  %v25572_v35 = vld [vmem:[#allocation55_spill] sm:$0xff] }
 0x24c   : > { %v2130_v52 = vmax.f32 %v25560_v11, %v2081_v36  ;;  %v2234_v10 = vmax.f32 %v2185_v27, 0.0  ;;  %v2186_v57 = vadd.f32 %v22237_v39, %v2132_v34  ;;  %v25569_v47 = vmax.f32 %v25567_v56, %v25568_v30  ;;  %v25574_v29 = vld [vmem:[#allocation15_spill] sm:$0xff] }
 0x24d   : > { %v2129_v16 = vmax.f32 %v25556_v43, %v2080_v60  ;;  %v18576_v12 = vpop.f32.mrb[168].mxu0  ;;  %18620 = vmatmul.mubr.msk.f32.gmra.mrb[8].mxu1 %vm2264_vm4, %v22421_v62  ;;  %18942 = vmatmul.mubr.msk.f32.gmra.mrb[206].mxu0 %vm2264_vm4, %v4570_v13  ;;  %v25570_v60 = vld [vmem:[#allocation80_spill] sm:$0xff]  ;;  %v25573_v1 = vmax.f32 %v25571_v51, %v25572_v35  ;;  %v25575_v2 = vld [vmem:[#allocation51_spill] sm:$0xff]  ;;  %v25590_v51 = vld [vmem:[#allocation18_spill] sm:$0xff] }
 0x24e   : > { %v2184_v31 = vadd.f32 %v22237_v39, %v2130_v52  ;;  %2284 = vst.msk [vmem:[#allocation2 + $0x98] sm:$0xff] %vm2264_vm4, %v2234_v10  ;;  %v2235_v63 = vmax.f32 %v2186_v57, 0.0  ;;  %v2086_v17 = vmax.f32 %v25561_v50, %v18576_v12  ;;  %v1903_v54 = vpop.f32.mrb[169].mxu0  ;;  %18944 = vmatprep.mubr.msk.f32.mxu0 %vm2264_vm4, %v4571_v22  ;;  %v25576_v43 = vmax.f32 %v25574_v29, %v25575_v2  ;;  %v25577_v10 = vld [vmem:[#allocation86_spill] sm:$0xff]  ;;  %v25578_v12 = vld [vmem:[#allocation81_spill] sm:$0xff] }
 0x24f   : > { %v2183_v49 = vadd.f32 %v22237_v39, %v2129_v16  ;;  %v22430_v5 = vld [vmem:[#allocation2 + $0x61] sm:$0xff]  ;;  %v2084_v14 = vmax.f32 %v25562_v28, %v1903_v54  ;;  %v18577_v26 = vpop.f32.mrb[170].mxu0  ;;  %v22465_v48 = vld [vmem:[#allocation2 + $0x79] sm:$0xff]  ;;  %v25591_v35 = vld [vmem:[#allocation54_spill] sm:$0xff] }
 0x250   : > { %v2233_v21 = vmax.f32 %v2184_v31, 0.0  ;;  %18622 = vmatprep.mubr.msk.f32.mxu1 %vm2264_vm4, %v22430_v5  ;;  %v4572_v4 = vld [vmem:[#allocation2 + $0x67] sm:$0xff]  ;;  %2285 = vst.msk [vmem:[#allocation2 + $0xa0] sm:$0xff] %vm2264_vm4, %v2235_v63  ;;  %v2135_v42 = vmax.f32 %v25565_v7, %v2086_v17  ;;  %v2087_v0 = vmax.f32 %v25566_v45, %v18577_v26  ;;  %v1906_v38 = vpop.f32.mrb[171].mxu0  ;;  %v4575_v11 = vld [vmem:[#allocation2 + $0x7f] sm:$0xff] }
 0x251   : > { %v2232_v20 = vmax.f32 %v2183_v49, 0.0  ;;  %v2133_v53 = vmax.f32 %v25569_v47, %v2084_v14  ;;  %v2085_v24 = vmax.f32 %v25570_v60, %v1906_v38  ;;  %18945 = vmatmul.mubr.msk.f32.gmra.mrb[208].mxu0 %vm2264_vm4, %v4572_v4  ;;  %v25579_v17 = vld [vmem:[#allocation20_spill] sm:$0xff]  ;;  %v25580_v54 = vld [vmem:[#allocation57_spill] sm:$0xff]  ;;  %v25582_v14 = vld [vmem:[#allocation83_spill] sm:$0xff] }
 0x252   : > { %v22441_v25 = vld [vmem:[#allocation2 + $0x69] sm:$0xff]  ;;  %v22443_v6 = vld [vmem:[#allocation2 + $0x71] sm:$0xff]  ;;  %2283 = vst.msk [vmem:[#allocation2 + $0x90] sm:$0xff] %vm2264_vm4, %v2233_v21  ;;  %v2189_v41 = vadd.f32 %v22237_v39, %v2135_v42  ;;  %v2136_v37 = vmax.f32 %v25573_v1, %v2087_v0  ;;  %v25581_v21 = vmax.f32 %v25579_v17, %v25580_v54  ;;  %v25584_v45 = vld [vmem:[#allocation52_spill] sm:$0xff]  ;;  %v25592_v1 = vmax.f32 %v25590_v51, %v25591_v35 }
 0x253   : > { %2282 = vst.msk [vmem:[#allocation2 + $0x88] sm:$0xff] %vm2264_vm4, %v2232_v20  ;;  %v4573_v18 = vld [vmem:[#allocation2 + $0x6f] sm:$0xff]  ;;  %18623 = vmatmul.mubr.msk.f32.gmra.mrb[10].mxu1 %vm2264_vm4, %v22441_v25  ;;  %v2187_v9 = vadd.f32 %v22237_v39, %v2133_v53  ;;  %v2134_v16 = vmax.f32 %v25576_v43, %v2085_v24  ;;  %v4574_v34 = vld [vmem:[#allocation2 + $0x77] sm:$0xff]  ;;  %v25583_v42 = vld [vmem:[#allocation21_spill] sm:$0xff] }
 0x254   : > { %18625 = vmatprep.mubr.msk.f32.mxu1 %vm2264_vm4, %v22443_v6  ;;  %18947 = vmatprep.mubr.msk.f32.mxu0 %vm2264_vm4, %v4573_v18  ;;  %v2238_v36 = vmax.f32 %v2189_v41, 0.0  ;;  %v2190_v27 = vadd.f32 %v22237_v39, %v2136_v37  ;;  %v25585_v0 = vmax.f32 %v25583_v42, %v25584_v45  ;;  %v25586_v18 = vld [vmem:[#allocation84_spill] sm:$0xff]  ;;  %v25587_v47 = vld [vmem:[#allocation23_spill] sm:$0xff]  ;;  %v25606_v51 = vld [vmem:[#allocation22_spill] sm:$0xff] }
 0x255   : > { %v2236_v49 = vmax.f32 %v2187_v9, 0.0  ;;  %v2188_v46 = vadd.f32 %v22237_v39, %v2134_v16  ;;  %v18580_v55 = vpop.f32.mrb[172].mxu0  ;;  %18948 = vmatmul.mubr.msk.f32.gmra.mrb[210].mxu0 %vm2264_vm4, %v4574_v34  ;;  %v25588_v53 = vld [vmem:[#allocation59_spill] sm:$0xff]  ;;  %v25600_v42 = vld [vmem:[#allocation56_spill] sm:$0xff]  ;;  %v25607_v35 = vld [vmem:[#allocation58_spill] sm:$0xff] }
 0x256   : > { %2288 = vst.msk [vmem:[#allocation2 + $0xb8] sm:$0xff] %vm2264_vm4, %v2238_v36  ;;  %v2239_v52 = vmax.f32 %v2190_v27, 0.0  ;;  %v2090_v57 = vmax.f32 %v25577_v10, %v18580_v55  ;;  %v1919_v13 = vpop.f32.mrb[173].mxu0  ;;  %18950 = vmatprep.mubr.msk.f32.mxu0 %vm2264_vm4, %v4575_v11  ;;  %v25589_v60 = vmax.f32 %v25587_v47, %v25588_v53  ;;  %v25598_v54 = vld [vmem:[#allocation87_spill] sm:$0xff] }
 0x257   : > { %18626 = vmatmul.mubr.msk.f32.gmra.mrb[12].mxu1 %vm2264_vm4, %v22465_v48  ;;  %2286 = vst.msk [vmem:[#allocation2 + $0xa8] sm:$0xff] %vm2264_vm4, %v2236_v49  ;;  %v2237_v31 = vmax.f32 %v2188_v46, 0.0  ;;  %v2088_v22 = vmax.f32 %v25578_v12, %v1919_v13  ;;  %v18581_v63 = vpop.f32.mrb[174].mxu0  ;;  %v22509_v2 = vld [vmem:[#allocation2 + $0x99] sm:$0xff]  ;;  %v25593_v46 = vld [vmem:[#allocation90_spill] sm:$0xff] }
 0x258   : > { %2289 = vst.msk [vmem:[#allocation2 + $0xc0] sm:$0xff] %vm2264_vm4, %v2239_v52  ;;  %v2139_v28 = vmax.f32 %v25581_v21, %v2090_v57  ;;  %v2091_v26 = vmax.f32 %v25582_v14, %v18581_v63  ;;  %v1922_v4 = vpop.f32.mrb[175].mxu0  ;;  %v4579_v34 = vld [vmem:[#allocation2 + $0x9f] sm:$0xff]  ;;  %v25604_v47 = vld [vmem:[#allocation63_spill] sm:$0xff] }
 0x259   : > { %v22487_v8 = vld [vmem:[#allocation2 + $0x91] sm:$0xff]  ;;  %2287 = vst.msk [vmem:[#allocation2 + $0xb0] sm:$0xff] %vm2264_vm4, %v2237_v31  ;;  %v2137_v38 = vmax.f32 %v25585_v0, %v2088_v22  ;;  %v2089_v56 = vmax.f32 %v25586_v18, %v1922_v4  ;;  %v25594_v57 = vld [vmem:[#allocation85_spill] sm:$0xff]  ;;  %v25595_v22 = vld [vmem:[#allocation24_spill] sm:$0xff] }
 0x25a   : > { %v22474_v20 = vld [vmem:[#allocation2 + $0x81] sm:$0xff]  ;;  %v22485_v61 = vld [vmem:[#allocation2 + $0x89] sm:$0xff]  ;;  %v2193_v30 = vadd.f32 %v22237_v39, %v2139_v28  ;;  %v2140_v24 = vmax.f32 %v25589_v60, %v2091_v26  ;;  %v4578_v43 = vld [vmem:[#allocation2 + $0x97] sm:$0xff] }
 0x25b   : > { %18628 = vmatprep.mubr.msk.f32.mxu1 %vm2264_vm4, %v22474_v20  ;;  %v4576_v50 = vld [vmem:[#allocation2 + $0x87] sm:$0xff]  ;;  %v4577_v7 = vld [vmem:[#allocation2 + $0x8f] sm:$0xff]  ;;  %v2191_v41 = vadd.f32 %v22237_v39, %v2137_v38  ;;  %v2138_v37 = vmax.f32 %v25592_v1, %v2089_v56  ;;  %v25602_v38 = vld [vmem:[#allocation88_spill] sm:$0xff]  ;;  %v25608_v1 = vmax.f32 %v25606_v51, %v25607_v35 }
 0x25c   : > { %18629 = vmatmul.mubr.msk.f32.gmra.mrb[14].mxu1 %vm2264_vm4, %v22485_v61  ;;  %18951 = vmatmul.mubr.msk.f32.gmra.mrb[212].mxu0 %vm2264_vm4, %v4576_v50  ;;  %v2242_v9 = vmax.f32 %v2193_v30, 0.0  ;;  %v2194_v29 = vadd.f32 %v22237_v39, %v2140_v24  ;;  %v25596_v63 = vld [vmem:[#allocation61_spill] sm:$0xff]  ;;  %v25603_v30 = vld [vmem:[#allocation27_spill] sm:$0xff]  ;;  %v22551_v24 = vld [vmem:[%s25306_s1 + $0x4c] sm:$0x7] }
 0x25d   : > { %18631 = vmatprep.mubr.msk.f32.mxu1 %vm2264_vm4, %v22487_v8  ;;  %18953 = vmatprep.mubr.msk.f32.mxu0 %vm2264_vm4, %v4577_v7  ;;  %v2240_v16 = vmax.f32 %v2191_v41, 0.0  ;;  %v2192_v36 = vadd.f32 %v22237_v39, %v2138_v37  ;;  %v18584_v27 = vpop.f32.mrb[176].mxu0  ;;  %v25597_v50 = vmax.f32 %v25595_v22, %v25596_v63  ;;  %v25599_v7 = vld [vmem:[#allocation25_spill] sm:$0xff]  ;;  %v25605_v53 = vmax.f32 %v25603_v30, %v25604_v47  ;;  %v25618_v47 = vld [vmem:[#allocation92_spill] sm:$0xff]  ;;  %v25620_v51 = vld [vmem:[#allocation67_spill] sm:$0xff] }
 0x25e   : > { %2292 = vst.msk [vmem:[#allocation2 + $0xd8] sm:$0xff] %vm2264_vm4, %v2242_v9  ;;  %v2243_v49 = vmax.f32 %v2194_v29, 0.0  ;;  %v2094_v55 = vmax.f32 %v25593_v46, %v18584_v27  ;;  %v1935_v11 = vpop.f32.mrb[177].mxu0  ;;  %v22518_v52 = vld [vmem:[#allocation2 + $0xa1] sm:$0xff]  ;;  %v25601_v45 = vmax.f32 %v25599_v7, %v25600_v42  ;;  %21258 = vmatprep.subr.msk.bf16.mxu0 %vm2526_vm3, %v22551_v24 }
 0x25f   : > { %2290 = vst.msk [vmem:[#allocation2 + $0xc8] sm:$0xff] %vm2264_vm4, %v2240_v16  ;;  %v2241_v10 = vmax.f32 %v2192_v36, 0.0  ;;  %v2092_v13 = vmax.f32 %v25594_v57, %v1935_v11  ;;  %v18585_v31 = vpop.f32.mrb[178].mxu0  ;;  %v4580_v12 = vld [vmem:[#allocation2 + $0xa7] sm:$0xff] }
 0x260   : > { %18632 = vmatmul.mubr.msk.f32.gmra.mrb[16].mxu1 %vm2264_vm4, %v22509_v2  ;;  %18954 = vmatmul.mubr.msk.f32.gmra.mrb[214].mxu0 %vm2264_vm4, %v4578_v43  ;;  %2293 = vst.msk [vmem:[#allocation2 + $0xe0] sm:$0xff] %vm2264_vm4, %v2243_v49  ;;  %v2143_v17 = vmax.f32 %v25597_v50, %v2094_v55  ;;  %v2095_v21 = vmax.f32 %v25598_v54, %v18585_v31  ;;  %v1938_v28 = vpop.f32.mrb[179].mxu0  ;;  %v22529_v14 = vld [vmem:[#allocation2 + $0xa9] sm:$0xff]  ;;  %v22531_v26 = vld [vmem:[#allocation2 + $0xb1] sm:$0xff]  ;;  %v22560_v43 = vld [vmem:[#allocation2 + $0xb9] sm:$0xff] }
 0x261   : > { %18956 = vmatprep.mubr.msk.f32.mxu0 %vm2264_vm4, %v4579_v34  ;;  %18634 = vmatprep.mubr.msk.f32.mxu1 %vm2264_vm4, %v22518_v52  ;;  %v4581_v4 = vld [vmem:[#allocation2 + $0xaf] sm:$0xff]  ;;  %2291 = vst.msk [vmem:[#allocation2 + $0xd0] sm:$0xff] %vm2264_vm4, %v2241_v10  ;;  %v2141_v0 = vmax.f32 %v25601_v45, %v2092_v13  ;;  %v2093_v18 = vmax.f32 %v25602_v38, %v1938_v28  ;;  %v4582_v16 = vld [vmem:[#allocation2 + $0xb7] sm:$0xff]  ;;  %v4583_v49 = vld [vmem:[#allocation2 + $0xbf] sm:$0xff] }
 0x262   : > { %v2197_v56 = vadd.f32 %v22237_v39, %v2143_v17  ;;  %v2144_v60 = vmax.f32 %v25605_v53, %v2095_v21  ;;  %v25609_v55 = vld [vmem:[#allocation94_spill] sm:$0xff]  ;;  %v25610_v31 = vld [vmem:[#allocation89_spill] sm:$0xff]  ;;  %v25611_v50 = vld [vmem:[#allocation28_spill] sm:$0xff] }
 0x263   : > { %v2195_v41 = vadd.f32 %v22237_v39, %v2141_v0  ;;  %v2142_v37 = vmax.f32 %v25608_v1, %v2093_v18  ;;  %v25612_v17 = vld [vmem:[#allocation65_spill] sm:$0xff]  ;;  %v25614_v28 = vld [vmem:[#allocation91_spill] sm:$0xff]  ;;  %v25616_v18 = vld [vmem:[#allocation60_spill] sm:$0xff] }
 0x264   : > { %18635 = vmatmul.mubr.msk.f32.gmra.mrb[18].mxu1 %vm2264_vm4, %v22529_v14  ;;  %18957 = vmatmul.mubr.msk.f32.gmra.mrb[216].mxu0 %vm2264_vm4, %v4580_v12  ;;  %v2246_v9 = vmax.f32 %v2197_v56, 0.0  ;;  %v2198_v29 = vadd.f32 %v22237_v39, %v2144_v60  ;;  %v25613_v54 = vmax.f32 %v25611_v50, %v25612_v17  ;;  %v25615_v38 = vld [vmem:[#allocation29_spill] sm:$0xff] }
 0x265   : > { %18637 = vmatprep.mubr.msk.f32.mxu1 %vm2264_vm4, %v22531_v26  ;;  %18959 = vmatprep.mubr.msk.f32.mxu0 %vm2264_vm4, %v4581_v4  ;;  %v2244_v36 = vmax.f32 %v2195_v41, 0.0  ;;  %v2196_v27 = vadd.f32 %v22237_v39, %v2142_v37  ;;  %v18588_v34 = vpop.f32.mrb[180].mxu0  ;;  %v25617_v56 = vmax.f32 %v25615_v38, %v25616_v18  ;;  %v25619_v41 = vld [vmem:[#allocation31_spill] sm:$0xff] }
 0x266   : > { %2296 = vst.msk [vmem:[#allocation2 + $0xf8] sm:$0xff] %vm2264_vm4, %v2246_v9  ;;  %v2247_v46 = vmax.f32 %v2198_v29, 0.0  ;;  %v2098_v11 = vmax.f32 %v25609_v55, %v18588_v34  ;;  %v1951_v10 = vpop.f32.mrb[181].mxu0  ;;  %v22569_v57 = vld [vmem:[#allocation2 + $0xc1] sm:$0xff]  ;;  %v25621_v35 = vmax.f32 %v25619_v41, %v25620_v51  ;;  %v25622_v9 = vld [vmem:[#allocation26_spill] sm:$0xff] }
 0x267   : > { %2294 = vst.msk [vmem:[#allocation2 + $0xe8] sm:$0xff] %vm2264_vm4, %v2244_v36  ;;  %v2245_v13 = vmax.f32 %v2196_v27, 0.0  ;;  %v2096_v12 = vmax.f32 %v25610_v31, %v1951_v10  ;;  %v18589_v22 = vpop.f32.mrb[182].mxu0  ;;  %v4584_v63 = vld [vmem:[#allocation2 + $0xc7] sm:$0xff] }
 0x268   : > { %18638 = vmatmul.mubr.msk.f32.gmra.mrb[20].mxu1 %vm2264_vm4, %v22560_v43  ;;  %18960 = vmatmul.mubr.msk.f32.gmra.mrb[218].mxu0 %vm2264_vm4, %v4582_v16  ;;  %2297 = vst.msk [vmem:[#allocation2 + $0x100] sm:$0xff] %vm2264_vm4, %v2247_v46  ;;  %v2147_v21 = vmax.f32 %v25613_v54, %v2098_v11  ;;  %v2099_v4 = vmax.f32 %v25614_v28, %v18589_v22  ;;  %v1954_v7 = vpop.f32.mrb[183].mxu0  ;;  %v22580_v42 = vld [vmem:[#allocation2 + $0xc9] sm:$0xff]  ;;  %v22582_v45 = vld [vmem:[#allocation2 + $0xd1] sm:$0xff] }
 0x269   : > { %18962 = vmatprep.mubr.msk.f32.mxu0 %vm2264_vm4, %v4583_v49  ;;  %18640 = vmatprep.mubr.msk.f32.mxu1 %vm2264_vm4, %v22569_v57  ;;  %v4585_v0 = vld [vmem:[#allocation2 + $0xcf] sm:$0xff]  ;;  %2295 = vst.msk [vmem:[#allocation2 + $0xf0] sm:$0xff] %vm2264_vm4, %v2245_v13  ;;  %v2145_v30 = vmax.f32 %v25617_v56, %v2096_v12  ;;  %v2097_v53 = vmax.f32 %v25618_v47, %v1954_v7  ;;  %v22604_v49 = vld [vmem:[#allocation2 + $0xd9] sm:$0xff]  ;;  %v25626_v54 = vld [vmem:[#allocation93_spill] sm:$0xff] }
 0x26a   : > { %v2201_v60 = vadd.f32 %v22237_v39, %v2147_v21  ;;  %v2148_v1 = vmax.f32 %v25621_v35, %v2099_v4  ;;  %v25623_v29 = vld [vmem:[#allocation62_spill] sm:$0xff]  ;;  %v4586_v46 = vld [vmem:[#allocation2 + $0xd7] sm:$0xff]  ;;  %v4587_v13 = vld [vmem:[#allocation2 + $0xdf] sm:$0xff] }
 0x26b   : > { %v2199_v37 = vadd.f32 %v22237_v39, %v2145_v30  ;;  %v25624_v16 = vmax.f32 %v25622_v9, %v25623_v29  ;;  %v25625_v12 = vld [vmem:[#allocation98_spill] sm:$0xff]  ;;  %v25627_v7 = vld [vmem:[#allocation32_spill] sm:$0xff]  ;;  %v25630_v56 = vld [vmem:[#allocation95_spill] sm:$0xff] }
 0x26c   : > { %18641 = vmatmul.mubr.msk.f32.gmra.mrb[22].mxu1 %vm2264_vm4, %v22580_v42  ;;  %18963 = vmatmul.mubr.msk.f32.gmra.mrb[220].mxu0 %vm2264_vm4, %v4584_v63  ;;  %v2250_v27 = vmax.f32 %v2201_v60, 0.0  ;;  %v2202_v34 = vadd.f32 %v22237_v39, %v2148_v1  ;;  %v25631_v51 = vld [vmem:[#allocation33_spill] sm:$0xff]  ;;  %v25632_v35 = vld [vmem:[#allocation64_spill] sm:$0xff] }
 0x26d   : > { %18643 = vmatprep.mubr.msk.f32.mxu1 %vm2264_vm4, %v22582_v45  ;;  %18965 = vmatprep.mubr.msk.f32.mxu0 %vm2264_vm4, %v4585_v0  ;;  %v2146_v36 = vmax.f32 %v25624_v16, %v2097_v53  ;;  %v2248_v55 = vmax.f32 %v2199_v37, 0.0  ;;  %v18592_v10 = vpop.f32.mrb[184].mxu0  ;;  %v25628_v0 = vld [vmem:[#allocation69_spill] sm:$0xff]  ;;  %v25633_v1 = vmax.f32 %v25631_v51, %v25632_v35  ;;  %v25634_v9 = vld [vmem:[#allocation96_spill] sm:$0xff] }
 0x26e   : > { %2300 = vst.msk [vmem:[#allocation2 + $0x118] sm:$0xff] %vm2264_vm4, %v2250_v27  ;;  %v2251_v31 = vmax.f32 %v2202_v34, 0.0  ;;  %v2102_v22 = vmax.f32 %v25625_v12, %v18592_v10  ;;  %v1967_v63 = vpop.f32.mrb[185].mxu0  ;;  %v22613_v50 = vld [vmem:[#allocation2 + $0xe1] sm:$0xff]  ;;  %v25629_v38 = vmax.f32 %v25627_v7, %v25628_v0  ;;  %v25636_v27 = vld [vmem:[#allocation71_spill] sm:$0xff]  ;;  %v25639_v10 = vld [vmem:[#allocation66_spill] sm:$0xff] }
 0x26f   : > { %v2200_v11 = vadd.f32 %v22237_v39, %v2146_v36  ;;  %2298 = vst.msk [vmem:[#allocation2 + $0x108] sm:$0xff] %vm2264_vm4, %v2248_v55  ;;  %v2100_v21 = vmax.f32 %v25626_v54, %v1967_v63  ;;  %v18593_v28 = vpop.f32.mrb[186].mxu0  ;;  %v4588_v4 = vld [vmem:[#allocation2 + $0xe7] sm:$0xff]  ;;  %v25635_v36 = vld [vmem:[#allocation35_spill] sm:$0xff] }
 0x270   : > { %18644 = vmatmul.mubr.msk.f32.gmra.mrb[24].mxu1 %vm2264_vm4, %v22604_v49  ;;  %18966 = vmatmul.mubr.msk.f32.gmra.mrb[222].mxu0 %vm2264_vm4, %v4586_v46  ;;  %2301 = vst.msk [vmem:[#allocation2 + $0x120] sm:$0xff] %vm2264_vm4, %v2251_v31  ;;  %v2151_v18 = vmax.f32 %v25629_v38, %v2102_v22  ;;  %v2103_v30 = vmax.f32 %v25630_v56, %v18593_v28  ;;  %v1970_v47 = vpop.f32.mrb[187].mxu0  ;;  %v22624_v53 = vld [vmem:[#allocation2 + $0xe9] sm:$0xff]  ;;  %v22626_v60 = vld [vmem:[#allocation2 + $0xf1] sm:$0xff]  ;;  %v22648_v63 = vld [vmem:[#allocation2 + $0xf9] sm:$0xff] }
 0x271   : > { %18968 = vmatprep.mubr.msk.f32.mxu0 %vm2264_vm4, %v4587_v13  ;;  %v2249_v17 = vmax.f32 %v2200_v11, 0.0  ;;  %18646 = vmatprep.mubr.msk.f32.mxu1 %vm2264_vm4, %v22613_v50  ;;  %v4589_v41 = vld [vmem:[#allocation2 + $0xef] sm:$0xff]  ;;  %v2149_v37 = vmax.f32 %v25633_v1, %v2100_v21  ;;  %v2101_v29 = vmax.f32 %v25634_v9, %v1970_v47  ;;  %v25637_v34 = vmax.f32 %v25635_v36, %v25636_v27  ;;  %v25642_v47 = vld [vmem:[#allocation97_spill] sm:$0xff]  ;;  %v25643_v1 = vld [vmem:[#allocation36_spill] sm:$0xff] }
 0x272   : > { %v2205_v16 = vadd.f32 %v22237_v39, %v2151_v18  ;;  %v25638_v11 = vld [vmem:[#allocation30_spill] sm:$0xff] }
 0x273   : > { %2299 = vst.msk [vmem:[#allocation2 + $0x110] sm:$0xff] %vm2264_vm4, %v2249_v17  ;;  %v2152_v46 = vmax.f32 %v25637_v34, %v2103_v30  ;;  %v2203_v55 = vadd.f32 %v22237_v39, %v2149_v37  ;;  %v25640_v13 = vmax.f32 %v25638_v11, %v25639_v10  ;;  %v4590_v17 = vld [vmem:[#allocation2 + $0xf7] sm:$0xff]  ;;  %v25641_v0 = vld [vmem:[#allocation102_spill] sm:$0xff]  ;;  %v25644_v37 = vld [vmem:[#allocation73_spill] sm:$0xff] }
 0x274   : > { %18647 = vmatmul.mubr.msk.f32.gmra.mrb[26].mxu1 %vm2264_vm4, %v22624_v53  ;;  %18969 = vmatmul.mubr.msk.f32.gmra.mrb[224].mxu0 %vm2264_vm4, %v4588_v4  ;;  %v2254_v12 = vmax.f32 %v2205_v16, 0.0  ;;  %v4591_v4 = vld [vmem:[#allocation2 + $0xff] sm:$0xff]  ;;  %v25645_v9 = vmax.f32 %v25643_v1, %v25644_v37  ;;  %v25646_v16 = vld [vmem:[#allocation99_spill] sm:$0xff] }
 0x275   : > { %18649 = vmatprep.mubr.msk.f32.mxu1 %vm2264_vm4, %v22626_v60  ;;  %18971 = vmatprep.mubr.msk.f32.mxu0 %vm2264_vm4, %v4589_v41  ;;  %v2150_v31 = vmax.f32 %v25640_v13, %v2101_v29  ;;  %v2206_v22 = vadd.f32 %v22237_v39, %v2152_v46  ;;  %v2252_v54 = vmax.f32 %v2203_v55, 0.0  ;;  %v18596_v28 = vpop.f32.mrb[188].mxu0  ;;  %v25647_v11 = vld [vmem:[#allocation37_spill] sm:$0xff]  ;;  %v25648_v10 = vld [vmem:[#allocation68_spill] sm:$0xff] }
 0x276   : > { %2304 = vst.msk [vmem:[#allocation2 + $0x138] sm:$0xff] %vm2264_vm4, %v2254_v12  ;;  %v2106_v38 = vmax.f32 %v25641_v0, %v18596_v28  ;;  %v1983_v18 = vpop.f32.mrb[189].mxu0  ;;  %v22657_v56 = vld [vmem:[#allocation2 + $0x101] sm:$0xff]  ;;  %v25649_v13 = vmax.f32 %v25647_v11, %v25648_v10  ;;  %v25654_v0 = vld [vmem:[#allocation34_spill] sm:$0xff] }
 0x277   : > { %v2204_v21 = vadd.f32 %v22237_v39, %v2150_v31  ;;  %v2255_v7 = vmax.f32 %v2206_v22, 0.0  ;;  %2302 = vst.msk [vmem:[#allocation2 + $0x128] sm:$0xff] %vm2264_vm4, %v2252_v54  ;;  %v2104_v41 = vmax.f32 %v25642_v47, %v1983_v18  ;;  %v18597_v51 = vpop.f32.mrb[190].mxu0  ;;  %v4592_v35 = vld [vmem:[#allocation2 + $0x107] sm:$0xff]  ;;  %v25650_v12 = vld [vmem:[#allocation100_spill] sm:$0xff]  ;;  %v25651_v54 = vld [vmem:[#allocation39_spill] sm:$0xff] }
 0x278   : > { %18650 = vmatmul.mubr.msk.f32.gmra.mrb[28].mxu1 %vm2264_vm4, %v22648_v63  ;;  %18972 = vmatmul.mubr.msk.f32.gmra.mrb[226].mxu0 %vm2264_vm4, %v4590_v17  ;;  %v2155_v29 = vmax.f32 %v25645_v9, %v2106_v38  ;;  %v2107_v36 = vmax.f32 %v25646_v16, %v18597_v51  ;;  %v1986_v27 = vpop.f32.mrb[191].mxu0  ;;  %v25655_v38 = vld [vmem:[#allocation70_spill] sm:$0xff]  ;;  %v22692_v51 = vld [vmem:[#allocation2 + $0x119] sm:$0xff] }
 0x279   : > { %18974 = vmatprep.mubr.msk.f32.mxu0 %vm2264_vm4, %v4591_v4  ;;  %v2253_v30 = vmax.f32 %v2204_v21, 0.0  ;;  %18652 = vmatprep.mubr.msk.f32.mxu1 %vm2264_vm4, %v22657_v56  ;;  %2305 = vst.msk [vmem:[#allocation2 + $0x140] sm:$0xff] %vm2264_vm4, %v2255_v7  ;;  %v2153_v31 = vmax.f32 %v25649_v13, %v2104_v41  ;;  %v2105_v22 = vmax.f32 %v25650_v12, %v1986_v27  ;;  %v25652_v21 = vld [vmem:[#allocation75_spill] sm:$0xff]  ;;  %v25658_v13 = vld [vmem:[#allocation101_spill] sm:$0xff] }
 0x27a   : > { %v22668_v34 = vld [vmem:[#allocation2 + $0x109] sm:$0xff]  ;;  %v22670_v46 = vld [vmem:[#allocation2 + $0x111] sm:$0xff]  ;;  %v2209_v17 = vadd.f32 %v22237_v39, %v2155_v29  ;;  %v25653_v28 = vmax.f32 %v25651_v54, %v25652_v21  ;;  %v25656_v18 = vmax.f32 %v25654_v0, %v25655_v38  ;;  %v4595_v29 = vld [vmem:[#allocation2 + $0x11f] sm:$0xff] }
 0x27b   : > { %v4593_v55 = vld [vmem:[#allocation2 + $0x10f] sm:$0xff]  ;;  %2303 = vst.msk [vmem:[#allocation2 + $0x130] sm:$0xff] %vm2264_vm4, %v2253_v30  ;;  %v2207_v7 = vadd.f32 %v22237_v39, %v2153_v31  ;;  %v25660_v54 = vld [vmem:[#allocation76_spill] sm:$0xff] }
 0x27c   : > { %18653 = vmatmul.mubr.msk.f32.gmra.mrb[30].mxu1 %vm2264_vm4, %v22668_v34  ;;  %18975 = vmatmul.mubr.msk.f32.gmra.mrb[228].mxu0 %vm2264_vm4, %v4592_v35  ;;  %v2156_v4 = vmax.f32 %v25653_v28, %v2107_v36  ;;  %v2154_v30 = vmax.f32 %v25656_v18, %v2105_v22  ;;  %v2258_v47 = vmax.f32 %v2209_v17, 0.0  ;;  %v4594_v35 = vld [vmem:[#allocation2 + $0x117] sm:$0xff]  ;;  %v25657_v36 = vld [vmem:[#allocation105_spill] sm:$0xff] }
 0x27d   : > { %18655 = vmatprep.mubr.msk.f32.mxu1 %vm2264_vm4, %v22670_v46  ;;  %18977 = vmatprep.mubr.msk.f32.mxu0 %vm2264_vm4, %v4593_v55  ;;  %v2256_v1 = vmax.f32 %v2207_v7, 0.0  ;;  %v18600_v9 = vpop.f32.mrb[192].mxu0  ;;  %v25659_v17 = vld [vmem:[#allocation40_spill] sm:$0xff] }
 0x27e   : > { %v2210_v41 = vadd.f32 %v22237_v39, %v2156_v4  ;;  %v2208_v37 = vadd.f32 %v22237_v39, %v2154_v30  ;;  %2308 = vst.msk [vmem:[#allocation2 + $0x158] sm:$0xff] %vm2264_vm4, %v2258_v47  ;;  %v2110_v27 = vmax.f32 %v25657_v36, %v18600_v9  ;;  %v1999_v55 = vpop.f32.mrb[193].mxu0  ;;  %v22701_v11 = vld [vmem:[#allocation2 + $0x121] sm:$0xff]  ;;  %v25661_v21 = vmax.f32 %v25659_v17, %v25660_v54  ;;  %v25662_v4 = vld [vmem:[#allocation103_spill] sm:$0xff] }
 0x27f   : > { %2306 = vst.msk [vmem:[#allocation2 + $0x148] sm:$0xff] %vm2264_vm4, %v2256_v1  ;;  %v2108_v31 = vmax.f32 %v25658_v13, %v1999_v55  ;;  %v18601_v12 = vpop.f32.mrb[194].mxu0  ;;  %v4596_v22 = vld [vmem:[#allocation2 + $0x127] sm:$0xff] }
 0x280   : > { %18656 = vmatmul.mubr.msk.f32.gmra.mrb[32].mxu1 %vm2264_vm4, %v22692_v51  ;;  %18978 = vmatmul.mubr.msk.f32.gmra.mrb[230].mxu0 %vm2264_vm4, %v4594_v35  ;;  %v2259_v16 = vmax.f32 %v2210_v41, 0.0  ;;  %v2257_v10 = vmax.f32 %v2208_v37, 0.0  ;;  %v2159_v28 = vmax.f32 %v25661_v21, %v2110_v27  ;;  %v2111_v7 = vmax.f32 %v25662_v4, %v18601_v12  ;;  %v2002_v0 = vpop.f32.mrb[195].mxu0  ;;  %v25663_v47 = vld [vmem:[#allocation41_spill] sm:$0xff]  ;;  %v25664_v41 = vld [vmem:[#allocation72_spill] sm:$0xff]  ;;  %v25670_v13 = vld [vmem:[#allocation38_spill] sm:$0xff] }
 0x281   : > { %18980 = vmatprep.mubr.msk.f32.mxu0 %vm2264_vm4, %v4595_v29  ;;  %18658 = vmatprep.mubr.msk.f32.mxu1 %vm2264_vm4, %v22701_v11  ;;  %v25665_v35 = vmax.f32 %v25663_v47, %v25664_v41  ;;  %v25666_v37 = vld [vmem:[#allocation104_spill] sm:$0xff]  ;;  %v25668_v36 = vld [vmem:[#allocation77_spill] sm:$0xff] }
 0x282   : > { %2309 = vst.msk [vmem:[#allocation2 + $0x160] sm:$0xff] %vm2264_vm4, %v2259_v16  ;;  %v22712_v38 = vld [vmem:[#allocation2 + $0x129] sm:$0xff]  ;;  %v22714_v18 = vld [vmem:[#allocation2 + $0x131] sm:$0xff]  ;;  %2307 = vst.msk [vmem:[#allocation2 + $0x150] sm:$0xff] %vm2264_vm4, %v2257_v10  ;;  %v2109_v9 = vmax.f32 %v25666_v37, %v2002_v0  ;;  %v2213_v29 = vadd.f32 %v22237_v39, %v2159_v28 }
 0x283   : > { %v4597_v30 = vld [vmem:[#allocation2 + $0x12f] sm:$0xff]  ;;  %v2157_v1 = vmax.f32 %v25665_v35, %v2108_v31  ;;  %v22736_v21 = vld [vmem:[#allocation2 + $0x139] sm:$0xff]  ;;  %v2816_v37 = vld [vmem:[#allocation2 + $0x3] sm:$0xff] }
 0x284   : > { %18659 = vmatmul.mubr.msk.f32.gmra.mrb[34].mxu1 %vm2264_vm4, %v22712_v38  ;;  %18981 = vmatmul.mubr.msk.f32.gmra.mrb[232].mxu0 %vm2264_vm4, %v4596_v22  ;;  %v25667_v16 = vld [vmem:[#allocation42_spill] sm:$0xff]  ;;  %v2262_v54 = vmax.f32 %v2213_v29, 0.0  ;;  %v4598_v28 = vld [vmem:[#allocation2 + $0x137] sm:$0xff]  ;;  %v4599_v0 = vld [vmem:[#allocation2 + $0x13f] sm:$0xff] }
 0x285   : > { %v25669_v27 = vmax.f32 %v25667_v16, %v25668_v36  ;;  %18661 = vmatprep.mubr.msk.f32.mxu1 %vm2264_vm4, %v22714_v18  ;;  %18983 = vmatprep.mubr.msk.f32.mxu0 %vm2264_vm4, %v4597_v30  ;;  %v2211_v10 = vadd.f32 %v22237_v39, %v2157_v1  ;;  %v25671_v31 = vld [vmem:[#allocation74_spill] sm:$0xff]  ;;  %v22760_v36 = vld [vmem:[%s25306_s1 + $0x28] sm:$0x7] }
 0x286   : > { %v25672_v12 = vmax.f32 %v25670_v13, %v25671_v31  ;;  %2312 = vst.msk [vmem:[#allocation2 + $0x178] sm:$0xff] %vm2264_vm4, %v2262_v54  ;;  %v22744_v47 = vld [vmem:[#allocation2 + $0x141] sm:$0xff]  ;;  %v2817_v29 = vld [vmem:[#allocation2 + $0xb] sm:$0xff]  ;;  %v2822_v13 = vld [vmem:[#allocation2 + $0x33] sm:$0xff] }
 0x287   : > { %v2160_v55 = vmax.f32 %v25669_v27, %v2111_v7  ;;  %v2260_v4 = vmax.f32 %v2211_v10, 0.0  ;;  %v4600_v35 = vld [vmem:[#allocation2 + $0x147] sm:$0xff]  ;;  %v2818_v27 = vld [vmem:[#allocation2 + $0x13] sm:$0xff]  ;;  %v2843_v31 = vld [vmem:[#allocation2 + $0xdb] sm:$0xff] }
 0x288   : > { %v2158_v17 = vmax.f32 %v25672_v12, %v2109_v9  ;;  %18662 = vmatmul.mubr.msk.f32.gmra.mrb[36].mxu1 %vm2264_vm4, %v22736_v21  ;;  %18984 = vmatmul.mubr.msk.f32.gmra.mrb[234].mxu0 %vm2264_vm4, %v4598_v28  ;;  %v3401_v9 = vsel %vm2526_vm3, %v22319_v32, 0  ;;  %v2819_v32 = vld [vmem:[#allocation2 + $0x1b] sm:$0xff]  ;;  %v2820_v10 = vld [vmem:[#allocation2 + $0x23] sm:$0xff]  ;;  %v3232_v54 = vld [vmem:[#allocation2 + $0xc] sm:$0xff] }
 0x289   : > { %v2214_v22 = vadd.f32 %v22237_v39, %v2160_v55  ;;  %18986 = vmatprep.mubr.msk.f32.mxu0 %vm2264_vm4, %v4599_v0  ;;  %2310 = vst.msk [vmem:[#allocation2 + $0x168] sm:$0xff] %vm2264_vm4, %v2260_v4  ;;  %18664 = vmatprep.mubr.msk.f32.mxu1 %vm2264_vm4, %v22744_v47  ;;  %v4601_v1 = vld [vmem:[#allocation2 + $0x14f] sm:$0xff]  ;;  %v4602_v16 = vld [vmem:[#allocation2 + $0x157] sm:$0xf]  ;;  %v5604_v55 = vsel %vm2526_vm3, %v22551_v24, 0  ;;  %v3231_v12 = vld [vmem:[#allocation2 + $0x4] sm:$0xff] }
 0x28a   : > { %v2212_v7 = vadd.f32 %v22237_v39, %v2158_v17  ;;  %v2398_v39 = vld [vmem:[#allocation2 + $0x149] sm:$0xf]  ;;  %v3773_v17 = vsel %vm2526_vm3, %v22760_v36, 0  ;;  %v3233_v28 = vld [vmem:[#allocation2 + $0x14] sm:$0xff] }
 0x28b   : > { %v2263_v30 = vmax.f32 %v2214_v22, 0.0  ;;  %v2825_v24 = vld [vmem:[#allocation2 + $0x4b] sm:$0xff]  ;;  %v5060_v22 = vld [vmem:[#allocation2 + $0x159] sm:$0xf] }
 0x28c   : > { %v2261_v41 = vmax.f32 %v2212_v7, 0.0  ;;  %18665 = vmatmul.mubr.msk.f32.gmra.mrb[38].mxu1 %vm2264_vm4, %v2398_v39  ;;  %18987 = vmatmul.mubr.msk.f32.gmra.mrb[236].mxu0 %vm2264_vm4, %v4600_v35  ;;  %v22906_v4 = vld [vmem:[#allocation2 + $0x12] sm:$0xff]  ;;  %v3234_v7 = vld [vmem:[#allocation2 + $0x1c] sm:$0xff]  ;;  %v22924_v35 = vld [vmem:[#allocation2 + $0x2a] sm:$0xff] }
 0x28d   : > { %2313 = vst.msk [vmem:[#allocation2 + $0x180] sm:$0xff] %vm2264_vm4, %v2263_v30  ;;  %18669 = vmatprep.mubr.msk.f32.mxu1 %vm2264_vm4, %v2816_v37  ;;  %18989 = vmatprep.mubr.msk.f32.mxu0 %vm2264_vm4, %v4601_v1  ;;  %v22912_v0 = vld [vmem:[#allocation2 + $0x1a] sm:$0xff]  ;;  %v3236_v39 = vld [vmem:[#allocation2 + $0x2c] sm:$0xff] }
 0x28e   : > { %2311 = vst.msk [vmem:[#allocation2 + $0x170] sm:$0xff] %vm2264_vm4, %v2261_v41  ;;  %v22919_v41 = vld [vmem:[#allocation2 + $0x22] sm:$0xff]  ;;  %v3237_v1 = vld [vmem:[#allocation2 + $0x34] sm:$0xff] }
 0x28f   : > { %v22929_v37 = vld [vmem:[#allocation2 + $0x32] sm:$0xff] }
 0x290   : > { %18670 = vmatmul.mubr.msk.f32.vlgmr.msra.gmra.mrb[40].mxu1 %vm2264_vm4, %v2817_v29  ;;  %18990 = vmatmul.mubr.msk.f32.gmra.mrb[238].mxu0 %vm2264_vm4, %v4602_v16  ;;  %v22934_v29 = vld [vmem:[#allocation2 + $0x3a] sm:$0xff]  ;;  %v3239_v16 = vld [vmem:[#allocation2 + $0x44] sm:$0xff] }
 0x291   : > { %18733 = vmatpush3.bf16.msra.mxu1 %v3401_v9  ;;  %18672 = vmatprep.mubr.msk.f32.mxu1 %vm2264_vm4, %v2818_v27  ;;  %v3238_v9 = vld [vmem:[#allocation2 + $0x3c] sm:$0xff]  ;;  %v3240_v27 = vld [vmem:[#allocation2 + $0x4c] sm:$0xff] }
 0x292   : > { %18994 = vmatprep.mubr.msk.f32.mxu0 %vm2264_vm4, %v22302_v23  ;;  %21254 = vmatprep.subr.msk.bf16.mxu1 %vm2526_vm3, %v22760_v36  ;;  %v2821_v23 = vld [vmem:[#allocation2 + $0x2b] sm:$0xff]  ;;  %v22939_v36 = vld [vmem:[#allocation2 + $0x42] sm:$0xff] }
 0x294   : > { %18673 = vmatmul.mubr.msk.f32.gmra.mrb[0].mxu1 %vm2264_vm4, %v2819_v32  ;;  %18995 = vmatmul.mubr.msk.f32.vlgmr.msra.gmra.mrb[198].mxu0 %vm2264_vm4, %v22314_v15  ;;  %v2823_v15 = vld [vmem:[#allocation2 + $0x3b] sm:$0xff]  ;;  %v22944_v32 = vld [vmem:[#allocation2 + $0x4a] sm:$0xff] }
 0x295   : > { %18675 = vmatprep.mubr.msk.f32.mxu1 %vm2264_vm4, %v2820_v10  ;;  %18997 = vmatprep.mubr.msk.f32.mxu0 %vm2264_vm4, %v22342_v33  ;;  %v2824_v33 = vld [vmem:[#allocation2 + $0x43] sm:$0xff]  ;;  %v22949_v10 = vld [vmem:[#allocation2 + $0x52] sm:$0xff] }
 0x296   : > { %19058 = vmatpush3.bf16.msra.mxu0 %v5604_v55  ;;  %v3241_v55 = vld [vmem:[#allocation2 + $0x54] sm:$0xff] }
 0x298   : > { %18676 = vmatmul.mubr.msk.f32.gmra.mrb[2].mxu1 %vm2264_vm4, %v2821_v23  ;;  %18998 = vmatmul.mubr.msk.f32.gmra.mrb[200].mxu0 %vm2264_vm4, %v22353_v3  ;;  %v2826_v3 = vld [vmem:[#allocation2 + $0x53] sm:$0xff]  ;;  %v3242_v23 = vld [vmem:[#allocation2 + $0x5c] sm:$0xff] }
 0x299   : > { %18678 = vmatprep.mubr.msk.f32.mxu1 %vm2264_vm4, %v2822_v13  ;;  %19000 = vmatprep.mubr.msk.f32.mxu0 %vm2264_vm4, %v22355_v58  ;;  %v2827_v58 = vld [vmem:[#allocation2 + $0x5b] sm:$0xff] }
 0x29a   : > { %v22954_v13 = vld [vmem:[#allocation2 + $0x5a] sm:$0xff] }
 0x29c   : > { %18679 = vmatmul.mubr.msk.f32.gmra.mrb[4].mxu1 %vm2264_vm4, %v2823_v15  ;;  %19001 = vmatmul.mubr.msk.f32.gmra.mrb[202].mxu0 %vm2264_vm4, %v22377_v40  ;;  %v2828_v40 = vld [vmem:[#allocation2 + $0x63] sm:$0xff] }
 0x29d   : > { %18681 = vmatprep.mubr.msk.f32.mxu1 %vm2264_vm4, %v2824_v33  ;;  %19003 = vmatprep.mubr.msk.f32.mxu0 %vm2264_vm4, %v22386_v59  ;;  %v2829_v59 = vld [vmem:[#allocation2 + $0x6b] sm:$0xff]  ;;  %v22959_v33 = vld [vmem:[#allocation2 + $0x62] sm:$0xff] }
 0x29e   : > { %v3243_v15 = vld [vmem:[#allocation2 + $0x64] sm:$0xff] }
 0x2a0   : > { %18682 = vmatmul.mubr.msk.f32.gmra.mrb[6].mxu1 %vm2264_vm4, %v2825_v24  ;;  %19004 = vmatmul.mubr.msk.f32.gmra.mrb[204].mxu0 %vm2264_vm4, %v22397_v19  ;;  %v2830_v19 = vld [vmem:[#allocation2 + $0x73] sm:$0xff] }
 0x2a1   : > { %18684 = vmatprep.mubr.msk.f32.mxu1 %vm2264_vm4, %v2826_v3  ;;  %19006 = vmatprep.mubr.msk.f32.mxu0 %vm2264_vm4, %v22399_v44  ;;  %v2831_v44 = vld [vmem:[#allocation2 + $0x7b] sm:$0xff]  ;;  %v3244_v24 = vld [vmem:[#allocation2 + $0x6c] sm:$0xff] }
 0x2a2   : > { %v22964_v3 = vld [vmem:[#allocation2 + $0x6a] sm:$0xff] }
 0x2a4   : > { %18685 = vmatmul.mubr.msk.f32.gmra.mrb[8].mxu1 %vm2264_vm4, %v2827_v58  ;;  %19007 = vmatmul.mubr.msk.f32.gmra.mrb[206].mxu0 %vm2264_vm4, %v22421_v62  ;;  %v2832_v62 = vld [vmem:[#allocation2 + $0x83] sm:$0xff]  ;;  %v3245_v58 = vld [vmem:[#allocation2 + $0x74] sm:$0xff] }
 0x2a5   : > { %18687 = vmatprep.mubr.msk.f32.mxu1 %vm2264_vm4, %v2828_v40  ;;  %19009 = vmatprep.mubr.msk.f32.mxu0 %vm2264_vm4, %v22430_v5  ;;  %v2833_v5 = vld [vmem:[#allocation2 + $0x8b] sm:$0xff] }
 0x2a6   : > { %v22969_v40 = vld [vmem:[#allocation2 + $0x72] sm:$0xff] }
 0x2a8   : > { %18688 = vmatmul.mubr.msk.f32.gmra.mrb[10].mxu1 %vm2264_vm4, %v2829_v59  ;;  %19010 = vmatmul.mubr.msk.f32.gmra.mrb[208].mxu0 %vm2264_vm4, %v22441_v25  ;;  %v2834_v25 = vld [vmem:[#allocation2 + $0x93] sm:$0xff]  ;;  %v3246_v59 = vld [vmem:[#allocation2 + $0x7c] sm:$0xff] }
 0x2a9   : > { %18690 = vmatprep.mubr.msk.f32.mxu1 %vm2264_vm4, %v2830_v19  ;;  %19012 = vmatprep.mubr.msk.f32.mxu0 %vm2264_vm4, %v22443_v6  ;;  %v2835_v6 = vld [vmem:[#allocation2 + $0x9b] sm:$0xff] }
 0x2aa   : > { %v22974_v19 = vld [vmem:[#allocation2 + $0x7a] sm:$0xff] }
 0x2ac   : > { %18691 = vmatmul.mubr.msk.f32.gmra.mrb[12].mxu1 %vm2264_vm4, %v2831_v44  ;;  %19013 = vmatmul.mubr.msk.f32.gmra.mrb[210].mxu0 %vm2264_vm4, %v22465_v48  ;;  %v2836_v48 = vld [vmem:[#allocation2 + $0xa3] sm:$0xff] }
 0x2ad   : > { %18693 = vmatprep.mubr.msk.f32.mxu1 %vm2264_vm4, %v2832_v62  ;;  %19015 = vmatprep.mubr.msk.f32.mxu0 %vm2264_vm4, %v22474_v20  ;;  %v2837_v20 = vld [vmem:[#allocation2 + $0xab] sm:$0xff]  ;;  %v22979_v62 = vld [vmem:[#allocation2 + $0x82] sm:$0xff] }
 0x2ae   : > { %v3247_v44 = vld [vmem:[#allocation2 + $0x84] sm:$0xff] }
 0x2b0   : > { %18694 = vmatmul.mubr.msk.f32.gmra.mrb[14].mxu1 %vm2264_vm4, %v2833_v5  ;;  %19016 = vmatmul.mubr.msk.f32.gmra.mrb[212].mxu0 %vm2264_vm4, %v22485_v61  ;;  %v2838_v61 = vld [vmem:[#allocation2 + $0xb3] sm:$0xff] }
 0x2b1   : > { %18696 = vmatprep.mubr.msk.f32.mxu1 %vm2264_vm4, %v2834_v25  ;;  %19018 = vmatprep.mubr.msk.f32.mxu0 %vm2264_vm4, %v22487_v8  ;;  %v22834_v8 = vld [vmem:[%s25306_s1 + $0x3c] sm:$0x7]  ;;  %v3248_v5 = vld [vmem:[#allocation2 + $0x8c] sm:$0xff] }
 0x2b2   : > { %21259 = vmatprep.subr.msk.bf16.mxu0 %vm2526_vm3, %v22834_v8  ;;  %v5976_v30 = vsel %vm2526_vm3, %v22834_v8, 0  ;;  %v22984_v25 = vld [vmem:[#allocation2 + $0x8a] sm:$0xff] }
 0x2b3   : > { %v3251_v8 = vld [vmem:[#allocation2 + $0xa4] sm:$0xff] }
 0x2b4   : > { %18697 = vmatmul.mubr.msk.f32.gmra.mrb[16].mxu1 %vm2264_vm4, %v2835_v6  ;;  %19019 = vmatmul.mubr.msk.f32.gmra.mrb[214].mxu0 %vm2264_vm4, %v22509_v2  ;;  %v2839_v2 = vld [vmem:[#allocation2 + $0xbb] sm:$0xff] }
 0x2b5   : > { %18699 = vmatprep.mubr.msk.f32.mxu1 %vm2264_vm4, %v2836_v48  ;;  %19021 = vmatprep.mubr.msk.f32.mxu0 %vm2264_vm4, %v22518_v52  ;;  %v2840_v52 = vld [vmem:[#allocation2 + $0xc3] sm:$0xff]  ;;  %v3249_v6 = vld [vmem:[#allocation2 + $0x94] sm:$0xff] }
 0x2b6   : > { %v22989_v48 = vld [vmem:[#allocation2 + $0x92] sm:$0xff] }
 0x2b8   : > { %18700 = vmatmul.mubr.msk.f32.gmra.mrb[18].mxu1 %vm2264_vm4, %v2837_v20  ;;  %19022 = vmatmul.mubr.msk.f32.gmra.mrb[216].mxu0 %vm2264_vm4, %v22529_v14  ;;  %v2841_v14 = vld [vmem:[#allocation2 + $0xcb] sm:$0xff]  ;;  %v3250_v20 = vld [vmem:[#allocation2 + $0x9c] sm:$0xff] }
 0x2b9   : > { %18702 = vmatprep.mubr.msk.f32.mxu1 %vm2264_vm4, %v2838_v61  ;;  %19024 = vmatprep.mubr.msk.f32.mxu0 %vm2264_vm4, %v22531_v26  ;;  %v2842_v26 = vld [vmem:[#allocation2 + $0xd3] sm:$0xff] }
 0x2ba   : > { %v22994_v61 = vld [vmem:[#allocation2 + $0x9a] sm:$0xff] }
 0x2bc   : > { %18703 = vmatmul.mubr.msk.f32.gmra.mrb[20].mxu1 %vm2264_vm4, %v2839_v2  ;;  %19025 = vmatmul.mubr.msk.f32.gmra.mrb[218].mxu0 %vm2264_vm4, %v22560_v43  ;;  %v2844_v43 = vld [vmem:[#allocation2 + $0xe3] sm:$0xff] }
 0x2bd   : > { %18705 = vmatprep.mubr.msk.f32.mxu1 %vm2264_vm4, %v2840_v52  ;;  %19027 = vmatprep.mubr.msk.f32.mxu0 %vm2264_vm4, %v22569_v57  ;;  %v2845_v57 = vld [vmem:[#allocation2 + $0xeb] sm:$0xff]  ;;  %v22999_v2 = vld [vmem:[#allocation2 + $0xa2] sm:$0xff] }
 0x2be   : > { %v3252_v52 = vld [vmem:[#allocation2 + $0xac] sm:$0xff] }
 0x2c0   : > { %18706 = vmatmul.mubr.msk.f32.gmra.mrb[22].mxu1 %vm2264_vm4, %v2841_v14  ;;  %19028 = vmatmul.mubr.msk.f32.gmra.mrb[220].mxu0 %vm2264_vm4, %v22580_v42  ;;  %v2846_v42 = vld [vmem:[#allocation2 + $0xf3] sm:$0xff]  ;;  %v23004_v14 = vld [vmem:[#allocation2 + $0xaa] sm:$0xff] }
 0x2c1   : > { %18708 = vmatprep.mubr.msk.f32.mxu1 %vm2264_vm4, %v2842_v26  ;;  %19030 = vmatprep.mubr.msk.f32.mxu0 %vm2264_vm4, %v22582_v45  ;;  %v2847_v45 = vld [vmem:[#allocation2 + $0xfb] sm:$0xff] }
 0x2c2   : > { %v3253_v26 = vld [vmem:[#allocation2 + $0xb4] sm:$0xff] }
 0x2c4   : > { %18709 = vmatmul.mubr.msk.f32.gmra.mrb[24].mxu1 %vm2264_vm4, %v2843_v31  ;;  %19031 = vmatmul.mubr.msk.f32.gmra.mrb[222].mxu0 %vm2264_vm4, %v22604_v49  ;;  %v2848_v49 = vld [vmem:[#allocation2 + $0x103] sm:$0xff]  ;;  %v23009_v31 = vld [vmem:[#allocation2 + $0xb2] sm:$0xff] }
 0x2c5   : > { %18711 = vmatprep.mubr.msk.f32.mxu1 %vm2264_vm4, %v2844_v43  ;;  %19033 = vmatprep.mubr.msk.f32.mxu0 %vm2264_vm4, %v22613_v50  ;;  %v2849_v50 = vld [vmem:[#allocation2 + $0x10b] sm:$0xff]  ;;  %v23014_v43 = vld [vmem:[%s25306_s1 + $0x44] sm:$0x7] }
 0x2c8   : > { %18712 = vmatmul.mubr.msk.f32.gmra.mrb[26].mxu1 %vm2264_vm4, %v2845_v57  ;;  %19034 = vmatmul.mubr.msk.f32.gmra.mrb[224].mxu0 %vm2264_vm4, %v22624_v53  ;;  %v2850_v53 = vld [vmem:[#allocation2 + $0x113] sm:$0xff] }
 0x2c9   : > { %18714 = vmatprep.mubr.msk.f32.mxu1 %vm2264_vm4, %v2846_v42  ;;  %19036 = vmatprep.mubr.msk.f32.mxu0 %vm2264_vm4, %v22626_v60  ;;  %v2851_v60 = vld [vmem:[#allocation2 + $0x11b] sm:$0xff] }
 0x2ca   : > { %v3254_v42 = vld [vmem:[#allocation2 + $0xbc] sm:$0xff] }
 0x2cc   : > { %18715 = vmatmul.mubr.msk.f32.gmra.mrb[28].mxu1 %vm2264_vm4, %v2847_v45  ;;  %19037 = vmatmul.mubr.msk.f32.gmra.mrb[226].mxu0 %vm2264_vm4, %v22648_v63  ;;  %v2852_v63 = vld [vmem:[#allocation2 + $0x123] sm:$0xff]  ;;  %v23023_v45 = vld [vmem:[#allocation2 + $0xba] sm:$0xff] }
 0x2cd   : > { %18717 = vmatprep.mubr.msk.f32.mxu1 %vm2264_vm4, %v2848_v49  ;;  %19039 = vmatprep.mubr.msk.f32.mxu0 %vm2264_vm4, %v22657_v56  ;;  %v2853_v56 = vld [vmem:[#allocation2 + $0x12b] sm:$0xff] }
 0x2d0   : > { %18718 = vmatmul.mubr.msk.f32.gmra.mrb[30].mxu1 %vm2264_vm4, %v2849_v50  ;;  %19040 = vmatmul.mubr.msk.f32.gmra.mrb[228].mxu0 %vm2264_vm4, %v22668_v34  ;;  %v2854_v34 = vld [vmem:[#allocation2 + $0x133] sm:$0xff]  ;;  %v3255_v50 = vld [vmem:[#allocation2 + $0xc4] sm:$0xff] }
 0x2d1   : > { %18720 = vmatprep.mubr.msk.f32.mxu1 %vm2264_vm4, %v2850_v53  ;;  %19042 = vmatprep.mubr.msk.f32.mxu0 %vm2264_vm4, %v22670_v46  ;;  %v2855_v46 = vld [vmem:[#allocation2 + $0x13b] sm:$0xff] }
 0x2d2   : > { %v23030_v53 = vld [vmem:[#allocation2 + $0xc2] sm:$0xff] }
 0x2d4   : > { %18721 = vmatmul.mubr.msk.f32.gmra.mrb[32].mxu1 %vm2264_vm4, %v2851_v60  ;;  %19043 = vmatmul.mubr.msk.f32.gmra.mrb[230].mxu0 %vm2264_vm4, %v22692_v51  ;;  %v2856_v51 = vld [vmem:[#allocation2 + $0x143] sm:$0xff]  ;;  %v3256_v60 = vld [vmem:[#allocation2 + $0xcc] sm:$0xff] }
 0x2d5   : > { %18723 = vmatprep.mubr.msk.f32.mxu1 %vm2264_vm4, %v2852_v63  ;;  %19045 = vmatprep.mubr.msk.f32.mxu0 %vm2264_vm4, %v22701_v11  ;;  %v2857_v11 = vld [vmem:[#allocation2 + $0x14b] sm:$0xf] }
 0x2d6   : > { %v23035_v63 = vld [vmem:[#allocation2 + $0xca] sm:$0xff] }
 0x2d8   : > { %18724 = vmatmul.mubr.msk.f32.gmra.mrb[34].mxu1 %vm2264_vm4, %v2853_v56  ;;  %19046 = vmatmul.mubr.msk.f32.gmra.mrb[232].mxu0 %vm2264_vm4, %v22712_v38  ;;  %v5058_v38 = vld [vmem:[#allocation2 + $0x149] sm:$0xff]  ;;  %v3257_v56 = vld [vmem:[#allocation2 + $0xd4] sm:$0xff] }
 0x2d9   : > { %18726 = vmatprep.mubr.msk.f32.mxu1 %vm2264_vm4, %v2854_v34  ;;  %19048 = vmatprep.mubr.msk.f32.mxu0 %vm2264_vm4, %v22714_v18  ;;  %v5059_v18 = vld [vmem:[#allocation2 + $0x151] sm:$0xff] }
 0x2da   : > { %v23040_v34 = vld [vmem:[#allocation2 + $0xd2] sm:$0xff] }
 0x2dc   : > { %18727 = vmatmul.mubr.msk.f32.gmra.mrb[36].mxu1 %vm2264_vm4, %v2855_v46  ;;  %19049 = vmatmul.mubr.msk.f32.gmra.mrb[234].mxu0 %vm2264_vm4, %v22736_v21  ;;  %v22901_v21 = vld [vmem:[%s25306_s1 + $0x30] sm:$0x7]  ;;  %v3258_v46 = vld [vmem:[#allocation2 + $0xdc] sm:$0xff] }
 0x2dd   : > { %18729 = vmatprep.mubr.msk.f32.mxu1 %vm2264_vm4, %v2856_v51  ;;  %19051 = vmatprep.mubr.msk.f32.mxu0 %vm2264_vm4, %v22744_v47  ;;  %v3235_v47 = vld [vmem:[#allocation2 + $0x24] sm:$0xff]  ;;  %v23045_v51 = vld [vmem:[#allocation2 + $0xda] sm:$0xff] }
 0x2e0   : > { %18730 = vmatmul.mubr.msk.f32.gmra.mrb[38].mxu1 %vm2264_vm4, %v2857_v11  ;;  %19052 = vmatmul.mubr.msk.f32.gmra.mrb[236].mxu0 %vm2264_vm4, %v5058_v38  ;;  %v3259_v11 = vld [vmem:[#allocation2 + $0xe4] sm:$0xff] }
 0x2e1   : > { %18734 = vmatprep.mubr.msk.f32.mxu1 %vm2264_vm4, %v3231_v12  ;;  %19054 = vmatprep.mubr.msk.f32.mxu0 %vm2264_vm4, %v5059_v18  ;;  %v23050_v38 = vld [vmem:[#allocation2 + $0xe2] sm:$0xff]  ;;  %v3260_v12 = vld [vmem:[#allocation2 + $0xec] sm:$0xff] }
 0x2e2   : > { %v23055_v18 = vld [vmem:[#allocation2 + $0xea] sm:$0xff] }
 0x2e3   : > { %25675 = vst [vmem:[#allocation10_spill] sm:$0xff] %v23055_v18 }
 0x2e4   : > { %18735 = vmatmul.mubr.msk.f32.vlgmr.msra.gmra.mrb[40].mxu1 %vm2264_vm4, %v3232_v54  ;;  %19055 = vmatmul.mubr.msk.f32.gmra.mrb[238].mxu0 %vm2264_vm4, %v5060_v22  ;;  %v23060_v54 = vld [vmem:[#allocation2 + $0xf2] sm:$0xff]  ;;  %v3262_v22 = vld [vmem:[#allocation2 + $0xfc] sm:$0xff] }
 0x2e5   : > { %18798 = vmatpush3.bf16.msra.mxu1 %v3773_v17  ;;  %18737 = vmatprep.mubr.msk.f32.mxu1 %vm2264_vm4, %v3233_v28  ;;  %v3261_v17 = vld [vmem:[#allocation2 + $0xf4] sm:$0xff]  ;;  %25676 = vst [vmem:[#allocation44_spill] sm:$0xff] %v23060_v54 }
 0x2e6   : > { %19059 = vmatprep.mubr.msk.f32.mxu0 %vm2264_vm4, %v22906_v4  ;;  %21255 = vmatprep.subr.msk.bf16.mxu1 %vm2526_vm3, %v22901_v21  ;;  %v23065_v28 = vld [vmem:[#allocation2 + $0xfa] sm:$0xff] }
 0x2e7   : > { %25677 = vst [vmem:[#allocation9_spill] sm:$0xff] %v23065_v28 }
 0x2e8   : > { %18738 = vmatmul.mubr.msk.f32.gmra.mrb[0].mxu1 %vm2264_vm4, %v3234_v7  ;;  %19060 = vmatmul.mubr.msk.f32.vlgmr.msra.gmra.mrb[198].mxu0 %vm2264_vm4, %v22912_v0  ;;  %v3263_v7 = vld [vmem:[#allocation2 + $0x104] sm:$0xff] }
 0x2e9   : > { %18740 = vmatprep.mubr.msk.f32.mxu1 %vm2264_vm4, %v3235_v47  ;;  %19062 = vmatprep.mubr.msk.f32.mxu0 %vm2264_vm4, %v22919_v41  ;;  %v3264_v47 = vld [vmem:[#allocation2 + $0x10c] sm:$0xff] }
 0x2ea   : > { %19123 = vmatpush3.bf16.msra.mxu0 %v5976_v30  ;;  %v23070_v30 = vld [vmem:[#allocation2 + $0x102] sm:$0xff] }
 0x2eb   : > { %21260 = vmatprep.subr.msk.bf16.mxu0 %vm2526_vm3, %v23014_v43  ;;  %25678 = vst [vmem:[#allocation45_spill] sm:$0xff] %v23070_v30 }
 0x2ec   : > { %18741 = vmatmul.mubr.msk.f32.gmra.mrb[2].mxu1 %vm2264_vm4, %v3236_v39  ;;  %19063 = vmatmul.mubr.msk.f32.gmra.mrb[200].mxu0 %vm2264_vm4, %v22924_v35  ;;  %v23075_v39 = vld [vmem:[#allocation2 + $0x10a] sm:$0xff] }
 0x2ed   : > { %18743 = vmatprep.mubr.msk.f32.mxu1 %vm2264_vm4, %v3237_v1  ;;  %19065 = vmatprep.mubr.msk.f32.mxu0 %vm2264_vm4, %v22929_v37  ;;  %25679 = vst [vmem:[#allocation12_spill] sm:$0xff] %v23075_v39  ;;  %v3265_v1 = vld [vmem:[#allocation2 + $0x114] sm:$0xff] }
 0x2f0   : > { %18744 = vmatmul.mubr.msk.f32.gmra.mrb[4].mxu1 %vm2264_vm4, %v3238_v9  ;;  %19066 = vmatmul.mubr.msk.f32.gmra.mrb[202].mxu0 %vm2264_vm4, %v22934_v29  ;;  %v23080_v9 = vld [vmem:[#allocation2 + $0x112] sm:$0xff] }
 0x2f1   : > { %18746 = vmatprep.mubr.msk.f32.mxu1 %vm2264_vm4, %v3239_v16  ;;  %19068 = vmatprep.mubr.msk.f32.mxu0 %vm2264_vm4, %v22939_v36  ;;  %25680 = vst [vmem:[#allocation46_spill] sm:$0xff] %v23080_v9  ;;  %v3266_v16 = vld [vmem:[#allocation2 + $0x11c] sm:$0xff] }
 0x2f4   : > { %18747 = vmatmul.mubr.msk.f32.gmra.mrb[6].mxu1 %vm2264_vm4, %v3240_v27  ;;  %19069 = vmatmul.mubr.msk.f32.gmra.mrb[204].mxu0 %vm2264_vm4, %v22944_v32  ;;  %v23085_v27 = vld [vmem:[#allocation2 + $0x11a] sm:$0xff] }
 0x2f5   : > { %18749 = vmatprep.mubr.msk.f32.mxu1 %vm2264_vm4, %v3241_v55  ;;  %19071 = vmatprep.mubr.msk.f32.mxu0 %vm2264_vm4, %v22949_v10  ;;  %25681 = vst [vmem:[#allocation11_spill] sm:$0xff] %v23085_v27  ;;  %v3267_v55 = vld [vmem:[#allocation2 + $0x124] sm:$0xff] }
 0x2f8   : > { %18750 = vmatmul.mubr.msk.f32.gmra.mrb[8].mxu1 %vm2264_vm4, %v3242_v23  ;;  %19072 = vmatmul.mubr.msk.f32.gmra.mrb[206].mxu0 %vm2264_vm4, %v22954_v13  ;;  %v23090_v23 = vld [vmem:[#allocation2 + $0x122] sm:$0xff] }
 0x2f9   : > { %18752 = vmatprep.mubr.msk.f32.mxu1 %vm2264_vm4, %v3243_v15  ;;  %19074 = vmatprep.mubr.msk.f32.mxu0 %vm2264_vm4, %v22959_v33  ;;  %25682 = vst [vmem:[#allocation47_spill] sm:$0xff] %v23090_v23  ;;  %v3268_v15 = vld [vmem:[#allocation2 + $0x12c] sm:$0xff] }
 0x2fc   : > { %18753 = vmatmul.mubr.msk.f32.gmra.mrb[10].mxu1 %vm2264_vm4, %v3244_v24  ;;  %19075 = vmatmul.mubr.msk.f32.gmra.mrb[208].mxu0 %vm2264_vm4, %v22964_v3  ;;  %v23095_v24 = vld [vmem:[#allocation2 + $0x12a] sm:$0xff] }
 0x2fd   : > { %18755 = vmatprep.mubr.msk.f32.mxu1 %vm2264_vm4, %v3245_v58  ;;  %19077 = vmatprep.mubr.msk.f32.mxu0 %vm2264_vm4, %v22969_v40  ;;  %25683 = vst [vmem:[#allocation14_spill] sm:$0xff] %v23095_v24  ;;  %v3269_v58 = vld [vmem:[#allocation2 + $0x134] sm:$0xff] }
 0x300   : > { %18756 = vmatmul.mubr.msk.f32.gmra.mrb[12].mxu1 %vm2264_vm4, %v3246_v59  ;;  %19078 = vmatmul.mubr.msk.f32.gmra.mrb[210].mxu0 %vm2264_vm4, %v22974_v19  ;;  %v23100_v59 = vld [vmem:[#allocation2 + $0x132] sm:$0xff] }
 0x301   : > { %18758 = vmatprep.mubr.msk.f32.mxu1 %vm2264_vm4, %v3247_v44  ;;  %19080 = vmatprep.mubr.msk.f32.mxu0 %vm2264_vm4, %v22979_v62  ;;  %25684 = vst [vmem:[#allocation48_spill] sm:$0xff] %v23100_v59  ;;  %v3270_v44 = vld [vmem:[#allocation2 + $0x13c] sm:$0xff] }
 0x304   : > { %18759 = vmatmul.mubr.msk.f32.gmra.mrb[14].mxu1 %vm2264_vm4, %v3248_v5  ;;  %19081 = vmatmul.mubr.msk.f32.gmra.mrb[212].mxu0 %vm2264_vm4, %v22984_v25  ;;  %v23105_v5 = vld [vmem:[#allocation2 + $0x13a] sm:$0xff] }
 0x305   : > { %18761 = vmatprep.mubr.msk.f32.mxu1 %vm2264_vm4, %v3249_v6  ;;  %19083 = vmatprep.mubr.msk.f32.mxu0 %vm2264_vm4, %v22989_v48  ;;  %25685 = vst [vmem:[#allocation13_spill] sm:$0xff] %v23105_v5  ;;  %v3271_v6 = vld [vmem:[#allocation2 + $0x144] sm:$0xff] }
 0x308   : > { %18762 = vmatmul.mubr.msk.f32.gmra.mrb[16].mxu1 %vm2264_vm4, %v3250_v20  ;;  %19084 = vmatmul.mubr.msk.f32.gmra.mrb[214].mxu0 %vm2264_vm4, %v22994_v61  ;;  %v23110_v20 = vld [vmem:[#allocation2 + $0x142] sm:$0xff] }
 0x309   : > { %18764 = vmatprep.mubr.msk.f32.mxu1 %vm2264_vm4, %v3251_v8  ;;  %19086 = vmatprep.mubr.msk.f32.mxu0 %vm2264_vm4, %v22999_v2  ;;  %25686 = vst [vmem:[#allocation49_spill] sm:$0xff] %v23110_v20  ;;  %v3272_v8 = vld [vmem:[#allocation2 + $0x14c] sm:$0xf] }
 0x30c   : > { %18765 = vmatmul.mubr.msk.f32.gmra.mrb[18].mxu1 %vm2264_vm4, %v3252_v52  ;;  %19087 = vmatmul.mubr.msk.f32.gmra.mrb[216].mxu0 %vm2264_vm4, %v23004_v14  ;;  %v23021_v57 = vpop.f32.mrb[196].mxu0  ;;  %v5473_v52 = vld [vmem:[#allocation2 + $0x14a] sm:$0xff] }
 0x30d   : > { %18767 = vmatprep.mubr.msk.f32.mxu1 %vm2264_vm4, %v3253_v26  ;;  %19089 = vmatprep.mubr.msk.f32.mxu0 %vm2264_vm4, %v23009_v31  ;;  %25673 = vst [vmem:[#allocation8_spill] sm:$0xff] %v23021_v57  ;;  %v23025_v49 = vpop.f32.mrb[197].mxu0  ;;  %v2314_v26 = vld [vmem:[#allocation2] sm:$0xff] }
 0x30e   : > { %25674 = vst [vmem:[#allocation43_spill] sm:$0xff] %v23025_v49  ;;  %v4536_v49 = vld [vmem:[#allocation2 + $0x9e] sm:$0xff]  ;;  %v4537_v57 = vld [vmem:[#allocation2 + $0xa6] sm:$0xff] }
 0x310   : > { %18768 = vmatmul.mubr.msk.f32.gmra.mrb[20].mxu1 %vm2264_vm4, %v3254_v42  ;;  %19090 = vmatmul.mubr.msk.f32.gmra.mrb[218].mxu0 %vm2264_vm4, %v23023_v45  ;;  %v5474_v42 = vld [vmem:[#allocation2 + $0x152] sm:$0xff] }
 0x311   : > { %18770 = vmatprep.mubr.msk.f32.mxu1 %vm2264_vm4, %v3255_v50  ;;  %19092 = vmatprep.mubr.msk.f32.mxu0 %vm2264_vm4, %v23030_v53  ;;  %v4145_v50 = vsel %vm2526_vm3, %v22901_v21, 0  ;;  %v23135_v21 = vld [vmem:[#allocation2 + $0x18] sm:$0xff] }
 0x314   : > { %18771 = vmatmul.mubr.msk.f32.gmra.mrb[22].mxu1 %vm2264_vm4, %v3256_v60  ;;  %19093 = vmatmul.mubr.msk.f32.gmra.mrb[220].mxu0 %vm2264_vm4, %v23035_v63  ;;  %v2315_v60 = vld [vmem:[#allocation2 + $0x8] sm:$0xff] }
 0x315   : > { %18773 = vmatprep.mubr.msk.f32.mxu1 %vm2264_vm4, %v3257_v56  ;;  %19095 = vmatprep.mubr.msk.f32.mxu0 %vm2264_vm4, %v23040_v34  ;;  %v5475_v56 = vld [vmem:[#allocation2 + $0x15a] sm:$0xf] }
 0x318   : > { %18774 = vmatmul.mubr.msk.f32.gmra.mrb[24].mxu1 %vm2264_vm4, %v3258_v46  ;;  %19096 = vmatmul.mubr.msk.f32.gmra.mrb[222].mxu0 %vm2264_vm4, %v23045_v51  ;;  %v23124_v46 = vld [vmem:[%s25306_s1 + $0x54] sm:$0x7] }
 0x319   : > { %18776 = vmatprep.mubr.msk.f32.mxu1 %vm2264_vm4, %v3259_v11  ;;  %19098 = vmatprep.mubr.msk.f32.mxu0 %vm2264_vm4, %v23050_v38  ;;  %v23128_v11 = vld [vmem:[#allocation2 + $0x10] sm:$0xff] }
 0x31c   : > { %18777 = vmatmul.mubr.msk.f32.gmra.mrb[26].mxu1 %vm2264_vm4, %v3260_v12  ;;  %19099 = vmatmul.mubr.msk.f32.gmra.mrb[224].mxu0 %vm2264_vm4, %v23055_v18  ;;  %v4518_v12 = vld [vmem:[#allocation2 + $0xe] sm:$0xff] }
 0x31d   : > { %18779 = vmatprep.mubr.msk.f32.mxu1 %vm2264_vm4, %v3261_v17  ;;  %19101 = vmatprep.mubr.msk.f32.mxu0 %vm2264_vm4, %v23060_v54  ;;  %v4519_v17 = vld [vmem:[#allocation2 + $0x16] sm:$0xff]  ;;  %v4558_v18 = vld [vmem:[#allocation2 + $0x14e] sm:$0xff] }
 0x31e   : > { %v4547_v54 = vld [vmem:[#allocation2 + $0xf6] sm:$0xff] }
 0x320   : > { %18780 = vmatmul.mubr.msk.f32.gmra.mrb[28].mxu1 %vm2264_vm4, %v3262_v22  ;;  %19102 = vmatmul.mubr.msk.f32.gmra.mrb[226].mxu0 %vm2264_vm4, %v23065_v28  ;;  %v6348_v22 = vsel %vm2526_vm3, %v23014_v43, 0  ;;  %v23152_v43 = vld [vmem:[#allocation2 + $0x30] sm:$0xff] }
 0x321   : > { %18782 = vmatprep.mubr.msk.f32.mxu1 %vm2264_vm4, %v3263_v7  ;;  %19104 = vmatprep.mubr.msk.f32.mxu0 %vm2264_vm4, %v23070_v30  ;;  %v23142_v7 = vld [vmem:[#allocation2 + $0x20] sm:$0xff]  ;;  %v4546_v28 = vld [vmem:[#allocation2 + $0xee] sm:$0xff] }
 0x322   : > { %v4545_v30 = vld [vmem:[#allocation2 + $0xe6] sm:$0xff] }
 0x324   : > { %18783 = vmatmul.mubr.msk.f32.gmra.mrb[30].mxu1 %vm2264_vm4, %v3264_v47  ;;  %19105 = vmatmul.mubr.msk.f32.gmra.mrb[228].mxu0 %vm2264_vm4, %v23075_v39  ;;  %v4520_v47 = vld [vmem:[#allocation2 + $0x1e] sm:$0xff] }
 0x325   : > { %18785 = vmatprep.mubr.msk.f32.mxu1 %vm2264_vm4, %v3265_v1  ;;  %19107 = vmatprep.mubr.msk.f32.mxu0 %vm2264_vm4, %v23080_v9  ;;  %v23147_v1 = vld [vmem:[#allocation2 + $0x28] sm:$0xff]  ;;  %v4543_v9 = vld [vmem:[#allocation2 + $0xd6] sm:$0xff]  ;;  %v4544_v39 = vld [vmem:[#allocation2 + $0xde] sm:$0xff] }
 0x328   : > { %18786 = vmatmul.mubr.msk.f32.gmra.mrb[32].mxu1 %vm2264_vm4, %v3266_v16  ;;  %19108 = vmatmul.mubr.msk.f32.gmra.mrb[230].mxu0 %vm2264_vm4, %v23085_v27  ;;  %v4521_v16 = vld [vmem:[#allocation2 + $0x26] sm:$0xff]  ;;  %v4542_v27 = vld [vmem:[#allocation2 + $0xce] sm:$0xff] }
 0x329   : > { %18788 = vmatprep.mubr.msk.f32.mxu1 %vm2264_vm4, %v3267_v55  ;;  %19110 = vmatprep.mubr.msk.f32.mxu0 %vm2264_vm4, %v23090_v23  ;;  %v4522_v55 = vld [vmem:[#allocation2 + $0x2e] sm:$0xff] }
 0x32a   : > { %v23259_v23 = vld [vmem:[#allocation2 + $0xd0] sm:$0xff] }
 0x32c   : > { %18789 = vmatmul.mubr.msk.f32.gmra.mrb[34].mxu1 %vm2264_vm4, %v3268_v15  ;;  %19111 = vmatmul.mubr.msk.f32.gmra.mrb[232].mxu0 %vm2264_vm4, %v23095_v24  ;;  %v23157_v15 = vld [vmem:[#allocation2 + $0x38] sm:$0xff]  ;;  %v4541_v24 = vld [vmem:[#allocation2 + $0xc6] sm:$0xff] }
 0x32d   : > { %18791 = vmatprep.mubr.msk.f32.mxu1 %vm2264_vm4, %v3269_v58  ;;  %19113 = vmatprep.mubr.msk.f32.mxu0 %vm2264_vm4, %v23100_v59  ;;  %v4523_v58 = vld [vmem:[#allocation2 + $0x36] sm:$0xff]  ;;  %v4540_v59 = vld [vmem:[#allocation2 + $0xbe] sm:$0xff] }
 0x330   : > { %18792 = vmatmul.mubr.msk.f32.gmra.mrb[36].mxu1 %vm2264_vm4, %v3270_v44  ;;  %19114 = vmatmul.mubr.msk.f32.gmra.mrb[234].mxu0 %vm2264_vm4, %v23105_v5  ;;  %v23162_v44 = vld [vmem:[#allocation2 + $0x40] sm:$0xff]  ;;  %v4539_v5 = vld [vmem:[#allocation2 + $0xb6] sm:$0xff] }
 0x331   : > { %18794 = vmatprep.mubr.msk.f32.mxu1 %vm2264_vm4, %v3271_v6  ;;  %19116 = vmatprep.mubr.msk.f32.mxu0 %vm2264_vm4, %v23110_v20  ;;  %v4524_v6 = vld [vmem:[#allocation2 + $0x3e] sm:$0xff]  ;;  %v4538_v20 = vld [vmem:[#allocation2 + $0xae] sm:$0xff] }
 0x334   : > { %18795 = vmatmul.mubr.msk.f32.gmra.mrb[38].mxu1 %vm2264_vm4, %v3272_v8  ;;  %19117 = vmatmul.mubr.msk.f32.gmra.mrb[236].mxu0 %vm2264_vm4, %v5473_v52  ;;  %v23167_v8 = vld [vmem:[#allocation2 + $0x48] sm:$0xff] }
 0x335   : > { %18799 = vmatprep.mubr.msk.f32.mxu1 %vm2264_vm4, %v2314_v26  ;;  %19119 = vmatprep.mubr.msk.f32.mxu0 %vm2264_vm4, %v5474_v42  ;;  %v4525_v52 = vld [vmem:[#allocation2 + $0x46] sm:$0xff]  ;;  %v23172_v26 = vld [vmem:[#allocation2 + $0x50] sm:$0xff] }
 0x336   : > { %v4526_v42 = vld [vmem:[#allocation2 + $0x4e] sm:$0xff] }
 0x338   : > { %18800 = vmatmul.mubr.msk.f32.vlgmr.msra.gmra.mrb[40].mxu1 %vm2264_vm4, %v2315_v60  ;;  %19120 = vmatmul.mubr.msk.f32.gmra.mrb[238].mxu0 %vm2264_vm4, %v5475_v56  ;;  %v4527_v60 = vld [vmem:[#allocation2 + $0x56] sm:$0xff]  ;;  %v23182_v56 = vld [vmem:[#allocation2 + $0x60] sm:$0xff] }
 0x339   : > { %18863 = vmatpush3.bf16.msra.mxu1 %v4145_v50  ;;  %18802 = vmatprep.mubr.msk.f32.mxu1 %vm2264_vm4, %v23128_v11  ;;  %v23177_v50 = vld [vmem:[#allocation2 + $0x58] sm:$0xff] }
 0x33a   : > { %19124 = vmatprep.mubr.msk.f32.mxu0 %vm2264_vm4, %v4518_v12  ;;  %21261 = vmatprep.subr.msk.bf16.mxu1 %vm2526_vm3, %v23124_v46  ;;  %v4528_v12 = vld [vmem:[#allocation2 + $0x5e] sm:$0xff] }
 0x33c   : > { %18803 = vmatmul.mubr.msk.f32.gmra.mrb[0].mxu1 %vm2264_vm4, %v23135_v21  ;;  %19125 = vmatmul.mubr.msk.f32.vlgmr.msra.gmra.mrb[198].mxu0 %vm2264_vm4, %v4519_v17  ;;  %v23187_v17 = vld [vmem:[#allocation2 + $0x68] sm:$0xff] }
 0x33d   : > { %18805 = vmatprep.mubr.msk.f32.mxu1 %vm2264_vm4, %v23142_v7  ;;  %19127 = vmatprep.mubr.msk.f32.mxu0 %vm2264_vm4, %v4520_v47  ;;  %v23192_v47 = vld [vmem:[#allocation2 + $0x70] sm:$0xff] }
 0x33e   : > { %19188 = vmatpush3.bf16.msra.mxu0 %v6348_v22  ;;  %v4529_v22 = vld [vmem:[#allocation2 + $0x66] sm:$0xff] }
 0x340   : > { %18806 = vmatmul.mubr.msk.f32.gmra.mrb[2].mxu1 %vm2264_vm4, %v23147_v1  ;;  %19128 = vmatmul.mubr.msk.f32.gmra.mrb[200].mxu0 %vm2264_vm4, %v4521_v16  ;;  %v4530_v16 = vld [vmem:[#allocation2 + $0x6e] sm:$0xff] }
 0x341   : > { %18808 = vmatprep.mubr.msk.f32.mxu1 %vm2264_vm4, %v23152_v43  ;;  %19130 = vmatprep.mubr.msk.f32.mxu0 %vm2264_vm4, %v4522_v55  ;;  %v23197_v55 = vld [vmem:[#allocation2 + $0x78] sm:$0xff] }
 0x344   : > { %18809 = vmatmul.mubr.msk.f32.gmra.mrb[4].mxu1 %vm2264_vm4, %v23157_v15  ;;  %19131 = vmatmul.mubr.msk.f32.gmra.mrb[202].mxu0 %vm2264_vm4, %v4523_v58  ;;  %v4531_v58 = vld [vmem:[#allocation2 + $0x76] sm:$0xff] }
 0x345   : > { %18811 = vmatprep.mubr.msk.f32.mxu1 %vm2264_vm4, %v23162_v44  ;;  %19133 = vmatprep.mubr.msk.f32.mxu0 %vm2264_vm4, %v4524_v6  ;;  %v23202_v6 = vld [vmem:[#allocation2 + $0x80] sm:$0xff] }
 0x348   : > { %18812 = vmatmul.mubr.msk.f32.gmra.mrb[6].mxu1 %vm2264_vm4, %v23167_v8  ;;  %19134 = vmatmul.mubr.msk.f32.gmra.mrb[204].mxu0 %vm2264_vm4, %v4525_v52  ;;  %v4532_v52 = vld [vmem:[#allocation2 + $0x7e] sm:$0xff] }
 0x349   : > { %18814 = vmatprep.mubr.msk.f32.mxu1 %vm2264_vm4, %v23172_v26  ;;  %19136 = vmatprep.mubr.msk.f32.mxu0 %vm2264_vm4, %v4526_v42  ;;  %v23207_v42 = vld [vmem:[#allocation2 + $0x88] sm:$0xff] }
 0x34c   : > { %18815 = vmatmul.mubr.msk.f32.gmra.mrb[8].mxu1 %vm2264_vm4, %v23177_v50  ;;  %19137 = vmatmul.mubr.msk.f32.gmra.mrb[206].mxu0 %vm2264_vm4, %v4527_v60  ;;  %v4533_v60 = vld [vmem:[#allocation2 + $0x86] sm:$0xff] }
 0x34d   : > { %18817 = vmatprep.mubr.msk.f32.mxu1 %vm2264_vm4, %v23182_v56  ;;  %19139 = vmatprep.mubr.msk.f32.mxu0 %vm2264_vm4, %v4528_v12  ;;  %v23212_v12 = vld [vmem:[#allocation2 + $0x90] sm:$0xff] }
 0x350   : > { %18818 = vmatmul.mubr.msk.f32.gmra.mrb[10].mxu1 %vm2264_vm4, %v23187_v17  ;;  %19140 = vmatmul.mubr.msk.f32.gmra.mrb[208].mxu0 %vm2264_vm4, %v4529_v22  ;;  %v4534_v22 = vld [vmem:[#allocation2 + $0x8e] sm:$0xff] }
 0x351   : > { %18820 = vmatprep.mubr.msk.f32.mxu1 %vm2264_vm4, %v23192_v47  ;;  %19142 = vmatprep.mubr.msk.f32.mxu0 %vm2264_vm4, %v4530_v16  ;;  %v23217_v16 = vld [vmem:[#allocation2 + $0x98] sm:$0xff] }
 0x354   : > { %18821 = vmatmul.mubr.msk.f32.gmra.mrb[12].mxu1 %vm2264_vm4, %v23197_v55  ;;  %19143 = vmatmul.mubr.msk.f32.gmra.mrb[210].mxu0 %vm2264_vm4, %v4531_v58  ;;  %v4535_v58 = vld [vmem:[#allocation2 + $0x96] sm:$0xff] }
 0x355   : > { %18823 = vmatprep.mubr.msk.f32.mxu1 %vm2264_vm4, %v23202_v6  ;;  %19145 = vmatprep.mubr.msk.f32.mxu0 %vm2264_vm4, %v4532_v52  ;;  %v23222_v52 = vld [vmem:[#allocation2 + $0xa0] sm:$0xff] }
 0x358   : > { %18824 = vmatmul.mubr.msk.f32.gmra.mrb[14].mxu1 %vm2264_vm4, %v23207_v42  ;;  %19146 = vmatmul.mubr.msk.f32.gmra.mrb[212].mxu0 %vm2264_vm4, %v4533_v60  ;;  %v23227_v60 = vld [vmem:[#allocation2 + $0xa8] sm:$0xff] }
 0x359   : > { %18826 = vmatprep.mubr.msk.f32.mxu1 %vm2264_vm4, %v23212_v12  ;;  %19148 = vmatprep.mubr.msk.f32.mxu0 %vm2264_vm4, %v4534_v22  ;;  %v23232_v22 = vld [vmem:[#allocation2 + $0xb0] sm:$0xff] }
 0x35c   : > { %18827 = vmatmul.mubr.msk.f32.gmra.mrb[16].mxu1 %vm2264_vm4, %v23217_v16  ;;  %19149 = vmatmul.mubr.msk.f32.gmra.mrb[214].mxu0 %vm2264_vm4, %v4535_v58  ;;  %v23244_v58 = vld [vmem:[#allocation2 + $0xb8] sm:$0xff] }
 0x35d   : > { %18829 = vmatprep.mubr.msk.f32.mxu1 %vm2264_vm4, %v23222_v52  ;;  %19151 = vmatprep.mubr.msk.f32.mxu0 %vm2264_vm4, %v4536_v49  ;;  %v23240_v49 = vld [vmem:[%s25306_s1 + $0x68] sm:$0x7] }
 0x35e   : > { %21266 = vmatprep.subr.msk.bf16.mxu0 %vm2526_vm3, %v23240_v49 }
 0x360   : > { %18830 = vmatmul.mubr.msk.f32.gmra.mrb[18].mxu1 %vm2264_vm4, %v23227_v60  ;;  %19152 = vmatmul.mubr.msk.f32.gmra.mrb[216].mxu0 %vm2264_vm4, %v4537_v57  ;;  %v23249_v57 = vld [vmem:[#allocation2 + $0xc0] sm:$0xff] }
 0x361   : > { %18832 = vmatprep.mubr.msk.f32.mxu1 %vm2264_vm4, %v23232_v22  ;;  %19154 = vmatprep.mubr.msk.f32.mxu0 %vm2264_vm4, %v4538_v20  ;;  %v23254_v20 = vld [vmem:[#allocation2 + $0xc8] sm:$0xff] }
 0x364   : > { %18833 = vmatmul.mubr.msk.f32.gmra.mrb[20].mxu1 %vm2264_vm4, %v23244_v58  ;;  %19155 = vmatmul.mubr.msk.f32.gmra.mrb[218].mxu0 %vm2264_vm4, %v4539_v5  ;;  %v23264_v5 = vld [vmem:[#allocation2 + $0xd8] sm:$0xff] }
 0x365   : > { %18835 = vmatprep.mubr.msk.f32.mxu1 %vm2264_vm4, %v23249_v57  ;;  %19157 = vmatprep.mubr.msk.f32.mxu0 %vm2264_vm4, %v4540_v59  ;;  %v23269_v59 = vld [vmem:[#allocation2 + $0xe0] sm:$0xff] }
 0x366   : > { %25687 = vst [vmem:[#allocation82_spill] sm:$0xff] %v23269_v59 }
 0x368   : > { %18836 = vmatmul.mubr.msk.f32.gmra.mrb[22].mxu1 %vm2264_vm4, %v23254_v20  ;;  %19158 = vmatmul.mubr.msk.f32.gmra.mrb[220].mxu0 %vm2264_vm4, %v4541_v24  ;;  %v23274_v24 = vld [vmem:[#allocation2 + $0xe8] sm:$0xff] }
 0x369   : > { %18838 = vmatprep.mubr.msk.f32.mxu1 %vm2264_vm4, %v23259_v23  ;;  %19160 = vmatprep.mubr.msk.f32.mxu0 %vm2264_vm4, %v4542_v27  ;;  %25688 = vst [vmem:[#allocation78_spill] sm:$0xff] %v23274_v24  ;;  %v23279_v27 = vld [vmem:[#allocation2 + $0xf0] sm:$0xff] }
 0x36a   : > { %25689 = vst [vmem:[#allocation16_spill] sm:$0xff] %v23279_v27 }
 0x36c   : > { %18839 = vmatmul.mubr.msk.f32.gmra.mrb[24].mxu1 %vm2264_vm4, %v23264_v5  ;;  %19161 = vmatmul.mubr.msk.f32.gmra.mrb[222].mxu0 %vm2264_vm4, %v4543_v9  ;;  %v23284_v9 = vld [vmem:[#allocation2 + $0xf8] sm:$0xff] }
 0x36d   : > { %18841 = vmatprep.mubr.msk.f32.mxu1 %vm2264_vm4, %v23269_v59  ;;  %19163 = vmatprep.mubr.msk.f32.mxu0 %vm2264_vm4, %v4544_v39  ;;  %25690 = vst [vmem:[#allocation53_spill] sm:$0xff] %v23284_v9  ;;  %v23289_v39 = vld [vmem:[#allocation2 + $0x100] sm:$0xff]  ;;  %v4559_v59 = vld [vmem:[#allocation2 + $0x156] sm:$0xf] }
 0x36e   : > { %25691 = vst [vmem:[#allocation79_spill] sm:$0xff] %v23289_v39 }
 0x370   : > { %18842 = vmatmul.mubr.msk.f32.gmra.mrb[26].mxu1 %vm2264_vm4, %v23274_v24  ;;  %19164 = vmatmul.mubr.msk.f32.gmra.mrb[224].mxu0 %vm2264_vm4, %v4545_v30  ;;  %v4548_v24 = vld [vmem:[#allocation2 + $0xfe] sm:$0xff]  ;;  %v23294_v30 = vld [vmem:[#allocation2 + $0x108] sm:$0xff] }
 0x371   : > { %18844 = vmatprep.mubr.msk.f32.mxu1 %vm2264_vm4, %v23279_v27  ;;  %19166 = vmatprep.mubr.msk.f32.mxu0 %vm2264_vm4, %v4546_v28  ;;  %25692 = vst [vmem:[#allocation17_spill] sm:$0xff] %v23294_v30  ;;  %v4549_v27 = vld [vmem:[#allocation2 + $0x106] sm:$0xff]  ;;  %v23299_v28 = vld [vmem:[#allocation2 + $0x110] sm:$0xff] }
 0x372   : > { %25693 = vst [vmem:[#allocation50_spill] sm:$0xff] %v23299_v28 }
 0x374   : > { %18845 = vmatmul.mubr.msk.f32.gmra.mrb[28].mxu1 %vm2264_vm4, %v23284_v9  ;;  %19167 = vmatmul.mubr.msk.f32.gmra.mrb[226].mxu0 %vm2264_vm4, %v4547_v54  ;;  %v4550_v9 = vld [vmem:[#allocation2 + $0x10e] sm:$0xff]  ;;  %v23304_v54 = vld [vmem:[#allocation2 + $0x118] sm:$0xff] }
 0x375   : > { %18847 = vmatprep.mubr.msk.f32.mxu1 %vm2264_vm4, %v23289_v39  ;;  %19169 = vmatprep.mubr.msk.f32.mxu0 %vm2264_vm4, %v4548_v24  ;;  %25694 = vst [vmem:[#allocation80_spill] sm:$0xff] %v23304_v54  ;;  %v4551_v39 = vld [vmem:[#allocation2 + $0x116] sm:$0xff]  ;;  %v23309_v24 = vld [vmem:[#allocation2 + $0x120] sm:$0xff] }
 0x376   : > { %25695 = vst [vmem:[#allocation19_spill] sm:$0xff] %v23309_v24 }
 0x378   : > { %18848 = vmatmul.mubr.msk.f32.gmra.mrb[30].mxu1 %vm2264_vm4, %v23294_v30  ;;  %19170 = vmatmul.mubr.msk.f32.gmra.mrb[228].mxu0 %vm2264_vm4, %v4549_v27  ;;  %v4552_v30 = vld [vmem:[#allocation2 + $0x11e] sm:$0xff]  ;;  %v23314_v27 = vld [vmem:[#allocation2 + $0x128] sm:$0xff] }
 0x379   : > { %18850 = vmatprep.mubr.msk.f32.mxu1 %vm2264_vm4, %v23299_v28  ;;  %19172 = vmatprep.mubr.msk.f32.mxu0 %vm2264_vm4, %v4550_v9  ;;  %25696 = vst [vmem:[#allocation55_spill] sm:$0xff] %v23314_v27  ;;  %v4553_v28 = vld [vmem:[#allocation2 + $0x126] sm:$0xff]  ;;  %v23319_v9 = vld [vmem:[#allocation2 + $0x130] sm:$0xff] }
 0x37a   : > { %25697 = vst [vmem:[#allocation15_spill] sm:$0xff] %v23319_v9 }
 0x37c   : > { %18851 = vmatmul.mubr.msk.f32.gmra.mrb[32].mxu1 %vm2264_vm4, %v23304_v54  ;;  %19173 = vmatmul.mubr.msk.f32.gmra.mrb[230].mxu0 %vm2264_vm4, %v4551_v39  ;;  %v4554_v54 = vld [vmem:[#allocation2 + $0x12e] sm:$0xff]  ;;  %v23324_v39 = vld [vmem:[#allocation2 + $0x138] sm:$0xff] }
 0x37d   : > { %18853 = vmatprep.mubr.msk.f32.mxu1 %vm2264_vm4, %v23309_v24  ;;  %19175 = vmatprep.mubr.msk.f32.mxu0 %vm2264_vm4, %v4552_v30  ;;  %25698 = vst [vmem:[#allocation51_spill] sm:$0xff] %v23324_v39  ;;  %v4555_v24 = vld [vmem:[#allocation2 + $0x136] sm:$0xff]  ;;  %v23329_v30 = vld [vmem:[#allocation2 + $0x140] sm:$0xff] }
 0x380   : > { %18854 = vmatmul.mubr.msk.f32.gmra.mrb[34].mxu1 %vm2264_vm4, %v23314_v27  ;;  %19176 = vmatmul.mubr.msk.f32.gmra.mrb[232].mxu0 %vm2264_vm4, %v4553_v28  ;;  %v4556_v27 = vld [vmem:[#allocation2 + $0x13e] sm:$0xff]  ;;  %v2355_v28 = vld [vmem:[#allocation2 + $0x148] sm:$0xf] }
 0x381   : > { %18856 = vmatprep.mubr.msk.f32.mxu1 %vm2264_vm4, %v23319_v9  ;;  %19178 = vmatprep.mubr.msk.f32.mxu0 %vm2264_vm4, %v4554_v54  ;;  %v4557_v9 = vld [vmem:[#allocation2 + $0x146] sm:$0xff] }
 0x382   : > { %v2773_v54 = vld [vmem:[#allocation2 + $0x2] sm:$0xff] }
 0x384   : > { %18857 = vmatmul.mubr.msk.f32.gmra.mrb[36].mxu1 %vm2264_vm4, %v23324_v39  ;;  %19179 = vmatmul.mubr.msk.f32.gmra.mrb[234].mxu0 %vm2264_vm4, %v4555_v24  ;;  %v7016_v24 = vsel %vm2526_vm3, %v23124_v46, 0  ;;  %v2774_v39 = vld [vmem:[#allocation2 + $0xa] sm:$0xff]  ;;  %v6846_v46 = vld [vmem:[#allocation2 + $0x1d] sm:$0xff] }
 0x385   : > { %18859 = vmatprep.mubr.msk.f32.mxu1 %vm2264_vm4, %v23329_v30  ;;  %19181 = vmatprep.mubr.msk.f32.mxu0 %vm2264_vm4, %v4556_v27  ;;  %v23343_v27 = vld [vmem:[%s25306_s1 + $0x5c] sm:$0x7] }
 0x388   : > { %18860 = vmatmul.mubr.msk.f32.gmra.mrb[38].mxu1 %vm2264_vm4, %v2355_v28  ;;  %19182 = vmatmul.mubr.msk.f32.gmra.mrb[236].mxu0 %vm2264_vm4, %v4557_v9  ;;  %v23582_v9 = vld [vmem:[#allocation2 + $0x85] sm:$0xff] }
 0x389   : > { %18864 = vmatprep.mubr.msk.f32.mxu1 %vm2264_vm4, %v2773_v54  ;;  %19184 = vmatprep.mubr.msk.f32.mxu0 %vm2264_vm4, %v4558_v18  ;;  %v9301_v18 = vsel %vm2526_vm3, %v23240_v49, 0  ;;  %v23567_v49 = vld [vmem:[#allocation2 + $0x6d] sm:$0xff]  ;;  %v23592_v54 = vld [vmem:[#allocation2 + $0x95] sm:$0xff] }
 0x38a   : > { %v9143_v28 = vld [vmem:[#allocation2 + $0x8b] sm:$0xff] }
 0x38c   : > { %18865 = vmatmul.mubr.msk.f32.vlgmr.msra.gmra.mrb[40].mxu1 %vm2264_vm4, %v2774_v39  ;;  %19185 = vmatmul.mubr.msk.f32.gmra.mrb[238].mxu0 %vm2264_vm4, %v4559_v59  ;;  %v9141_v59 = vld [vmem:[#allocation2 + $0x7b] sm:$0xff]  ;;  %v9142_v39 = vld [vmem:[#allocation2 + $0x83] sm:$0xff] }
 0x38d   : > { %19253 = vmatpush3.bf16.msra.mxu1 %v7016_v24  ;;  %18867 = vmatprep.mubr.msk.f32.mxu1 %vm2264_vm4, %v22906_v4  ;;  %v9631_v4 = vld [vmem:[%s25306_s1 + $0x70] sm:$0x7]  ;;  %v9144_v24 = vld [vmem:[#allocation2 + $0x93] sm:$0xff] }
 0x38e   : > { %19189 = vmatprep.mubr.msk.f32.mxu0 %vm2264_vm4, %v23128_v11  ;;  %21262 = vmatprep.subr.msk.bf16.mxu1 %vm2526_vm3, %v23343_v27  ;;  %v7474_v11 = vsel %vm2526_vm3, %v23343_v27, 0  ;;  %v23597_v27 = vld [vmem:[#allocation2 + $0x9d] sm:$0xff] }
 0x390   : > { %18868 = vmatmul.mubr.msk.f32.gmra.mrb[0].mxu1 %vm2264_vm4, %v22912_v0  ;;  %19190 = vmatmul.mubr.msk.f32.vlgmr.msra.gmra.mrb[198].mxu0 %vm2264_vm4, %v23135_v21  ;;  %v25699_v0 = vld [vmem:[#allocation82_spill] sm:$0xff]  ;;  %v5017_v21 = vld [vmem:[#allocation2 + $0x158] sm:$0xf] }
 0x391   : > { %18870 = vmatprep.mubr.msk.f32.mxu1 %vm2264_vm4, %v22919_v41  ;;  %19192 = vmatprep.mubr.msk.f32.mxu0 %vm2264_vm4, %v23142_v7  ;;  %v25700_v41 = vld [vmem:[#allocation10_spill] sm:$0xff] }
 0x392   : > { %19578 = vmatpush3.bf16.msra.mxu0 %v9301_v18  ;;  %v6847_v7 = vld [vmem:[#allocation2 + $0x25] sm:$0xff]  ;;  %v9145_v18 = vld [vmem:[#allocation2 + $0x9b] sm:$0xff] }
 0x393   : > { %21267 = vmatprep.subr.msk.bf16.mxu0 %vm2526_vm3, %v9631_v4 }
 0x394   : > { %18871 = vmatmul.mubr.msk.f32.gmra.mrb[2].mxu1 %vm2264_vm4, %v22924_v35  ;;  %19193 = vmatmul.mubr.msk.f32.gmra.mrb[200].mxu0 %vm2264_vm4, %v23147_v1  ;;  %v25701_v35 = vld [vmem:[#allocation78_spill] sm:$0xff]  ;;  %v23520_v1 = vld [vmem:[%s25306_s1 + $0x60] sm:$0x7] }
 0x395   : > { %18873 = vmatprep.mubr.msk.f32.mxu1 %vm2264_vm4, %v22929_v37  ;;  %19195 = vmatprep.mubr.msk.f32.mxu0 %vm2264_vm4, %v23152_v43  ;;  %v25702_v37 = vld [vmem:[#allocation44_spill] sm:$0xff]  ;;  %v23524_v43 = vld [vmem:[#allocation2 + $0x2d] sm:$0xff] }
 0x398   : > { %18874 = vmatmul.mubr.msk.f32.gmra.mrb[4].mxu1 %vm2264_vm4, %v22934_v29  ;;  %19196 = vmatmul.mubr.msk.f32.gmra.mrb[202].mxu0 %vm2264_vm4, %v23157_v15  ;;  %v25703_v29 = vld [vmem:[#allocation16_spill] sm:$0xff]  ;;  %v9131_v15 = vld [vmem:[#allocation2 + $0x2b] sm:$0xff] }
 0x399   : > { %18876 = vmatprep.mubr.msk.f32.mxu1 %vm2264_vm4, %v22939_v36  ;;  %19198 = vmatprep.mubr.msk.f32.mxu0 %vm2264_vm4, %v23162_v44  ;;  %v25704_v36 = vld [vmem:[#allocation9_spill] sm:$0xff]  ;;  %v23531_v44 = vld [vmem:[#allocation2 + $0x35] sm:$0xff] }
 0x39c   : > { %18877 = vmatmul.mubr.msk.f32.gmra.mrb[6].mxu1 %vm2264_vm4, %v22944_v32  ;;  %19199 = vmatmul.mubr.msk.f32.gmra.mrb[204].mxu0 %vm2264_vm4, %v23167_v8  ;;  %v25705_v32 = vld [vmem:[#allocation53_spill] sm:$0xff]  ;;  %v9132_v8 = vld [vmem:[#allocation2 + $0x33] sm:$0xff] }
 0x39d   : > { %18879 = vmatprep.mubr.msk.f32.mxu1 %vm2264_vm4, %v22949_v10  ;;  %19201 = vmatprep.mubr.msk.f32.mxu0 %vm2264_vm4, %v23172_v26  ;;  %v25706_v10 = vld [vmem:[#allocation45_spill] sm:$0xff]  ;;  %v9759_v26 = vsel %vm2526_vm3, %v9631_v4, 0 }
 0x39e   : > { %v23602_v4 = vld [vmem:[#allocation2 + $0xa5] sm:$0xff] }
 0x3a0   : > { %18880 = vmatmul.mubr.msk.f32.gmra.mrb[8].mxu1 %vm2264_vm4, %v22954_v13  ;;  %19202 = vmatmul.mubr.msk.f32.gmra.mrb[206].mxu0 %vm2264_vm4, %v23177_v50  ;;  %v25707_v13 = vld [vmem:[#allocation79_spill] sm:$0xff]  ;;  %v23537_v50 = vld [vmem:[#allocation2 + $0x3d] sm:$0xff] }
 0x3a1   : > { %18882 = vmatprep.mubr.msk.f32.mxu1 %vm2264_vm4, %v22959_v33  ;;  %19204 = vmatprep.mubr.msk.f32.mxu0 %vm2264_vm4, %v23182_v56  ;;  %v25708_v33 = vld [vmem:[#allocation12_spill] sm:$0xff] }
 0x3a2   : > { %v9133_v56 = vld [vmem:[#allocation2 + $0x3b] sm:$0xff] }
 0x3a4   : > { %18883 = vmatmul.mubr.msk.f32.gmra.mrb[10].mxu1 %vm2264_vm4, %v22964_v3  ;;  %19205 = vmatmul.mubr.msk.f32.gmra.mrb[208].mxu0 %vm2264_vm4, %v23187_v17  ;;  %v25709_v3 = vld [vmem:[#allocation17_spill] sm:$0xff] }
 0x3a5   : > { %18885 = vmatprep.mubr.msk.f32.mxu1 %vm2264_vm4, %v22969_v40  ;;  %19207 = vmatprep.mubr.msk.f32.mxu0 %vm2264_vm4, %v23192_v47  ;;  %v25710_v40 = vld [vmem:[#allocation46_spill] sm:$0xff]  ;;  %v9134_v47 = vld [vmem:[#allocation2 + $0x43] sm:$0xff] }
 0x3a6   : > { %v23542_v17 = vld [vmem:[#allocation2 + $0x45] sm:$0xff] }
 0x3a8   : > { %18886 = vmatmul.mubr.msk.f32.gmra.mrb[12].mxu1 %vm2264_vm4, %v22974_v19  ;;  %19208 = vmatmul.mubr.msk.f32.gmra.mrb[210].mxu0 %vm2264_vm4, %v23197_v55  ;;  %v25711_v19 = vld [vmem:[#allocation50_spill] sm:$0xff] }
 0x3a9   : > { %18888 = vmatprep.mubr.msk.f32.mxu1 %vm2264_vm4, %v22979_v62  ;;  %19210 = vmatprep.mubr.msk.f32.mxu0 %vm2264_vm4, %v23202_v6  ;;  %v25712_v62 = vld [vmem:[#allocation11_spill] sm:$0xff]  ;;  %v9135_v6 = vld [vmem:[#allocation2 + $0x4b] sm:$0xff] }
 0x3aa   : > { %v23547_v55 = vld [vmem:[#allocation2 + $0x4d] sm:$0xff] }
 0x3ac   : > { %18889 = vmatmul.mubr.msk.f32.gmra.mrb[14].mxu1 %vm2264_vm4, %v22984_v25  ;;  %19211 = vmatmul.mubr.msk.f32.gmra.mrb[212].mxu0 %vm2264_vm4, %v23207_v42  ;;  %v25713_v25 = vld [vmem:[#allocation80_spill] sm:$0xff] }
 0x3ad   : > { %18891 = vmatprep.mubr.msk.f32.mxu1 %vm2264_vm4, %v22989_v48  ;;  %19213 = vmatprep.mubr.msk.f32.mxu0 %vm2264_vm4, %v23212_v12  ;;  %v25714_v48 = vld [vmem:[#allocation47_spill] sm:$0xff] }
 0x3ae   : > { %v23552_v42 = vld [vmem:[#allocation2 + $0x55] sm:$0xff] }
 0x3af   : > { %v9136_v12 = vld [vmem:[#allocation2 + $0x53] sm:$0xff] }
 0x3b0   : > { %18892 = vmatmul.mubr.msk.f32.gmra.mrb[16].mxu1 %vm2264_vm4, %v22994_v61  ;;  %19214 = vmatmul.mubr.msk.f32.gmra.mrb[214].mxu0 %vm2264_vm4, %v23217_v16  ;;  %v25715_v61 = vld [vmem:[#allocation19_spill] sm:$0xff]  ;;  %v23557_v16 = vld [vmem:[#allocation2 + $0x5d] sm:$0xff] }
 0x3b1   : > { %18894 = vmatprep.mubr.msk.f32.mxu1 %vm2264_vm4, %v22999_v2  ;;  %19216 = vmatprep.mubr.msk.f32.mxu0 %vm2264_vm4, %v23222_v52  ;;  %v25716_v2 = vld [vmem:[#allocation14_spill] sm:$0xff]  ;;  %v9137_v52 = vld [vmem:[#allocation2 + $0x5b] sm:$0xff] }
 0x3b4   : > { %18895 = vmatmul.mubr.msk.f32.gmra.mrb[18].mxu1 %vm2264_vm4, %v23004_v14  ;;  %19217 = vmatmul.mubr.msk.f32.gmra.mrb[216].mxu0 %vm2264_vm4, %v23227_v60  ;;  %v25717_v14 = vld [vmem:[#allocation55_spill] sm:$0xff]  ;;  %v23562_v60 = vld [vmem:[#allocation2 + $0x65] sm:$0xff] }
 0x3b5   : > { %18897 = vmatprep.mubr.msk.f32.mxu1 %vm2264_vm4, %v23009_v31  ;;  %19219 = vmatprep.mubr.msk.f32.mxu0 %vm2264_vm4, %v23232_v22  ;;  %v25718_v31 = vld [vmem:[#allocation48_spill] sm:$0xff] }
 0x3b6   : > { %v9138_v22 = vld [vmem:[#allocation2 + $0x63] sm:$0xff] }
 0x3b8   : > { %18898 = vmatmul.mubr.msk.f32.gmra.mrb[20].mxu1 %vm2264_vm4, %v23023_v45  ;;  %19220 = vmatmul.mubr.msk.f32.gmra.mrb[218].mxu0 %vm2264_vm4, %v23244_v58  ;;  %v25719_v45 = vld [vmem:[#allocation15_spill] sm:$0xff]  ;;  %v9139_v58 = vld [vmem:[#allocation2 + $0x6b] sm:$0xff] }
 0x3b9   : > { %18900 = vmatprep.mubr.msk.f32.mxu1 %vm2264_vm4, %v23030_v53  ;;  %19222 = vmatprep.mubr.msk.f32.mxu0 %vm2264_vm4, %v23249_v57  ;;  %v25720_v53 = vld [vmem:[#allocation13_spill] sm:$0xff]  ;;  %v23572_v57 = vld [vmem:[#allocation2 + $0x75] sm:$0xff] }
 0x3bc   : > { %18901 = vmatmul.mubr.msk.f32.gmra.mrb[22].mxu1 %vm2264_vm4, %v23035_v63  ;;  %19223 = vmatmul.mubr.msk.f32.gmra.mrb[220].mxu0 %vm2264_vm4, %v23254_v20  ;;  %v25721_v63 = vld [vmem:[#allocation51_spill] sm:$0xff] }
 0x3bd   : > { %18903 = vmatprep.mubr.msk.f32.mxu1 %vm2264_vm4, %v23040_v34  ;;  %19225 = vmatprep.mubr.msk.f32.mxu0 %vm2264_vm4, %v23259_v23  ;;  %v25722_v34 = vld [vmem:[#allocation49_spill] sm:$0xff]  ;;  %v5016_v23 = vld [vmem:[#allocation2 + $0x150] sm:$0xff] }
 0x3be   : > { %v9140_v20 = vld [vmem:[#allocation2 + $0x73] sm:$0xff] }
 0x3c0   : > { %18904 = vmatmul.mubr.msk.f32.gmra.mrb[24].mxu1 %vm2264_vm4, %v23045_v51  ;;  %19226 = vmatmul.mubr.msk.f32.gmra.mrb[222].mxu0 %vm2264_vm4, %v23264_v5  ;;  %v2814_v51 = vld [vmem:[#allocation2 + $0x14a] sm:$0xf]  ;;  %v23577_v5 = vld [vmem:[#allocation2 + $0x7d] sm:$0xff] }
 0x3c1   : > { %18906 = vmatprep.mubr.msk.f32.mxu1 %vm2264_vm4, %v23050_v38  ;;  %19228 = vmatprep.mubr.msk.f32.mxu0 %vm2264_vm4, %v25699_v0  ;;  %v5015_v38 = vld [vmem:[#allocation2 + $0x148] sm:$0xff] }
 0x3c2   : > { %v9146_v0 = vld [vmem:[#allocation2 + $0xa3] sm:$0xff] }
 0x3c4   : > { %18907 = vmatmul.mubr.msk.f32.gmra.mrb[26].mxu1 %vm2264_vm4, %v25700_v41  ;;  %19229 = vmatmul.mubr.msk.f32.gmra.mrb[224].mxu0 %vm2264_vm4, %v25701_v35  ;;  %v23607_v41 = vld [vmem:[#allocation2 + $0xad] sm:$0xff] }
 0x3c5   : > { %18909 = vmatprep.mubr.msk.f32.mxu1 %vm2264_vm4, %v25702_v37  ;;  %19231 = vmatprep.mubr.msk.f32.mxu0 %vm2264_vm4, %v25703_v29  ;;  %v9147_v35 = vld [vmem:[#allocation2 + $0xab] sm:$0xff]  ;;  %v23612_v37 = vld [vmem:[#allocation2 + $0xb5] sm:$0xff] }
 0x3c6   : > { %v9148_v29 = vld [vmem:[#allocation2 + $0xb3] sm:$0xff] }
 0x3c8   : > { %18910 = vmatmul.mubr.msk.f32.gmra.mrb[28].mxu1 %vm2264_vm4, %v25704_v36  ;;  %19232 = vmatmul.mubr.msk.f32.gmra.mrb[226].mxu0 %vm2264_vm4, %v25705_v32  ;;  %v23617_v36 = vld [vmem:[#allocation2 + $0xbd] sm:$0xff] }
 0x3c9   : > { %18912 = vmatprep.mubr.msk.f32.mxu1 %vm2264_vm4, %v25706_v10  ;;  %19234 = vmatprep.mubr.msk.f32.mxu0 %vm2264_vm4, %v25707_v13  ;;  %v9149_v32 = vld [vmem:[#allocation2 + $0xbb] sm:$0xff]  ;;  %v23622_v10 = vld [vmem:[#allocation2 + $0xc5] sm:$0xff] }
 0x3ca   : > { %v9150_v13 = vld [vmem:[#allocation2 + $0xc3] sm:$0xff] }
 0x3cc   : > { %18913 = vmatmul.mubr.msk.f32.gmra.mrb[30].mxu1 %vm2264_vm4, %v25708_v33  ;;  %19235 = vmatmul.mubr.msk.f32.gmra.mrb[228].mxu0 %vm2264_vm4, %v25709_v3  ;;  %v23627_v33 = vld [vmem:[#allocation2 + $0xcd] sm:$0xff] }
 0x3cd   : > { %18915 = vmatprep.mubr.msk.f32.mxu1 %vm2264_vm4, %v25710_v40  ;;  %19237 = vmatprep.mubr.msk.f32.mxu0 %vm2264_vm4, %v25711_v19  ;;  %v9151_v3 = vld [vmem:[#allocation2 + $0xcb] sm:$0xff]  ;;  %v23632_v40 = vld [vmem:[#allocation2 + $0xd5] sm:$0xff] }
 0x3ce   : > { %v9152_v19 = vld [vmem:[#allocation2 + $0xd3] sm:$0xff] }
 0x3d0   : > { %18916 = vmatmul.mubr.msk.f32.gmra.mrb[32].mxu1 %vm2264_vm4, %v25712_v62  ;;  %19238 = vmatmul.mubr.msk.f32.gmra.mrb[230].mxu0 %vm2264_vm4, %v25713_v25  ;;  %v23637_v62 = vld [vmem:[#allocation2 + $0xdd] sm:$0xff] }
 0x3d1   : > { %18918 = vmatprep.mubr.msk.f32.mxu1 %vm2264_vm4, %v25714_v48  ;;  %19240 = vmatprep.mubr.msk.f32.mxu0 %vm2264_vm4, %v25715_v61  ;;  %v9153_v25 = vld [vmem:[#allocation2 + $0xdb] sm:$0xff]  ;;  %v23642_v48 = vld [vmem:[#allocation2 + $0xe5] sm:$0xff] }
 0x3d2   : > { %v9154_v61 = vld [vmem:[#allocation2 + $0xe3] sm:$0xff] }
 0x3d4   : > { %18919 = vmatmul.mubr.msk.f32.gmra.mrb[34].mxu1 %vm2264_vm4, %v25716_v2  ;;  %19241 = vmatmul.mubr.msk.f32.gmra.mrb[232].mxu0 %vm2264_vm4, %v25717_v14  ;;  %v23647_v2 = vld [vmem:[%s25306_s1 + $0x74] sm:$0x7] }
 0x3d5   : > { %18921 = vmatprep.mubr.msk.f32.mxu1 %vm2264_vm4, %v25718_v31  ;;  %19243 = vmatprep.mubr.msk.f32.mxu0 %vm2264_vm4, %v25719_v45  ;;  %v23652_v14 = vld [vmem:[#allocation2 + $0xed] sm:$0xff]  ;;  %v23659_v45 = vld [vmem:[#allocation2 + $0xf5] sm:$0xff] }
 0x3d6   : > { %v9155_v31 = vld [vmem:[#allocation2 + $0xeb] sm:$0xff] }
 0x3d8   : > { %18922 = vmatmul.mubr.msk.f32.gmra.mrb[36].mxu1 %vm2264_vm4, %v25720_v53  ;;  %19244 = vmatmul.mubr.msk.f32.gmra.mrb[234].mxu0 %vm2264_vm4, %v25721_v63  ;;  %v9156_v53 = vld [vmem:[#allocation2 + $0xf3] sm:$0xff]  ;;  %v23664_v63 = vld [vmem:[#allocation2 + $0xfd] sm:$0xff] }
 0x3d9   : > { %18924 = vmatprep.mubr.msk.f32.mxu1 %vm2264_vm4, %v25722_v34  ;;  %19246 = vmatprep.mubr.msk.f32.mxu0 %vm2264_vm4, %v23329_v30  ;;  %v23587_v30 = vld [vmem:[#allocation2 + $0x8d] sm:$0xff]  ;;  %v9157_v34 = vld [vmem:[#allocation2 + $0xfb] sm:$0xff] }
 0x3dc   : > { %18925 = vmatmul.mubr.msk.f32.gmra.mrb[38].mxu1 %vm2264_vm4, %v2814_v51  ;;  %19247 = vmatmul.mubr.msk.f32.gmra.mrb[236].mxu0 %vm2264_vm4, %v5015_v38  ;;  %v23669_v51 = vld [vmem:[#allocation2 + $0x105] sm:$0xff] }
 0x3dd   : > { %19249 = vmatprep.mubr.msk.f32.mxu0 %vm2264_vm4, %v5016_v23  ;;  %19254 = vmatprep.mubr.msk.f32.mxu1 %vm2264_vm4, %v6846_v46  ;;  %v9158_v38 = vld [vmem:[#allocation2 + $0x103] sm:$0xff]  ;;  %v23674_v23 = vld [vmem:[#allocation2 + $0x10d] sm:$0xff] }
 0x3de   : > { %v9159_v46 = vld [vmem:[#allocation2 + $0x10b] sm:$0xff] }
 0x3e0   : > { %19250 = vmatmul.mubr.msk.f32.gmra.mrb[238].mxu0 %vm2264_vm4, %v5017_v21  ;;  %19255 = vmatmul.mubr.msk.f32.vlgmr.msra.gmra.mrb[42].mxu1 %vm2264_vm4, %v6847_v7  ;;  %v9160_v21 = vld [vmem:[#allocation2 + $0x113] sm:$0xff]  ;;  %v23684_v7 = vld [vmem:[#allocation2 + $0x11d] sm:$0xff] }
 0x3e1   : > { %19318 = vmatpush3.bf16.msra.mxu1 %v7474_v11  ;;  %19257 = vmatprep.mubr.msk.f32.mxu1 %vm2264_vm4, %v23524_v43  ;;  %v23679_v11 = vld [vmem:[#allocation2 + $0x115] sm:$0xff] }
 0x3e2   : > { %19579 = vmatprep.mubr.msk.f32.mxu0 %vm2264_vm4, %v9131_v15  ;;  %21263 = vmatprep.subr.msk.bf16.mxu1 %vm2526_vm3, %v23520_v1  ;;  %v9161_v15 = vld [vmem:[#allocation2 + $0x11b] sm:$0xff] }
 0x3e4   : > { %19258 = vmatmul.mubr.msk.f32.gmra.mrb[44].mxu1 %vm2264_vm4, %v23531_v44  ;;  %19580 = vmatmul.mubr.msk.f32.vlgmr.msra.gmra.mrb[240].mxu0 %vm2264_vm4, %v9132_v8  ;;  %v23689_v8 = vld [vmem:[#allocation2 + $0x125] sm:$0xff] }
 0x3e5   : > { %19260 = vmatprep.mubr.msk.f32.mxu1 %vm2264_vm4, %v23537_v50  ;;  %19582 = vmatprep.mubr.msk.f32.mxu0 %vm2264_vm4, %v9133_v56  ;;  %v23694_v56 = vld [vmem:[#allocation2 + $0x12d] sm:$0xff] }
 0x3e6   : > { %19643 = vmatpush3.bf16.msra.mxu0 %v9759_v26  ;;  %v9162_v26 = vld [vmem:[#allocation2 + $0x123] sm:$0xff] }
 0x3e7   : > { %21268 = vmatprep.subr.msk.bf16.mxu0 %vm2526_vm3, %v23647_v2 }
 0x3e8   : > { %19261 = vmatmul.mubr.msk.f32.gmra.mrb[46].mxu1 %vm2264_vm4, %v23542_v17  ;;  %19583 = vmatmul.mubr.msk.f32.gmra.mrb[242].mxu0 %vm2264_vm4, %v9134_v47  ;;  %v9163_v47 = vld [vmem:[#allocation2 + $0x12b] sm:$0xff] }
 0x3e9   : > { %19263 = vmatprep.mubr.msk.f32.mxu1 %vm2264_vm4, %v23547_v55  ;;  %19585 = vmatprep.mubr.msk.f32.mxu0 %vm2264_vm4, %v9135_v6  ;;  %v23699_v6 = vld [vmem:[#allocation2 + $0x135] sm:$0xff] }
 0x3ec   : > { %19264 = vmatmul.mubr.msk.f32.gmra.mrb[48].mxu1 %vm2264_vm4, %v23552_v42  ;;  %19586 = vmatmul.mubr.msk.f32.gmra.mrb[244].mxu0 %vm2264_vm4, %v9136_v12  ;;  %v9164_v12 = vld [vmem:[#allocation2 + $0x133] sm:$0xff] }
 0x3ed   : > { %19266 = vmatprep.mubr.msk.f32.mxu1 %vm2264_vm4, %v23557_v16  ;;  %19588 = vmatprep.mubr.msk.f32.mxu0 %vm2264_vm4, %v9137_v52  ;;  %v23704_v52 = vld [vmem:[#allocation2 + $0x13d] sm:$0xff] }
 0x3f0   : > { %19267 = vmatmul.mubr.msk.f32.gmra.mrb[50].mxu1 %vm2264_vm4, %v23562_v60  ;;  %19589 = vmatmul.mubr.msk.f32.gmra.mrb[246].mxu0 %vm2264_vm4, %v9138_v22  ;;  %v9165_v22 = vld [vmem:[#allocation2 + $0x13b] sm:$0xff] }
 0x3f1   : > { %19269 = vmatprep.mubr.msk.f32.mxu1 %vm2264_vm4, %v23567_v49  ;;  %19591 = vmatprep.mubr.msk.f32.mxu0 %vm2264_vm4, %v9139_v58  ;;  %v23709_v58 = vld [vmem:[#allocation2 + $0x145] sm:$0xff] }
 0x3f4   : > { %19270 = vmatmul.mubr.msk.f32.gmra.mrb[52].mxu1 %vm2264_vm4, %v23572_v57  ;;  %19592 = vmatmul.mubr.msk.f32.gmra.mrb[248].mxu0 %vm2264_vm4, %v9140_v20  ;;  %v9166_v20 = vld [vmem:[#allocation2 + $0x143] sm:$0xff] }
 0x3f5   : > { %19272 = vmatprep.mubr.msk.f32.mxu1 %vm2264_vm4, %v23577_v5  ;;  %19594 = vmatprep.mubr.msk.f32.mxu0 %vm2264_vm4, %v9141_v59  ;;  %v23714_v59 = vld [vmem:[#allocation2 + $0x14d] sm:$0xff] }
 0x3f8   : > { %19273 = vmatmul.mubr.msk.f32.gmra.mrb[54].mxu1 %vm2264_vm4, %v23582_v9  ;;  %19595 = vmatmul.mubr.msk.f32.gmra.mrb[250].mxu0 %vm2264_vm4, %v9142_v39  ;;  %v9167_v39 = vld [vmem:[#allocation2 + $0x14b] sm:$0xff] }
 0x3f9   : > { %19275 = vmatprep.mubr.msk.f32.mxu1 %vm2264_vm4, %v23587_v30  ;;  %19597 = vmatprep.mubr.msk.f32.mxu0 %vm2264_vm4, %v9143_v28  ;;  %v23719_v28 = vld [vmem:[#allocation2 + $0x155] sm:$0xff] }
 0x3fc   : > { %19276 = vmatmul.mubr.msk.f32.gmra.mrb[56].mxu1 %vm2264_vm4, %v23592_v54  ;;  %19598 = vmatmul.mubr.msk.f32.gmra.mrb[252].mxu0 %vm2264_vm4, %v9144_v24  ;;  %v9168_v24 = vld [vmem:[#allocation2 + $0x153] sm:$0xff] }
 0x3fd   : > { %19278 = vmatprep.mubr.msk.f32.mxu1 %vm2264_vm4, %v23597_v27  ;;  %19600 = vmatprep.mubr.msk.f32.mxu0 %vm2264_vm4, %v9145_v18  ;;  %v23724_v18 = vld [vmem:[#allocation2 + $0x15d] sm:$0xff] }
 0x400   : > { %19279 = vmatmul.mubr.msk.f32.gmra.mrb[58].mxu1 %vm2264_vm4, %v23602_v4  ;;  %19601 = vmatmul.mubr.msk.f32.gmra.mrb[254].mxu0 %vm2264_vm4, %v9146_v0  ;;  %v9169_v0 = vld [vmem:[#allocation2 + $0x15b] sm:$0xff] }
 0x401   : > { %19281 = vmatprep.mubr.msk.f32.mxu1 %vm2264_vm4, %v23607_v41  ;;  %19603 = vmatprep.mubr.msk.f32.mxu0 %vm2264_vm4, %v9147_v35  ;;  %v6887_v35 = vld [vmem:[#allocation2 + $0x165] sm:$0xf] }
 0x404   : > { %19282 = vmatmul.mubr.msk.f32.gmra.mrb[60].mxu1 %vm2264_vm4, %v23612_v37  ;;  %19604 = vmatmul.mubr.msk.f32.gmra.mrb[0].mxu0 %vm2264_vm4, %v9148_v29  ;;  %v9170_v29 = vld [vmem:[#allocation2 + $0x163] sm:$0xff] }
 0x405   : > { %19284 = vmatprep.mubr.msk.f32.mxu1 %vm2264_vm4, %v23617_v36  ;;  %19606 = vmatprep.mubr.msk.f32.mxu0 %vm2264_vm4, %v9149_v32  ;;  %v7304_v32 = vld [vmem:[#allocation2 + $0x1f] sm:$0xff] }
 0x408   : > { %19285 = vmatmul.mubr.msk.f32.gmra.mrb[62].mxu1 %vm2264_vm4, %v23622_v10  ;;  %19607 = vmatmul.mubr.msk.f32.gmra.mrb[2].mxu0 %vm2264_vm4, %v9150_v13  ;;  %v9171_v13 = vld [vmem:[#allocation2 + $0x16b] sm:$0xff] }
 0x409   : > { %19287 = vmatprep.mubr.msk.f32.mxu1 %vm2264_vm4, %v23627_v33  ;;  %19609 = vmatprep.mubr.msk.f32.mxu0 %vm2264_vm4, %v9151_v3  ;;  %v7889_v3 = vsel %vm2526_vm3, %v23520_v1, 0  ;;  %v7307_v1 = vld [vmem:[#allocation2 + $0x37] sm:$0xff] }
 0x40c   : > { %19288 = vmatmul.mubr.msk.f32.gmra.mrb[64].mxu1 %vm2264_vm4, %v23632_v40  ;;  %19610 = vmatmul.mubr.msk.f32.gmra.mrb[4].mxu0 %vm2264_vm4, %v9152_v19  ;;  %v7305_v19 = vld [vmem:[#allocation2 + $0x27] sm:$0xff] }
 0x40d   : > { %19290 = vmatprep.mubr.msk.f32.mxu1 %vm2264_vm4, %v23637_v62  ;;  %19612 = vmatprep.mubr.msk.f32.mxu0 %vm2264_vm4, %v9153_v25  ;;  %v9172_v25 = vld [vmem:[#allocation2 + $0x173] sm:$0xf] }
 0x410   : > { %19291 = vmatmul.mubr.msk.f32.gmra.mrb[66].mxu1 %vm2264_vm4, %v23642_v48  ;;  %19613 = vmatmul.mubr.msk.f32.gmra.mrb[6].mxu0 %vm2264_vm4, %v9154_v61  ;;  %v23738_v61 = vld [vmem:[%s25306_s1 + $0x50] sm:$0x7] }
 0x411   : > { %19293 = vmatprep.mubr.msk.f32.mxu1 %vm2264_vm4, %v23652_v14  ;;  %19615 = vmatprep.mubr.msk.f32.mxu0 %vm2264_vm4, %v9155_v31  ;;  %v7306_v31 = vld [vmem:[#allocation2 + $0x2f] sm:$0xff] }
 0x414   : > { %19294 = vmatmul.mubr.msk.f32.gmra.mrb[68].mxu1 %vm2264_vm4, %v23659_v45  ;;  %19616 = vmatmul.mubr.msk.f32.gmra.mrb[8].mxu0 %vm2264_vm4, %v9156_v53  ;;  %v10174_v53 = vsel %vm2526_vm3, %v23647_v2, 0  ;;  %v7313_v2 = vld [vmem:[#allocation2 + $0x67] sm:$0xff] }
 0x415   : > { %19296 = vmatprep.mubr.msk.f32.mxu1 %vm2264_vm4, %v23664_v63  ;;  %19618 = vmatprep.mubr.msk.f32.mxu0 %vm2264_vm4, %v9157_v34  ;;  %v7308_v34 = vld [vmem:[#allocation2 + $0x3f] sm:$0xff] }
 0x418   : > { %19297 = vmatmul.mubr.msk.f32.gmra.mrb[70].mxu1 %vm2264_vm4, %v23669_v51  ;;  %19619 = vmatmul.mubr.msk.f32.gmra.mrb[10].mxu0 %vm2264_vm4, %v9158_v38  ;;  %v7310_v38 = vld [vmem:[#allocation2 + $0x4f] sm:$0xff] }
 0x419   : > { %19299 = vmatprep.mubr.msk.f32.mxu1 %vm2264_vm4, %v23674_v23  ;;  %19621 = vmatprep.mubr.msk.f32.mxu0 %vm2264_vm4, %v9159_v46  ;;  %v25723_v46 = vld [vmem:[#allocation8_spill] sm:$0xff] }
 0x41c   : > { %19300 = vmatmul.mubr.msk.f32.gmra.mrb[72].mxu1 %vm2264_vm4, %v23679_v11  ;;  %19622 = vmatmul.mubr.msk.f32.gmra.mrb[12].mxu0 %vm2264_vm4, %v9160_v21 }
 0x41d   : > { %19302 = vmatprep.mubr.msk.f32.mxu1 %vm2264_vm4, %v23684_v7  ;;  %19624 = vmatprep.mubr.msk.f32.mxu0 %vm2264_vm4, %v9161_v15  ;;  %v25724_v15 = vld [vmem:[#allocation43_spill] sm:$0xff] }
 0x420   : > { %19303 = vmatmul.mubr.msk.f32.gmra.mrb[74].mxu1 %vm2264_vm4, %v23689_v8  ;;  %19625 = vmatmul.mubr.msk.f32.gmra.mrb[14].mxu0 %vm2264_vm4, %v9162_v26 }
 0x421   : > { %19305 = vmatprep.mubr.msk.f32.mxu1 %vm2264_vm4, %v23694_v56  ;;  %19627 = vmatprep.mubr.msk.f32.mxu0 %vm2264_vm4, %v9163_v47 }
 0x424   : > { %19306 = vmatmul.mubr.msk.f32.gmra.mrb[76].mxu1 %vm2264_vm4, %v23699_v6  ;;  %19628 = vmatmul.mubr.msk.f32.gmra.mrb[16].mxu0 %vm2264_vm4, %v9164_v12 }
 0x425   : > { %19308 = vmatprep.mubr.msk.f32.mxu1 %vm2264_vm4, %v23704_v52  ;;  %19630 = vmatprep.mubr.msk.f32.mxu0 %vm2264_vm4, %v9165_v22  ;;  %v7329_v22 = vld [vmem:[#allocation2 + $0xe7] sm:$0xff] }
 0x428   : > { %19309 = vmatmul.mubr.msk.f32.gmra.mrb[78].mxu1 %vm2264_vm4, %v23709_v58  ;;  %19631 = vmatmul.mubr.msk.f32.gmra.mrb[18].mxu0 %vm2264_vm4, %v9166_v20 }
 0x429   : > { %19311 = vmatprep.mubr.msk.f32.mxu1 %vm2264_vm4, %v23714_v59  ;;  %19633 = vmatprep.mubr.msk.f32.mxu0 %vm2264_vm4, %v9167_v39 }
 0x42c   : > { %19312 = vmatmul.mubr.msk.f32.gmra.mrb[80].mxu1 %vm2264_vm4, %v23719_v28  ;;  %19634 = vmatmul.mubr.msk.f32.gmra.mrb[20].mxu0 %vm2264_vm4, %v9168_v24 }
 0x42d   : > { %19314 = vmatprep.mubr.msk.f32.mxu1 %vm2264_vm4, %v23724_v18  ;;  %19636 = vmatprep.mubr.msk.f32.mxu0 %vm2264_vm4, %v9169_v0  ;;  %v7331_v0 = vld [vmem:[#allocation2 + $0xf7] sm:$0xff] }
 0x430   : > { %19315 = vmatmul.mubr.msk.f32.gmra.mrb[82].mxu1 %vm2264_vm4, %v6887_v35  ;;  %19637 = vmatmul.mubr.msk.f32.gmra.mrb[22].mxu0 %vm2264_vm4, %v9170_v29 }
 0x431   : > { %19319 = vmatprep.mubr.msk.f32.mxu1 %vm2264_vm4, %v7304_v32  ;;  %19639 = vmatprep.mubr.msk.f32.mxu0 %vm2264_vm4, %v9171_v13 }
 0x434   : > { %19320 = vmatmul.mubr.msk.f32.vlgmr.msra.gmra.mrb[42].mxu1 %vm2264_vm4, %v7305_v19  ;;  %19640 = vmatmul.mubr.msk.f32.gmra.mrb[24].mxu0 %vm2264_vm4, %v9172_v25 }
 0x435   : > { %19383 = vmatpush3.bf16.msra.mxu1 %v7889_v3  ;;  %19322 = vmatprep.mubr.msk.f32.mxu1 %vm2264_vm4, %v7306_v31 }
 0x436   : > { %19644 = vmatprep.mubr.msk.f32.mxu0 %vm2264_vm4, %v23524_v43  ;;  %21264 = vmatprep.subr.msk.bf16.mxu1 %vm2526_vm3, %v23738_v61  ;;  %v7309_v43 = vld [vmem:[#allocation2 + $0x47] sm:$0xff] }
 0x438   : > { %19323 = vmatmul.mubr.msk.f32.gmra.mrb[44].mxu1 %vm2264_vm4, %v7307_v1  ;;  %19645 = vmatmul.mubr.msk.f32.vlgmr.msra.gmra.mrb[240].mxu0 %vm2264_vm4, %v23531_v44  ;;  %v7311_v44 = vld [vmem:[#allocation2 + $0x57] sm:$0xff]  ;;  %v7333_v1 = vld [vmem:[#allocation2 + $0x107] sm:$0xff] }
 0x439   : > { %19325 = vmatprep.mubr.msk.f32.mxu1 %vm2264_vm4, %v7308_v34  ;;  %19647 = vmatprep.mubr.msk.f32.mxu0 %vm2264_vm4, %v23537_v50  ;;  %v7312_v50 = vld [vmem:[#allocation2 + $0x5f] sm:$0xff] }
 0x43a   : > { %19708 = vmatpush3.bf16.msra.mxu0 %v10174_v53 }
 0x43c   : > { %19326 = vmatmul.mubr.msk.f32.gmra.mrb[46].mxu1 %vm2264_vm4, %v7309_v43  ;;  %19648 = vmatmul.mubr.msk.f32.gmra.mrb[242].mxu0 %vm2264_vm4, %v23542_v17  ;;  %v7314_v17 = vld [vmem:[#allocation2 + $0x6f] sm:$0xff] }
 0x43d   : > { %19328 = vmatprep.mubr.msk.f32.mxu1 %vm2264_vm4, %v7310_v38  ;;  %19650 = vmatprep.mubr.msk.f32.mxu0 %vm2264_vm4, %v23547_v55  ;;  %v7315_v55 = vld [vmem:[#allocation2 + $0x77] sm:$0xff] }
 0x440   : > { %19329 = vmatmul.mubr.msk.f32.gmra.mrb[48].mxu1 %vm2264_vm4, %v7311_v44  ;;  %19651 = vmatmul.mubr.msk.f32.gmra.mrb[244].mxu0 %vm2264_vm4, %v23552_v42  ;;  %v7316_v42 = vld [vmem:[#allocation2 + $0x7f] sm:$0xff] }
 0x441   : > { %19331 = vmatprep.mubr.msk.f32.mxu1 %vm2264_vm4, %v7312_v50  ;;  %19653 = vmatprep.mubr.msk.f32.mxu0 %vm2264_vm4, %v23557_v16  ;;  %v7317_v16 = vld [vmem:[#allocation2 + $0x87] sm:$0xff] }
 0x444   : > { %19332 = vmatmul.mubr.msk.f32.gmra.mrb[50].mxu1 %vm2264_vm4, %v7313_v2  ;;  %19654 = vmatmul.mubr.msk.f32.gmra.mrb[246].mxu0 %vm2264_vm4, %v23562_v60  ;;  %v7318_v60 = vld [vmem:[#allocation2 + $0x8f] sm:$0xff] }
 0x445   : > { %19334 = vmatprep.mubr.msk.f32.mxu1 %vm2264_vm4, %v7314_v17  ;;  %19656 = vmatprep.mubr.msk.f32.mxu0 %vm2264_vm4, %v23567_v49  ;;  %v7319_v49 = vld [vmem:[#allocation2 + $0x97] sm:$0xff] }
 0x446   : > { %v7335_v17 = vld [vmem:[#allocation2 + $0x117] sm:$0xff] }
 0x448   : > { %19335 = vmatmul.mubr.msk.f32.gmra.mrb[52].mxu1 %vm2264_vm4, %v7315_v55  ;;  %19657 = vmatmul.mubr.msk.f32.gmra.mrb[248].mxu0 %vm2264_vm4, %v23572_v57  ;;  %v7320_v57 = vld [vmem:[#allocation2 + $0x9f] sm:$0xff] }
 0x449   : > { %19337 = vmatprep.mubr.msk.f32.mxu1 %vm2264_vm4, %v7316_v42  ;;  %19659 = vmatprep.mubr.msk.f32.mxu0 %vm2264_vm4, %v23577_v5  ;;  %v7321_v5 = vld [vmem:[#allocation2 + $0xa7] sm:$0xff] }
 0x44c   : > { %19338 = vmatmul.mubr.msk.f32.gmra.mrb[54].mxu1 %vm2264_vm4, %v7317_v16  ;;  %19660 = vmatmul.mubr.msk.f32.gmra.mrb[250].mxu0 %vm2264_vm4, %v23582_v9  ;;  %v7322_v9 = vld [vmem:[#allocation2 + $0xaf] sm:$0xff] }
 0x44d   : > { %19340 = vmatprep.mubr.msk.f32.mxu1 %vm2264_vm4, %v7318_v60  ;;  %19662 = vmatprep.mubr.msk.f32.mxu0 %vm2264_vm4, %v23587_v30  ;;  %v7323_v30 = vld [vmem:[#allocation2 + $0xb7] sm:$0xff] }
 0x450   : > { %19341 = vmatmul.mubr.msk.f32.gmra.mrb[56].mxu1 %vm2264_vm4, %v7319_v49  ;;  %19663 = vmatmul.mubr.msk.f32.gmra.mrb[252].mxu0 %vm2264_vm4, %v23592_v54  ;;  %v7324_v54 = vld [vmem:[#allocation2 + $0xbf] sm:$0xff] }
 0x451   : > { %19343 = vmatprep.mubr.msk.f32.mxu1 %vm2264_vm4, %v7320_v57  ;;  %19665 = vmatprep.mubr.msk.f32.mxu0 %vm2264_vm4, %v23597_v27  ;;  %v7325_v27 = vld [vmem:[#allocation2 + $0xc7] sm:$0xff] }
 0x454   : > { %19344 = vmatmul.mubr.msk.f32.gmra.mrb[58].mxu1 %vm2264_vm4, %v7321_v5  ;;  %19666 = vmatmul.mubr.msk.f32.gmra.mrb[254].mxu0 %vm2264_vm4, %v23602_v4  ;;  %v7326_v4 = vld [vmem:[#allocation2 + $0xcf] sm:$0xff] }
 0x455   : > { %19346 = vmatprep.mubr.msk.f32.mxu1 %vm2264_vm4, %v7322_v9  ;;  %19668 = vmatprep.mubr.msk.f32.mxu0 %vm2264_vm4, %v23607_v41  ;;  %v23812_v41 = vld [vmem:[%s25306_s1 + $0x64] sm:$0x7]  ;;  %v7337_v9 = vld [vmem:[#allocation2 + $0x127] sm:$0xff] }
 0x456   : > { %21269 = vmatprep.subr.msk.bf16.mxu0 %vm2526_vm3, %v23812_v41 }
 0x458   : > { %19347 = vmatmul.mubr.msk.f32.gmra.mrb[60].mxu1 %vm2264_vm4, %v7323_v30  ;;  %19669 = vmatmul.mubr.msk.f32.gmra.mrb[0].mxu0 %vm2264_vm4, %v23612_v37 }
 0x459   : > { %19349 = vmatprep.mubr.msk.f32.mxu1 %vm2264_vm4, %v7324_v54  ;;  %19671 = vmatprep.mubr.msk.f32.mxu0 %vm2264_vm4, %v23617_v36  ;;  %v7327_v36 = vld [vmem:[#allocation2 + $0xd7] sm:$0xff] }
 0x45c   : > { %19350 = vmatmul.mubr.msk.f32.gmra.mrb[62].mxu1 %vm2264_vm4, %v7325_v27  ;;  %19672 = vmatmul.mubr.msk.f32.gmra.mrb[2].mxu0 %vm2264_vm4, %v23622_v10 }
 0x45d   : > { %19352 = vmatprep.mubr.msk.f32.mxu1 %vm2264_vm4, %v7326_v4  ;;  %19674 = vmatprep.mubr.msk.f32.mxu0 %vm2264_vm4, %v23627_v33  ;;  %v7328_v33 = vld [vmem:[#allocation2 + $0xdf] sm:$0xff] }
 0x45f   : > { %v18866_v37 = vpop.f32.mrb[40].mxu1 }
 0x460   : > { %v20410_v21 = vadd.f32 %v18866_v37, %v25723_v46  ;;  %v4181_v10 = vpop.f32.mrb[41].mxu1  ;;  %19353 = vmatmul.mubr.msk.f32.gmra.mrb[64].mxu1 %vm2264_vm4, %v7327_v36  ;;  %19675 = vmatmul.mubr.msk.f32.gmra.mrb[4].mxu0 %vm2264_vm4, %v23632_v40  ;;  %v7330_v40 = vld [vmem:[#allocation2 + $0xef] sm:$0xff] }
 0x461   : > { %v20411_v26 = vadd.f32 %v4181_v10, %v25724_v15  ;;  %19355 = vmatprep.mubr.msk.f32.mxu1 %vm2264_vm4, %v7328_v33  ;;  %19677 = vmatprep.mubr.msk.f32.mxu0 %vm2264_vm4, %v23637_v62 }
 0x462   : > { %4476 = vst.msk [vmem:[#allocation3 + $0x8] sm:$0xff] %vm4474_vm5, %v20410_v21  ;;  %v7339_v21 = vld [vmem:[#allocation2 + $0x137] sm:$0xff] }
 0x463   : > { %4475 = vst.msk [vmem:[#allocation3] sm:$0xff] %vm4474_vm5, %v20411_v26  ;;  %v18869_v47 = vpop.f32.mrb[0].mxu1  ;;  %v19191_v12 = vpop.f32.mrb[198].mxu0 }
 0x464   : > { %4478 = vst.msk [vmem:[#allocation3 + $0x18] sm:$0xff] %vm4474_vm5, %v18869_v47  ;;  %v4191_v20 = vpop.f32.mrb[1].mxu1  ;;  %v6384_v39 = vpop.f32.mrb[199].mxu0  ;;  %19356 = vmatmul.mubr.msk.f32.gmra.mrb[66].mxu1 %vm2264_vm4, %v7329_v22  ;;  %19678 = vmatmul.mubr.msk.f32.gmra.mrb[6].mxu0 %vm2264_vm4, %v23642_v48  ;;  %v7332_v48 = vld [vmem:[#allocation2 + $0xff] sm:$0xff] }
 0x465   : > { %4477 = vst.msk [vmem:[#allocation3 + $0x10] sm:$0xff] %vm4474_vm5, %v4191_v20  ;;  %19358 = vmatprep.mubr.msk.f32.mxu1 %vm2264_vm4, %v7330_v40  ;;  %19680 = vmatprep.mubr.msk.f32.mxu0 %vm2264_vm4, %v23652_v14  ;;  %v7341_v20 = vld [vmem:[#allocation2 + $0x147] sm:$0xff] }
 0x467   : > { %v18872_v62 = vpop.f32.mrb[2].mxu1  ;;  %v19194_v24 = vpop.f32.mrb[200].mxu0 }
 0x468   : > { %4480 = vst.msk [vmem:[#allocation3 + $0x28] sm:$0xff] %vm4474_vm5, %v18872_v62  ;;  %v4201_v35 = vpop.f32.mrb[3].mxu1  ;;  %v6394_v29 = vpop.f32.mrb[201].mxu0  ;;  %19359 = vmatmul.mubr.msk.f32.gmra.mrb[68].mxu1 %vm2264_vm4, %v7331_v0  ;;  %19681 = vmatmul.mubr.msk.f32.gmra.mrb[8].mxu0 %vm2264_vm4, %v23659_v45 }
 0x469   : > { %v6678_v32 = vld [vmem:[#allocation3 + $0x8] sm:$0xff]  ;;  %4479 = vst.msk [vmem:[#allocation3 + $0x20] sm:$0xff] %vm4474_vm5, %v4201_v35  ;;  %19361 = vmatprep.mubr.msk.f32.mxu1 %vm2264_vm4, %v7332_v48  ;;  %19683 = vmatprep.mubr.msk.f32.mxu0 %vm2264_vm4, %v23664_v63 }
 0x46a   : > { %v6720_v14 = vadd.f32 %v19191_v12, %v6678_v32  ;;  %v6677_v13 = vld [vmem:[#allocation3] sm:$0xff]  ;;  %v7343_v48 = vld [vmem:[#allocation2 + $0x157] sm:$0xff] }
 0x46b   : > { %v6719_v3 = vadd.f32 %v6677_v13, %v6384_v39  ;;  %v6680_v19 = vld [vmem:[#allocation3 + $0x18] sm:$0xff]  ;;  %v18875_v25 = vpop.f32.mrb[4].mxu1  ;;  %v19197_v31 = vpop.f32.mrb[202].mxu0  ;;  %v7334_v63 = vld [vmem:[#allocation2 + $0x10f] sm:$0xff] }
 0x46c   : > { %6762 = vst.msk [vmem:[#allocation3 + $0x8] sm:$0xff] %vm4474_vm5, %v6720_v14  ;;  %v6722_v53 = vadd.f32 %v19194_v24, %v6680_v19  ;;  %v6679_v45 = vld [vmem:[#allocation3 + $0x10] sm:$0xff]  ;;  %4482 = vst.msk [vmem:[#allocation3 + $0x38] sm:$0xff] %vm4474_vm5, %v18875_v25  ;;  %v4211_v34 = vpop.f32.mrb[5].mxu1  ;;  %v6404_v43 = vpop.f32.mrb[203].mxu0  ;;  %19362 = vmatmul.mubr.msk.f32.gmra.mrb[70].mxu1 %vm2264_vm4, %v7333_v1  ;;  %19684 = vmatmul.mubr.msk.f32.gmra.mrb[10].mxu0 %vm2264_vm4, %v23669_v51 }
 0x46d   : > { %6761 = vst.msk [vmem:[#allocation3] sm:$0xff] %vm4474_vm5, %v6719_v3  ;;  %v6721_v38 = vadd.f32 %v6679_v45, %v6394_v29  ;;  %4481 = vst.msk [vmem:[#allocation3 + $0x30] sm:$0xff] %vm4474_vm5, %v4211_v34  ;;  %19364 = vmatprep.mubr.msk.f32.mxu1 %vm2264_vm4, %v7334_v63  ;;  %19686 = vmatprep.mubr.msk.f32.mxu0 %vm2264_vm4, %v23674_v23  ;;  %v7336_v23 = vld [vmem:[#allocation2 + $0x11f] sm:$0xff]  ;;  %v7345_v1 = vld [vmem:[#allocation2 + $0x167] sm:$0xf] }
 0x46e   : > { %6764 = vst.msk [vmem:[#allocation3 + $0x18] sm:$0xff] %vm4474_vm5, %v6722_v53  ;;  %v9628_v53 = vld [vmem:[#allocation2 + $0x165] sm:$0xff]  ;;  %v9629_v63 = vld [vmem:[#allocation2 + $0x16d] sm:$0xff] }
 0x46f   : > { %6763 = vst.msk [vmem:[#allocation3 + $0x10] sm:$0xff] %vm4474_vm5, %v6721_v38  ;;  %v6682_v44 = vld [vmem:[#allocation3 + $0x28] sm:$0xff]  ;;  %v18878_v50 = vpop.f32.mrb[6].mxu1  ;;  %v19200_v2 = vpop.f32.mrb[204].mxu0 }
 0x470   : > { %v6724_v51 = vadd.f32 %v19197_v31, %v6682_v44  ;;  %v6681_v55 = vld [vmem:[#allocation3 + $0x20] sm:$0xff]  ;;  %4484 = vst.msk [vmem:[#allocation3 + $0x48] sm:$0xff] %vm4474_vm5, %v18878_v50  ;;  %v4221_v42 = vpop.f32.mrb[7].mxu1  ;;  %v6414_v16 = vpop.f32.mrb[205].mxu0  ;;  %19365 = vmatmul.mubr.msk.f32.gmra.mrb[72].mxu1 %vm2264_vm4, %v7335_v17  ;;  %19687 = vmatmul.mubr.msk.f32.gmra.mrb[12].mxu0 %vm2264_vm4, %v23679_v11  ;;  %v8261_v44 = vsel %vm2526_vm3, %v23738_v61, 0  ;;  %v7721_v61 = vld [vmem:[#allocation2 + $0x30] sm:$0xff] }
 0x471   : > { %v6723_v60 = vadd.f32 %v6681_v55, %v6404_v43  ;;  %4483 = vst.msk [vmem:[#allocation3 + $0x40] sm:$0xff] %vm4474_vm5, %v4221_v42  ;;  %19367 = vmatprep.mubr.msk.f32.mxu1 %vm2264_vm4, %v7336_v23  ;;  %19689 = vmatprep.mubr.msk.f32.mxu0 %vm2264_vm4, %v23684_v7  ;;  %v7338_v7 = vld [vmem:[#allocation2 + $0x12f] sm:$0xff]  ;;  %v23917_v42 = vld [vmem:[%s25306_s1 + $0x58] sm:$0x7] }
 0x472   : > { %6766 = vst.msk [vmem:[#allocation3 + $0x28] sm:$0xff] %vm4474_vm5, %v6724_v51  ;;  %v9630_v50 = vld [vmem:[#allocation2 + $0x175] sm:$0xf]  ;;  %v7720_v55 = vld [vmem:[#allocation2 + $0x28] sm:$0xff] }
 0x473   : > { %6765 = vst.msk [vmem:[#allocation3 + $0x20] sm:$0xff] %vm4474_vm5, %v6723_v60  ;;  %v6684_v49 = vld [vmem:[#allocation3 + $0x38] sm:$0xff]  ;;  %v18881_v57 = vpop.f32.mrb[8].mxu1  ;;  %v19203_v5 = vpop.f32.mrb[206].mxu0 }
 0x474   : > { %v6726_v30 = vadd.f32 %v19200_v2, %v6684_v49  ;;  %v6683_v54 = vld [vmem:[#allocation3 + $0x30] sm:$0xff]  ;;  %4486 = vst.msk [vmem:[#allocation3 + $0x58] sm:$0xff] %vm4474_vm5, %v18881_v57  ;;  %v4231_v11 = vpop.f32.mrb[9].mxu1  ;;  %v6424_v27 = vpop.f32.mrb[207].mxu0  ;;  %19368 = vmatmul.mubr.msk.f32.gmra.mrb[74].mxu1 %vm2264_vm4, %v7337_v9  ;;  %19690 = vmatmul.mubr.msk.f32.gmra.mrb[14].mxu0 %vm2264_vm4, %v23689_v8 }
 0x475   : > { %v6725_v4 = vadd.f32 %v6683_v54, %v6414_v16  ;;  %4485 = vst.msk [vmem:[#allocation3 + $0x50] sm:$0xff] %vm4474_vm5, %v4231_v11  ;;  %19370 = vmatprep.mubr.msk.f32.mxu1 %vm2264_vm4, %v7338_v7  ;;  %19692 = vmatprep.mubr.msk.f32.mxu0 %vm2264_vm4, %v23694_v56  ;;  %v7340_v56 = vld [vmem:[#allocation2 + $0x13f] sm:$0xff]  ;;  %v10546_v7 = vsel %vm2526_vm3, %v23812_v41, 0 }
 0x476   : > { %6768 = vst.msk [vmem:[#allocation3 + $0x38] sm:$0xff] %vm4474_vm5, %v6726_v30  ;;  %v7722_v11 = vld [vmem:[#allocation2 + $0x38] sm:$0xff] }
 0x477   : > { %6767 = vst.msk [vmem:[#allocation3 + $0x30] sm:$0xff] %vm4474_vm5, %v6725_v4  ;;  %v6686_v37 = vld [vmem:[#allocation3 + $0x48] sm:$0xff]  ;;  %v18884_v36 = vpop.f32.mrb[10].mxu1  ;;  %v19206_v46 = vpop.f32.mrb[208].mxu0 }
 0x478   : > { %v6728_v10 = vadd.f32 %v19203_v5, %v6686_v37  ;;  %v6685_v33 = vld [vmem:[#allocation3 + $0x40] sm:$0xff]  ;;  %4488 = vst.msk [vmem:[#allocation3 + $0x68] sm:$0xff] %vm4474_vm5, %v18884_v36  ;;  %v4241_v8 = vpop.f32.mrb[11].mxu1  ;;  %v6434_v15 = vpop.f32.mrb[209].mxu0  ;;  %19371 = vmatmul.mubr.msk.f32.gmra.mrb[76].mxu1 %vm2264_vm4, %v7339_v21  ;;  %19693 = vmatmul.mubr.msk.f32.gmra.mrb[16].mxu0 %vm2264_vm4, %v23699_v6  ;;  %v7723_v21 = vld [vmem:[#allocation2 + $0x40] sm:$0xff] }
 0x479   : > { %v6727_v26 = vadd.f32 %v6685_v33, %v6424_v27  ;;  %4487 = vst.msk [vmem:[#allocation3 + $0x60] sm:$0xff] %vm4474_vm5, %v4241_v8  ;;  %19373 = vmatprep.mubr.msk.f32.mxu1 %vm2264_vm4, %v7340_v56  ;;  %19695 = vmatprep.mubr.msk.f32.mxu0 %vm2264_vm4, %v23704_v52  ;;  %v7342_v52 = vld [vmem:[#allocation2 + $0x14f] sm:$0xff] }
 0x47a   : > { %6770 = vst.msk [vmem:[#allocation3 + $0x48] sm:$0xff] %vm4474_vm5, %v6728_v10  ;;  %v23924_v5 = vld [vmem:[#allocation2 + $0x2e] sm:$0xff]  ;;  %v23932_v27 = vld [vmem:[#allocation2 + $0x36] sm:$0xff]  ;;  %v23940_v10 = vld [vmem:[#allocation2 + $0x3e] sm:$0xff] }
 0x47b   : > { %6769 = vst.msk [vmem:[#allocation3 + $0x40] sm:$0xff] %vm4474_vm5, %v6727_v26  ;;  %v6688_v47 = vld [vmem:[#allocation3 + $0x58] sm:$0xff]  ;;  %v18887_v12 = vpop.f32.mrb[12].mxu1  ;;  %v19209_v22 = vpop.f32.mrb[210].mxu0  ;;  %v7724_v56 = vld [vmem:[#allocation2 + $0x48] sm:$0xff] }
 0x47c   : > { %v6730_v39 = vadd.f32 %v19206_v46, %v6688_v47  ;;  %v6687_v40 = vld [vmem:[#allocation3 + $0x50] sm:$0xff]  ;;  %4490 = vst.msk [vmem:[#allocation3 + $0x78] sm:$0xff] %vm4474_vm5, %v18887_v12  ;;  %v4251_v6 = vpop.f32.mrb[13].mxu1  ;;  %v6444_v62 = vpop.f32.mrb[211].mxu0  ;;  %19374 = vmatmul.mubr.msk.f32.gmra.mrb[78].mxu1 %vm2264_vm4, %v7341_v20  ;;  %19696 = vmatmul.mubr.msk.f32.gmra.mrb[18].mxu0 %vm2264_vm4, %v23709_v58  ;;  %v23948_v26 = vld [vmem:[#allocation2 + $0x46] sm:$0xff] }
 0x47d   : > { %v6729_v24 = vadd.f32 %v6687_v40, %v6434_v15  ;;  %4489 = vst.msk [vmem:[#allocation3 + $0x70] sm:$0xff] %vm4474_vm5, %v4251_v6  ;;  %19376 = vmatprep.mubr.msk.f32.mxu1 %vm2264_vm4, %v7342_v52  ;;  %19698 = vmatprep.mubr.msk.f32.mxu0 %vm2264_vm4, %v23714_v59  ;;  %v7344_v59 = vld [vmem:[#allocation2 + $0x15f] sm:$0xff]  ;;  %v23954_v40 = vld [vmem:[#allocation2 + $0x4e] sm:$0xff] }
 0x47e   : > { %6772 = vst.msk [vmem:[#allocation3 + $0x58] sm:$0xff] %vm4474_vm5, %v6730_v39  ;;  %v7725_v39 = vld [vmem:[#allocation2 + $0x50] sm:$0xff] }
 0x47f   : > { %6771 = vst.msk [vmem:[#allocation3 + $0x50] sm:$0xff] %vm4474_vm5, %v6729_v24  ;;  %v6690_v0 = vld [vmem:[#allocation3 + $0x68] sm:$0xff]  ;;  %v18890_v35 = vpop.f32.mrb[14].mxu1  ;;  %v19212_v29 = vpop.f32.mrb[212].mxu0 }
 0x480   : > { %v6732_v32 = vadd.f32 %v19209_v22, %v6690_v0  ;;  %v6689_v14 = vld [vmem:[#allocation3 + $0x60] sm:$0xff]  ;;  %4492 = vst.msk [vmem:[#allocation3 + $0x88] sm:$0xff] %vm4474_vm5, %v18890_v35  ;;  %v4261_v58 = vpop.f32.mrb[15].mxu1  ;;  %v6454_v13 = vpop.f32.mrb[213].mxu0  ;;  %19377 = vmatmul.mubr.msk.f32.gmra.mrb[80].mxu1 %vm2264_vm4, %v7343_v48  ;;  %19699 = vmatmul.mubr.msk.f32.gmra.mrb[20].mxu0 %vm2264_vm4, %v23719_v28  ;;  %v7726_v0 = vld [vmem:[#allocation2 + $0x58] sm:$0xff] }
 0x481   : > { %v6731_v3 = vadd.f32 %v6689_v14, %v6444_v62  ;;  %4491 = vst.msk [vmem:[#allocation3 + $0x80] sm:$0xff] %vm4474_vm5, %v4261_v58  ;;  %19379 = vmatprep.mubr.msk.f32.mxu1 %vm2264_vm4, %v7344_v59  ;;  %19701 = vmatprep.mubr.msk.f32.mxu0 %vm2264_vm4, %v23724_v18  ;;  %v7719_v18 = vld [vmem:[#allocation2 + $0x20] sm:$0xff]  ;;  %v23962_v35 = vld [vmem:[#allocation2 + $0x56] sm:$0xff] }
 0x482   : > { %6774 = vst.msk [vmem:[#allocation3 + $0x68] sm:$0xff] %vm4474_vm5, %v6732_v32  ;;  %v7727_v58 = vld [vmem:[#allocation2 + $0x60] sm:$0xff] }
 0x483   : > { %6773 = vst.msk [vmem:[#allocation3 + $0x60] sm:$0xff] %vm4474_vm5, %v6731_v3  ;;  %v6692_v19 = vld [vmem:[#allocation3 + $0x78] sm:$0xff]  ;;  %v18893_v25 = vpop.f32.mrb[16].mxu1  ;;  %v19215_v31 = vpop.f32.mrb[214].mxu0 }
 0x484   : > { %v6734_v45 = vadd.f32 %v19212_v29, %v6692_v19  ;;  %v6691_v28 = vld [vmem:[#allocation3 + $0x70] sm:$0xff]  ;;  %4494 = vst.msk [vmem:[#allocation3 + $0x98] sm:$0xff] %vm4474_vm5, %v18893_v25  ;;  %v4271_v34 = vpop.f32.mrb[17].mxu1  ;;  %v6464_v43 = vpop.f32.mrb[215].mxu0  ;;  %19380 = vmatmul.mubr.msk.f32.gmra.mrb[82].mxu1 %vm2264_vm4, %v7345_v1  ;;  %19702 = vmatmul.mubr.msk.f32.gmra.mrb[22].mxu0 %vm2264_vm4, %v9628_v53  ;;  %v23976_v1 = vld [vmem:[#allocation2 + $0x66] sm:$0xff] }
 0x485   : > { %v6733_v38 = vadd.f32 %v6691_v28, %v6454_v13  ;;  %4493 = vst.msk [vmem:[#allocation3 + $0x90] sm:$0xff] %vm4474_vm5, %v4271_v34  ;;  %19384 = vmatprep.mubr.msk.f32.mxu1 %vm2264_vm4, %v7719_v18  ;;  %19704 = vmatprep.mubr.msk.f32.mxu0 %vm2264_vm4, %v9629_v63  ;;  %v23968_v13 = vld [vmem:[#allocation2 + $0x5e] sm:$0xff]  ;;  %v23982_v18 = vld [vmem:[#allocation2 + $0x6e] sm:$0xff] }
 0x486   : > { %6776 = vst.msk [vmem:[#allocation3 + $0x78] sm:$0xff] %vm4474_vm5, %v6734_v45 }
 0x487   : > { %6775 = vst.msk [vmem:[#allocation3 + $0x70] sm:$0xff] %vm4474_vm5, %v6733_v38  ;;  %v6694_v2 = vld [vmem:[#allocation3 + $0x88] sm:$0xff]  ;;  %v18896_v17 = vpop.f32.mrb[18].mxu1  ;;  %v19218_v51 = vpop.f32.mrb[216].mxu0 }
 0x488   : > { %v6736_v16 = vadd.f32 %v19215_v31, %v6694_v2  ;;  %v6693_v23 = vld [vmem:[#allocation3 + $0x80] sm:$0xff]  ;;  %4496 = vst.msk [vmem:[#allocation3 + $0xa8] sm:$0xff] %vm4474_vm5, %v18896_v17  ;;  %v4281_v60 = vpop.f32.mrb[19].mxu1  ;;  %v6474_v49 = vpop.f32.mrb[217].mxu0  ;;  %19385 = vmatmul.mubr.msk.f32.vlgmr.msra.gmra.mrb[42].mxu1 %vm2264_vm4, %v7720_v55  ;;  %19705 = vmatmul.mubr.msk.f32.gmra.mrb[24].mxu0 %vm2264_vm4, %v9630_v50  ;;  %v7730_v2 = vld [vmem:[#allocation2 + $0x78] sm:$0xff] }
 0x489   : > { %v6735_v57 = vadd.f32 %v6693_v23, %v6464_v43  ;;  %4495 = vst.msk [vmem:[#allocation3 + $0xa0] sm:$0xff] %vm4474_vm5, %v4281_v60  ;;  %19448 = vmatpush3.bf16.msra.mxu1 %v8261_v44  ;;  %19387 = vmatprep.mubr.msk.f32.mxu1 %vm2264_vm4, %v7721_v61  ;;  %v7728_v31 = vld [vmem:[#allocation2 + $0x68] sm:$0xff]  ;;  %v7729_v43 = vld [vmem:[#allocation2 + $0x70] sm:$0xff]  ;;  %v7731_v60 = vld [vmem:[#allocation2 + $0x80] sm:$0xff] }
 0x48a   : > { %6778 = vst.msk [vmem:[#allocation3 + $0x88] sm:$0xff] %vm4474_vm5, %v6736_v16  ;;  %19709 = vmatprep.mubr.msk.f32.mxu0 %vm2264_vm4, %v23924_v5  ;;  %21265 = vmatprep.subr.msk.bf16.mxu1 %vm2526_vm3, %v23917_v42  ;;  %v23990_v17 = vld [vmem:[#allocation2 + $0x76] sm:$0xff] }
 0x48b   : > { %6777 = vst.msk [vmem:[#allocation3 + $0x80] sm:$0xff] %vm4474_vm5, %v6735_v57  ;;  %v6696_v9 = vld [vmem:[#allocation3 + $0x98] sm:$0xff]  ;;  %v18899_v30 = vpop.f32.mrb[20].mxu1  ;;  %v19221_v54 = vpop.f32.mrb[218].mxu0 }
 0x48c   : > { %v6738_v4 = vadd.f32 %v19218_v51, %v6696_v9  ;;  %v6695_v37 = vld [vmem:[#allocation3 + $0x90] sm:$0xff]  ;;  %4498 = vst.msk [vmem:[#allocation3 + $0xb8] sm:$0xff] %vm4474_vm5, %v18899_v30  ;;  %v4291_v36 = vpop.f32.mrb[21].mxu1  ;;  %v6484_v46 = vpop.f32.mrb[219].mxu0  ;;  %19388 = vmatmul.mubr.msk.f32.gmra.mrb[44].mxu1 %vm2264_vm4, %v7722_v11  ;;  %19710 = vmatmul.mubr.msk.f32.vlgmr.msra.gmra.mrb[240].mxu0 %vm2264_vm4, %v23932_v27  ;;  %v24004_v11 = vld [vmem:[#allocation2 + $0x86] sm:$0xff] }
 0x48d   : > { %v6737_v33 = vadd.f32 %v6695_v37, %v6474_v49  ;;  %4497 = vst.msk [vmem:[#allocation3 + $0xb0] sm:$0xff] %vm4474_vm5, %v4291_v36  ;;  %19390 = vmatprep.mubr.msk.f32.mxu1 %vm2264_vm4, %v7723_v21  ;;  %19712 = vmatprep.mubr.msk.f32.mxu0 %vm2264_vm4, %v23940_v10  ;;  %v23996_v49 = vld [vmem:[#allocation2 + $0x7e] sm:$0xff]  ;;  %v24010_v21 = vld [vmem:[#allocation2 + $0x8e] sm:$0xff] }
 0x48e   : > { %6780 = vst.msk [vmem:[#allocation3 + $0x98] sm:$0xff] %vm4474_vm5, %v6738_v4  ;;  %19773 = vmatpush3.bf16.msra.mxu0 %v10546_v7 }
 0x48f   : > { %6779 = vst.msk [vmem:[#allocation3 + $0x90] sm:$0xff] %vm4474_vm5, %v6737_v33  ;;  %v6698_v41 = vld [vmem:[#allocation3 + $0xa8] sm:$0xff]  ;;  %v18902_v8 = vpop.f32.mrb[22].mxu1  ;;  %v19224_v15 = vpop.f32.mrb[220].mxu0 }
 0x490   : > { %v6740_v47 = vadd.f32 %v19221_v54, %v6698_v41  ;;  %v6697_v12 = vld [vmem:[#allocation3 + $0xa0] sm:$0xff]  ;;  %4500 = vst.msk [vmem:[#allocation3 + $0xc8] sm:$0xff] %vm4474_vm5, %v18902_v8  ;;  %v4301_v22 = vpop.f32.mrb[23].mxu1  ;;  %v6494_v20 = vpop.f32.mrb[221].mxu0  ;;  %19391 = vmatmul.mubr.msk.f32.gmra.mrb[46].mxu1 %vm2264_vm4, %v7724_v56  ;;  %19713 = vmatmul.mubr.msk.f32.gmra.mrb[242].mxu0 %vm2264_vm4, %v23948_v26  ;;  %v7734_v56 = vld [vmem:[#allocation2 + $0x98] sm:$0xff] }
 0x491   : > { %v6739_v6 = vadd.f32 %v6697_v12, %v6484_v46  ;;  %4499 = vst.msk [vmem:[#allocation3 + $0xc0] sm:$0xff] %vm4474_vm5, %v4301_v22  ;;  %19393 = vmatprep.mubr.msk.f32.mxu1 %vm2264_vm4, %v7725_v39  ;;  %19715 = vmatprep.mubr.msk.f32.mxu0 %vm2264_vm4, %v23954_v40  ;;  %v7732_v54 = vld [vmem:[#allocation2 + $0x88] sm:$0xff]  ;;  %v7733_v46 = vld [vmem:[#allocation2 + $0x90] sm:$0xff] }
 0x492   : > { %6782 = vst.msk [vmem:[#allocation3 + $0xa8] sm:$0xff] %vm4474_vm5, %v6740_v47  ;;  %v24018_v47 = vld [vmem:[#allocation2 + $0x96] sm:$0xff] }
 0x493   : > { %6781 = vst.msk [vmem:[#allocation3 + $0xa0] sm:$0xff] %vm4474_vm5, %v6739_v6  ;;  %v6700_v62 = vld [vmem:[#allocation3 + $0xb8] sm:$0xff]  ;;  %v18905_v52 = vpop.f32.mrb[24].mxu1  ;;  %v19227_v24 = vpop.f32.mrb[222].mxu0 }
 0x494   : > { %v6742_v29 = vadd.f32 %v19224_v15, %v6700_v62  ;;  %v6699_v48 = vld [vmem:[#allocation3 + $0xb0] sm:$0xff]  ;;  %4502 = vst.msk [vmem:[#allocation3 + $0xd8] sm:$0xff] %vm4474_vm5, %v18905_v52  ;;  %v4311_v32 = vpop.f32.mrb[25].mxu1  ;;  %v6504_v14 = vpop.f32.mrb[223].mxu0  ;;  %19394 = vmatmul.mubr.msk.f32.gmra.mrb[48].mxu1 %vm2264_vm4, %v7726_v0  ;;  %19716 = vmatmul.mubr.msk.f32.gmra.mrb[244].mxu0 %vm2264_vm4, %v23962_v35  ;;  %v7735_v6 = vld [vmem:[#allocation2 + $0xa0] sm:$0xff] }
 0x495   : > { %v6741_v59 = vadd.f32 %v6699_v48, %v6494_v20  ;;  %4501 = vst.msk [vmem:[#allocation3 + $0xd0] sm:$0xff] %vm4474_vm5, %v4311_v32  ;;  %19396 = vmatprep.mubr.msk.f32.mxu1 %vm2264_vm4, %v7727_v58  ;;  %19718 = vmatprep.mubr.msk.f32.mxu0 %vm2264_vm4, %v23968_v13  ;;  %v24024_v62 = vld [vmem:[#allocation2 + $0x9e] sm:$0xff]  ;;  %v7736_v48 = vld [vmem:[#allocation2 + $0xa8] sm:$0xff] }
 0x496   : > { %6784 = vst.msk [vmem:[#allocation3 + $0xb8] sm:$0xff] %vm4474_vm5, %v6742_v29  ;;  %v24032_v32 = vld [vmem:[#allocation2 + $0xa6] sm:$0xff] }
 0x497   : > { %6783 = vst.msk [vmem:[#allocation3 + $0xb0] sm:$0xff] %vm4474_vm5, %v6741_v59  ;;  %v6702_v3 = vld [vmem:[#allocation3 + $0xc8] sm:$0xff]  ;;  %v18908_v19 = vpop.f32.mrb[26].mxu1  ;;  %v19230_v25 = vpop.f32.mrb[224].mxu0 }
 0x498   : > { %v6744_v53 = vadd.f32 %v19227_v24, %v6702_v3  ;;  %v6701_v45 = vld [vmem:[#allocation3 + $0xc0] sm:$0xff]  ;;  %4504 = vst.msk [vmem:[#allocation3 + $0xe8] sm:$0xff] %vm4474_vm5, %v18908_v19  ;;  %v4321_v28 = vpop.f32.mrb[27].mxu1  ;;  %v6514_v34 = vpop.f32.mrb[225].mxu0  ;;  %19397 = vmatmul.mubr.msk.f32.gmra.mrb[50].mxu1 %vm2264_vm4, %v7728_v31  ;;  %19719 = vmatmul.mubr.msk.f32.gmra.mrb[246].mxu0 %vm2264_vm4, %v23976_v1  ;;  %v7737_v19 = vld [vmem:[#allocation2 + $0xb0] sm:$0xff] }
 0x499   : > { %v6743_v63 = vadd.f32 %v6701_v45, %v6504_v14  ;;  %4503 = vst.msk [vmem:[#allocation3 + $0xe0] sm:$0xff] %vm4474_vm5, %v4321_v28  ;;  %19399 = vmatprep.mubr.msk.f32.mxu1 %vm2264_vm4, %v7729_v43  ;;  %19721 = vmatprep.mubr.msk.f32.mxu0 %vm2264_vm4, %v23982_v18  ;;  %v24046_v43 = vld [vmem:[#allocation2 + $0xb6] sm:$0xff] }
 0x49a   : > { %6786 = vst.msk [vmem:[#allocation3 + $0xc8] sm:$0xff] %vm4474_vm5, %v6744_v53 }
 0x49b   : > { %6785 = vst.msk [vmem:[#allocation3 + $0xc0] sm:$0xff] %vm4474_vm5, %v6743_v63  ;;  %v6704_v38 = vld [vmem:[#allocation3 + $0xd8] sm:$0xff]  ;;  %v18911_v44 = vpop.f32.mrb[28].mxu1  ;;  %v19233_v50 = vpop.f32.mrb[226].mxu0 }
 0x49c   : > { %v6746_v51 = vadd.f32 %v19230_v25, %v6704_v38  ;;  %v6703_v55 = vld [vmem:[#allocation3 + $0xd0] sm:$0xff]  ;;  %4506 = vst.msk [vmem:[#allocation3 + $0xf8] sm:$0xff] %vm4474_vm5, %v18911_v44  ;;  %v4331_v16 = vpop.f32.mrb[29].mxu1  ;;  %v6524_v23 = vpop.f32.mrb[227].mxu0  ;;  %19400 = vmatmul.mubr.msk.f32.gmra.mrb[52].mxu1 %vm2264_vm4, %v7730_v2  ;;  %19722 = vmatmul.mubr.msk.f32.gmra.mrb[248].mxu0 %vm2264_vm4, %v23990_v17  ;;  %v24038_v25 = vld [vmem:[#allocation2 + $0xae] sm:$0xff]  ;;  %v7739_v2 = vld [vmem:[#allocation2 + $0xc0] sm:$0xff] }
 0x49d   : > { %v6745_v61 = vadd.f32 %v6703_v55, %v6514_v34  ;;  %4505 = vst.msk [vmem:[#allocation3 + $0xf0] sm:$0xff] %vm4474_vm5, %v4331_v16  ;;  %19402 = vmatprep.mubr.msk.f32.mxu1 %vm2264_vm4, %v7731_v60  ;;  %19724 = vmatprep.mubr.msk.f32.mxu0 %vm2264_vm4, %v23996_v49  ;;  %v7738_v34 = vld [vmem:[#allocation2 + $0xb8] sm:$0xff]  ;;  %v7740_v16 = vld [vmem:[#allocation2 + $0xc8] sm:$0xff] }
 0x49e   : > { %6788 = vst.msk [vmem:[#allocation3 + $0xd8] sm:$0xff] %vm4474_vm5, %v6746_v51  ;;  %v24052_v51 = vld [vmem:[#allocation2 + $0xbe] sm:$0xff] }
 0x49f   : > { %6787 = vst.msk [vmem:[#allocation3 + $0xd0] sm:$0xff] %vm4474_vm5, %v6745_v61  ;;  %v6706_v57 = vld [vmem:[#allocation3 + $0xe8] sm:$0xff]  ;;  %v18914_v9 = vpop.f32.mrb[30].mxu1  ;;  %v19236_v30 = vpop.f32.mrb[228].mxu0 }
 0x4a0   : > { %v6748_v7 = vadd.f32 %v19233_v50, %v6706_v57  ;;  %v6705_v4 = vld [vmem:[#allocation3 + $0xe0] sm:$0xff]  ;;  %4508 = vst.msk [vmem:[#allocation3 + $0x108] sm:$0xff] %vm4474_vm5, %v18914_v9  ;;  %v4341_v37 = vpop.f32.mrb[31].mxu1  ;;  %v6534_v36 = vpop.f32.mrb[229].mxu0  ;;  %19403 = vmatmul.mubr.msk.f32.gmra.mrb[54].mxu1 %vm2264_vm4, %v7732_v54  ;;  %19725 = vmatmul.mubr.msk.f32.gmra.mrb[250].mxu0 %vm2264_vm4, %v24004_v11  ;;  %v7741_v9 = vld [vmem:[#allocation2 + $0xd0] sm:$0xff] }
 0x4a1   : > { %v6747_v33 = vadd.f32 %v6705_v4, %v6524_v23  ;;  %4507 = vst.msk [vmem:[#allocation3 + $0x100] sm:$0xff] %vm4474_vm5, %v4341_v37  ;;  %19405 = vmatprep.mubr.msk.f32.mxu1 %vm2264_vm4, %v7733_v46  ;;  %19727 = vmatprep.mubr.msk.f32.mxu0 %vm2264_vm4, %v24010_v21  ;;  %v24060_v57 = vld [vmem:[#allocation2 + $0xc6] sm:$0xff]  ;;  %v24066_v37 = vld [vmem:[#allocation2 + $0xce] sm:$0xff] }
 0x4a2   : > { %6790 = vst.msk [vmem:[#allocation3 + $0xe8] sm:$0xff] %vm4474_vm5, %v6748_v7 }
 0x4a3   : > { %6789 = vst.msk [vmem:[#allocation3 + $0xe0] sm:$0xff] %vm4474_vm5, %v6747_v33  ;;  %v6708_v41 = vld [vmem:[#allocation3 + $0xf8] sm:$0xff]  ;;  %v18917_v8 = vpop.f32.mrb[32].mxu1  ;;  %v19239_v15 = vpop.f32.mrb[230].mxu0 }
 0x4a4   : > { %v6750_v12 = vadd.f32 %v19236_v30, %v6708_v41  ;;  %v6707_v22 = vld [vmem:[#allocation3 + $0xf0] sm:$0xff]  ;;  %4510 = vst.msk [vmem:[#allocation3 + $0x118] sm:$0xff] %vm4474_vm5, %v18917_v8  ;;  %v4351_v20 = vpop.f32.mrb[33].mxu1  ;;  %v6544_v39 = vpop.f32.mrb[231].mxu0  ;;  %19406 = vmatmul.mubr.msk.f32.gmra.mrb[56].mxu1 %vm2264_vm4, %v7734_v56  ;;  %19728 = vmatmul.mubr.msk.f32.gmra.mrb[252].mxu0 %vm2264_vm4, %v24018_v47 }
 0x4a5   : > { %v6749_v52 = vadd.f32 %v6707_v22, %v6534_v36  ;;  %4509 = vst.msk [vmem:[#allocation3 + $0x110] sm:$0xff] %vm4474_vm5, %v4351_v20  ;;  %19408 = vmatprep.mubr.msk.f32.mxu1 %vm2264_vm4, %v7735_v6  ;;  %19730 = vmatprep.mubr.msk.f32.mxu0 %vm2264_vm4, %v24024_v62  ;;  %v24071_v36 = vld [vmem:[%s25306_s1 + $0x6c] sm:$0x7]  ;;  %v7742_v8 = vld [vmem:[#allocation2 + $0xd8] sm:$0xff]  ;;  %v7743_v20 = vld [vmem:[#allocation2 + $0xe0] sm:$0xff] }
 0x4a6   : > { %6792 = vst.msk [vmem:[#allocation3 + $0xf8] sm:$0xff] %vm4474_vm5, %v6750_v12  ;;  %21270 = vmatprep.subr.msk.bf16.mxu0 %vm2526_vm3, %v24071_v36 }
 0x4a7   : > { %6791 = vst.msk [vmem:[#allocation3 + $0xf0] sm:$0xff] %vm4474_vm5, %v6749_v52  ;;  %v6710_v24 = vld [vmem:[#allocation3 + $0x108] sm:$0xff]  ;;  %v18920_v0 = vpop.f32.mrb[34].mxu1  ;;  %v19242_v29 = vpop.f32.mrb[232].mxu0 }
 0x4a8   : > { %v6752_v14 = vadd.f32 %v19239_v15, %v6710_v24  ;;  %v6709_v58 = vld [vmem:[#allocation3 + $0x100] sm:$0xff]  ;;  %4512 = vst.msk [vmem:[#allocation3 + $0x128] sm:$0xff] %vm4474_vm5, %v18920_v0  ;;  %v4361_v59 = vpop.f32.mrb[35].mxu1  ;;  %v6554_v3 = vpop.f32.mrb[233].mxu0  ;;  %19409 = vmatmul.mubr.msk.f32.gmra.mrb[58].mxu1 %vm2264_vm4, %v7736_v48  ;;  %19731 = vmatmul.mubr.msk.f32.gmra.mrb[254].mxu0 %vm2264_vm4, %v24032_v32  ;;  %v24081_v15 = vld [vmem:[#allocation2 + $0xd6] sm:$0xff] }
 0x4a9   : > { %v6751_v31 = vadd.f32 %v6709_v58, %v6544_v39  ;;  %4511 = vst.msk [vmem:[#allocation3 + $0x120] sm:$0xff] %vm4474_vm5, %v4361_v59  ;;  %19411 = vmatprep.mubr.msk.f32.mxu1 %vm2264_vm4, %v7737_v19  ;;  %19733 = vmatprep.mubr.msk.f32.mxu0 %vm2264_vm4, %v24038_v25  ;;  %v24086_v39 = vld [vmem:[#allocation2 + $0xde] sm:$0xff]  ;;  %v7744_v24 = vld [vmem:[#allocation2 + $0xe8] sm:$0xff]  ;;  %v24105_v19 = vld [vmem:[#allocation2 + $0xf6] sm:$0xff] }
 0x4aa   : > { %6794 = vst.msk [vmem:[#allocation3 + $0x108] sm:$0xff] %vm4474_vm5, %v6752_v14  ;;  %v24093_v0 = vld [vmem:[#allocation2 + $0xe6] sm:$0xff]  ;;  %v7745_v14 = vld [vmem:[#allocation2 + $0xf0] sm:$0xff] }
 0x4ab   : > { %6793 = vst.msk [vmem:[#allocation3 + $0x100] sm:$0xff] %vm4474_vm5, %v6751_v31  ;;  %v6712_v53 = vld [vmem:[#allocation3 + $0x118] sm:$0xff]  ;;  %v18923_v45 = vpop.f32.mrb[36].mxu1  ;;  %v19245_v28 = vpop.f32.mrb[234].mxu0  ;;  %v24098_v58 = vld [vmem:[#allocation2 + $0xee] sm:$0xff] }
 0x4ac   : > { %v6754_v63 = vadd.f32 %v19242_v29, %v6712_v53  ;;  %v6711_v38 = vld [vmem:[#allocation3 + $0x110] sm:$0xff]  ;;  %4514 = vst.msk [vmem:[#allocation3 + $0x138] sm:$0xff] %vm4474_vm5, %v18923_v45  ;;  %v4371_v44 = vpop.f32.mrb[37].mxu1  ;;  %v6564_v50 = vpop.f32.mrb[235].mxu0  ;;  %19412 = vmatmul.mubr.msk.f32.gmra.mrb[60].mxu1 %vm2264_vm4, %v7738_v34  ;;  %19734 = vmatmul.mubr.msk.f32.gmra.mrb[0].mxu0 %vm2264_vm4, %v24046_v43  ;;  %v7747_v31 = vld [vmem:[#allocation2 + $0x100] sm:$0xff]  ;;  %v7748_v45 = vld [vmem:[#allocation2 + $0x108] sm:$0xff] }
 0x4ad   : > { %v6753_v55 = vadd.f32 %v6711_v38, %v6554_v3  ;;  %4513 = vst.msk [vmem:[#allocation3 + $0x130] sm:$0xff] %vm4474_vm5, %v4371_v44  ;;  %19414 = vmatprep.mubr.msk.f32.mxu1 %vm2264_vm4, %v7739_v2  ;;  %19736 = vmatprep.mubr.msk.f32.mxu0 %vm2264_vm4, %v24052_v51  ;;  %v7746_v3 = vld [vmem:[#allocation2 + $0xf8] sm:$0xff]  ;;  %v7749_v34 = vld [vmem:[#allocation2 + $0x110] sm:$0xff] }
 0x4ae   : > { %6796 = vst.msk [vmem:[#allocation3 + $0x118] sm:$0xff] %vm4474_vm5, %v6754_v63  ;;  %v24110_v53 = vld [vmem:[#allocation2 + $0xfe] sm:$0xff]  ;;  %v24120_v63 = vld [vmem:[#allocation2 + $0x10e] sm:$0xff]  ;;  %v24125_v44 = vld [vmem:[#allocation2 + $0x116] sm:$0xff] }
 0x4af   : > { %6795 = vst.msk [vmem:[#allocation3 + $0x110] sm:$0xff] %vm4474_vm5, %v6753_v55  ;;  %v6714_v23 = vld [vmem:[#allocation3 + $0x128] sm:$0xff]  ;;  %v18926_v60 = vpop.f32.mrb[38].mxu1  ;;  %v19248_v61 = vpop.f32.mrb[236].mxu0  ;;  %25726 = vst [vmem:[#allocation81_spill] sm:$0xff] %v24120_v63  ;;  %v7750_v38 = vld [vmem:[#allocation2 + $0x118] sm:$0xff] }
 0x4b0   : > { %v6756_v30 = vadd.f32 %v19245_v28, %v6714_v23  ;;  %v6713_v54 = vld [vmem:[#allocation3 + $0x120] sm:$0xff]  ;;  %4517 = vst.msk [vmem:[#allocation3 + $0x148] sm:$0xf] %vm4516_vm6, %v18926_v60  ;;  %v4381_v7 = vpop.f32.mrb[39].mxu1  ;;  %v6574_v4 = vpop.f32.mrb[237].mxu0  ;;  %19415 = vmatmul.mubr.msk.f32.gmra.mrb[62].mxu1 %vm2264_vm4, %v7740_v16  ;;  %19737 = vmatmul.mubr.msk.f32.gmra.mrb[2].mxu0 %vm2264_vm4, %v24060_v57  ;;  %25727 = vst [vmem:[#allocation20_spill] sm:$0xff] %v24125_v44 }
 0x4b1   : > { %v6755_v46 = vadd.f32 %v6713_v54, %v6564_v50  ;;  %4515 = vst.msk [vmem:[#allocation3 + $0x140] sm:$0xff] %vm4474_vm5, %v4381_v7  ;;  %19417 = vmatprep.mubr.msk.f32.mxu1 %vm2264_vm4, %v7741_v9  ;;  %19739 = vmatprep.mubr.msk.f32.mxu0 %vm2264_vm4, %v24066_v37  ;;  %v24115_v28 = vld [vmem:[#allocation2 + $0x106] sm:$0xff]  ;;  %v24130_v2 = vld [vmem:[#allocation2 + $0x11e] sm:$0xff]  ;;  %v7753_v23 = vld [vmem:[#allocation2 + $0x130] sm:$0xff] }
 0x4b2   : > { %6798 = vst.msk [vmem:[#allocation3 + $0x128] sm:$0xff] %vm4474_vm5, %v6756_v30  ;;  %25725 = vst [vmem:[#allocation86_spill] sm:$0xff] %v24115_v28  ;;  %v7751_v50 = vld [vmem:[#allocation2 + $0x120] sm:$0xff]  ;;  %v7752_v55 = vld [vmem:[#allocation2 + $0x128] sm:$0xff] }
 0x4b3   : > { %6797 = vst.msk [vmem:[#allocation3 + $0x120] sm:$0xff] %vm4474_vm5, %v6755_v46  ;;  %v6716_v33 = vld [vmem:[#allocation3 + $0x138] sm:$0xff]  ;;  %v19251_v41 = vpop.f32.mrb[238].mxu0  ;;  %25728 = vst [vmem:[#allocation57_spill] sm:$0xff] %v24130_v2  ;;  %v24140_v60 = vld [vmem:[#allocation2 + $0x12e] sm:$0xff] }
 0x4b4   : > { %v6758_v56 = vadd.f32 %v19248_v61, %v6716_v33  ;;  %v6715_v12 = vld [vmem:[#allocation3 + $0x130] sm:$0xff]  ;;  %v6584_v22 = vpop.f32.mrb[239].mxu0  ;;  %19418 = vmatmul.mubr.msk.f32.gmra.mrb[64].mxu1 %vm2264_vm4, %v7742_v8  ;;  %19740 = vmatmul.mubr.msk.f32.gmra.mrb[4].mxu0 %vm2264_vm4, %v24081_v15  ;;  %v24135_v16 = vld [vmem:[#allocation2 + $0x126] sm:$0xff]  ;;  %25730 = vst [vmem:[#allocation21_spill] sm:$0xff] %v24140_v60  ;;  %v7757_v46 = vld [vmem:[#allocation2 + $0x150] sm:$0xff] }
 0x4b5   : > { %v6757_v6 = vadd.f32 %v6715_v12, %v6574_v4  ;;  %19420 = vmatprep.mubr.msk.f32.mxu1 %vm2264_vm4, %v7743_v20  ;;  %19742 = vmatprep.mubr.msk.f32.mxu0 %vm2264_vm4, %v24086_v39  ;;  %25729 = vst [vmem:[#allocation83_spill] sm:$0xff] %v24135_v16  ;;  %v7754_v61 = vld [vmem:[#allocation2 + $0x138] sm:$0xff]  ;;  %v7755_v30 = vld [vmem:[#allocation2 + $0x140] sm:$0xff]  ;;  %v7756_v7 = vld [vmem:[#allocation2 + $0x148] sm:$0xff] }
 0x4b6   : > { %6800 = vst.msk [vmem:[#allocation3 + $0x138] sm:$0xff] %vm4474_vm5, %v6758_v56  ;;  %v24145_v9 = vld [vmem:[#allocation2 + $0x136] sm:$0xff]  ;;  %v24150_v54 = vld [vmem:[#allocation2 + $0x13e] sm:$0xff]  ;;  %v24155_v4 = vld [vmem:[#allocation2 + $0x146] sm:$0xff] }
 0x4b7   : > { %6799 = vst.msk [vmem:[#allocation3 + $0x130] sm:$0xff] %vm4474_vm5, %v6757_v6  ;;  %v6718_v52 = vld [vmem:[#allocation3 + $0x148] sm:$0xf]  ;;  %25731 = vst [vmem:[#allocation52_spill] sm:$0xff] %v24145_v9  ;;  %v24165_v8 = vld [vmem:[#allocation2 + $0x156] sm:$0xff] }
 0x4b8   : > { %v6760_v29 = vadd.f32 %v19251_v41, %v6718_v52  ;;  %v6717_v48 = vld [vmem:[#allocation3 + $0x140] sm:$0xff]  ;;  %19421 = vmatmul.mubr.msk.f32.gmra.mrb[66].mxu1 %vm2264_vm4, %v7744_v24  ;;  %19743 = vmatmul.mubr.msk.f32.gmra.mrb[6].mxu0 %vm2264_vm4, %v24093_v0  ;;  %25732 = vst [vmem:[#allocation84_spill] sm:$0xff] %v24150_v54  ;;  %25733 = vst [vmem:[#allocation23_spill] sm:$0xff] %v24155_v4  ;;  %v7758_v41 = vld [vmem:[#allocation2 + $0x158] sm:$0xff]  ;;  %v8633_v24 = vsel %vm2526_vm3, %v23917_v42, 0 }
 0x4b9   : > { %v6759_v59 = vadd.f32 %v6717_v48, %v6584_v22  ;;  %19423 = vmatprep.mubr.msk.f32.mxu1 %vm2264_vm4, %v7745_v14  ;;  %19745 = vmatprep.mubr.msk.f32.mxu0 %vm2264_vm4, %v24098_v58  ;;  %v24160_v33 = vld [vmem:[#allocation2 + $0x14e] sm:$0xff]  ;;  %25735 = vst [vmem:[#allocation18_spill] sm:$0xff] %v24165_v8  ;;  %v7759_v56 = vld [vmem:[#allocation2 + $0x160] sm:$0xff]  ;;  %v7760_v22 = vld [vmem:[#allocation2 + $0x168] sm:$0xf] }
 0x4ba   : > { %6802 = vst.msk [vmem:[#allocation3 + $0x148] sm:$0xf] %vm4516_vm6, %v6760_v29  ;;  %25734 = vst [vmem:[#allocation59_spill] sm:$0xff] %v24160_v33  ;;  %v24170_v12 = vld [vmem:[#allocation2 + $0x15e] sm:$0xff]  ;;  %v10043_v20 = vld [vmem:[#allocation2 + $0x166] sm:$0xff] }
 0x4bb   : > { %6801 = vst.msk [vmem:[#allocation3 + $0x140] sm:$0xff] %vm4474_vm5, %v6759_v59  ;;  %25736 = vst [vmem:[#allocation54_spill] sm:$0xff] %v24170_v12  ;;  %v6803_v6 = vld [vmem:[#allocation2 + $0x1c] sm:$0xff]  ;;  %v10044_v52 = vld [vmem:[#allocation2 + $0x16e] sm:$0xff] }
 0x4bc   : > { %19424 = vmatmul.mubr.msk.f32.gmra.mrb[68].mxu1 %vm2264_vm4, %v7746_v3  ;;  %19746 = vmatmul.mubr.msk.f32.gmra.mrb[8].mxu0 %vm2264_vm4, %v24105_v19  ;;  %v6804_v29 = vld [vmem:[#allocation2 + $0x24] sm:$0xff]  ;;  %v10045_v48 = vld [vmem:[#allocation2 + $0x176] sm:$0xf]  ;;  %v24184_v14 = vld [vmem:[%s25306_s1 + $0x7c] sm:$0x7] }
 0x4bd   : > { %19426 = vmatprep.mubr.msk.f32.mxu1 %vm2264_vm4, %v7747_v31  ;;  %19748 = vmatprep.mubr.msk.f32.mxu0 %vm2264_vm4, %v24110_v53  ;;  %v24188_v59 = vld [vmem:[#allocation2 + $0x2c] sm:$0xff]  ;;  %v24195_v42 = vld [vmem:[#allocation2 + $0x34] sm:$0xff] }
 0x4be   : > { %v9088_v3 = vld [vmem:[#allocation2 + $0x2a] sm:$0xff]  ;;  %v9089_v31 = vld [vmem:[#allocation2 + $0x32] sm:$0xff] }
 0x4c0   : > { %19427 = vmatmul.mubr.msk.f32.gmra.mrb[70].mxu1 %vm2264_vm4, %v7748_v45  ;;  %19749 = vmatmul.mubr.msk.f32.gmra.mrb[10].mxu0 %vm2264_vm4, %v24115_v28  ;;  %v10918_v45 = vsel %vm2526_vm3, %v24071_v36, 0  ;;  %v24212_v36 = vld [vmem:[#allocation2 + $0x4c] sm:$0xff] }
 0x4c1   : > { %19429 = vmatprep.mubr.msk.f32.mxu1 %vm2264_vm4, %v7749_v34  ;;  %19751 = vmatprep.mubr.msk.f32.mxu0 %vm2264_vm4, %v24120_v63  ;;  %v24202_v34 = vld [vmem:[#allocation2 + $0x3c] sm:$0xff]  ;;  %v9129_v28 = vld [vmem:[#allocation2 + $0x172] sm:$0xf] }
 0x4c2   : > { %v9118_v63 = vld [vmem:[#allocation2 + $0x11a] sm:$0xff] }
 0x4c4   : > { %19430 = vmatmul.mubr.msk.f32.gmra.mrb[72].mxu1 %vm2264_vm4, %v7750_v38  ;;  %19752 = vmatmul.mubr.msk.f32.gmra.mrb[12].mxu0 %vm2264_vm4, %v24125_v44  ;;  %v9090_v38 = vld [vmem:[#allocation2 + $0x3a] sm:$0xff]  ;;  %v9117_v44 = vld [vmem:[#allocation2 + $0x112] sm:$0xff] }
 0x4c5   : > { %19432 = vmatprep.mubr.msk.f32.mxu1 %vm2264_vm4, %v7751_v50  ;;  %19754 = vmatprep.mubr.msk.f32.mxu0 %vm2264_vm4, %v24130_v2  ;;  %v24207_v50 = vld [vmem:[#allocation2 + $0x44] sm:$0xff] }
 0x4c6   : > { %v9116_v2 = vld [vmem:[#allocation2 + $0x10a] sm:$0xff] }
 0x4c8   : > { %19433 = vmatmul.mubr.msk.f32.gmra.mrb[74].mxu1 %vm2264_vm4, %v7752_v55  ;;  %19755 = vmatmul.mubr.msk.f32.gmra.mrb[14].mxu0 %vm2264_vm4, %v24135_v16  ;;  %v9091_v55 = vld [vmem:[#allocation2 + $0x42] sm:$0xff] }
 0x4c9   : > { %19435 = vmatprep.mubr.msk.f32.mxu1 %vm2264_vm4, %v7753_v23  ;;  %19757 = vmatprep.mubr.msk.f32.mxu0 %vm2264_vm4, %v24140_v60  ;;  %v9092_v23 = vld [vmem:[#allocation2 + $0x4a] sm:$0xff]  ;;  %v9114_v60 = vld [vmem:[#allocation2 + $0xfa] sm:$0xff]  ;;  %v9115_v16 = vld [vmem:[#allocation2 + $0x102] sm:$0xff] }
 0x4cc   : > { %19436 = vmatmul.mubr.msk.f32.gmra.mrb[76].mxu1 %vm2264_vm4, %v7754_v61  ;;  %19758 = vmatmul.mubr.msk.f32.gmra.mrb[16].mxu0 %vm2264_vm4, %v24145_v9  ;;  %v24217_v61 = vld [vmem:[#allocation2 + $0x54] sm:$0xff] }
 0x4cd   : > { %19438 = vmatprep.mubr.msk.f32.mxu1 %vm2264_vm4, %v7755_v30  ;;  %19760 = vmatprep.mubr.msk.f32.mxu0 %vm2264_vm4, %v24150_v54  ;;  %v9093_v30 = vld [vmem:[#allocation2 + $0x52] sm:$0xff]  ;;  %v9112_v54 = vld [vmem:[#allocation2 + $0xea] sm:$0xff] }
 0x4ce   : > { %v9113_v9 = vld [vmem:[#allocation2 + $0xf2] sm:$0xff] }
 0x4d0   : > { %19439 = vmatmul.mubr.msk.f32.gmra.mrb[78].mxu1 %vm2264_vm4, %v7756_v7  ;;  %19761 = vmatmul.mubr.msk.f32.gmra.mrb[18].mxu0 %vm2264_vm4, %v24155_v4  ;;  %v24222_v7 = vld [vmem:[#allocation2 + $0x5c] sm:$0xff] }
 0x4d1   : > { %19441 = vmatprep.mubr.msk.f32.mxu1 %vm2264_vm4, %v7757_v46  ;;  %19763 = vmatprep.mubr.msk.f32.mxu0 %vm2264_vm4, %v24160_v33  ;;  %v9094_v46 = vld [vmem:[#allocation2 + $0x5a] sm:$0xff]  ;;  %v9111_v4 = vld [vmem:[#allocation2 + $0xe2] sm:$0xff] }
 0x4d2   : > { %v9110_v33 = vld [vmem:[#allocation2 + $0xda] sm:$0xff] }
 0x4d4   : > { %19442 = vmatmul.mubr.msk.f32.gmra.mrb[80].mxu1 %vm2264_vm4, %v7758_v41  ;;  %19764 = vmatmul.mubr.msk.f32.gmra.mrb[20].mxu0 %vm2264_vm4, %v24165_v8  ;;  %v24227_v41 = vld [vmem:[#allocation2 + $0x64] sm:$0xff]  ;;  %v9109_v8 = vld [vmem:[#allocation2 + $0xd2] sm:$0xff] }
 0x4d5   : > { %19444 = vmatprep.mubr.msk.f32.mxu1 %vm2264_vm4, %v7759_v56  ;;  %19766 = vmatprep.mubr.msk.f32.mxu0 %vm2264_vm4, %v24170_v12  ;;  %v9095_v56 = vld [vmem:[#allocation2 + $0x62] sm:$0xff]  ;;  %v9108_v12 = vld [vmem:[#allocation2 + $0xca] sm:$0xff] }
 0x4d8   : > { %19445 = vmatmul.mubr.msk.f32.gmra.mrb[82].mxu1 %vm2264_vm4, %v7760_v22  ;;  %19767 = vmatmul.mubr.msk.f32.gmra.mrb[22].mxu0 %vm2264_vm4, %v10043_v20  ;;  %v24232_v22 = vld [vmem:[#allocation2 + $0x6c] sm:$0xff] }
 0x4d9   : > { %19449 = vmatprep.mubr.msk.f32.mxu1 %vm2264_vm4, %v6803_v6  ;;  %19769 = vmatprep.mubr.msk.f32.mxu0 %vm2264_vm4, %v10044_v52  ;;  %v9096_v20 = vld [vmem:[#allocation2 + $0x6a] sm:$0xff]  ;;  %v24237_v6 = vld [vmem:[#allocation2 + $0x74] sm:$0xff] }
 0x4da   : > { %v9097_v52 = vld [vmem:[#allocation2 + $0x72] sm:$0xff] }
 0x4dc   : > { %19450 = vmatmul.mubr.msk.f32.vlgmr.msra.gmra.mrb[42].mxu1 %vm2264_vm4, %v6804_v29  ;;  %19770 = vmatmul.mubr.msk.f32.gmra.mrb[24].mxu0 %vm2264_vm4, %v10045_v48  ;;  %v9098_v29 = vld [vmem:[#allocation2 + $0x7a] sm:$0xff]  ;;  %v24247_v48 = vld [vmem:[#allocation2 + $0x84] sm:$0xff] }
 0x4dd   : > { %19513 = vmatpush3.bf16.msra.mxu1 %v8633_v24  ;;  %19452 = vmatprep.mubr.msk.f32.mxu1 %vm2264_vm4, %v24188_v59  ;;  %v24242_v24 = vld [vmem:[#allocation2 + $0x7c] sm:$0xff] }
 0x4de   : > { %19774 = vmatprep.mubr.msk.f32.mxu0 %vm2264_vm4, %v9088_v3  ;;  %21271 = vmatprep.subr.msk.bf16.mxu1 %vm2526_vm3, %v24184_v14  ;;  %v9099_v3 = vld [vmem:[#allocation2 + $0x82] sm:$0xff] }
 0x4e0   : > { %19453 = vmatmul.mubr.msk.f32.gmra.mrb[44].mxu1 %vm2264_vm4, %v24195_v42  ;;  %19775 = vmatmul.mubr.msk.f32.vlgmr.msra.gmra.mrb[240].mxu0 %vm2264_vm4, %v9089_v31  ;;  %v24252_v31 = vld [vmem:[#allocation2 + $0x8c] sm:$0xff] }
 0x4e1   : > { %19455 = vmatprep.mubr.msk.f32.mxu1 %vm2264_vm4, %v24202_v34  ;;  %19777 = vmatprep.mubr.msk.f32.mxu0 %vm2264_vm4, %v9090_v38  ;;  %v24257_v38 = vld [vmem:[#allocation2 + $0x94] sm:$0xff] }
 0x4e2   : > { %19838 = vmatpush3.bf16.msra.mxu0 %v10918_v45  ;;  %v9100_v45 = vld [vmem:[#allocation2 + $0x8a] sm:$0xff] }
 0x4e4   : > { %19456 = vmatmul.mubr.msk.f32.gmra.mrb[46].mxu1 %vm2264_vm4, %v24207_v50  ;;  %19778 = vmatmul.mubr.msk.f32.gmra.mrb[242].mxu0 %vm2264_vm4, %v9091_v55  ;;  %v9101_v55 = vld [vmem:[#allocation2 + $0x92] sm:$0xff] }
 0x4e5   : > { %19458 = vmatprep.mubr.msk.f32.mxu1 %vm2264_vm4, %v24212_v36  ;;  %19780 = vmatprep.mubr.msk.f32.mxu0 %vm2264_vm4, %v9092_v23  ;;  %v24262_v23 = vld [vmem:[#allocation2 + $0x9c] sm:$0xff] }
 0x4e8   : > { %19459 = vmatmul.mubr.msk.f32.gmra.mrb[48].mxu1 %vm2264_vm4, %v24217_v61  ;;  %19781 = vmatmul.mubr.msk.f32.gmra.mrb[244].mxu0 %vm2264_vm4, %v9093_v30  ;;  %v9102_v30 = vld [vmem:[#allocation2 + $0x9a] sm:$0xff] }
 0x4e9   : > { %19461 = vmatprep.mubr.msk.f32.mxu1 %vm2264_vm4, %v24222_v7  ;;  %19783 = vmatprep.mubr.msk.f32.mxu0 %vm2264_vm4, %v9094_v46  ;;  %v24267_v46 = vld [vmem:[#allocation2 + $0xa4] sm:$0xff] }
 0x4ec   : > { %19462 = vmatmul.mubr.msk.f32.gmra.mrb[50].mxu1 %vm2264_vm4, %v24227_v41  ;;  %19784 = vmatmul.mubr.msk.f32.gmra.mrb[246].mxu0 %vm2264_vm4, %v9095_v56  ;;  %v9103_v56 = vld [vmem:[#allocation2 + $0xa2] sm:$0xff] }
 0x4ed   : > { %19464 = vmatprep.mubr.msk.f32.mxu1 %vm2264_vm4, %v24232_v22  ;;  %19786 = vmatprep.mubr.msk.f32.mxu0 %vm2264_vm4, %v9096_v20  ;;  %v24272_v20 = vld [vmem:[#allocation2 + $0xac] sm:$0xff] }
 0x4f0   : > { %19465 = vmatmul.mubr.msk.f32.gmra.mrb[52].mxu1 %vm2264_vm4, %v24237_v6  ;;  %19787 = vmatmul.mubr.msk.f32.gmra.mrb[248].mxu0 %vm2264_vm4, %v9097_v52  ;;  %v9104_v52 = vld [vmem:[#allocation2 + $0xaa] sm:$0xff] }
 0x4f1   : > { %19467 = vmatprep.mubr.msk.f32.mxu1 %vm2264_vm4, %v24242_v24  ;;  %19789 = vmatprep.mubr.msk.f32.mxu0 %vm2264_vm4, %v9098_v29  ;;  %v24277_v29 = vld [vmem:[#allocation2 + $0xb4] sm:$0xff] }
 0x4f4   : > { %19468 = vmatmul.mubr.msk.f32.gmra.mrb[54].mxu1 %vm2264_vm4, %v24247_v48  ;;  %19790 = vmatmul.mubr.msk.f32.gmra.mrb[250].mxu0 %vm2264_vm4, %v9099_v3  ;;  %v9105_v3 = vld [vmem:[#allocation2 + $0xb2] sm:$0xff] }
 0x4f5   : > { %19470 = vmatprep.mubr.msk.f32.mxu1 %vm2264_vm4, %v24252_v31  ;;  %19792 = vmatprep.mubr.msk.f32.mxu0 %vm2264_vm4, %v9100_v45  ;;  %v24282_v45 = vld [vmem:[#allocation2 + $0xbc] sm:$0xff] }
 0x4f8   : > { %19471 = vmatmul.mubr.msk.f32.gmra.mrb[56].mxu1 %vm2264_vm4, %v24257_v38  ;;  %19793 = vmatmul.mubr.msk.f32.gmra.mrb[252].mxu0 %vm2264_vm4, %v9101_v55  ;;  %v9106_v55 = vld [vmem:[#allocation2 + $0xba] sm:$0xff] }
 0x4f9   : > { %19473 = vmatprep.mubr.msk.f32.mxu1 %vm2264_vm4, %v24262_v23  ;;  %19795 = vmatprep.mubr.msk.f32.mxu0 %vm2264_vm4, %v9102_v30  ;;  %v24287_v30 = vld [vmem:[#allocation2 + $0xc4] sm:$0xff] }
 0x4fc   : > { %19474 = vmatmul.mubr.msk.f32.gmra.mrb[58].mxu1 %vm2264_vm4, %v24267_v46  ;;  %19796 = vmatmul.mubr.msk.f32.gmra.mrb[254].mxu0 %vm2264_vm4, %v9103_v56  ;;  %v9107_v56 = vld [vmem:[#allocation2 + $0xc2] sm:$0xff] }
 0x4fd   : > { %19476 = vmatprep.mubr.msk.f32.mxu1 %vm2264_vm4, %v24272_v20  ;;  %19798 = vmatprep.mubr.msk.f32.mxu0 %vm2264_vm4, %v9104_v52  ;;  %v24292_v52 = vld [vmem:[#allocation2 + $0xcc] sm:$0xff] }
 0x500   : > { %19477 = vmatmul.mubr.msk.f32.gmra.mrb[60].mxu1 %vm2264_vm4, %v24277_v29  ;;  %19799 = vmatmul.mubr.msk.f32.gmra.mrb[0].mxu0 %vm2264_vm4, %v9105_v3  ;;  %v24297_v3 = vld [vmem:[#allocation2 + $0xd4] sm:$0xff] }
 0x501   : > { %19479 = vmatprep.mubr.msk.f32.mxu1 %vm2264_vm4, %v24282_v45  ;;  %19801 = vmatprep.mubr.msk.f32.mxu0 %vm2264_vm4, %v9106_v55  ;;  %v24302_v55 = vld [vmem:[#allocation2 + $0xdc] sm:$0xff] }
 0x504   : > { %19480 = vmatmul.mubr.msk.f32.gmra.mrb[62].mxu1 %vm2264_vm4, %v24287_v30  ;;  %19802 = vmatmul.mubr.msk.f32.gmra.mrb[2].mxu0 %vm2264_vm4, %v9107_v56  ;;  %v24307_v56 = vld [vmem:[#allocation2 + $0xe4] sm:$0xff] }
 0x505   : > { %19482 = vmatprep.mubr.msk.f32.mxu1 %vm2264_vm4, %v24292_v52  ;;  %19804 = vmatprep.mubr.msk.f32.mxu0 %vm2264_vm4, %v9108_v12  ;;  %v24312_v12 = vld [vmem:[#allocation2 + $0xec] sm:$0xff] }
 0x508   : > { %19483 = vmatmul.mubr.msk.f32.gmra.mrb[64].mxu1 %vm2264_vm4, %v24297_v3  ;;  %19805 = vmatmul.mubr.msk.f32.gmra.mrb[4].mxu0 %vm2264_vm4, %v9109_v8  ;;  %v24317_v8 = vld [vmem:[#allocation2 + $0xf4] sm:$0xff] }
 0x509   : > { %19485 = vmatprep.mubr.msk.f32.mxu1 %vm2264_vm4, %v24302_v55  ;;  %19807 = vmatprep.mubr.msk.f32.mxu0 %vm2264_vm4, %v9110_v33  ;;  %v24322_v33 = vld [vmem:[#allocation2 + $0xfc] sm:$0xff] }
 0x50c   : > { %19486 = vmatmul.mubr.msk.f32.gmra.mrb[66].mxu1 %vm2264_vm4, %v24307_v56  ;;  %19808 = vmatmul.mubr.msk.f32.gmra.mrb[6].mxu0 %vm2264_vm4, %v9111_v4  ;;  %v24327_v4 = vld [vmem:[#allocation2 + $0x104] sm:$0xff] }
 0x50d   : > { %19488 = vmatprep.mubr.msk.f32.mxu1 %vm2264_vm4, %v24312_v12  ;;  %19810 = vmatprep.mubr.msk.f32.mxu0 %vm2264_vm4, %v9112_v54  ;;  %25737 = vst [vmem:[#allocation90_spill] sm:$0xff] %v24327_v4  ;;  %v24332_v54 = vld [vmem:[#allocation2 + $0x10c] sm:$0xff] }
 0x50e   : > { %25738 = vst [vmem:[#allocation85_spill] sm:$0xff] %v24332_v54 }
 0x510   : > { %19489 = vmatmul.mubr.msk.f32.gmra.mrb[68].mxu1 %vm2264_vm4, %v24317_v8  ;;  %19811 = vmatmul.mubr.msk.f32.gmra.mrb[8].mxu0 %vm2264_vm4, %v9113_v9  ;;  %v24337_v9 = vld [vmem:[#allocation2 + $0x114] sm:$0xff] }
 0x511   : > { %19491 = vmatprep.mubr.msk.f32.mxu1 %vm2264_vm4, %v24322_v33  ;;  %19813 = vmatprep.mubr.msk.f32.mxu0 %vm2264_vm4, %v9114_v60  ;;  %25739 = vst [vmem:[#allocation24_spill] sm:$0xff] %v24337_v9  ;;  %v24342_v60 = vld [vmem:[#allocation2 + $0x11c] sm:$0xff] }
 0x512   : > { %25740 = vst [vmem:[#allocation61_spill] sm:$0xff] %v24342_v60 }
 0x514   : > { %19492 = vmatmul.mubr.msk.f32.gmra.mrb[70].mxu1 %vm2264_vm4, %v24327_v4  ;;  %19814 = vmatmul.mubr.msk.f32.gmra.mrb[10].mxu0 %vm2264_vm4, %v9115_v16  ;;  %v24347_v16 = vld [vmem:[#allocation2 + $0x124] sm:$0xff] }
 0x515   : > { %19494 = vmatprep.mubr.msk.f32.mxu1 %vm2264_vm4, %v24332_v54  ;;  %19816 = vmatprep.mubr.msk.f32.mxu0 %vm2264_vm4, %v9116_v2  ;;  %25741 = vst [vmem:[#allocation87_spill] sm:$0xff] %v24347_v16  ;;  %v9119_v54 = vld [vmem:[#allocation2 + $0x122] sm:$0xff]  ;;  %v24352_v2 = vld [vmem:[#allocation2 + $0x12c] sm:$0xff] }
 0x516   : > { %25742 = vst [vmem:[#allocation25_spill] sm:$0xff] %v24352_v2  ;;  %v9128_v4 = vld [vmem:[#allocation2 + $0x16a] sm:$0xff] }
 0x518   : > { %19495 = vmatmul.mubr.msk.f32.gmra.mrb[72].mxu1 %vm2264_vm4, %v24337_v9  ;;  %19817 = vmatmul.mubr.msk.f32.gmra.mrb[12].mxu0 %vm2264_vm4, %v9117_v44  ;;  %v9120_v9 = vld [vmem:[#allocation2 + $0x12a] sm:$0xff]  ;;  %v24357_v44 = vld [vmem:[#allocation2 + $0x134] sm:$0xff] }
 0x519   : > { %19497 = vmatprep.mubr.msk.f32.mxu1 %vm2264_vm4, %v24342_v60  ;;  %19819 = vmatprep.mubr.msk.f32.mxu0 %vm2264_vm4, %v9118_v63  ;;  %25743 = vst [vmem:[#allocation56_spill] sm:$0xff] %v24357_v44  ;;  %v9121_v60 = vld [vmem:[#allocation2 + $0x132] sm:$0xff]  ;;  %v24362_v63 = vld [vmem:[#allocation2 + $0x13c] sm:$0xff] }
 0x51a   : > { %25744 = vst [vmem:[#allocation88_spill] sm:$0xff] %v24362_v63 }
 0x51c   : > { %19498 = vmatmul.mubr.msk.f32.gmra.mrb[74].mxu1 %vm2264_vm4, %v24347_v16  ;;  %19820 = vmatmul.mubr.msk.f32.gmra.mrb[14].mxu0 %vm2264_vm4, %v9119_v54  ;;  %v9122_v16 = vld [vmem:[#allocation2 + $0x13a] sm:$0xff]  ;;  %v24367_v54 = vld [vmem:[#allocation2 + $0x144] sm:$0xff] }
 0x51d   : > { %19500 = vmatprep.mubr.msk.f32.mxu1 %vm2264_vm4, %v24352_v2  ;;  %19822 = vmatprep.mubr.msk.f32.mxu0 %vm2264_vm4, %v9120_v9  ;;  %25745 = vst [vmem:[#allocation27_spill] sm:$0xff] %v24367_v54  ;;  %v9123_v2 = vld [vmem:[#allocation2 + $0x142] sm:$0xff]  ;;  %v24372_v9 = vld [vmem:[#allocation2 + $0x14c] sm:$0xff] }
 0x51e   : > { %25746 = vst [vmem:[#allocation63_spill] sm:$0xff] %v24372_v9 }
 0x520   : > { %19501 = vmatmul.mubr.msk.f32.gmra.mrb[76].mxu1 %vm2264_vm4, %v24357_v44  ;;  %19823 = vmatmul.mubr.msk.f32.gmra.mrb[16].mxu0 %vm2264_vm4, %v9121_v60  ;;  %v9124_v44 = vld [vmem:[#allocation2 + $0x14a] sm:$0xff]  ;;  %v24377_v60 = vld [vmem:[#allocation2 + $0x154] sm:$0xff] }
 0x521   : > { %19503 = vmatprep.mubr.msk.f32.mxu1 %vm2264_vm4, %v24362_v63  ;;  %19825 = vmatprep.mubr.msk.f32.mxu0 %vm2264_vm4, %v9122_v16  ;;  %25747 = vst [vmem:[#allocation22_spill] sm:$0xff] %v24377_v60  ;;  %v9125_v63 = vld [vmem:[#allocation2 + $0x152] sm:$0xff]  ;;  %v24382_v16 = vld [vmem:[#allocation2 + $0x15c] sm:$0xff] }
 0x524   : > { %19504 = vmatmul.mubr.msk.f32.gmra.mrb[78].mxu1 %vm2264_vm4, %v24367_v54  ;;  %19826 = vmatmul.mubr.msk.f32.gmra.mrb[18].mxu0 %vm2264_vm4, %v9123_v2  ;;  %v9126_v54 = vld [vmem:[#allocation2 + $0x15a] sm:$0xff]  ;;  %v6844_v2 = vld [vmem:[#allocation2 + $0x164] sm:$0xf] }
 0x525   : > { %19506 = vmatprep.mubr.msk.f32.mxu1 %vm2264_vm4, %v24372_v9  ;;  %19828 = vmatprep.mubr.msk.f32.mxu0 %vm2264_vm4, %v9124_v44  ;;  %v9127_v9 = vld [vmem:[#allocation2 + $0x162] sm:$0xff] }
 0x526   : > { %v7261_v44 = vld [vmem:[#allocation2 + $0x1e] sm:$0xff] }
 0x528   : > { %19507 = vmatmul.mubr.msk.f32.gmra.mrb[80].mxu1 %vm2264_vm4, %v24377_v60  ;;  %19829 = vmatmul.mubr.msk.f32.gmra.mrb[20].mxu0 %vm2264_vm4, %v9125_v63  ;;  %v11586_v63 = vsel %vm2526_vm3, %v24184_v14, 0  ;;  %v7262_v60 = vld [vmem:[#allocation2 + $0x26] sm:$0xff]  ;;  %v9587_v14 = vld [vmem:[#allocation2 + $0x174] sm:$0xf] }
 0x529   : > { %19509 = vmatprep.mubr.msk.f32.mxu1 %vm2264_vm4, %v24382_v16  ;;  %19831 = vmatprep.mubr.msk.f32.mxu0 %vm2264_vm4, %v9126_v54  ;;  %v24396_v54 = vld [vmem:[%s25306_s1 + $0x84] sm:$0x7] }
 0x52c   : > { %19510 = vmatmul.mubr.msk.f32.gmra.mrb[82].mxu1 %vm2264_vm4, %v6844_v2  ;;  %19832 = vmatmul.mubr.msk.f32.gmra.mrb[22].mxu0 %vm2264_vm4, %v9127_v9  ;;  %v11444_v9 = vld [vmem:[#allocation2 + $0x119] sm:$0xff]  ;;  %v11447_v2 = vld [vmem:[#allocation2 + $0x131] sm:$0xff] }
 0x52d   : > { %19514 = vmatprep.mubr.msk.f32.mxu1 %vm2264_vm4, %v7261_v44  ;;  %19834 = vmatprep.mubr.msk.f32.mxu0 %vm2264_vm4, %v9128_v4  ;;  %v11443_v4 = vld [vmem:[#allocation2 + $0x111] sm:$0xff]  ;;  %v11448_v44 = vld [vmem:[#allocation2 + $0x139] sm:$0xff] }
 0x530   : > { %19515 = vmatmul.mubr.msk.f32.vlgmr.msra.gmra.mrb[42].mxu1 %vm2264_vm4, %v7262_v60  ;;  %19835 = vmatmul.mubr.msk.f32.gmra.mrb[24].mxu0 %vm2264_vm4, %v9129_v28  ;;  %v12044_v28 = vsel %vm2526_vm3, %v24396_v54, 0  ;;  %v11445_v60 = vld [vmem:[#allocation2 + $0x121] sm:$0xff] }
 0x531   : > { %19903 = vmatpush3.bf16.msra.mxu1 %v11586_v63  ;;  %19517 = vmatprep.mubr.msk.f32.mxu1 %vm2264_vm4, %v23924_v5  ;;  %v25748_v5 = vld [vmem:[#allocation86_spill] sm:$0xff]  ;;  %v11449_v63 = vld [vmem:[#allocation2 + $0x141] sm:$0xff] }
 0x532   : > { %19839 = vmatprep.mubr.msk.f32.mxu0 %vm2264_vm4, %v24188_v59  ;;  %21272 = vmatprep.subr.msk.bf16.mxu1 %vm2526_vm3, %v24396_v54  ;;  %v11417_v59 = vld [vmem:[#allocation2 + $0x41] sm:$0xff]  ;;  %v11450_v54 = vld [vmem:[#allocation2 + $0x149] sm:$0xff] }
 0x534   : > { %19518 = vmatmul.mubr.msk.f32.gmra.mrb[44].mxu1 %vm2264_vm4, %v23932_v27  ;;  %19840 = vmatmul.mubr.msk.f32.vlgmr.msra.gmra.mrb[240].mxu0 %vm2264_vm4, %v24195_v42  ;;  %v25749_v27 = vld [vmem:[#allocation90_spill] sm:$0xff]  ;;  %v24567_v42 = vld [vmem:[%s25306_s1 + $0x88] sm:$0x7] }
 0x535   : > { %19520 = vmatprep.mubr.msk.f32.mxu1 %vm2264_vm4, %v23940_v10  ;;  %19842 = vmatprep.mubr.msk.f32.mxu0 %vm2264_vm4, %v24202_v34  ;;  %v25750_v10 = vld [vmem:[#allocation81_spill] sm:$0xff] }
 0x536   : > { %v11418_v34 = vld [vmem:[#allocation2 + $0x49] sm:$0xff] }
 0x538   : > { %19521 = vmatmul.mubr.msk.f32.gmra.mrb[46].mxu1 %vm2264_vm4, %v23948_v26  ;;  %19843 = vmatmul.mubr.msk.f32.gmra.mrb[242].mxu0 %vm2264_vm4, %v24207_v50  ;;  %v25751_v26 = vld [vmem:[#allocation85_spill] sm:$0xff]  ;;  %v11419_v50 = vld [vmem:[#allocation2 + $0x51] sm:$0xff] }
 0x539   : > { %19523 = vmatprep.mubr.msk.f32.mxu1 %vm2264_vm4, %v23954_v40  ;;  %19845 = vmatprep.mubr.msk.f32.mxu0 %vm2264_vm4, %v24212_v36  ;;  %v25752_v40 = vld [vmem:[#allocation20_spill] sm:$0xff] }
 0x53a   : > { %v11420_v36 = vld [vmem:[#allocation2 + $0x59] sm:$0xff] }
 0x53c   : > { %19524 = vmatmul.mubr.msk.f32.gmra.mrb[48].mxu1 %vm2264_vm4, %v23962_v35  ;;  %19846 = vmatmul.mubr.msk.f32.gmra.mrb[244].mxu0 %vm2264_vm4, %v24217_v61  ;;  %v25753_v35 = vld [vmem:[#allocation24_spill] sm:$0xff] }
 0x53d   : > { %19526 = vmatprep.mubr.msk.f32.mxu1 %vm2264_vm4, %v23968_v13  ;;  %19848 = vmatprep.mubr.msk.f32.mxu0 %vm2264_vm4, %v24222_v7  ;;  %v25754_v13 = vld [vmem:[#allocation57_spill] sm:$0xff] }
 0x53e   : > { %v11421_v61 = vld [vmem:[#allocation2 + $0x61] sm:$0xff]  ;;  %v11422_v7 = vld [vmem:[#allocation2 + $0x69] sm:$0xff] }
 0x540   : > { %19527 = vmatmul.mubr.msk.f32.gmra.mrb[50].mxu1 %vm2264_vm4, %v23976_v1  ;;  %19849 = vmatmul.mubr.msk.f32.gmra.mrb[246].mxu0 %vm2264_vm4, %v24227_v41  ;;  %v25755_v1 = vld [vmem:[#allocation61_spill] sm:$0xff]  ;;  %v11423_v41 = vld [vmem:[#allocation2 + $0x71] sm:$0xff] }
 0x541   : > { %19529 = vmatprep.mubr.msk.f32.mxu1 %vm2264_vm4, %v23982_v18  ;;  %19851 = vmatprep.mubr.msk.f32.mxu0 %vm2264_vm4, %v24232_v22  ;;  %v25756_v18 = vld [vmem:[#allocation83_spill] sm:$0xff] }
 0x542   : > { %v11424_v22 = vld [vmem:[#allocation2 + $0x79] sm:$0xff] }
 0x544   : > { %19530 = vmatmul.mubr.msk.f32.gmra.mrb[52].mxu1 %vm2264_vm4, %v23990_v17  ;;  %19852 = vmatmul.mubr.msk.f32.gmra.mrb[248].mxu0 %vm2264_vm4, %v24237_v6  ;;  %v25757_v17 = vld [vmem:[#allocation87_spill] sm:$0xff]  ;;  %v11425_v6 = vld [vmem:[#allocation2 + $0x81] sm:$0xff] }
 0x545   : > { %19532 = vmatprep.mubr.msk.f32.mxu1 %vm2264_vm4, %v23996_v49  ;;  %19854 = vmatprep.mubr.msk.f32.mxu0 %vm2264_vm4, %v24242_v24  ;;  %v25758_v49 = vld [vmem:[#allocation21_spill] sm:$0xff] }
 0x546   : > { %v11426_v24 = vld [vmem:[#allocation2 + $0x89] sm:$0xff] }
 0x548   : > { %19533 = vmatmul.mubr.msk.f32.gmra.mrb[54].mxu1 %vm2264_vm4, %v24004_v11  ;;  %19855 = vmatmul.mubr.msk.f32.gmra.mrb[250].mxu0 %vm2264_vm4, %v24247_v48  ;;  %v25759_v11 = vld [vmem:[#allocation25_spill] sm:$0xff]  ;;  %v11427_v48 = vld [vmem:[#allocation2 + $0x91] sm:$0xff] }
 0x549   : > { %19535 = vmatprep.mubr.msk.f32.mxu1 %vm2264_vm4, %v24010_v21  ;;  %19857 = vmatprep.mubr.msk.f32.mxu0 %vm2264_vm4, %v24252_v31  ;;  %v25760_v21 = vld [vmem:[#allocation52_spill] sm:$0xff] }
 0x54a   : > { %v11428_v31 = vld [vmem:[#allocation2 + $0x99] sm:$0xff] }
 0x54c   : > { %19536 = vmatmul.mubr.msk.f32.gmra.mrb[56].mxu1 %vm2264_vm4, %v24018_v47  ;;  %19858 = vmatmul.mubr.msk.f32.gmra.mrb[252].mxu0 %vm2264_vm4, %v24257_v38  ;;  %v25761_v47 = vld [vmem:[#allocation56_spill] sm:$0xff] }
 0x54d   : > { %19538 = vmatprep.mubr.msk.f32.mxu1 %vm2264_vm4, %v24024_v62  ;;  %19860 = vmatprep.mubr.msk.f32.mxu0 %vm2264_vm4, %v24262_v23  ;;  %v25762_v62 = vld [vmem:[#allocation84_spill] sm:$0xff]  ;;  %v11430_v23 = vld [vmem:[#allocation2 + $0xa9] sm:$0xff] }
 0x54e   : > { %v11429_v38 = vld [vmem:[#allocation2 + $0xa1] sm:$0xff] }
 0x550   : > { %19539 = vmatmul.mubr.msk.f32.gmra.mrb[58].mxu1 %vm2264_vm4, %v24032_v32  ;;  %19861 = vmatmul.mubr.msk.f32.gmra.mrb[254].mxu0 %vm2264_vm4, %v24267_v46  ;;  %v25763_v32 = vld [vmem:[#allocation88_spill] sm:$0xff]  ;;  %v11431_v46 = vld [vmem:[#allocation2 + $0xb1] sm:$0xff] }
 0x551   : > { %19541 = vmatprep.mubr.msk.f32.mxu1 %vm2264_vm4, %v24038_v25  ;;  %19863 = vmatprep.mubr.msk.f32.mxu0 %vm2264_vm4, %v24272_v20  ;;  %v25764_v25 = vld [vmem:[#allocation23_spill] sm:$0xff] }
 0x552   : > { %v11432_v20 = vld [vmem:[#allocation2 + $0xb9] sm:$0xff] }
 0x554   : > { %19542 = vmatmul.mubr.msk.f32.gmra.mrb[60].mxu1 %vm2264_vm4, %v24046_v43  ;;  %19864 = vmatmul.mubr.msk.f32.gmra.mrb[0].mxu0 %vm2264_vm4, %v24277_v29  ;;  %v25765_v43 = vld [vmem:[#allocation27_spill] sm:$0xff]  ;;  %v11433_v29 = vld [vmem:[#allocation2 + $0xc1] sm:$0xff] }
 0x555   : > { %19544 = vmatprep.mubr.msk.f32.mxu1 %vm2264_vm4, %v24052_v51  ;;  %19866 = vmatprep.mubr.msk.f32.mxu0 %vm2264_vm4, %v24282_v45  ;;  %v25766_v51 = vld [vmem:[#allocation59_spill] sm:$0xff]  ;;  %v11434_v45 = vld [vmem:[#allocation2 + $0xc9] sm:$0xff] }
 0x558   : > { %19545 = vmatmul.mubr.msk.f32.gmra.mrb[62].mxu1 %vm2264_vm4, %v24060_v57  ;;  %19867 = vmatmul.mubr.msk.f32.gmra.mrb[2].mxu0 %vm2264_vm4, %v24287_v30  ;;  %v25767_v57 = vld [vmem:[#allocation63_spill] sm:$0xff] }
 0x559   : > { %19547 = vmatprep.mubr.msk.f32.mxu1 %vm2264_vm4, %v24066_v37  ;;  %19869 = vmatprep.mubr.msk.f32.mxu0 %vm2264_vm4, %v24292_v52  ;;  %v25768_v37 = vld [vmem:[#allocation18_spill] sm:$0xff]  ;;  %v11436_v52 = vld [vmem:[#allocation2 + $0xd9] sm:$0xff] }
 0x55a   : > { %v11435_v30 = vld [vmem:[#allocation2 + $0xd1] sm:$0xff] }
 0x55c   : > { %19548 = vmatmul.mubr.msk.f32.gmra.mrb[64].mxu1 %vm2264_vm4, %v24081_v15  ;;  %19870 = vmatmul.mubr.msk.f32.gmra.mrb[4].mxu0 %vm2264_vm4, %v24297_v3  ;;  %v25769_v15 = vld [vmem:[#allocation22_spill] sm:$0xff]  ;;  %v11437_v3 = vld [vmem:[#allocation2 + $0xe1] sm:$0xff] }
 0x55d   : > { %19550 = vmatprep.mubr.msk.f32.mxu1 %vm2264_vm4, %v24086_v39  ;;  %19872 = vmatprep.mubr.msk.f32.mxu0 %vm2264_vm4, %v24302_v55  ;;  %v25770_v39 = vld [vmem:[#allocation54_spill] sm:$0xff] }
 0x55e   : > { %v11438_v55 = vld [vmem:[#allocation2 + $0xe9] sm:$0xff] }
 0x560   : > { %19551 = vmatmul.mubr.msk.f32.gmra.mrb[66].mxu1 %vm2264_vm4, %v24093_v0  ;;  %19873 = vmatmul.mubr.msk.f32.gmra.mrb[6].mxu0 %vm2264_vm4, %v24307_v56  ;;  %v7302_v0 = vld [vmem:[#allocation2 + $0x166] sm:$0xf]  ;;  %v11439_v56 = vld [vmem:[#allocation2 + $0xf1] sm:$0xff] }
 0x561   : > { %19553 = vmatprep.mubr.msk.f32.mxu1 %vm2264_vm4, %v24098_v58  ;;  %19875 = vmatprep.mubr.msk.f32.mxu0 %vm2264_vm4, %v24312_v12  ;;  %v9585_v58 = vld [vmem:[#allocation2 + $0x164] sm:$0xff]  ;;  %v11440_v12 = vld [vmem:[#allocation2 + $0xf9] sm:$0xff] }
 0x564   : > { %19554 = vmatmul.mubr.msk.f32.gmra.mrb[68].mxu1 %vm2264_vm4, %v24105_v19  ;;  %19876 = vmatmul.mubr.msk.f32.gmra.mrb[8].mxu0 %vm2264_vm4, %v24317_v8  ;;  %v9586_v19 = vld [vmem:[#allocation2 + $0x16c] sm:$0xff]  ;;  %v11441_v8 = vld [vmem:[#allocation2 + $0x101] sm:$0xff] }
 0x565   : > { %19556 = vmatprep.mubr.msk.f32.mxu1 %vm2264_vm4, %v24110_v53  ;;  %19878 = vmatprep.mubr.msk.f32.mxu0 %vm2264_vm4, %v24322_v33  ;;  %v11416_v53 = vld [vmem:[#allocation2 + $0x39] sm:$0xff]  ;;  %v11442_v33 = vld [vmem:[#allocation2 + $0x109] sm:$0xff] }
 0x568   : > { %19557 = vmatmul.mubr.msk.f32.gmra.mrb[70].mxu1 %vm2264_vm4, %v25748_v5  ;;  %19879 = vmatmul.mubr.msk.f32.gmra.mrb[10].mxu0 %vm2264_vm4, %v25749_v27  ;;  %v11451_v5 = vld [vmem:[#allocation2 + $0x151] sm:$0xff]  ;;  %v11452_v27 = vld [vmem:[#allocation2 + $0x159] sm:$0xff] }
 0x569   : > { %19559 = vmatprep.mubr.msk.f32.mxu1 %vm2264_vm4, %v25750_v10  ;;  %19881 = vmatprep.mubr.msk.f32.mxu0 %vm2264_vm4, %v25751_v26  ;;  %v11453_v10 = vld [vmem:[#allocation2 + $0x161] sm:$0xff]  ;;  %v11454_v26 = vld [vmem:[#allocation2 + $0x169] sm:$0xff] }
 0x56c   : > { %19560 = vmatmul.mubr.msk.f32.gmra.mrb[72].mxu1 %vm2264_vm4, %v25752_v40  ;;  %19882 = vmatmul.mubr.msk.f32.gmra.mrb[12].mxu0 %vm2264_vm4, %v25753_v35  ;;  %v11455_v40 = vld [vmem:[#allocation2 + $0x171] sm:$0xff]  ;;  %v11456_v35 = vld [vmem:[#allocation2 + $0x179] sm:$0xff] }
 0x56d   : > { %19562 = vmatprep.mubr.msk.f32.mxu1 %vm2264_vm4, %v25754_v13  ;;  %19884 = vmatprep.mubr.msk.f32.mxu0 %vm2264_vm4, %v25755_v1  ;;  %v11457_v13 = vld [vmem:[#allocation2 + $0x181] sm:$0xf] }
 0x56e   : > { %v11874_v1 = vld [vmem:[#allocation2 + $0x3b] sm:$0xff] }
 0x570   : > { %19563 = vmatmul.mubr.msk.f32.gmra.mrb[74].mxu1 %vm2264_vm4, %v25756_v18  ;;  %19885 = vmatmul.mubr.msk.f32.gmra.mrb[14].mxu0 %vm2264_vm4, %v25757_v17  ;;  %v12459_v18 = vsel %vm2526_vm3, %v24567_v42, 0  ;;  %v11875_v17 = vld [vmem:[#allocation2 + $0x43] sm:$0xff] }
 0x571   : > { %19565 = vmatprep.mubr.msk.f32.mxu1 %vm2264_vm4, %v25758_v49  ;;  %19887 = vmatprep.mubr.msk.f32.mxu0 %vm2264_vm4, %v25759_v11  ;;  %v24619_v49 = vld [vmem:[%s25306_s1 + $0x78] sm:$0x7]  ;;  %v11876_v11 = vld [vmem:[#allocation2 + $0x4b] sm:$0xff] }
 0x574   : > { %19566 = vmatmul.mubr.msk.f32.gmra.mrb[76].mxu1 %vm2264_vm4, %v25760_v21  ;;  %19888 = vmatmul.mubr.msk.f32.gmra.mrb[16].mxu0 %vm2264_vm4, %v25761_v47  ;;  %v11877_v21 = vld [vmem:[#allocation2 + $0x53] sm:$0xff]  ;;  %v11878_v47 = vld [vmem:[#allocation2 + $0x5b] sm:$0xff] }
 0x575   : > { %19568 = vmatprep.mubr.msk.f32.mxu1 %vm2264_vm4, %v25762_v62  ;;  %19890 = vmatprep.mubr.msk.f32.mxu0 %vm2264_vm4, %v25763_v32  ;;  %v11879_v62 = vld [vmem:[#allocation2 + $0x63] sm:$0xff]  ;;  %v11880_v32 = vld [vmem:[#allocation2 + $0x6b] sm:$0xff] }
 0x578   : > { %19569 = vmatmul.mubr.msk.f32.gmra.mrb[78].mxu1 %vm2264_vm4, %v25764_v25  ;;  %19891 = vmatmul.mubr.msk.f32.gmra.mrb[18].mxu0 %vm2264_vm4, %v25765_v43  ;;  %v11881_v25 = vld [vmem:[#allocation2 + $0x73] sm:$0xff]  ;;  %v11882_v43 = vld [vmem:[#allocation2 + $0x7b] sm:$0xff] }
 0x579   : > { %19571 = vmatprep.mubr.msk.f32.mxu1 %vm2264_vm4, %v25766_v51  ;;  %19893 = vmatprep.mubr.msk.f32.mxu0 %vm2264_vm4, %v25767_v57  ;;  %v11883_v51 = vld [vmem:[#allocation2 + $0x83] sm:$0xff]  ;;  %v11884_v57 = vld [vmem:[#allocation2 + $0x8b] sm:$0xff] }
 0x57c   : > { %19572 = vmatmul.mubr.msk.f32.gmra.mrb[80].mxu1 %vm2264_vm4, %v25768_v37  ;;  %19894 = vmatmul.mubr.msk.f32.gmra.mrb[20].mxu0 %vm2264_vm4, %v25769_v15  ;;  %v11885_v37 = vld [vmem:[#allocation2 + $0x93] sm:$0xff]  ;;  %v11886_v15 = vld [vmem:[#allocation2 + $0x9b] sm:$0xff] }
 0x57d   : > { %19574 = vmatprep.mubr.msk.f32.mxu1 %vm2264_vm4, %v25770_v39  ;;  %19896 = vmatprep.mubr.msk.f32.mxu0 %vm2264_vm4, %v24382_v16  ;;  %v11446_v16 = vld [vmem:[#allocation2 + $0x129] sm:$0xff] }
 0x57e   : > { %v11887_v39 = vld [vmem:[#allocation2 + $0xa3] sm:$0xff] }
 0x580   : > { %19575 = vmatmul.mubr.msk.f32.gmra.mrb[82].mxu1 %vm2264_vm4, %v7302_v0  ;;  %19897 = vmatmul.mubr.msk.f32.gmra.mrb[22].mxu0 %vm2264_vm4, %v9585_v58  ;;  %v11888_v0 = vld [vmem:[#allocation2 + $0xab] sm:$0xff]  ;;  %v11889_v58 = vld [vmem:[#allocation2 + $0xb3] sm:$0xff] }
 0x581   : > { %19899 = vmatprep.mubr.msk.f32.mxu0 %vm2264_vm4, %v9586_v19  ;;  %19904 = vmatprep.mubr.msk.f32.mxu1 %vm2264_vm4, %v11416_v53  ;;  %v11890_v19 = vld [vmem:[#allocation2 + $0xbb] sm:$0xff]  ;;  %v11891_v53 = vld [vmem:[#allocation2 + $0xc3] sm:$0xff] }
 0x584   : > { %19900 = vmatmul.mubr.msk.f32.gmra.mrb[24].mxu0 %vm2264_vm4, %v9587_v14  ;;  %19905 = vmatmul.mubr.msk.f32.vlgmr.msra.gmra.mrb[84].mxu1 %vm2264_vm4, %v11417_v59  ;;  %v11893_v14 = vld [vmem:[#allocation2 + $0xd3] sm:$0xff]  ;;  %v11894_v59 = vld [vmem:[#allocation2 + $0xdb] sm:$0xff] }
 0x585   : > { %19968 = vmatpush3.bf16.msra.mxu1 %v12044_v28  ;;  %19907 = vmatprep.mubr.msk.f32.mxu1 %vm2264_vm4, %v11418_v34  ;;  %v11892_v28 = vld [vmem:[#allocation2 + $0xcb] sm:$0xff] }
 0x586   : > { %21273 = vmatprep.subr.msk.bf16.mxu1 %vm2526_vm3, %v24567_v42  ;;  %v11895_v42 = vld [vmem:[#allocation2 + $0xe3] sm:$0xff]  ;;  %v11896_v34 = vld [vmem:[#allocation2 + $0xeb] sm:$0xff] }
 0x588   : > { %19908 = vmatmul.mubr.msk.f32.gmra.mrb[86].mxu1 %vm2264_vm4, %v11419_v50 }
 0x589   : > { %19910 = vmatprep.mubr.msk.f32.mxu1 %vm2264_vm4, %v11420_v36  ;;  %v8963_v36 = vld [vmem:[#allocation3 + $0x8] sm:$0xff] }
 0x58c   : > { %19911 = vmatmul.mubr.msk.f32.gmra.mrb[88].mxu1 %vm2264_vm4, %v11421_v61  ;;  %v11897_v61 = vld [vmem:[#allocation2 + $0xf3] sm:$0xff] }
 0x58d   : > { %19913 = vmatprep.mubr.msk.f32.mxu1 %vm2264_vm4, %v11422_v7 }
 0x590   : > { %19914 = vmatmul.mubr.msk.f32.gmra.mrb[90].mxu1 %vm2264_vm4, %v11423_v41 }
 0x591   : > { %19916 = vmatprep.mubr.msk.f32.mxu1 %vm2264_vm4, %v11424_v22  ;;  %v8962_v22 = vld [vmem:[#allocation3] sm:$0xff] }
 0x594   : > { %19917 = vmatmul.mubr.msk.f32.gmra.mrb[92].mxu1 %vm2264_vm4, %v11425_v6  ;;  %v11898_v6 = vld [vmem:[#allocation2 + $0xfb] sm:$0xff] }
 0x595   : > { %19919 = vmatprep.mubr.msk.f32.mxu1 %vm2264_vm4, %v11426_v24 }
 0x598   : > { %19920 = vmatmul.mubr.msk.f32.gmra.mrb[94].mxu1 %vm2264_vm4, %v11427_v48 }
 0x599   : > { %19922 = vmatprep.mubr.msk.f32.mxu1 %vm2264_vm4, %v11428_v31  ;;  %v8965_v31 = vld [vmem:[#allocation3 + $0x18] sm:$0xff] }
 0x59c   : > { %19923 = vmatmul.mubr.msk.f32.gmra.mrb[96].mxu1 %vm2264_vm4, %v11429_v38 }
 0x59d   : > { %19925 = vmatprep.mubr.msk.f32.mxu1 %vm2264_vm4, %v11430_v23  ;;  %v11899_v23 = vld [vmem:[#allocation2 + $0x103] sm:$0xff] }
 0x5a0   : > { %19926 = vmatmul.mubr.msk.f32.gmra.mrb[98].mxu1 %vm2264_vm4, %v11431_v46 }
 0x5a1   : > { %19928 = vmatprep.mubr.msk.f32.mxu1 %vm2264_vm4, %v11432_v20 }
 0x5a4   : > { %19929 = vmatmul.mubr.msk.f32.gmra.mrb[100].mxu1 %vm2264_vm4, %v11433_v29  ;;  %v8964_v29 = vld [vmem:[#allocation3 + $0x10] sm:$0xff] }
 0x5a5   : > { %19931 = vmatprep.mubr.msk.f32.mxu1 %vm2264_vm4, %v11434_v45 }
 0x5a8   : > { %19932 = vmatmul.mubr.msk.f32.gmra.mrb[102].mxu1 %vm2264_vm4, %v11435_v30  ;;  %v11900_v30 = vld [vmem:[#allocation2 + $0x10b] sm:$0xff] }
 0x5a9   : > { %19934 = vmatprep.mubr.msk.f32.mxu1 %vm2264_vm4, %v11436_v52 }
 0x5ac   : > { %19935 = vmatmul.mubr.msk.f32.gmra.mrb[104].mxu1 %vm2264_vm4, %v11437_v3 }
 0x5ad   : > { %19937 = vmatprep.mubr.msk.f32.mxu1 %vm2264_vm4, %v11438_v55  ;;  %v8967_v55 = vld [vmem:[#allocation3 + $0x28] sm:$0xff] }
 0x5b0   : > { %19938 = vmatmul.mubr.msk.f32.gmra.mrb[106].mxu1 %vm2264_vm4, %v11439_v56 }
 0x5b1   : > { %19940 = vmatprep.mubr.msk.f32.mxu1 %vm2264_vm4, %v11440_v12  ;;  %v11901_v12 = vld [vmem:[#allocation2 + $0x113] sm:$0xff] }
 0x5b4   : > { %19941 = vmatmul.mubr.msk.f32.gmra.mrb[108].mxu1 %vm2264_vm4, %v11441_v8 }
 0x5b5   : > { %19943 = vmatprep.mubr.msk.f32.mxu1 %vm2264_vm4, %v11442_v33 }
 0x5b8   : > { %19944 = vmatmul.mubr.msk.f32.gmra.mrb[110].mxu1 %vm2264_vm4, %v11443_v4  ;;  %v8966_v4 = vld [vmem:[#allocation3 + $0x20] sm:$0xff] }
 0x5b9   : > { %19946 = vmatprep.mubr.msk.f32.mxu1 %vm2264_vm4, %v11444_v9 }
 0x5bc   : > { %19947 = vmatmul.mubr.msk.f32.gmra.mrb[112].mxu1 %vm2264_vm4, %v11445_v60  ;;  %v11902_v60 = vld [vmem:[#allocation2 + $0x11b] sm:$0xff] }
 0x5bd   : > { %19949 = vmatprep.mubr.msk.f32.mxu1 %vm2264_vm4, %v11446_v16 }
 0x5c0   : > { %19950 = vmatmul.mubr.msk.f32.gmra.mrb[114].mxu1 %vm2264_vm4, %v11447_v2 }
 0x5c1   : > { %19952 = vmatprep.mubr.msk.f32.mxu1 %vm2264_vm4, %v11448_v44 }
 0x5c4   : > { %19953 = vmatmul.mubr.msk.f32.gmra.mrb[116].mxu1 %vm2264_vm4, %v11449_v63 }
 0x5c5   : > { %19955 = vmatprep.mubr.msk.f32.mxu1 %vm2264_vm4, %v11450_v54 }
 0x5c8   : > { %19956 = vmatmul.mubr.msk.f32.gmra.mrb[118].mxu1 %vm2264_vm4, %v11451_v5 }
 0x5c9   : > { %19958 = vmatprep.mubr.msk.f32.mxu1 %vm2264_vm4, %v11452_v27  ;;  %v8969_v27 = vld [vmem:[#allocation3 + $0x38] sm:$0xff] }
 0x5cc   : > { %19959 = vmatmul.mubr.msk.f32.gmra.mrb[120].mxu1 %vm2264_vm4, %v11453_v10 }
 0x5cd   : > { %19961 = vmatprep.mubr.msk.f32.mxu1 %vm2264_vm4, %v11454_v26  ;;  %v11903_v26 = vld [vmem:[#allocation2 + $0x123] sm:$0xff] }
 0x5d0   : > { %19962 = vmatmul.mubr.msk.f32.gmra.mrb[122].mxu1 %vm2264_vm4, %v11455_v40 }
 0x5d1   : > { %19964 = vmatprep.mubr.msk.f32.mxu1 %vm2264_vm4, %v11456_v35 }
 0x5d4   : > { %19965 = vmatmul.mubr.msk.f32.gmra.mrb[124].mxu1 %vm2264_vm4, %v11457_v13  ;;  %v8968_v13 = vld [vmem:[#allocation3 + $0x30] sm:$0xff] }
 0x5d5   : > { %19969 = vmatprep.mubr.msk.f32.mxu1 %vm2264_vm4, %v11874_v1 }
 0x5d8   : > { %19970 = vmatmul.mubr.msk.f32.vlgmr.msra.gmra.mrb[84].mxu1 %vm2264_vm4, %v11875_v17 }
 0x5d9   : > { %20033 = vmatpush3.bf16.msra.mxu1 %v12459_v18  ;;  %19972 = vmatprep.mubr.msk.f32.mxu1 %vm2264_vm4, %v11876_v11  ;;  %v11904_v18 = vld [vmem:[#allocation2 + $0x12b] sm:$0xff] }
 0x5da   : > { %21274 = vmatprep.subr.msk.bf16.mxu1 %vm2526_vm3, %v24619_v49 }
 0x5dc   : > { %19973 = vmatmul.mubr.msk.f32.gmra.mrb[86].mxu1 %vm2264_vm4, %v11877_v21 }
 0x5dd   : > { %19975 = vmatprep.mubr.msk.f32.mxu1 %vm2264_vm4, %v11878_v47 }
 0x5e0   : > { %19976 = vmatmul.mubr.msk.f32.gmra.mrb[88].mxu1 %vm2264_vm4, %v11879_v62 }
 0x5e1   : > { %19978 = vmatprep.mubr.msk.f32.mxu1 %vm2264_vm4, %v11880_v32 }
 0x5e4   : > { %19979 = vmatmul.mubr.msk.f32.gmra.mrb[90].mxu1 %vm2264_vm4, %v11881_v25  ;;  %v8971_v25 = vld [vmem:[#allocation3 + $0x48] sm:$0xff] }
 0x5e5   : > { %19981 = vmatprep.mubr.msk.f32.mxu1 %vm2264_vm4, %v11882_v43 }
 0x5e8   : > { %19982 = vmatmul.mubr.msk.f32.gmra.mrb[92].mxu1 %vm2264_vm4, %v11883_v51  ;;  %v11905_v51 = vld [vmem:[#allocation2 + $0x133] sm:$0xff] }
 0x5e9   : > { %19984 = vmatprep.mubr.msk.f32.mxu1 %vm2264_vm4, %v11884_v57 }
 0x5ec   : > { %19985 = vmatmul.mubr.msk.f32.gmra.mrb[94].mxu1 %vm2264_vm4, %v11885_v37 }
 0x5ed   : > { %19987 = vmatprep.mubr.msk.f32.mxu1 %vm2264_vm4, %v11886_v15  ;;  %v8970_v15 = vld [vmem:[#allocation3 + $0x40] sm:$0xff] }
 0x5f0   : > { %19988 = vmatmul.mubr.msk.f32.gmra.mrb[96].mxu1 %vm2264_vm4, %v11887_v39 }
 0x5f1   : > { %19990 = vmatprep.mubr.msk.f32.mxu1 %vm2264_vm4, %v11888_v0  ;;  %v11906_v0 = vld [vmem:[#allocation2 + $0x13b] sm:$0xff] }
 0x5f4   : > { %19991 = vmatmul.mubr.msk.f32.gmra.mrb[98].mxu1 %vm2264_vm4, %v11889_v58 }
 0x5f5   : > { %19993 = vmatprep.mubr.msk.f32.mxu1 %vm2264_vm4, %v11890_v19 }
 0x5f8   : > { %19994 = vmatmul.mubr.msk.f32.gmra.mrb[100].mxu1 %vm2264_vm4, %v11891_v53 }
 0x5f9   : > { %19996 = vmatprep.mubr.msk.f32.mxu1 %vm2264_vm4, %v11892_v28 }
 0x5fc   : > { %19997 = vmatmul.mubr.msk.f32.gmra.mrb[102].mxu1 %vm2264_vm4, %v11893_v14 }
 0x5fd   : > { %19999 = vmatprep.mubr.msk.f32.mxu1 %vm2264_vm4, %v11894_v59 }
 0x600   : > { %20000 = vmatmul.mubr.msk.f32.gmra.mrb[104].mxu1 %vm2264_vm4, %v11895_v42  ;;  %v8973_v42 = vld [vmem:[#allocation3 + $0x58] sm:$0xff] }
 0x601   : > { %20002 = vmatprep.mubr.msk.f32.mxu1 %vm2264_vm4, %v11896_v34 }
 0x603   : > { %v19516_v50 = vpop.f32.mrb[42].mxu1 }
 0x604   : > { %v9005_v7 = vadd.f32 %v19516_v50, %v8963_v36  ;;  %v8669_v41 = vpop.f32.mrb[43].mxu1  ;;  %20003 = vmatmul.mubr.msk.f32.gmra.mrb[106].mxu1 %vm2264_vm4, %v11897_v61  ;;  %v11907_v50 = vld [vmem:[#allocation2 + $0x143] sm:$0xff] }
 0x605   : > { %v9004_v24 = vadd.f32 %v8962_v22, %v8669_v41  ;;  %20005 = vmatprep.mubr.msk.f32.mxu1 %vm2264_vm4, %v11898_v6  ;;  %v11908_v22 = vld [vmem:[#allocation2 + $0x14b] sm:$0xff] }
 0x606   : > { %9047 = vst.msk [vmem:[#allocation3 + $0x8] sm:$0xff] %vm4474_vm5, %v9005_v7  ;;  %v8972_v7 = vld [vmem:[#allocation3 + $0x50] sm:$0xff] }
 0x607   : > { %9046 = vst.msk [vmem:[#allocation3] sm:$0xff] %vm4474_vm5, %v9004_v24  ;;  %v19519_v48 = vpop.f32.mrb[44].mxu1  ;;  %v19841_v38 = vpop.f32.mrb[240].mxu0 }
 0x608   : > { %v9007_v46 = vadd.f32 %v19519_v48, %v8965_v31  ;;  %v8679_v20 = vpop.f32.mrb[45].mxu1  ;;  %v10954_v45 = vpop.f32.mrb[241].mxu0  ;;  %20006 = vmatmul.mubr.msk.f32.gmra.mrb[108].mxu1 %vm2264_vm4, %v11899_v23 }
 0x609   : > { %v9006_v52 = vadd.f32 %v8964_v29, %v8679_v20  ;;  %20008 = vmatprep.mubr.msk.f32.mxu1 %vm2264_vm4, %v11900_v30  ;;  %v11909_v29 = vld [vmem:[#allocation2 + $0x153] sm:$0xff] }
 0x60a   : > { %9049 = vst.msk [vmem:[#allocation3 + $0x18] sm:$0xff] %vm4474_vm5, %v9007_v46  ;;  %v8975_v46 = vld [vmem:[#allocation3 + $0x68] sm:$0xff] }
 0x60b   : > { %9048 = vst.msk [vmem:[#allocation3 + $0x10] sm:$0xff] %vm4474_vm5, %v9006_v52  ;;  %v19522_v3 = vpop.f32.mrb[46].mxu1  ;;  %v19844_v56 = vpop.f32.mrb[242].mxu0  ;;  %v8974_v52 = vld [vmem:[#allocation3 + $0x60] sm:$0xff] }
 0x60c   : > { %v9009_v8 = vadd.f32 %v19522_v3, %v8967_v55  ;;  %v8689_v33 = vpop.f32.mrb[47].mxu1  ;;  %v10964_v9 = vpop.f32.mrb[243].mxu0  ;;  %20009 = vmatmul.mubr.msk.f32.gmra.mrb[110].mxu1 %vm2264_vm4, %v11901_v12  ;;  %v11910_v55 = vld [vmem:[#allocation2 + $0x15b] sm:$0xff] }
 0x60d   : > { %v11248_v16 = vld [vmem:[#allocation3 + $0x8] sm:$0xff]  ;;  %v9008_v2 = vadd.f32 %v8966_v4, %v8689_v33  ;;  %20011 = vmatprep.mubr.msk.f32.mxu1 %vm2264_vm4, %v11902_v60  ;;  %v8977_v60 = vld [vmem:[#allocation3 + $0x78] sm:$0xff] }
 0x60e   : > { %v11290_v44 = vadd.f32 %v19841_v38, %v11248_v16  ;;  %v11247_v63 = vld [vmem:[#allocation3] sm:$0xff]  ;;  %9051 = vst.msk [vmem:[#allocation3 + $0x28] sm:$0xff] %vm4474_vm5, %v9009_v8 }
 0x60f   : > { %v11289_v54 = vadd.f32 %v11247_v63, %v10954_v45  ;;  %9050 = vst.msk [vmem:[#allocation3 + $0x20] sm:$0xff] %vm4474_vm5, %v9008_v2  ;;  %v19525_v5 = vpop.f32.mrb[48].mxu1  ;;  %v19847_v10 = vpop.f32.mrb[244].mxu0  ;;  %v11911_v2 = vld [vmem:[#allocation2 + $0x163] sm:$0xff] }
 0x610   : > { %11332 = vst.msk [vmem:[#allocation3 + $0x8] sm:$0xff] %vm4474_vm5, %v11290_v44  ;;  %v9011_v40 = vadd.f32 %v19525_v5, %v8969_v27  ;;  %v8699_v35 = vpop.f32.mrb[49].mxu1  ;;  %v10974_v1 = vpop.f32.mrb[245].mxu0  ;;  %20012 = vmatmul.mubr.msk.f32.gmra.mrb[112].mxu1 %vm2264_vm4, %v11903_v26  ;;  %v11912_v27 = vld [vmem:[#allocation2 + $0x16b] sm:$0xff] }
 0x611   : > { %11331 = vst.msk [vmem:[#allocation3] sm:$0xff] %vm4474_vm5, %v11289_v54  ;;  %v11250_v17 = vld [vmem:[#allocation3 + $0x18] sm:$0xff]  ;;  %v9010_v11 = vadd.f32 %v8968_v13, %v8699_v35  ;;  %20014 = vmatprep.mubr.msk.f32.mxu1 %vm2264_vm4, %v11904_v18  ;;  %v8976_v54 = vld [vmem:[#allocation3 + $0x70] sm:$0xff]  ;;  %v8979_v18 = vld [vmem:[#allocation3 + $0x88] sm:$0xff] }
 0x612   : > { %v11292_v21 = vadd.f32 %v19844_v56, %v11250_v17  ;;  %v11249_v47 = vld [vmem:[#allocation3 + $0x10] sm:$0xff]  ;;  %9053 = vst.msk [vmem:[#allocation3 + $0x38] sm:$0xff] %vm4474_vm5, %v9011_v40 }
 0x613   : > { %v11291_v62 = vadd.f32 %v11249_v47, %v10964_v9  ;;  %9052 = vst.msk [vmem:[#allocation3 + $0x30] sm:$0xff] %vm4474_vm5, %v9010_v11  ;;  %v19528_v32 = vpop.f32.mrb[50].mxu1  ;;  %v19850_v43 = vpop.f32.mrb[246].mxu0  ;;  %v11913_v11 = vld [vmem:[#allocation2 + $0x173] sm:$0xff] }
 0x614   : > { %11334 = vst.msk [vmem:[#allocation3 + $0x18] sm:$0xff] %vm4474_vm5, %v11292_v21  ;;  %v9013_v57 = vadd.f32 %v19528_v32, %v8971_v25  ;;  %v8709_v37 = vpop.f32.mrb[51].mxu1  ;;  %v10984_v39 = vpop.f32.mrb[247].mxu0  ;;  %20015 = vmatmul.mubr.msk.f32.gmra.mrb[114].mxu1 %vm2264_vm4, %v11905_v51  ;;  %v11914_v25 = vld [vmem:[#allocation2 + $0x17b] sm:$0xff] }
 0x615   : > { %11333 = vst.msk [vmem:[#allocation3 + $0x10] sm:$0xff] %vm4474_vm5, %v11291_v62  ;;  %v11252_v58 = vld [vmem:[#allocation3 + $0x28] sm:$0xff]  ;;  %v9012_v19 = vadd.f32 %v8970_v15, %v8709_v37  ;;  %20017 = vmatprep.mubr.msk.f32.mxu1 %vm2264_vm4, %v11906_v0  ;;  %v8978_v62 = vld [vmem:[#allocation3 + $0x80] sm:$0xff]  ;;  %v8981_v0 = vld [vmem:[#allocation3 + $0x98] sm:$0xff] }
 0x616   : > { %v11294_v53 = vadd.f32 %v19847_v10, %v11252_v58  ;;  %v11251_v28 = vld [vmem:[#allocation3 + $0x20] sm:$0xff]  ;;  %9055 = vst.msk [vmem:[#allocation3 + $0x48] sm:$0xff] %vm4474_vm5, %v9013_v57 }
 0x617   : > { %v11293_v14 = vadd.f32 %v11251_v28, %v10974_v1  ;;  %9054 = vst.msk [vmem:[#allocation3 + $0x40] sm:$0xff] %vm4474_vm5, %v9012_v19  ;;  %v19531_v59 = vpop.f32.mrb[52].mxu1  ;;  %v19853_v34 = vpop.f32.mrb[248].mxu0  ;;  %v11915_v19 = vld [vmem:[#allocation2 + $0x183] sm:$0xf] }
 0x618   : > { %11336 = vst.msk [vmem:[#allocation3 + $0x28] sm:$0xff] %vm4474_vm5, %v11294_v53  ;;  %v9015_v36 = vadd.f32 %v19531_v59, %v8973_v42  ;;  %v8719_v61 = vpop.f32.mrb[53].mxu1  ;;  %v10994_v41 = vpop.f32.mrb[249].mxu0  ;;  %20018 = vmatmul.mubr.msk.f32.gmra.mrb[116].mxu1 %vm2264_vm4, %v11907_v50  ;;  %v12289_v42 = vld [vmem:[#allocation2 + $0x3c] sm:$0xff] }
 0x619   : > { %11335 = vst.msk [vmem:[#allocation3 + $0x20] sm:$0xff] %vm4474_vm5, %v11293_v14  ;;  %v11254_v6 = vld [vmem:[#allocation3 + $0x38] sm:$0xff]  ;;  %v9014_v24 = vadd.f32 %v8972_v7, %v8719_v61  ;;  %20020 = vmatprep.mubr.msk.f32.mxu1 %vm2264_vm4, %v11908_v22  ;;  %v8980_v14 = vld [vmem:[#allocation3 + $0x90] sm:$0xff]  ;;  %v12831_v7 = vsel %vm2526_vm3, %v24619_v49, 0  ;;  %v12291_v49 = vld [vmem:[#allocation2 + $0x4c] sm:$0xff] }
 0x61a   : > { %v11296_v48 = vadd.f32 %v19850_v43, %v11254_v6  ;;  %v11253_v31 = vld [vmem:[#allocation3 + $0x30] sm:$0xff]  ;;  %9057 = vst.msk [vmem:[#allocation3 + $0x58] sm:$0xff] %vm4474_vm5, %v9015_v36  ;;  %v8983_v6 = vld [vmem:[#allocation3 + $0xa8] sm:$0xff] }
 0x61b   : > { %v11295_v38 = vadd.f32 %v11253_v31, %v10984_v39  ;;  %9056 = vst.msk [vmem:[#allocation3 + $0x50] sm:$0xff] %vm4474_vm5, %v9014_v24  ;;  %v19534_v23 = vpop.f32.mrb[54].mxu1  ;;  %v19856_v20 = vpop.f32.mrb[250].mxu0  ;;  %v24704_v31 = vld [vmem:[%s25306_s1 + $0x80] sm:$0x7] }
 0x61c   : > { %11338 = vst.msk [vmem:[#allocation3 + $0x38] sm:$0xff] %vm4474_vm5, %v11296_v48  ;;  %v9017_v45 = vadd.f32 %v19534_v23, %v8975_v46  ;;  %v8729_v30 = vpop.f32.mrb[55].mxu1  ;;  %v11004_v3 = vpop.f32.mrb[251].mxu0  ;;  %20021 = vmatmul.mubr.msk.f32.gmra.mrb[118].mxu1 %vm2264_vm4, %v11909_v29  ;;  %v12290_v48 = vld [vmem:[#allocation2 + $0x44] sm:$0xff] }
 0x61d   : > { %11337 = vst.msk [vmem:[#allocation3 + $0x30] sm:$0xff] %vm4474_vm5, %v11295_v38  ;;  %v11256_v56 = vld [vmem:[#allocation3 + $0x48] sm:$0xff]  ;;  %v9016_v12 = vadd.f32 %v8974_v52, %v8729_v30  ;;  %20023 = vmatprep.mubr.msk.f32.mxu1 %vm2264_vm4, %v11910_v55  ;;  %v8982_v46 = vld [vmem:[#allocation3 + $0xa0] sm:$0xff] }
 0x61e   : > { %v11298_v8 = vadd.f32 %v19853_v34, %v11256_v56  ;;  %v11255_v33 = vld [vmem:[#allocation3 + $0x40] sm:$0xff]  ;;  %9059 = vst.msk [vmem:[#allocation3 + $0x68] sm:$0xff] %vm4474_vm5, %v9017_v45  ;;  %v8985_v56 = vld [vmem:[#allocation3 + $0xb8] sm:$0xff] }
 0x61f   : > { %v11297_v4 = vadd.f32 %v11255_v33, %v10994_v41  ;;  %9058 = vst.msk [vmem:[#allocation3 + $0x60] sm:$0xff] %vm4474_vm5, %v9016_v12  ;;  %v19537_v9 = vpop.f32.mrb[56].mxu1  ;;  %v19859_v16 = vpop.f32.mrb[252].mxu0 }
 0x620   : > { %11340 = vst.msk [vmem:[#allocation3 + $0x48] sm:$0xff] %vm4474_vm5, %v11298_v8  ;;  %v9019_v44 = vadd.f32 %v19537_v9, %v8977_v60  ;;  %v8739_v63 = vpop.f32.mrb[57].mxu1  ;;  %v11014_v5 = vpop.f32.mrb[253].mxu0  ;;  %20024 = vmatmul.mubr.msk.f32.gmra.mrb[120].mxu1 %vm2264_vm4, %v11911_v2  ;;  %v12292_v8 = vld [vmem:[#allocation2 + $0x54] sm:$0xff] }
 0x621   : > { %11339 = vst.msk [vmem:[#allocation3 + $0x40] sm:$0xff] %vm4474_vm5, %v11297_v4  ;;  %v11258_v10 = vld [vmem:[#allocation3 + $0x58] sm:$0xff]  ;;  %v9018_v26 = vadd.f32 %v8976_v54, %v8739_v63  ;;  %20026 = vmatprep.mubr.msk.f32.mxu1 %vm2264_vm4, %v11912_v27  ;;  %v8984_v9 = vld [vmem:[#allocation3 + $0xb0] sm:$0xff] }
 0x622   : > { %v11300_v40 = vadd.f32 %v19856_v20, %v11258_v10  ;;  %v11257_v35 = vld [vmem:[#allocation3 + $0x50] sm:$0xff]  ;;  %9061 = vst.msk [vmem:[#allocation3 + $0x78] sm:$0xff] %vm4474_vm5, %v9019_v44  ;;  %v8987_v10 = vld [vmem:[#allocation3 + $0xc8] sm:$0xff] }
 0x623   : > { %v11299_v13 = vadd.f32 %v11257_v35, %v11004_v3  ;;  %9060 = vst.msk [vmem:[#allocation3 + $0x70] sm:$0xff] %vm4474_vm5, %v9018_v26  ;;  %v19540_v1 = vpop.f32.mrb[58].mxu1  ;;  %v19862_v17 = vpop.f32.mrb[254].mxu0 }
 0x624   : > { %11342 = vst.msk [vmem:[#allocation3 + $0x58] sm:$0xff] %vm4474_vm5, %v11300_v40  ;;  %v9021_v21 = vadd.f32 %v19540_v1, %v8979_v18  ;;  %v8749_v47 = vpop.f32.mrb[59].mxu1  ;;  %v11024_v32 = vpop.f32.mrb[255].mxu0  ;;  %20027 = vmatmul.mubr.msk.f32.gmra.mrb[122].mxu1 %vm2264_vm4, %v11913_v11  ;;  %v12294_v40 = vld [vmem:[#allocation2 + $0x64] sm:$0xff] }
 0x625   : > { %11341 = vst.msk [vmem:[#allocation3 + $0x50] sm:$0xff] %vm4474_vm5, %v11299_v13  ;;  %v11260_v43 = vld [vmem:[#allocation3 + $0x68] sm:$0xff]  ;;  %v9020_v51 = vadd.f32 %v8978_v62, %v8749_v47  ;;  %20029 = vmatprep.mubr.msk.f32.mxu1 %vm2264_vm4, %v11914_v25  ;;  %v8986_v1 = vld [vmem:[#allocation3 + $0xc0] sm:$0xff] }
 0x626   : > { %v11302_v57 = vadd.f32 %v19859_v16, %v11260_v43  ;;  %v11259_v37 = vld [vmem:[#allocation3 + $0x60] sm:$0xff]  ;;  %9063 = vst.msk [vmem:[#allocation3 + $0x88] sm:$0xff] %vm4474_vm5, %v9021_v21  ;;  %v12293_v16 = vld [vmem:[#allocation2 + $0x5c] sm:$0xff] }
 0x627   : > { %v11301_v15 = vadd.f32 %v11259_v37, %v11014_v5  ;;  %9062 = vst.msk [vmem:[#allocation3 + $0x80] sm:$0xff] %vm4474_vm5, %v9020_v51  ;;  %v19543_v39 = vpop.f32.mrb[60].mxu1  ;;  %v19865_v58 = vpop.f32.mrb[0].mxu0  ;;  %v8989_v43 = vld [vmem:[#allocation3 + $0xd8] sm:$0xff] }
 0x628   : > { %11344 = vst.msk [vmem:[#allocation3 + $0x68] sm:$0xff] %vm4474_vm5, %v11302_v57  ;;  %v9023_v53 = vadd.f32 %v19543_v39, %v8981_v0  ;;  %v8759_v28 = vpop.f32.mrb[61].mxu1  ;;  %v11034_v59 = vpop.f32.mrb[1].mxu0  ;;  %20030 = vmatmul.mubr.msk.f32.gmra.mrb[124].mxu1 %vm2264_vm4, %v11915_v19  ;;  %v12296_v57 = vld [vmem:[#allocation2 + $0x74] sm:$0xff] }
 0x629   : > { %11343 = vst.msk [vmem:[#allocation3 + $0x60] sm:$0xff] %vm4474_vm5, %v11301_v15  ;;  %v11262_v34 = vld [vmem:[#allocation3 + $0x78] sm:$0xff]  ;;  %v9022_v50 = vadd.f32 %v8980_v14, %v8759_v28  ;;  %20034 = vmatprep.mubr.msk.f32.mxu1 %vm2264_vm4, %v12289_v42  ;;  %v8988_v39 = vld [vmem:[#allocation3 + $0xd0] sm:$0xff] }
 0x62a   : > { %v11304_v36 = vadd.f32 %v19862_v17, %v11262_v34  ;;  %v11261_v61 = vld [vmem:[#allocation3 + $0x70] sm:$0xff]  ;;  %9065 = vst.msk [vmem:[#allocation3 + $0x98] sm:$0xff] %vm4474_vm5, %v9023_v53  ;;  %v12295_v17 = vld [vmem:[#allocation2 + $0x6c] sm:$0xff] }
 0x62b   : > { %v11303_v41 = vadd.f32 %v11261_v61, %v11024_v32  ;;  %9064 = vst.msk [vmem:[#allocation3 + $0x90] sm:$0xff] %vm4474_vm5, %v9022_v50  ;;  %v19546_v22 = vpop.f32.mrb[62].mxu1  ;;  %v19868_v24 = vpop.f32.mrb[2].mxu0  ;;  %v8991_v34 = vld [vmem:[#allocation3 + $0xe8] sm:$0xff] }
 0x62c   : > { %11346 = vst.msk [vmem:[#allocation3 + $0x78] sm:$0xff] %vm4474_vm5, %v11304_v36  ;;  %v9025_v38 = vadd.f32 %v19546_v22, %v8983_v6  ;;  %v8769_v23 = vpop.f32.mrb[63].mxu1  ;;  %v11044_v20 = vpop.f32.mrb[3].mxu0  ;;  %20035 = vmatmul.mubr.msk.f32.vlgmr.msra.gmra.mrb[84].mxu1 %vm2264_vm4, %v12290_v48  ;;  %v12298_v36 = vld [vmem:[#allocation2 + $0x84] sm:$0xff]  ;;  %v12299_v6 = vld [vmem:[#allocation2 + $0x8c] sm:$0xff] }
 0x62d   : > { %11345 = vst.msk [vmem:[#allocation3 + $0x70] sm:$0xff] %vm4474_vm5, %v11303_v41  ;;  %v11264_v29 = vld [vmem:[#allocation3 + $0x88] sm:$0xff]  ;;  %v9024_v45 = vadd.f32 %v8982_v46, %v8769_v23  ;;  %20098 = vmatpush3.bf16.msra.mxu1 %v12831_v7  ;;  %20037 = vmatprep.mubr.msk.f32.mxu1 %vm2264_vm4, %v12291_v49  ;;  %v8990_v41 = vld [vmem:[#allocation3 + $0xe0] sm:$0xff]  ;;  %v8993_v49 = vld [vmem:[#allocation3 + $0xf8] sm:$0xff] }
 0x62e   : > { %v11306_v30 = vadd.f32 %v19865_v58, %v11264_v29  ;;  %v11263_v52 = vld [vmem:[#allocation3 + $0x80] sm:$0xff]  ;;  %9067 = vst.msk [vmem:[#allocation3 + $0xa8] sm:$0xff] %vm4474_vm5, %v9025_v38  ;;  %21275 = vmatprep.subr.msk.bf16.mxu1 %vm2526_vm3, %v24704_v31  ;;  %v12297_v58 = vld [vmem:[#allocation2 + $0x7c] sm:$0xff] }
 0x62f   : > { %v11305_v3 = vadd.f32 %v11263_v52, %v11034_v59  ;;  %9066 = vst.msk [vmem:[#allocation3 + $0xa0] sm:$0xff] %vm4474_vm5, %v9024_v45  ;;  %v19549_v55 = vpop.f32.mrb[64].mxu1  ;;  %v19871_v12 = vpop.f32.mrb[4].mxu0  ;;  %v12300_v45 = vld [vmem:[#allocation2 + $0x94] sm:$0xff] }
 0x630   : > { %11348 = vst.msk [vmem:[#allocation3 + $0x88] sm:$0xff] %vm4474_vm5, %v11306_v30  ;;  %v9027_v33 = vadd.f32 %v19549_v55, %v8985_v56  ;;  %v8779_v4 = vpop.f32.mrb[65].mxu1  ;;  %v11054_v60 = vpop.f32.mrb[5].mxu0  ;;  %20038 = vmatmul.mubr.msk.f32.gmra.mrb[86].mxu1 %vm2264_vm4, %v12292_v8  ;;  %v12301_v56 = vld [vmem:[#allocation2 + $0x9c] sm:$0xff] }
 0x631   : > { %11347 = vst.msk [vmem:[#allocation3 + $0x80] sm:$0xff] %vm4474_vm5, %v11305_v3  ;;  %v11266_v2 = vld [vmem:[#allocation3 + $0x98] sm:$0xff]  ;;  %v9026_v44 = vadd.f32 %v8984_v9, %v8779_v4  ;;  %20040 = vmatprep.mubr.msk.f32.mxu1 %vm2264_vm4, %v12293_v16  ;;  %v8992_v3 = vld [vmem:[#allocation3 + $0xf0] sm:$0xff]  ;;  %v8995_v16 = vld [vmem:[#allocation3 + $0x108] sm:$0xff] }
 0x632   : > { %v11308_v63 = vadd.f32 %v19868_v24, %v11266_v2  ;;  %v11265_v54 = vld [vmem:[#allocation3 + $0x90] sm:$0xff]  ;;  %9069 = vst.msk [vmem:[#allocation3 + $0xb8] sm:$0xff] %vm4474_vm5, %v9027_v33 }
 0x633   : > { %v11307_v5 = vadd.f32 %v11265_v54, %v11044_v20  ;;  %9068 = vst.msk [vmem:[#allocation3 + $0xb0] sm:$0xff] %vm4474_vm5, %v9026_v44  ;;  %v19552_v27 = vpop.f32.mrb[66].mxu1  ;;  %v19874_v26 = vpop.f32.mrb[6].mxu0  ;;  %v12302_v44 = vld [vmem:[#allocation2 + $0xa4] sm:$0xff] }
 0x634   : > { %11350 = vst.msk [vmem:[#allocation3 + $0x98] sm:$0xff] %vm4474_vm5, %v11308_v63  ;;  %v9029_v35 = vadd.f32 %v19552_v27, %v8987_v10  ;;  %v8789_v13 = vpop.f32.mrb[67].mxu1  ;;  %v11064_v18 = vpop.f32.mrb[7].mxu0  ;;  %20041 = vmatmul.mubr.msk.f32.gmra.mrb[88].mxu1 %vm2264_vm4, %v12294_v40  ;;  %v12303_v10 = vld [vmem:[#allocation2 + $0xac] sm:$0xff] }
 0x635   : > { %11349 = vst.msk [vmem:[#allocation3 + $0x90] sm:$0xff] %vm4474_vm5, %v11307_v5  ;;  %v11268_v11 = vld [vmem:[#allocation3 + $0xa8] sm:$0xff]  ;;  %v9028_v21 = vadd.f32 %v8986_v1, %v8789_v13  ;;  %20043 = vmatprep.mubr.msk.f32.mxu1 %vm2264_vm4, %v12295_v17  ;;  %v8994_v5 = vld [vmem:[#allocation3 + $0x100] sm:$0xff]  ;;  %v8997_v17 = vld [vmem:[#allocation3 + $0x118] sm:$0xff] }
 0x636   : > { %v11310_v47 = vadd.f32 %v19871_v12, %v11268_v11  ;;  %v11267_v62 = vld [vmem:[#allocation3 + $0xa0] sm:$0xff]  ;;  %9071 = vst.msk [vmem:[#allocation3 + $0xc8] sm:$0xff] %vm4474_vm5, %v9029_v35 }
 0x637   : > { %v11309_v32 = vadd.f32 %v11267_v62, %v11054_v60  ;;  %9070 = vst.msk [vmem:[#allocation3 + $0xc0] sm:$0xff] %vm4474_vm5, %v9028_v21  ;;  %v19555_v25 = vpop.f32.mrb[68].mxu1  ;;  %v19877_v51 = vpop.f32.mrb[8].mxu0  ;;  %v12304_v21 = vld [vmem:[#allocation2 + $0xb4] sm:$0xff] }
 0x638   : > { %11352 = vst.msk [vmem:[#allocation3 + $0xa8] sm:$0xff] %vm4474_vm5, %v11310_v47  ;;  %v9031_v37 = vadd.f32 %v19555_v25, %v8989_v43  ;;  %v8799_v15 = vpop.f32.mrb[69].mxu1  ;;  %v11074_v0 = vpop.f32.mrb[9].mxu0  ;;  %20044 = vmatmul.mubr.msk.f32.gmra.mrb[90].mxu1 %vm2264_vm4, %v12296_v57  ;;  %v12305_v43 = vld [vmem:[#allocation2 + $0xbc] sm:$0xff] }
 0x639   : > { %11351 = vst.msk [vmem:[#allocation3 + $0xa0] sm:$0xff] %vm4474_vm5, %v11309_v32  ;;  %v11270_v19 = vld [vmem:[#allocation3 + $0xb8] sm:$0xff]  ;;  %v9030_v53 = vadd.f32 %v8988_v39, %v8799_v15  ;;  %20046 = vmatprep.mubr.msk.f32.mxu1 %vm2264_vm4, %v12297_v58  ;;  %v8996_v32 = vld [vmem:[#allocation3 + $0x110] sm:$0xff]  ;;  %v8999_v58 = vld [vmem:[#allocation3 + $0x128] sm:$0xff] }
 0x63a   : > { %v11312_v28 = vadd.f32 %v19874_v26, %v11270_v19  ;;  %v11269_v14 = vld [vmem:[#allocation3 + $0xb0] sm:$0xff]  ;;  %9073 = vst.msk [vmem:[#allocation3 + $0xd8] sm:$0xff] %vm4474_vm5, %v9031_v37 }
 0x63b   : > { %v11311_v59 = vadd.f32 %v11269_v14, %v11064_v18  ;;  %9072 = vst.msk [vmem:[#allocation3 + $0xd0] sm:$0xff] %vm4474_vm5, %v9030_v53  ;;  %v19558_v42 = vpop.f32.mrb[70].mxu1  ;;  %v19880_v50 = vpop.f32.mrb[10].mxu0  ;;  %v12306_v53 = vld [vmem:[#allocation2 + $0xc4] sm:$0xff] }
 0x63c   : > { %11354 = vst.msk [vmem:[#allocation3 + $0xb8] sm:$0xff] %vm4474_vm5, %v11312_v28  ;;  %v9033_v61 = vadd.f32 %v19558_v42, %v8991_v34  ;;  %v8809_v7 = vpop.f32.mrb[71].mxu1  ;;  %v11084_v22 = vpop.f32.mrb[11].mxu0  ;;  %20047 = vmatmul.mubr.msk.f32.gmra.mrb[92].mxu1 %vm2264_vm4, %v12298_v36  ;;  %v12307_v34 = vld [vmem:[#allocation2 + $0xcc] sm:$0xff] }
 0x63d   : > { %11353 = vst.msk [vmem:[#allocation3 + $0xb0] sm:$0xff] %vm4474_vm5, %v11311_v59  ;;  %v11272_v24 = vld [vmem:[#allocation3 + $0xc8] sm:$0xff]  ;;  %v9032_v48 = vadd.f32 %v8990_v41, %v8809_v7  ;;  %20049 = vmatprep.mubr.msk.f32.mxu1 %vm2264_vm4, %v12299_v6  ;;  %v8998_v59 = vld [vmem:[#allocation3 + $0x120] sm:$0xff]  ;;  %v9001_v6 = vld [vmem:[#allocation3 + $0x138] sm:$0xff] }
 0x63e   : > { %v11314_v38 = vadd.f32 %v19877_v51, %v11272_v24  ;;  %v11271_v23 = vld [vmem:[#allocation3 + $0xc0] sm:$0xff]  ;;  %9075 = vst.msk [vmem:[#allocation3 + $0xe8] sm:$0xff] %vm4474_vm5, %v9033_v61 }
 0x63f   : > { %v11313_v46 = vadd.f32 %v11271_v23, %v11074_v0  ;;  %9074 = vst.msk [vmem:[#allocation3 + $0xe0] sm:$0xff] %vm4474_vm5, %v9032_v48  ;;  %v19561_v20 = vpop.f32.mrb[72].mxu1  ;;  %v19883_v29 = vpop.f32.mrb[12].mxu0  ;;  %v12308_v48 = vld [vmem:[#allocation2 + $0xd4] sm:$0xff] }
 0x640   : > { %11356 = vst.msk [vmem:[#allocation3 + $0xc8] sm:$0xff] %vm4474_vm5, %v11314_v38  ;;  %v9035_v30 = vadd.f32 %v19561_v20, %v8993_v49  ;;  %v8819_v52 = vpop.f32.mrb[73].mxu1  ;;  %v11094_v55 = vpop.f32.mrb[13].mxu0  ;;  %20050 = vmatmul.mubr.msk.f32.gmra.mrb[94].mxu1 %vm2264_vm4, %v12300_v45  ;;  %v12309_v49 = vld [vmem:[#allocation2 + $0xdc] sm:$0xff] }
 0x641   : > { %11355 = vst.msk [vmem:[#allocation3 + $0xc0] sm:$0xff] %vm4474_vm5, %v11313_v46  ;;  %v11274_v12 = vld [vmem:[#allocation3 + $0xd8] sm:$0xff]  ;;  %v9034_v8 = vadd.f32 %v8992_v3, %v8819_v52  ;;  %20052 = vmatprep.mubr.msk.f32.mxu1 %vm2264_vm4, %v12301_v56  ;;  %v9000_v46 = vld [vmem:[#allocation3 + $0x130] sm:$0xff]  ;;  %v9003_v56 = vld [vmem:[#allocation3 + $0x148] sm:$0xf] }
 0x642   : > { %v11316_v33 = vadd.f32 %v19880_v50, %v11274_v12  ;;  %v11273_v4 = vld [vmem:[#allocation3 + $0xd0] sm:$0xff]  ;;  %9077 = vst.msk [vmem:[#allocation3 + $0xf8] sm:$0xff] %vm4474_vm5, %v9035_v30 }
 0x643   : > { %v11315_v9 = vadd.f32 %v11273_v4, %v11084_v22  ;;  %9076 = vst.msk [vmem:[#allocation3 + $0xf0] sm:$0xff] %vm4474_vm5, %v9034_v8  ;;  %v19564_v60 = vpop.f32.mrb[74].mxu1  ;;  %v19886_v2 = vpop.f32.mrb[14].mxu0  ;;  %v12310_v8 = vld [vmem:[#allocation2 + $0xe4] sm:$0xff] }
 0x644   : > { %11358 = vst.msk [vmem:[#allocation3 + $0xd8] sm:$0xff] %vm4474_vm5, %v11316_v33  ;;  %v9037_v63 = vadd.f32 %v19564_v60, %v8995_v16  ;;  %v8829_v54 = vpop.f32.mrb[75].mxu1  ;;  %v11104_v27 = vpop.f32.mrb[15].mxu0  ;;  %20053 = vmatmul.mubr.msk.f32.gmra.mrb[96].mxu1 %vm2264_vm4, %v12302_v44  ;;  %v12311_v16 = vld [vmem:[#allocation2 + $0xec] sm:$0xff] }
 0x645   : > { %11357 = vst.msk [vmem:[#allocation3 + $0xd0] sm:$0xff] %vm4474_vm5, %v11315_v9  ;;  %v11276_v26 = vld [vmem:[#allocation3 + $0xe8] sm:$0xff]  ;;  %v9036_v40 = vadd.f32 %v8994_v5, %v8829_v54  ;;  %20055 = vmatprep.mubr.msk.f32.mxu1 %vm2264_vm4, %v12303_v10  ;;  %v9002_v9 = vld [vmem:[#allocation3 + $0x140] sm:$0xff] }
 0x646   : > { %v11318_v35 = vadd.f32 %v19883_v29, %v11276_v26  ;;  %v11275_v13 = vld [vmem:[#allocation3 + $0xe0] sm:$0xff]  ;;  %9079 = vst.msk [vmem:[#allocation3 + $0x108] sm:$0xff] %vm4474_vm5, %v9037_v63  ;;  %v12312_v10 = vld [vmem:[#allocation2 + $0xf4] sm:$0xff] }
 0x647   : > { %v11317_v1 = vadd.f32 %v11275_v13, %v11094_v55  ;;  %9078 = vst.msk [vmem:[#allocation3 + $0x100] sm:$0xff] %vm4474_vm5, %v9036_v40  ;;  %v19567_v18 = vpop.f32.mrb[76].mxu1  ;;  %v19889_v11 = vpop.f32.mrb[16].mxu0  ;;  %v12313_v40 = vld [vmem:[#allocation2 + $0xfc] sm:$0xff] }
 0x648   : > { %11360 = vst.msk [vmem:[#allocation3 + $0xe8] sm:$0xff] %vm4474_vm5, %v11318_v35  ;;  %v9039_v47 = vadd.f32 %v19567_v18, %v8997_v17  ;;  %v8839_v62 = vpop.f32.mrb[77].mxu1  ;;  %v11114_v25 = vpop.f32.mrb[17].mxu0  ;;  %20056 = vmatmul.mubr.msk.f32.gmra.mrb[98].mxu1 %vm2264_vm4, %v12304_v21  ;;  %v12314_v17 = vld [vmem:[#allocation2 + $0x104] sm:$0xff] }
 0x649   : > { %11359 = vst.msk [vmem:[#allocation3 + $0xe0] sm:$0xff] %vm4474_vm5, %v11317_v1  ;;  %v11278_v51 = vld [vmem:[#allocation3 + $0xf8] sm:$0xff]  ;;  %v9038_v57 = vadd.f32 %v8996_v32, %v8839_v62  ;;  %20058 = vmatprep.mubr.msk.f32.mxu1 %vm2264_vm4, %v12305_v43 }
 0x64a   : > { %v11320_v37 = vadd.f32 %v19886_v2, %v11278_v51  ;;  %v11277_v15 = vld [vmem:[#allocation3 + $0xf0] sm:$0xff]  ;;  %9081 = vst.msk [vmem:[#allocation3 + $0x118] sm:$0xff] %vm4474_vm5, %v9039_v47  ;;  %v12318_v51 = vld [vmem:[#allocation2 + $0x124] sm:$0xff] }
 0x64b   : > { %v11319_v39 = vadd.f32 %v11277_v15, %v11104_v27  ;;  %9080 = vst.msk [vmem:[#allocation3 + $0x110] sm:$0xff] %vm4474_vm5, %v9038_v57  ;;  %v19570_v0 = vpop.f32.mrb[78].mxu1  ;;  %v19892_v19 = vpop.f32.mrb[18].mxu0  ;;  %v12317_v43 = vld [vmem:[#allocation2 + $0x11c] sm:$0xff]  ;;  %v12319_v57 = vld [vmem:[#allocation2 + $0x12c] sm:$0xff] }
 0x64c   : > { %11362 = vst.msk [vmem:[#allocation3 + $0xf8] sm:$0xff] %vm4474_vm5, %v11320_v37  ;;  %v9041_v28 = vadd.f32 %v19570_v0, %v8999_v58  ;;  %v8849_v14 = vpop.f32.mrb[79].mxu1  ;;  %v11124_v42 = vpop.f32.mrb[19].mxu0  ;;  %20059 = vmatmul.mubr.msk.f32.gmra.mrb[100].mxu1 %vm2264_vm4, %v12306_v53  ;;  %v12320_v37 = vld [vmem:[#allocation2 + $0x134] sm:$0xff]  ;;  %v12321_v15 = vld [vmem:[#allocation2 + $0x13c] sm:$0xff]  ;;  %v12323_v0 = vld [vmem:[#allocation2 + $0x14c] sm:$0xff] }
 0x64d   : > { %11361 = vst.msk [vmem:[#allocation3 + $0xf0] sm:$0xff] %vm4474_vm5, %v11319_v39  ;;  %v11280_v50 = vld [vmem:[#allocation3 + $0x108] sm:$0xff]  ;;  %v9040_v36 = vadd.f32 %v8998_v59, %v8849_v14  ;;  %20061 = vmatprep.mubr.msk.f32.mxu1 %vm2264_vm4, %v12307_v34  ;;  %v12322_v39 = vld [vmem:[#allocation2 + $0x144] sm:$0xff]  ;;  %v12329_v59 = vld [vmem:[#allocation2 + $0x17c] sm:$0xff] }
 0x64e   : > { %v11322_v61 = vadd.f32 %v19889_v11, %v11280_v50  ;;  %v11279_v7 = vld [vmem:[#allocation3 + $0x100] sm:$0xff]  ;;  %9083 = vst.msk [vmem:[#allocation3 + $0x128] sm:$0xff] %vm4474_vm5, %v9041_v28  ;;  %v12324_v58 = vld [vmem:[#allocation2 + $0x154] sm:$0xff]  ;;  %v13203_v50 = vsel %vm2526_vm3, %v24704_v31, 0 }
 0x64f   : > { %v11321_v41 = vadd.f32 %v11279_v7, %v11114_v25  ;;  %9082 = vst.msk [vmem:[#allocation3 + $0x120] sm:$0xff] %vm4474_vm5, %v9040_v36  ;;  %v19573_v22 = vpop.f32.mrb[80].mxu1  ;;  %v19895_v24 = vpop.f32.mrb[20].mxu0  ;;  %v12315_v11 = vld [vmem:[#allocation2 + $0x10c] sm:$0xff]  ;;  %v12316_v25 = vld [vmem:[#allocation2 + $0x114] sm:$0xff]  ;;  %v12326_v53 = vld [vmem:[#allocation2 + $0x164] sm:$0xff] }
 0x650   : > { %11364 = vst.msk [vmem:[#allocation3 + $0x108] sm:$0xff] %vm4474_vm5, %v11322_v61  ;;  %v9043_v38 = vadd.f32 %v19573_v22, %v9001_v6  ;;  %v8859_v23 = vpop.f32.mrb[81].mxu1  ;;  %v11134_v20 = vpop.f32.mrb[21].mxu0  ;;  %20062 = vmatmul.mubr.msk.f32.gmra.mrb[102].mxu1 %vm2264_vm4, %v12308_v48  ;;  %v12327_v28 = vld [vmem:[#allocation2 + $0x16c] sm:$0xff]  ;;  %v12328_v14 = vld [vmem:[#allocation2 + $0x174] sm:$0xff]  ;;  %v11374_v36 = vld [vmem:[#allocation2 + $0x40] sm:$0xff] }
 0x651   : > { %11363 = vst.msk [vmem:[#allocation3 + $0x100] sm:$0xff] %vm4474_vm5, %v11321_v41  ;;  %v11282_v29 = vld [vmem:[#allocation3 + $0x118] sm:$0xff]  ;;  %v9042_v45 = vadd.f32 %v9000_v46, %v8859_v23  ;;  %20064 = vmatprep.mubr.msk.f32.mxu1 %vm2264_vm4, %v12309_v49  ;;  %v11373_v34 = vld [vmem:[#allocation2 + $0x38] sm:$0xff]  ;;  %v11375_v61 = vld [vmem:[#allocation2 + $0x48] sm:$0xff] }
 0x652   : > { %v11324_v30 = vadd.f32 %v19892_v19, %v11282_v29  ;;  %v11281_v52 = vld [vmem:[#allocation3 + $0x110] sm:$0xff]  ;;  %9085 = vst.msk [vmem:[#allocation3 + $0x138] sm:$0xff] %vm4474_vm5, %v9043_v38  ;;  %v11376_v7 = vld [vmem:[#allocation2 + $0x50] sm:$0xff]  ;;  %v11378_v22 = vld [vmem:[#allocation2 + $0x60] sm:$0xff] }
 0x653   : > { %v11323_v3 = vadd.f32 %v11281_v52, %v11124_v42  ;;  %9084 = vst.msk [vmem:[#allocation3 + $0x130] sm:$0xff] %vm4474_vm5, %v9042_v45  ;;  %v19576_v55 = vpop.f32.mrb[82].mxu1  ;;  %v19898_v12 = vpop.f32.mrb[22].mxu0  ;;  %v12325_v19 = vld [vmem:[#allocation2 + $0x15c] sm:$0xff]  ;;  %v12330_v42 = vld [vmem:[#allocation2 + $0x184] sm:$0xf] }
 0x654   : > { %11366 = vst.msk [vmem:[#allocation3 + $0x118] sm:$0xff] %vm4474_vm5, %v11324_v30  ;;  %v9045_v33 = vadd.f32 %v19576_v55, %v9003_v56  ;;  %v8869_v4 = vpop.f32.mrb[83].mxu1  ;;  %v11144_v60 = vpop.f32.mrb[23].mxu0  ;;  %20065 = vmatmul.mubr.msk.f32.gmra.mrb[104].mxu1 %vm2264_vm4, %v12310_v8  ;;  %v11377_v41 = vld [vmem:[#allocation2 + $0x58] sm:$0xff]  ;;  %v11379_v6 = vld [vmem:[#allocation2 + $0x68] sm:$0xff]  ;;  %v11380_v31 = vld [vmem:[#allocation2 + $0x70] sm:$0xff] }
 0x655   : > { %11365 = vst.msk [vmem:[#allocation3 + $0x110] sm:$0xff] %vm4474_vm5, %v11323_v3  ;;  %v11284_v2 = vld [vmem:[#allocation3 + $0x128] sm:$0xff]  ;;  %v9044_v44 = vadd.f32 %v9002_v9, %v8869_v4  ;;  %20067 = vmatprep.mubr.msk.f32.mxu1 %vm2264_vm4, %v12311_v16  ;;  %v11382_v48 = vld [vmem:[#allocation2 + $0x80] sm:$0xff]  ;;  %v11383_v38 = vld [vmem:[#allocation2 + $0x88] sm:$0xff]  ;;  %v21537_v56 = vmov 0.0  }
 0x656   : > { %v11326_v63 = vadd.f32 %v19895_v24, %v11284_v2  ;;  %v11283_v54 = vld [vmem:[#allocation3 + $0x120] sm:$0xff]  ;;  %9087 = vst.msk [vmem:[#allocation3 + $0x148] sm:$0xf] %vm4516_vm6, %v9045_v33  ;;  %v11381_v24 = vld [vmem:[#allocation2 + $0x78] sm:$0xff]  ;;  %v11384_v23 = vld [vmem:[#allocation2 + $0x90] sm:$0xff]  ;;  %20227 = vmatprep.subr.bf16.mxu0 %v21537_v56  ;;  %20229 = vmatprep.mubr.msk.f32.mxu0 %vm21538_vm7, %v21537_v56 }
 0x657   : > { %v11325_v5 = vadd.f32 %v11283_v54, %v11134_v20  ;;  %9086 = vst.msk [vmem:[#allocation3 + $0x140] sm:$0xff] %vm4474_vm5, %v9044_v44  ;;  %v19901_v27 = vpop.f32.mrb[24].mxu0  ;;  %v11385_v46 = vld [vmem:[#allocation2 + $0x98] sm:$0xff]  ;;  %v11386_v20 = vld [vmem:[#allocation2 + $0xa0] sm:$0xff]  ;;  %v11387_v49 = vld [vmem:[#allocation2 + $0xa8] sm:$0xff] }
 0x658   : > { %11368 = vst.msk [vmem:[#allocation3 + $0x128] sm:$0xff] %vm4474_vm5, %v11326_v63  ;;  %v11154_v26 = vpop.f32.mrb[25].mxu0  ;;  %20068 = vmatmul.mubr.msk.f32.gmra.mrb[106].mxu1 %vm2264_vm4, %v12312_v10  ;;  %v11388_v29 = vld [vmem:[#allocation2 + $0xb0] sm:$0xff]  ;;  %v11389_v45 = vld [vmem:[#allocation2 + $0xb8] sm:$0xff]  ;;  %v11390_v30 = vld [vmem:[#allocation2 + $0xc0] sm:$0xff] }
 0x659   : > { %11367 = vst.msk [vmem:[#allocation3 + $0x120] sm:$0xff] %vm4474_vm5, %v11325_v5  ;;  %v11286_v35 = vld [vmem:[#allocation3 + $0x138] sm:$0xff]  ;;  %20070 = vmatprep.mubr.msk.f32.mxu1 %vm2264_vm4, %v12313_v40  ;;  %v11391_v52 = vld [vmem:[#allocation2 + $0xc8] sm:$0xff]  ;;  %v11392_v3 = vld [vmem:[#allocation2 + $0xd0] sm:$0xff] }
 0x65a   : > { %v11328_v13 = vadd.f32 %v19898_v12, %v11286_v35  ;;  %v11285_v1 = vld [vmem:[#allocation3 + $0x130] sm:$0xff]  ;;  %v11394_v12 = vld [vmem:[#allocation2 + $0xe0] sm:$0xff]  ;;  %v11395_v8 = vld [vmem:[#allocation2 + $0xe8] sm:$0xff] }
 0x65b   : > { %v11327_v18 = vadd.f32 %v11285_v1, %v11144_v60  ;;  %v11393_v55 = vld [vmem:[#allocation2 + $0xd8] sm:$0xff]  ;;  %v11396_v33 = vld [vmem:[#allocation2 + $0xf0] sm:$0xff]  ;;  %v11398_v9 = vld [vmem:[#allocation2 + $0x100] sm:$0xff] }
 0x65c   : > { %11370 = vst.msk [vmem:[#allocation3 + $0x138] sm:$0xff] %vm4474_vm5, %v11328_v13  ;;  %20071 = vmatmul.mubr.msk.f32.gmra.mrb[108].mxu1 %vm2264_vm4, %v12314_v17  ;;  %v11397_v4 = vld [vmem:[#allocation2 + $0xf8] sm:$0xff]  ;;  %v11399_v60 = vld [vmem:[#allocation2 + $0x108] sm:$0xff]  ;;  %v11400_v16 = vld [vmem:[#allocation2 + $0x110] sm:$0xff] }
 0x65d   : > { %11369 = vst.msk [vmem:[#allocation3 + $0x130] sm:$0xff] %vm4474_vm5, %v11327_v18  ;;  %v11288_v21 = vld [vmem:[#allocation3 + $0x148] sm:$0xf]  ;;  %20073 = vmatprep.mubr.msk.f32.mxu1 %vm2264_vm4, %v12315_v11  ;;  %v11401_v2 = vld [vmem:[#allocation2 + $0x118] sm:$0xff]  ;;  %v11402_v44 = vld [vmem:[#allocation2 + $0x120] sm:$0xff] }
 0x65e   : > { %v11330_v47 = vadd.f32 %v19901_v27, %v11288_v21  ;;  %v11287_v62 = vld [vmem:[#allocation3 + $0x140] sm:$0xff]  ;;  %v11404_v54 = vld [vmem:[#allocation2 + $0x130] sm:$0xff]  ;;  %v11405_v5 = vld [vmem:[#allocation2 + $0x138] sm:$0xff] }
 0x65f   : > { %v11329_v32 = vadd.f32 %v11287_v62, %v11154_v26  ;;  %v11403_v63 = vld [vmem:[#allocation2 + $0x128] sm:$0xff]  ;;  %v11406_v27 = vld [vmem:[#allocation2 + $0x140] sm:$0xff]  ;;  %v11408_v26 = vld [vmem:[#allocation2 + $0x150] sm:$0xff] }
 0x660   : > { %11372 = vst.msk [vmem:[#allocation3 + $0x148] sm:$0xf] %vm4516_vm6, %v11330_v47  ;;  %20074 = vmatmul.mubr.msk.f32.gmra.mrb[110].mxu1 %vm2264_vm4, %v12316_v25  ;;  %v11407_v10 = vld [vmem:[#allocation2 + $0x148] sm:$0xff]  ;;  %v11409_v40 = vld [vmem:[#allocation2 + $0x158] sm:$0xff]  ;;  %v11410_v35 = vld [vmem:[#allocation2 + $0x160] sm:$0xff] }
 0x661   : > { %11371 = vst.msk [vmem:[#allocation3 + $0x140] sm:$0xff] %vm4474_vm5, %v11329_v32  ;;  %20076 = vmatprep.mubr.msk.f32.mxu1 %vm2264_vm4, %v12317_v43  ;;  %v11411_v13 = vld [vmem:[#allocation2 + $0x168] sm:$0xff]  ;;  %v11412_v1 = vld [vmem:[#allocation2 + $0x170] sm:$0xff]  ;;  %v11413_v18 = vld [vmem:[#allocation2 + $0x178] sm:$0xff] }
 0x662   : > { %v11414_v17 = vld [vmem:[#allocation2 + $0x180] sm:$0xf]  ;;  %v11833_v47 = vld [vmem:[#allocation2 + $0x4a] sm:$0xff]  ;;  %v11834_v62 = vld [vmem:[#allocation2 + $0x52] sm:$0xff] }
 0x663   : > { %v11831_v11 = vld [vmem:[#allocation2 + $0x3a] sm:$0xff]  ;;  %v11832_v21 = vld [vmem:[#allocation2 + $0x42] sm:$0xff]  ;;  %v11837_v43 = vld [vmem:[#allocation2 + $0x6a] sm:$0xff] }
 0x664   : > { %20077 = vmatmul.mubr.msk.f32.gmra.mrb[112].mxu1 %vm2264_vm4, %v12318_v51  ;;  %v11835_v32 = vld [vmem:[#allocation2 + $0x5a] sm:$0xff]  ;;  %v11836_v25 = vld [vmem:[#allocation2 + $0x62] sm:$0xff]  ;;  %v11838_v51 = vld [vmem:[#allocation2 + $0x72] sm:$0xff] }
 0x665   : > { %20079 = vmatprep.mubr.msk.f32.mxu1 %vm2264_vm4, %v12319_v57  ;;  %v11839_v57 = vld [vmem:[#allocation2 + $0x7a] sm:$0xff] }
 0x668   : > { %20080 = vmatmul.mubr.msk.f32.gmra.mrb[114].mxu1 %vm2264_vm4, %v12320_v37  ;;  %v11840_v37 = vld [vmem:[#allocation2 + $0x82] sm:$0xff] }
 0x669   : > { %20082 = vmatprep.mubr.msk.f32.mxu1 %vm2264_vm4, %v12321_v15  ;;  %v11841_v15 = vld [vmem:[#allocation2 + $0x8a] sm:$0xff] }
 0x66c   : > { %20083 = vmatmul.mubr.msk.f32.gmra.mrb[116].mxu1 %vm2264_vm4, %v12322_v39  ;;  %v11842_v39 = vld [vmem:[#allocation2 + $0x92] sm:$0xff] }
 0x66d   : > { %20085 = vmatprep.mubr.msk.f32.mxu1 %vm2264_vm4, %v12323_v0  ;;  %v11843_v0 = vld [vmem:[#allocation2 + $0x9a] sm:$0xff] }
 0x670   : > { %20086 = vmatmul.mubr.msk.f32.gmra.mrb[118].mxu1 %vm2264_vm4, %v12324_v58  ;;  %v11844_v58 = vld [vmem:[#allocation2 + $0xa2] sm:$0xff] }
 0x671   : > { %20088 = vmatprep.mubr.msk.f32.mxu1 %vm2264_vm4, %v12325_v19  ;;  %v11845_v19 = vld [vmem:[#allocation2 + $0xaa] sm:$0xff] }
 0x674   : > { %20089 = vmatmul.mubr.msk.f32.gmra.mrb[120].mxu1 %vm2264_vm4, %v12326_v53  ;;  %v11846_v53 = vld [vmem:[#allocation2 + $0xb2] sm:$0xff] }
 0x675   : > { %20091 = vmatprep.mubr.msk.f32.mxu1 %vm2264_vm4, %v12327_v28  ;;  %v11847_v28 = vld [vmem:[#allocation2 + $0xba] sm:$0xff] }
 0x678   : > { %20092 = vmatmul.mubr.msk.f32.gmra.mrb[122].mxu1 %vm2264_vm4, %v12328_v14  ;;  %v11848_v14 = vld [vmem:[#allocation2 + $0xc2] sm:$0xff] }
 0x679   : > { %20094 = vmatprep.mubr.msk.f32.mxu1 %vm2264_vm4, %v12329_v59  ;;  %v11849_v59 = vld [vmem:[#allocation2 + $0xca] sm:$0xff] }
 0x67c   : > { %20095 = vmatmul.mubr.msk.f32.gmra.mrb[124].mxu1 %vm2264_vm4, %v12330_v42  ;;  %v11850_v42 = vld [vmem:[#allocation2 + $0xd2] sm:$0xff] }
 0x67d   : > { %20099 = vmatprep.mubr.msk.f32.mxu1 %vm2264_vm4, %v11373_v34  ;;  %v11851_v34 = vld [vmem:[#allocation2 + $0xda] sm:$0xff] }
 0x680   : > { %20100 = vmatmul.mubr.msk.f32.vlgmr.msra.gmra.mrb[84].mxu1 %vm2264_vm4, %v11374_v36  ;;  %v11853_v36 = vld [vmem:[#allocation2 + $0xea] sm:$0xff] }
 0x681   : > { %20163 = vmatpush3.bf16.msra.mxu1 %v13203_v50  ;;  %20102 = vmatprep.mubr.msk.f32.mxu1 %vm2264_vm4, %v11375_v61  ;;  %v11852_v50 = vld [vmem:[#allocation2 + $0xe2] sm:$0xff]  ;;  %v11854_v61 = vld [vmem:[#allocation2 + $0xf2] sm:$0xff] }
 0x682   : > { %20247 = vmatprep.subr.bf16.mxu1 %v21537_v56 }
 0x684   : > { %20103 = vmatmul.mubr.msk.f32.gmra.mrb[86].mxu1 %vm2264_vm4, %v11376_v7  ;;  %v11855_v7 = vld [vmem:[#allocation2 + $0xfa] sm:$0xff] }
 0x685   : > { %20105 = vmatprep.mubr.msk.f32.mxu1 %vm2264_vm4, %v11377_v41  ;;  %v11856_v41 = vld [vmem:[#allocation2 + $0x102] sm:$0xff] }
 0x688   : > { %20106 = vmatmul.mubr.msk.f32.gmra.mrb[88].mxu1 %vm2264_vm4, %v11378_v22  ;;  %v11857_v22 = vld [vmem:[#allocation2 + $0x10a] sm:$0xff] }
 0x689   : > { %20108 = vmatprep.mubr.msk.f32.mxu1 %vm2264_vm4, %v11379_v6  ;;  %v11858_v6 = vld [vmem:[#allocation2 + $0x112] sm:$0xff] }
 0x68c   : > { %20109 = vmatmul.mubr.msk.f32.gmra.mrb[90].mxu1 %vm2264_vm4, %v11380_v31  ;;  %v11859_v31 = vld [vmem:[#allocation2 + $0x11a] sm:$0xff] }
 0x68d   : > { %20111 = vmatprep.mubr.msk.f32.mxu1 %vm2264_vm4, %v11381_v24  ;;  %v11860_v24 = vld [vmem:[#allocation2 + $0x122] sm:$0xff] }
 0x690   : > { %20112 = vmatmul.mubr.msk.f32.gmra.mrb[92].mxu1 %vm2264_vm4, %v11382_v48  ;;  %v11861_v48 = vld [vmem:[#allocation2 + $0x12a] sm:$0xff] }
 0x691   : > { %20114 = vmatprep.mubr.msk.f32.mxu1 %vm2264_vm4, %v11383_v38  ;;  %v11862_v38 = vld [vmem:[#allocation2 + $0x132] sm:$0xff] }
 0x694   : > { %20115 = vmatmul.mubr.msk.f32.gmra.mrb[94].mxu1 %vm2264_vm4, %v11384_v23  ;;  %v11863_v23 = vld [vmem:[#allocation2 + $0x13a] sm:$0xff] }
 0x695   : > { %20117 = vmatprep.mubr.msk.f32.mxu1 %vm2264_vm4, %v11385_v46  ;;  %v11864_v46 = vld [vmem:[#allocation2 + $0x142] sm:$0xff] }
 0x698   : > { %20118 = vmatmul.mubr.msk.f32.gmra.mrb[96].mxu1 %vm2264_vm4, %v11386_v20  ;;  %v11865_v20 = vld [vmem:[#allocation2 + $0x14a] sm:$0xff] }
 0x699   : > { %20120 = vmatprep.mubr.msk.f32.mxu1 %vm2264_vm4, %v11387_v49  ;;  %v11866_v49 = vld [vmem:[#allocation2 + $0x152] sm:$0xff] }
 0x69c   : > { %20121 = vmatmul.mubr.msk.f32.gmra.mrb[98].mxu1 %vm2264_vm4, %v11388_v29  ;;  %v11867_v29 = vld [vmem:[#allocation2 + $0x15a] sm:$0xff] }
 0x69d   : > { %20123 = vmatprep.mubr.msk.f32.mxu1 %vm2264_vm4, %v11389_v45  ;;  %v11868_v45 = vld [vmem:[#allocation2 + $0x162] sm:$0xff] }
 0x6a0   : > { %20124 = vmatmul.mubr.msk.f32.gmra.mrb[100].mxu1 %vm2264_vm4, %v11390_v30  ;;  %v11869_v30 = vld [vmem:[#allocation2 + $0x16a] sm:$0xff] }
 0x6a1   : > { %20126 = vmatprep.mubr.msk.f32.mxu1 %vm2264_vm4, %v11391_v52  ;;  %v11870_v52 = vld [vmem:[#allocation2 + $0x172] sm:$0xff] }
 0x6a4   : > { %20127 = vmatmul.mubr.msk.f32.gmra.mrb[102].mxu1 %vm2264_vm4, %v11392_v3  ;;  %v11871_v3 = vld [vmem:[#allocation2 + $0x17a] sm:$0xff] }
 0x6a5   : > { %20129 = vmatprep.mubr.msk.f32.mxu1 %vm2264_vm4, %v11393_v55  ;;  %v11872_v55 = vld [vmem:[#allocation2 + $0x182] sm:$0xf] }
 0x6a8   : > { %20130 = vmatmul.mubr.msk.f32.gmra.mrb[104].mxu1 %vm2264_vm4, %v11394_v12  ;;  %v21422_v12 = vld [vmem:[%s25306_s1 + $0x94] sm:$0xff]  }
 0x6a9   : > { %20132 = vmatprep.mubr.msk.f32.mxu1 %vm2264_vm4, %v11395_v8  ;;  %20228 = vmatpush3.bf16.msra.mxu0 %v21422_v12  ;;  %v21423_v8 = vld [vmem:[%s25306_s1 + $0xd4] sm:$0xff]  }
 0x6aa   : > { %20232 = vmatprep.subr.bf16.mxu0 %v21537_v56 }
 0x6ac   : > { %20133 = vmatmul.mubr.msk.f32.gmra.mrb[106].mxu1 %vm2264_vm4, %v11396_v33 }
 0x6ad   : > { %20135 = vmatprep.mubr.msk.f32.mxu1 %vm2264_vm4, %v11397_v4  ;;  %v13533_v4 = vld [vmem:[#allocation3 + $0x8] sm:$0xff] }
 0x6b0   : > { %20136 = vmatmul.mubr.msk.f32.gmra.mrb[108].mxu1 %vm2264_vm4, %v11398_v9 }
 0x6b1   : > { %20138 = vmatprep.mubr.msk.f32.mxu1 %vm2264_vm4, %v11399_v60 }
 0x6b4   : > { %20139 = vmatmul.mubr.msk.f32.gmra.mrb[110].mxu1 %vm2264_vm4, %v11400_v16  ;;  %v13532_v16 = vld [vmem:[#allocation3] sm:$0xff] }
 0x6b5   : > { %20141 = vmatprep.mubr.msk.f32.mxu1 %vm2264_vm4, %v11401_v2 }
 0x6b8   : > { %20142 = vmatmul.mubr.msk.f32.gmra.mrb[112].mxu1 %vm2264_vm4, %v11402_v44 }
 0x6b9   : > { %20144 = vmatprep.mubr.msk.f32.mxu1 %vm2264_vm4, %v11403_v63  ;;  %v13535_v63 = vld [vmem:[#allocation3 + $0x18] sm:$0xff] }
 0x6bc   : > { %20145 = vmatmul.mubr.msk.f32.gmra.mrb[114].mxu1 %vm2264_vm4, %v11404_v54 }
 0x6bd   : > { %20147 = vmatprep.mubr.msk.f32.mxu1 %vm2264_vm4, %v11405_v5 }
 0x6c0   : > { %20148 = vmatmul.mubr.msk.f32.gmra.mrb[116].mxu1 %vm2264_vm4, %v11406_v27  ;;  %v13534_v27 = vld [vmem:[#allocation3 + $0x10] sm:$0xff] }
 0x6c1   : > { %20150 = vmatprep.mubr.msk.f32.mxu1 %vm2264_vm4, %v11407_v10 }
 0x6c4   : > { %20151 = vmatmul.mubr.msk.f32.gmra.mrb[118].mxu1 %vm2264_vm4, %v11408_v26 }
 0x6c5   : > { %20153 = vmatprep.mubr.msk.f32.mxu1 %vm2264_vm4, %v11409_v40  ;;  %v13537_v40 = vld [vmem:[#allocation3 + $0x28] sm:$0xff] }
 0x6c8   : > { %20154 = vmatmul.mubr.msk.f32.gmra.mrb[120].mxu1 %vm2264_vm4, %v11410_v35 }
 0x6c9   : > { %20156 = vmatprep.mubr.msk.f32.mxu1 %vm2264_vm4, %v11411_v13 }
 0x6cc   : > { %20157 = vmatmul.mubr.msk.f32.gmra.mrb[122].mxu1 %vm2264_vm4, %v11412_v1  ;;  %v13536_v1 = vld [vmem:[#allocation3 + $0x20] sm:$0xff] }
 0x6cd   : > { %20159 = vmatprep.mubr.msk.f32.mxu1 %vm2264_vm4, %v11413_v18 }
 0x6d0   : > { %20160 = vmatmul.mubr.msk.f32.gmra.mrb[124].mxu1 %vm2264_vm4, %v11414_v17 }
 0x6d1   : > { %20164 = vmatprep.mubr.msk.f32.mxu1 %vm2264_vm4, %v11831_v11  ;;  %v13539_v11 = vld [vmem:[#allocation3 + $0x38] sm:$0xff] }
 0x6d4   : > { %20165 = vmatmul.mubr.msk.f32.vlgmr.msra.gmra.mrb[84].mxu1 %vm2264_vm4, %v11832_v21 }
 0x6d5   : > { %20167 = vmatprep.mubr.msk.f32.mxu1 %vm2264_vm4, %v11833_v47  ;;  %20248 = vmatpush3.bf16.msra.mxu1 %v21423_v8  ;;  %v13545_v8 = vld [vmem:[#allocation3 + $0x68] sm:$0xff] }
 0x6d6   : > { %20257 = vmatprep.subr.bf16.mxu1 %v21537_v56 }
 0x6d8   : > { %20168 = vmatmul.mubr.msk.f32.gmra.mrb[86].mxu1 %vm2264_vm4, %v11834_v62  ;;  %v13538_v62 = vld [vmem:[#allocation3 + $0x30] sm:$0xff] }
 0x6d9   : > { %20170 = vmatprep.mubr.msk.f32.mxu1 %vm2264_vm4, %v11835_v32 }
 0x6dc   : > { %20171 = vmatmul.mubr.msk.f32.gmra.mrb[88].mxu1 %vm2264_vm4, %v11836_v25 }
 0x6dd   : > { %20173 = vmatprep.mubr.msk.f32.mxu1 %vm2264_vm4, %v11837_v43 }
 0x6e0   : > { %20174 = vmatmul.mubr.msk.f32.gmra.mrb[90].mxu1 %vm2264_vm4, %v11838_v51 }
 0x6e1   : > { %20176 = vmatprep.mubr.msk.f32.mxu1 %vm2264_vm4, %v11839_v57 }
 0x6e4   : > { %20177 = vmatmul.mubr.msk.f32.gmra.mrb[92].mxu1 %vm2264_vm4, %v11840_v37  ;;  %v13541_v37 = vld [vmem:[#allocation3 + $0x48] sm:$0xff] }
 0x6e5   : > { %20179 = vmatprep.mubr.msk.f32.mxu1 %vm2264_vm4, %v11841_v15 }
 0x6e8   : > { %20180 = vmatmul.mubr.msk.f32.gmra.mrb[94].mxu1 %vm2264_vm4, %v11842_v39 }
 0x6e9   : > { %20182 = vmatprep.mubr.msk.f32.mxu1 %vm2264_vm4, %v11843_v0 }
 0x6ec   : > { %20183 = vmatmul.mubr.msk.f32.gmra.mrb[96].mxu1 %vm2264_vm4, %v11844_v58 }
 0x6ed   : > { %20185 = vmatprep.mubr.msk.f32.mxu1 %vm2264_vm4, %v11845_v19 }
 0x6f0   : > { %20186 = vmatmul.mubr.msk.f32.gmra.mrb[98].mxu1 %vm2264_vm4, %v11846_v53 }
 0x6f1   : > { %20188 = vmatprep.mubr.msk.f32.mxu1 %vm2264_vm4, %v11847_v28 }
 0x6f4   : > { %20189 = vmatmul.mubr.msk.f32.gmra.mrb[100].mxu1 %vm2264_vm4, %v11848_v14 }
 0x6f5   : > { %20191 = vmatprep.mubr.msk.f32.mxu1 %vm2264_vm4, %v11849_v59 }
 0x6f8   : > { %20192 = vmatmul.mubr.msk.f32.gmra.mrb[102].mxu1 %vm2264_vm4, %v11850_v42 }
 0x6f9   : > { %20194 = vmatprep.mubr.msk.f32.mxu1 %vm2264_vm4, %v11851_v34  ;;  %v13540_v34 = vld [vmem:[#allocation3 + $0x40] sm:$0xff] }
 0x6fc   : > { %20195 = vmatmul.mubr.msk.f32.gmra.mrb[104].mxu1 %vm2264_vm4, %v11852_v50 }
 0x6fd   : > { %20197 = vmatprep.mubr.msk.f32.mxu1 %vm2264_vm4, %v11853_v36  ;;  %v24910_v36 = vld [vmem:[%s25307_s2 + $0x1] ss:$0 sm:$0xff] }
 0x700   : > { %20198 = vmatmul.mubr.msk.f32.gmra.mrb[106].mxu1 %vm2264_vm4, %v11854_v61 }
 0x701   : > { %20200 = vmatprep.mubr.msk.f32.mxu1 %vm2264_vm4, %v11855_v7 }
 0x704   : > { %20201 = vmatmul.mubr.msk.f32.gmra.mrb[108].mxu1 %vm2264_vm4, %v11856_v41 }
 0x705   : > { %20203 = vmatprep.mubr.msk.f32.mxu1 %vm2264_vm4, %v11857_v22 }
 0x708   : > { %20204 = vmatmul.mubr.msk.f32.gmra.mrb[110].mxu1 %vm2264_vm4, %v11858_v6  ;;  %v13543_v6 = vld [vmem:[#allocation3 + $0x58] sm:$0xff] }
 0x709   : > { %20206 = vmatprep.mubr.msk.f32.mxu1 %vm2264_vm4, %v11859_v31 }
 0x70c   : > { %20207 = vmatmul.mubr.msk.f32.gmra.mrb[112].mxu1 %vm2264_vm4, %v11860_v24 }
 0x70d   : > { %20209 = vmatprep.mubr.msk.f32.mxu1 %vm2264_vm4, %v11861_v48 }
 0x710   : > { %20210 = vmatmul.mubr.msk.f32.gmra.mrb[114].mxu1 %vm2264_vm4, %v11862_v38 }
 0x711   : > { %20212 = vmatprep.mubr.msk.f32.mxu1 %vm2264_vm4, %v11863_v23 }
 0x714   : > { %20213 = vmatmul.mubr.msk.f32.gmra.mrb[116].mxu1 %vm2264_vm4, %v11864_v46 }
 0x715   : > { %20215 = vmatprep.mubr.msk.f32.mxu1 %vm2264_vm4, %v11865_v20 }
 0x718   : > { %20216 = vmatmul.mubr.msk.f32.gmra.mrb[118].mxu1 %vm2264_vm4, %v11866_v49 }
 0x719   : > { %20218 = vmatprep.mubr.msk.f32.mxu1 %vm2264_vm4, %v11867_v29  ;;  %v13542_v29 = vld [vmem:[#allocation3 + $0x50] sm:$0xff] }
 0x71c   : > { %20219 = vmatmul.mubr.msk.f32.gmra.mrb[120].mxu1 %vm2264_vm4, %v11868_v45 }
 0x71d   : > { %20221 = vmatprep.mubr.msk.f32.mxu1 %vm2264_vm4, %v11869_v30 }
 0x720   : > { %20222 = vmatmul.mubr.msk.f32.gmra.mrb[122].mxu1 %vm2264_vm4, %v11870_v52 }
 0x721   : > { %20224 = vmatprep.mubr.msk.f32.mxu1 %vm2264_vm4, %v11871_v3 }
 0x724   : > { %20225 = vmatmul.mubr.msk.f32.gmra.mrb[124].mxu1 %vm2264_vm4, %v11872_v55 }
 0x725   : > { %20249 = vmatprep.mubr.msk.f32.mxu1 %vm21538_vm7, %v21537_v56 }
 0x7a7   : > { %v20166_v33 = vpop.f32.mrb[84].mxu1 }
 0x7a8   : > { %v13575_v9 = vadd.f32 %v20166_v33, %v13533_v4  ;;  %v13239_v60 = vpop.f32.mrb[85].mxu1 }
 0x7a9   : > { %v13574_v2 = vadd.f32 %v13532_v16, %v13239_v60 }
 0x7aa   : > { %13617 = vst.msk [vmem:[#allocation3 + $0x8] sm:$0xff] %vm4474_vm5, %v13575_v9 }
 0x7ab   : > { %13616 = vst.msk [vmem:[#allocation3] sm:$0xff] %vm4474_vm5, %v13574_v2  ;;  %v20169_v44 = vpop.f32.mrb[86].mxu1 }
 0x7ac   : > { %v13577_v54 = vadd.f32 %v20169_v44, %v13535_v63  ;;  %v13249_v5 = vpop.f32.mrb[87].mxu1 }
 0x7ad   : > { %v13576_v10 = vadd.f32 %v13534_v27, %v13249_v5  ;;  %v13544_v5 = vld [vmem:[#allocation3 + $0x60] sm:$0xff] }
 0x7ae   : > { %13619 = vst.msk [vmem:[#allocation3 + $0x18] sm:$0xff] %vm4474_vm5, %v13577_v54 }
 0x7af   : > { %13618 = vst.msk [vmem:[#allocation3 + $0x10] sm:$0xff] %vm4474_vm5, %v13576_v10  ;;  %v20172_v26 = vpop.f32.mrb[88].mxu1 }
 0x7b0   : > { %v13579_v35 = vadd.f32 %v20172_v26, %v13537_v40  ;;  %v13259_v13 = vpop.f32.mrb[89].mxu1 }
 0x7b1   : > { %v13578_v18 = vadd.f32 %v13536_v1, %v13259_v13  ;;  %v13659_v51 = vld [vmem:[#allocation3 + $0x8] sm:$0xff]  ;;  %v13547_v13 = vld [vmem:[#allocation3 + $0x78] sm:$0xff] }
 0x7b2   : > { %13621 = vst.msk [vmem:[#allocation3 + $0x28] sm:$0xff] %vm4474_vm5, %v13579_v35  ;;  %v13658_v32 = vld [vmem:[#allocation3] sm:$0xff] }
 0x7b3   : > { %13620 = vst.msk [vmem:[#allocation3 + $0x20] sm:$0xff] %vm4474_vm5, %v13578_v18  ;;  %v20175_v17 = vpop.f32.mrb[90].mxu1  ;;  %v13698_v25 = vld [vmem:[#allocation3 + $0x1] sm:$0xff] }
 0x7b4   : > { %v13581_v21 = vadd.f32 %v20175_v17, %v13539_v11  ;;  %v13269_v47 = vpop.f32.mrb[91].mxu1  ;;  %v13738_v53 = vmax.f32 %v13658_v32, %v13698_v25  ;;  %v13546_v25 = vld [vmem:[#allocation3 + $0x70] sm:$0xff] }
 0x7b5   : > { %v13580_v43 = vadd.f32 %v13538_v62, %v13269_v47  ;;  %v13661_v7 = vld [vmem:[#allocation3 + $0x18] sm:$0xff] }
 0x7b6   : > { %v13699_v57 = vld [vmem:[#allocation3 + $0x9] sm:$0xff]  ;;  %13623 = vst.msk [vmem:[#allocation3 + $0x38] sm:$0xff] %vm4474_vm5, %v13581_v21  ;;  %v13779_v0 = vld [vmem:[#allocation3 + $0x16] sm:$0xff] }
 0x7b7   : > { %v13739_v15 = vmax.f32 %v13659_v51, %v13699_v57  ;;  %v13778_v39 = vld [vmem:[#allocation3 + $0xe] sm:$0xff]  ;;  %13622 = vst.msk [vmem:[#allocation3 + $0x30] sm:$0xff] %vm4474_vm5, %v13580_v43  ;;  %v20178_v19 = vpop.f32.mrb[92].mxu1  ;;  %v13819_v28 = vld [vmem:[#allocation3 + $0x17] sm:$0xff] }
 0x7b8   : > { %v13818_v58 = vld [vmem:[#allocation3 + $0xf] sm:$0xff]  ;;  %v13583_v59 = vadd.f32 %v20178_v19, %v13541_v37  ;;  %v13279_v42 = vpop.f32.mrb[93].mxu1  ;;  %v13859_v50 = vmax.f32 %v13779_v0, %v13819_v28 }
 0x7b9   : > { %v13858_v14 = vmax.f32 %v13778_v39, %v13818_v58  ;;  %v13582_v61 = vadd.f32 %v13540_v34, %v13279_v42  ;;  %v13548_v34 = vld [vmem:[#allocation3 + $0x80] sm:$0xff] }
 0x7ba   : > { %v13701_v22 = vld [vmem:[#allocation3 + $0x19] sm:$0xff]  ;;  %13625 = vst.msk [vmem:[#allocation3 + $0x48] sm:$0xff] %vm4474_vm5, %v13583_v59  ;;  %v13899_v31 = vmax.f32 %v13739_v15, %v13859_v50  ;;  %v13781_v48 = vld [vmem:[#allocation3 + $0x26] sm:$0xff] }
 0x7bb   : > { %v13898_v41 = vmax.f32 %v13738_v53, %v13858_v14  ;;  %v13741_v24 = vmax.f32 %v13661_v7, %v13701_v22  ;;  %13624 = vst.msk [vmem:[#allocation3 + $0x40] sm:$0xff] %vm4474_vm5, %v13582_v61  ;;  %v20181_v38 = vpop.f32.mrb[94].mxu1  ;;  %v13821_v46 = vld [vmem:[#allocation3 + $0x27] sm:$0xff] }
 0x7bc   : > { %v13585_v20 = vadd.f32 %v20181_v38, %v13543_v6  ;;  %v13289_v49 = vpop.f32.mrb[95].mxu1  ;;  %v13944_v45 = vadd.f32 %v24910_v36, %v13899_v31  ;;  %v13662_v30 = vld [vmem:[#allocation3 + $0x20] sm:$0xff]  ;;  %v13861_v3 = vmax.f32 %v13781_v48, %v13821_v46  ;;  %v13549_v15 = vld [vmem:[#allocation3 + $0x88] sm:$0xff] }
 0x7bd   : > { %v13943_v23 = vadd.f32 %v24910_v36, %v13898_v41  ;;  %v13702_v52 = vld [vmem:[#allocation3 + $0x21] sm:$0xff]  ;;  %v13584_v55 = vadd.f32 %v13542_v29, %v13289_v49  ;;  %v13665_v26 = vld [vmem:[#allocation3 + $0x38] sm:$0xff] }
 0x7be   : > { %13627 = vst.msk [vmem:[#allocation3 + $0x58] sm:$0xff] %vm4474_vm5, %v13585_v20  ;;  %v13984_v33 = vmax.f32 %v13944_v45, 0.0  ;;  %v13901_v4 = vmax.f32 %v13741_v24, %v13861_v3  ;;  %v13782_v9 = vld [vmem:[#allocation3 + $0x2e] sm:$0xff]  ;;  %v13742_v2 = vmax.f32 %v13662_v30, %v13702_v52  ;;  %v13551_v24 = vld [vmem:[#allocation3 + $0x98] sm:$0xff] }
 0x7bf   : > { %v13983_v12 = vmax.f32 %v13943_v23, 0.0  ;;  %v13822_v60 = vld [vmem:[#allocation3 + $0x2f] sm:$0xff]  ;;  %13626 = vst.msk [vmem:[#allocation3 + $0x50] sm:$0xff] %vm4474_vm5, %v13584_v55  ;;  %v20184_v16 = vpop.f32.mrb[96].mxu1 }
 0x7c0   : > { %v13862_v44 = vmax.f32 %v13782_v9, %v13822_v60  ;;  %v13587_v63 = vadd.f32 %v20184_v16, %v13545_v8  ;;  %v13299_v54 = vpop.f32.mrb[97].mxu1  ;;  %14024 = vst.msk [vmem:[#allocation4 + $0x8] sm:$0xff] %vm4474_vm5, %v13984_v33  ;;  %v13946_v27 = vadd.f32 %v24910_v36, %v13901_v4  ;;  %v13550_v55 = vld [vmem:[#allocation3 + $0x90] sm:$0xff]  ;;  %v13553_v9 = vld [vmem:[#allocation3 + $0xa8] sm:$0xff] }
 0x7c1   : > { %14023 = vst.msk [vmem:[#allocation4] sm:$0xff] %vm4474_vm5, %v13983_v12  ;;  %v13586_v10 = vadd.f32 %v13544_v5, %v13299_v54  ;;  %v13552_v5 = vld [vmem:[#allocation3 + $0xa0] sm:$0xff] }
 0x7c2   : > { %v13902_v40 = vmax.f32 %v13742_v2, %v13862_v44  ;;  %v13705_v35 = vld [vmem:[#allocation3 + $0x39] sm:$0xff]  ;;  %13629 = vst.msk [vmem:[#allocation3 + $0x68] sm:$0xff] %vm4474_vm5, %v13587_v63  ;;  %v13986_v1 = vmax.f32 %v13946_v27, 0.0  ;;  %v13785_v17 = vld [vmem:[#allocation3 + $0x46] sm:$0xff] }
 0x7c3   : > { %v13745_v18 = vmax.f32 %v13665_v26, %v13705_v35  ;;  %13628 = vst.msk [vmem:[#allocation3 + $0x60] sm:$0xff] %vm4474_vm5, %v13586_v10  ;;  %v20187_v11 = vpop.f32.mrb[98].mxu1  ;;  %v13825_v47 = vld [vmem:[#allocation3 + $0x47] sm:$0xff] }
 0x7c4   : > { %v13947_v21 = vadd.f32 %v24910_v36, %v13902_v40  ;;  %v13589_v62 = vadd.f32 %v20187_v11, %v13547_v13  ;;  %v13309_v32 = vpop.f32.mrb[99].mxu1  ;;  %14026 = vst.msk [vmem:[#allocation4 + $0x18] sm:$0xff] %vm4474_vm5, %v13986_v1  ;;  %v13666_v43 = vld [vmem:[#allocation3 + $0x40] sm:$0xff]  ;;  %v13865_v57 = vmax.f32 %v13785_v17, %v13825_v47 }
 0x7c5   : > { %v13706_v51 = vld [vmem:[#allocation3 + $0x41] sm:$0xff]  ;;  %v13588_v37 = vadd.f32 %v13546_v25, %v13309_v32  ;;  %v13669_v22 = vld [vmem:[#allocation3 + $0x58] sm:$0xff] }
 0x7c6   : > { %13631 = vst.msk [vmem:[#allocation3 + $0x78] sm:$0xff] %vm4474_vm5, %v13589_v62  ;;  %v13987_v39 = vmax.f32 %v13947_v21, 0.0  ;;  %v13905_v0 = vmax.f32 %v13745_v18, %v13865_v57  ;;  %v13786_v58 = vld [vmem:[#allocation3 + $0x4e] sm:$0xff]  ;;  %v13746_v28 = vmax.f32 %v13666_v43, %v13706_v51  ;;  %v13555_v18 = vld [vmem:[#allocation3 + $0xb8] sm:$0xff] }
 0x7c7   : > { %v13826_v19 = vld [vmem:[#allocation3 + $0x4f] sm:$0xff]  ;;  %13630 = vst.msk [vmem:[#allocation3 + $0x70] sm:$0xff] %vm4474_vm5, %v13588_v37  ;;  %v20190_v53 = vpop.f32.mrb[100].mxu1 }
 0x7c8   : > { %v13866_v14 = vmax.f32 %v13786_v58, %v13826_v19  ;;  %v13591_v59 = vadd.f32 %v20190_v53, %v13549_v15  ;;  %v13319_v42 = vpop.f32.mrb[101].mxu1  ;;  %14027 = vst.msk [vmem:[#allocation4 + $0x20] sm:$0xff] %vm4474_vm5, %v13987_v39  ;;  %v13950_v50 = vadd.f32 %v24910_v36, %v13905_v0  ;;  %v13668_v61 = vld [vmem:[#allocation3 + $0x50] sm:$0xff]  ;;  %v13557_v19 = vld [vmem:[#allocation3 + $0xc8] sm:$0xff] }
 0x7c9   : > { %v13708_v7 = vld [vmem:[#allocation3 + $0x51] sm:$0xff]  ;;  %v13590_v41 = vadd.f32 %v13548_v34, %v13319_v42  ;;  %v13556_v42 = vld [vmem:[#allocation3 + $0xc0] sm:$0xff] }
 0x7ca   : > { %v13906_v6 = vmax.f32 %v13746_v28, %v13866_v14  ;;  %v13709_v31 = vld [vmem:[#allocation3 + $0x59] sm:$0xff]  ;;  %13633 = vst.msk [vmem:[#allocation3 + $0x88] sm:$0xff] %vm4474_vm5, %v13591_v59  ;;  %v13990_v48 = vmax.f32 %v13950_v50, 0.0  ;;  %v13789_v46 = vld [vmem:[#allocation3 + $0x66] sm:$0xff]  ;;  %v13748_v29 = vmax.f32 %v13668_v61, %v13708_v7  ;;  %v13554_v15 = vld [vmem:[#allocation3 + $0xb0] sm:$0xff] }
 0x7cb   : > { %v13749_v38 = vmax.f32 %v13669_v22, %v13709_v31  ;;  %v13788_v23 = vld [vmem:[#allocation3 + $0x5e] sm:$0xff]  ;;  %13632 = vst.msk [vmem:[#allocation3 + $0x80] sm:$0xff] %vm4474_vm5, %v13590_v41  ;;  %v20193_v49 = vpop.f32.mrb[102].mxu1  ;;  %v13829_v45 = vld [vmem:[#allocation3 + $0x67] sm:$0xff] }
 0x7cc   : > { %v13828_v20 = vld [vmem:[#allocation3 + $0x5f] sm:$0xff]  ;;  %v13593_v52 = vadd.f32 %v20193_v49, %v13551_v24  ;;  %v13329_v3 = vpop.f32.mrb[103].mxu1  ;;  %v13951_v12 = vadd.f32 %v24910_v36, %v13906_v6  ;;  %14030 = vst.msk [vmem:[#allocation4 + $0x38] sm:$0xff] %vm4474_vm5, %v13990_v48  ;;  %v13869_v8 = vmax.f32 %v13789_v46, %v13829_v45  ;;  %v13558_v48 = vld [vmem:[#allocation3 + $0xd0] sm:$0xff] }
 0x7cd   : > { %v13868_v30 = vmax.f32 %v13788_v23, %v13828_v20  ;;  %v13592_v33 = vadd.f32 %v13550_v55, %v13329_v3  ;;  %v13673_v13 = vld [vmem:[#allocation3 + $0x78] sm:$0xff]  ;;  %v13561_v23 = vld [vmem:[#allocation3 + $0xe8] sm:$0xff] }
 0x7ce   : > { %13635 = vst.msk [vmem:[#allocation3 + $0x98] sm:$0xff] %vm4474_vm5, %v13593_v52  ;;  %v13991_v60 = vmax.f32 %v13951_v12, 0.0  ;;  %v13909_v16 = vmax.f32 %v13749_v38, %v13869_v8  ;;  %v13672_v27 = vld [vmem:[#allocation3 + $0x70] sm:$0xff]  ;;  %v13559_v7 = vld [vmem:[#allocation3 + $0xd8] sm:$0xff] }
 0x7cf   : > { %v13908_v4 = vmax.f32 %v13748_v29, %v13868_v30  ;;  %13634 = vst.msk [vmem:[#allocation3 + $0x90] sm:$0xff] %vm4474_vm5, %v13592_v33  ;;  %v20196_v2 = vpop.f32.mrb[104].mxu1  ;;  %v13712_v10 = vld [vmem:[#allocation3 + $0x71] sm:$0xff]  ;;  %v13560_v29 = vld [vmem:[#allocation3 + $0xe0] sm:$0xff] }
 0x7d0   : > { %v13595_v63 = vadd.f32 %v20196_v2, %v13553_v9  ;;  %v13339_v54 = vpop.f32.mrb[105].mxu1  ;;  %14031 = vst.msk [vmem:[#allocation4 + $0x40] sm:$0xff] %vm4474_vm5, %v13991_v60  ;;  %v13954_v40 = vadd.f32 %v24910_v36, %v13909_v16  ;;  %v13752_v25 = vmax.f32 %v13672_v27, %v13712_v10  ;;  %v13563_v30 = vld [vmem:[#allocation3 + $0xf8] sm:$0xff]  ;;  %v13562_v12 = vld [vmem:[#allocation3 + $0xf0] sm:$0xff]  ;;  %v13565_v16 = vld [vmem:[#allocation3 + $0x108] sm:$0xff] }
 0x7d1   : > { %v13953_v44 = vadd.f32 %v24910_v36, %v13908_v4  ;;  %v13594_v26 = vadd.f32 %v13552_v5, %v13339_v54 }
 0x7d2   : > { %v13713_v1 = vld [vmem:[#allocation3 + $0x79] sm:$0xff]  ;;  %13637 = vst.msk [vmem:[#allocation3 + $0xa8] sm:$0xff] %vm4474_vm5, %v13595_v63  ;;  %v13793_v21 = vld [vmem:[#allocation3 + $0x86] sm:$0xff]  ;;  %v13994_v32 = vmax.f32 %v13954_v40, 0.0 }
 0x7d3   : > { %v13993_v35 = vmax.f32 %v13953_v44, 0.0  ;;  %v13753_v17 = vmax.f32 %v13673_v13, %v13713_v1  ;;  %v13792_v11 = vld [vmem:[#allocation3 + $0x7e] sm:$0xff]  ;;  %13636 = vst.msk [vmem:[#allocation3 + $0xa0] sm:$0xff] %vm4474_vm5, %v13594_v26  ;;  %v20199_v62 = vpop.f32.mrb[106].mxu1  ;;  %v13833_v43 = vld [vmem:[#allocation3 + $0x87] sm:$0xff] }
 0x7d4   : > { %v13832_v47 = vld [vmem:[#allocation3 + $0x7f] sm:$0xff]  ;;  %v13597_v57 = vadd.f32 %v20199_v62, %v13555_v18  ;;  %v13349_v37 = vpop.f32.mrb[107].mxu1  ;;  %v13873_v39 = vmax.f32 %v13793_v21, %v13833_v43  ;;  %14034 = vst.msk [vmem:[#allocation4 + $0x58] sm:$0xff] %vm4474_vm5, %v13994_v32  ;;  %v13566_v43 = vld [vmem:[#allocation3 + $0x110] sm:$0xff] }
 0x7d5   : > { %14033 = vst.msk [vmem:[#allocation4 + $0x50] sm:$0xff] %vm4474_vm5, %v13993_v35  ;;  %v13872_v51 = vmax.f32 %v13792_v11, %v13832_v47  ;;  %v13596_v0 = vadd.f32 %v13554_v15, %v13349_v37  ;;  %v13564_v13 = vld [vmem:[#allocation3 + $0x100] sm:$0xff]  ;;  %v13567_v11 = vld [vmem:[#allocation3 + $0x118] sm:$0xff] }
 0x7d6   : > { %13639 = vst.msk [vmem:[#allocation3 + $0xb8] sm:$0xff] %vm4474_vm5, %v13597_v57  ;;  %v13913_v53 = vmax.f32 %v13753_v17, %v13873_v39 }
 0x7d7   : > { %v13912_v58 = vmax.f32 %v13752_v25, %v13872_v51  ;;  %13638 = vst.msk [vmem:[#allocation3 + $0xb0] sm:$0xff] %vm4474_vm5, %v13596_v0  ;;  %v20202_v28 = vpop.f32.mrb[108].mxu1 }
 0x7d8   : > { %v13599_v14 = vadd.f32 %v20202_v28, %v13557_v19  ;;  %v13359_v59 = vpop.f32.mrb[109].mxu1  ;;  %v13958_v61 = vadd.f32 %v24910_v36, %v13913_v53  ;;  %v13569_v19 = vld [vmem:[#allocation3 + $0x128] sm:$0xff] }
 0x7d9   : > { %v13957_v34 = vadd.f32 %v24910_v36, %v13912_v58  ;;  %v13598_v50 = vadd.f32 %v13556_v42, %v13359_v59 }
 0x7da   : > { %13641 = vst.msk [vmem:[#allocation3 + $0xc8] sm:$0xff] %vm4474_vm5, %v13599_v14  ;;  %v13998_v6 = vmax.f32 %v13958_v61, 0.0 }
 0x7db   : > { %v13997_v41 = vmax.f32 %v13957_v34, 0.0  ;;  %13640 = vst.msk [vmem:[#allocation3 + $0xc0] sm:$0xff] %vm4474_vm5, %v13598_v50  ;;  %v20205_v22 = vpop.f32.mrb[110].mxu1 }
 0x7dc   : > { %v13601_v31 = vadd.f32 %v20205_v22, %v13559_v7  ;;  %v13369_v24 = vpop.f32.mrb[111].mxu1  ;;  %14038 = vst.msk [vmem:[#allocation4 + $0x78] sm:$0xff] %vm4474_vm5, %v13998_v6  ;;  %v13568_v6 = vld [vmem:[#allocation3 + $0x120] sm:$0xff] }
 0x7dd   : > { %14037 = vst.msk [vmem:[#allocation4 + $0x70] sm:$0xff] %vm4474_vm5, %v13997_v41  ;;  %v13600_v38 = vadd.f32 %v13558_v48, %v13369_v24 }
 0x7de   : > { %13643 = vst.msk [vmem:[#allocation3 + $0xd8] sm:$0xff] %vm4474_vm5, %v13601_v31 }
 0x7df   : > { %13642 = vst.msk [vmem:[#allocation3 + $0xd0] sm:$0xff] %vm4474_vm5, %v13600_v38  ;;  %v20208_v46 = vpop.f32.mrb[112].mxu1 }
 0x7e0   : > { %v13603_v20 = vadd.f32 %v20208_v46, %v13561_v23  ;;  %v13379_v49 = vpop.f32.mrb[113].mxu1  ;;  %v13571_v46 = vld [vmem:[#allocation3 + $0x138] sm:$0xff] }
 0x7e1   : > { %v13602_v45 = vadd.f32 %v13560_v29, %v13379_v49  ;;  %v13683_v9 = vld [vmem:[#allocation3 + $0xc8] sm:$0xff] }
 0x7e2   : > { %13645 = vst.msk [vmem:[#allocation3 + $0xe8] sm:$0xff] %vm4474_vm5, %v13603_v20  ;;  %v13682_v8 = vld [vmem:[#allocation3 + $0xc0] sm:$0xff] }
 0x7e3   : > { %13644 = vst.msk [vmem:[#allocation3 + $0xe0] sm:$0xff] %vm4474_vm5, %v13602_v45  ;;  %v20211_v52 = vpop.f32.mrb[114].mxu1  ;;  %v13722_v33 = vld [vmem:[#allocation3 + $0xc1] sm:$0xff] }
 0x7e4   : > { %v13605_v3 = vadd.f32 %v20211_v52, %v13563_v30  ;;  %v13389_v55 = vpop.f32.mrb[115].mxu1  ;;  %v13762_v27 = vmax.f32 %v13682_v8, %v13722_v33 }
 0x7e5   : > { %v13604_v4 = vadd.f32 %v13562_v12, %v13389_v55  ;;  %v13570_v12 = vld [vmem:[#allocation3 + $0x130] sm:$0xff] }
 0x7e6   : > { %v13723_v60 = vld [vmem:[#allocation3 + $0xc9] sm:$0xff]  ;;  %13647 = vst.msk [vmem:[#allocation3 + $0xf8] sm:$0xff] %vm4474_vm5, %v13605_v3  ;;  %v13803_v63 = vld [vmem:[#allocation3 + $0xd6] sm:$0xff] }
 0x7e7   : > { %v13763_v2 = vmax.f32 %v13683_v9, %v13723_v60  ;;  %v13802_v44 = vld [vmem:[#allocation3 + $0xce] sm:$0xff]  ;;  %13646 = vst.msk [vmem:[#allocation3 + $0xf0] sm:$0xff] %vm4474_vm5, %v13604_v4  ;;  %v20214_v5 = vpop.f32.mrb[116].mxu1  ;;  %v13843_v10 = vld [vmem:[#allocation3 + $0xd7] sm:$0xff] }
 0x7e8   : > { %v13842_v54 = vld [vmem:[#allocation3 + $0xcf] sm:$0xff]  ;;  %v13607_v40 = vadd.f32 %v20214_v5, %v13565_v16  ;;  %v13399_v35 = vpop.f32.mrb[117].mxu1  ;;  %v13883_v1 = vmax.f32 %v13803_v63, %v13843_v10  ;;  %v13573_v16 = vld [vmem:[#allocation3 + $0x148] sm:$0xf] }
 0x7e9   : > { %v13882_v26 = vmax.f32 %v13802_v44, %v13842_v54  ;;  %v13606_v18 = vadd.f32 %v13564_v13, %v13399_v35  ;;  %v13687_v0 = vld [vmem:[#allocation3 + $0xe8] sm:$0xff]  ;;  %v21424_v44 = vld [vmem:[%s25306_s1 + $0xa4] sm:$0xff]  }
 0x7ea   : > { %13649 = vst.msk [vmem:[#allocation3 + $0x108] sm:$0xff] %vm4474_vm5, %v13607_v40  ;;  %v13923_v21 = vmax.f32 %v13763_v2, %v13883_v1  ;;  %v13686_v57 = vld [vmem:[#allocation3 + $0xe0] sm:$0xff] }
 0x7eb   : > { %v13922_v17 = vmax.f32 %v13762_v27, %v13882_v26  ;;  %13648 = vst.msk [vmem:[#allocation3 + $0x100] sm:$0xff] %vm4474_vm5, %v13606_v18  ;;  %v20217_v47 = vpop.f32.mrb[118].mxu1  ;;  %v13726_v37 = vld [vmem:[#allocation3 + $0xe1] sm:$0xff] }
 0x7ec   : > { %v13609_v32 = vadd.f32 %v20217_v47, %v13567_v11  ;;  %v13409_v25 = vpop.f32.mrb[119].mxu1  ;;  %v13968_v51 = vadd.f32 %v24910_v36, %v13923_v21  ;;  %v13766_v50 = vmax.f32 %v13686_v57, %v13726_v37  ;;  %v13572_v18 = vld [vmem:[#allocation3 + $0x140] sm:$0xff] }
 0x7ed   : > { %v13967_v62 = vadd.f32 %v24910_v36, %v13922_v17  ;;  %v13608_v15 = vadd.f32 %v13566_v43, %v13409_v25  ;;  %v13689_v48 = vld [vmem:[#allocation3 + $0xf8] sm:$0xff] }
 0x7ee   : > { %v13727_v58 = vld [vmem:[#allocation3 + $0xe9] sm:$0xff]  ;;  %13651 = vst.msk [vmem:[#allocation3 + $0x118] sm:$0xff] %vm4474_vm5, %v13609_v32  ;;  %v14008_v53 = vmax.f32 %v13968_v51, 0.0  ;;  %v13807_v59 = vld [vmem:[#allocation3 + $0xf6] sm:$0xff] }
 0x7ef   : > { %v14007_v39 = vmax.f32 %v13967_v62, 0.0  ;;  %v13767_v28 = vmax.f32 %v13687_v0, %v13727_v58  ;;  %v13806_v14 = vld [vmem:[#allocation3 + $0xee] sm:$0xff]  ;;  %13650 = vst.msk [vmem:[#allocation3 + $0x110] sm:$0xff] %vm4474_vm5, %v13608_v15  ;;  %v20220_v34 = vpop.f32.mrb[120].mxu1  ;;  %v13847_v61 = vld [vmem:[#allocation3 + $0xf7] sm:$0xff] }
 0x7f0   : > { %v13846_v42 = vld [vmem:[#allocation3 + $0xef] sm:$0xff]  ;;  %v13611_v41 = vadd.f32 %v20220_v34, %v13569_v19  ;;  %v13419_v22 = vpop.f32.mrb[121].mxu1  ;;  %14048 = vst.msk [vmem:[#allocation4 + $0xc8] sm:$0xff] %vm4474_vm5, %v14008_v53  ;;  %v13887_v31 = vmax.f32 %v13807_v59, %v13847_v61  ;;  %v21426_v19 = vld [vmem:[%s25306_s1 + $0xc4] sm:$0xff]  }
 0x7f1   : > { %14047 = vst.msk [vmem:[#allocation4 + $0xc0] sm:$0xff] %vm4474_vm5, %v14007_v39  ;;  %v13886_v7 = vmax.f32 %v13806_v14, %v13846_v42  ;;  %v13610_v24 = vadd.f32 %v13568_v6, %v13419_v22  ;;  %v21425_v32 = vld [vmem:[%s25306_s1 + $0xb4] sm:$0xff]  }
 0x7f2   : > { %v13729_v23 = vld [vmem:[#allocation3 + $0xf9] sm:$0xff]  ;;  %13653 = vst.msk [vmem:[#allocation3 + $0x128] sm:$0xff] %vm4474_vm5, %v13611_v41  ;;  %v13927_v20 = vmax.f32 %v13767_v28, %v13887_v31  ;;  %v13809_v29 = vld [vmem:[#allocation3 + $0x106] sm:$0xff] }
 0x7f3   : > { %v13926_v38 = vmax.f32 %v13766_v50, %v13886_v7  ;;  %v13769_v49 = vmax.f32 %v13689_v48, %v13729_v23  ;;  %13652 = vst.msk [vmem:[#allocation3 + $0x120] sm:$0xff] %vm4474_vm5, %v13610_v24  ;;  %v20223_v45 = vpop.f32.mrb[122].mxu1  ;;  %v13849_v52 = vld [vmem:[#allocation3 + $0x107] sm:$0xff]  ;;  %v21427_v48 = vld [vmem:[%s25306_s1 + $0xe4] sm:$0xff]  }
 0x7f4   : > { %v13613_v3 = vadd.f32 %v20223_v45, %v13571_v46  ;;  %v13429_v55 = vpop.f32.mrb[123].mxu1  ;;  %v13972_v8 = vadd.f32 %v24910_v36, %v13927_v20  ;;  %v13690_v33 = vld [vmem:[#allocation3 + $0x100] sm:$0xff]  ;;  %v13889_v9 = vmax.f32 %v13809_v29, %v13849_v52  ;;  %v21428_v28 = vld [vmem:[%s25306_s1 + $0xf4] sm:$0xff]   ;;  %v21471_v52 = vld [vmem:[%s25307_s2 + $0x1] ss:$0 sm:$0xff] }
 0x7f5   : > { %v13971_v30 = vadd.f32 %v24910_v36, %v13926_v38  ;;  %v13730_v4 = vld [vmem:[#allocation3 + $0x101] sm:$0xff]  ;;  %v13612_v60 = vadd.f32 %v13570_v12, %v13429_v55  ;;  %v13693_v21 = vld [vmem:[#allocation3 + $0x118] sm:$0xff] }
 0x7f6   : > { %13655 = vst.msk [vmem:[#allocation3 + $0x138] sm:$0xff] %vm4474_vm5, %v13613_v3  ;;  %v13929_v63 = vmax.f32 %v13769_v49, %v13889_v9  ;;  %v13810_v54 = vld [vmem:[#allocation3 + $0x10e] sm:$0xff]  ;;  %v14012_v10 = vmax.f32 %v13972_v8, 0.0  ;;  %v13770_v26 = vmax.f32 %v13690_v33, %v13730_v4 }
 0x7f7   : > { %v14011_v2 = vmax.f32 %v13971_v30, 0.0  ;;  %v13850_v5 = vld [vmem:[#allocation3 + $0x10f] sm:$0xff]  ;;  %13654 = vst.msk [vmem:[#allocation3 + $0x130] sm:$0xff] %vm4474_vm5, %v13612_v60  ;;  %v20226_v27 = vpop.f32.mrb[124].mxu1  ;;  %v21429_v60 = vld [vmem:[%s25306_s1 + $0x104] sm:$0xff]  }
 0x7f8   : > { %v13890_v40 = vmax.f32 %v13810_v54, %v13850_v5  ;;  %v13615_v35 = vadd.f32 %v20226_v27, %v13573_v16  ;;  %v14068_v13 = vld [vmem:[#allocation4 + $0x2] ss:$196 sm:$0x3]  ;;  %v13439_v1 = vpop.f32.mrb[125].mxu1  ;;  %v13974_v17 = vadd.f32 %v24910_v36, %v13929_v63  ;;  %14052 = vst.msk [vmem:[#allocation4 + $0xe8] sm:$0xff] %vm4474_vm5, %v14012_v10  ;;  %v21431_v27 = vld [vmem:[%s25306_s1 + $0x124] sm:$0xff]  }
 0x7f9   : > { %14051 = vst.msk [vmem:[#allocation4 + $0xe0] sm:$0xff] %vm4474_vm5, %v14011_v2  ;;  %20230 = vmatmul.mubr.msk.f32.vlgmr.msra.gmra.mrb[26].mxu0 %vm4474_vm5, %v14068_v13  ;;  %v13614_v11 = vadd.f32 %v13572_v18, %v13439_v1  ;;  %v14123_v37 = vld [vmem:[#allocation4 + $0x6] ss:$196 sm:$0x3]  ;;  %v21430_v33 = vld [vmem:[%s25306_s1 + $0x114] sm:$0xff]   ;;  %v21434_v1 = vld [vmem:[%s25306_s1 + $0x14c] sm:$0xff]  }
 0x7fa   : > { %v13930_v47 = vmax.f32 %v13770_v26, %v13890_v40  ;;  %v13733_v62 = vld [vmem:[#allocation3 + $0x119] sm:$0xff]  ;;  %13657 = vst.msk [vmem:[#allocation3 + $0x148] sm:$0xf] %vm4516_vm6, %v13615_v35  ;;  %20233 = vmatpush3.bf16.msra.mxu0 %v21424_v44  ;;  %20234 = vmatprep.mubr.msk.f32.mxu0 %vm21538_vm7, %v21537_v56  ;;  %v14014_v25 = vmax.f32 %v13974_v17, 0.0  ;;  %v13813_v51 = vld [vmem:[#allocation3 + $0x126] sm:$0xff] }
 0x7fb   : > { %v13773_v43 = vmax.f32 %v13693_v21, %v13733_v62  ;;  %13656 = vst.msk [vmem:[#allocation3 + $0x140] sm:$0xff] %vm4474_vm5, %v13614_v11  ;;  %20237 = vmatprep.subr.bf16.mxu0 %v21537_v56  ;;  %v13853_v57 = vld [vmem:[#allocation3 + $0x127] sm:$0xff]  ;;  %v21433_v35 = vld [vmem:[%s25306_s1 + $0x144] sm:$0xff]   ;;  %v21436_v21 = vld [vmem:[%s25306_s1 + $0x9c] sm:$0xff]  }
 0x7fc   : > { %v13975_v15 = vadd.f32 %v24910_v36, %v13930_v47  ;;  %14054 = vst.msk [vmem:[#allocation4 + $0xf8] sm:$0xff] %vm4474_vm5, %v14014_v25  ;;  %v13694_v39 = vld [vmem:[#allocation3 + $0x120] sm:$0xff]  ;;  %v13893_v58 = vmax.f32 %v13813_v51, %v13853_v57  ;;  %v21432_v10 = vld [vmem:[%s25306_s1 + $0x134] sm:$0xff]   ;;  %v21438_v25 = vld [vmem:[%s25306_s1 + $0xbc] sm:$0xff]  }
 0x7fd   : > { %v13734_v0 = vld [vmem:[#allocation3 + $0x121] sm:$0xff]  ;;  %20235 = vmatmul.mubr.msk.f32.vlgmr.msra.gmra.mrb[28].mxu0 %vm4474_vm5, %v14123_v37  ;;  %v13697_v42 = vld [vmem:[#allocation3 + $0x138] sm:$0x1f] }
 0x7fe   : > { %v13696_v53 = vld [vmem:[#allocation3 + $0x130] sm:$0xff]  ;;  %20238 = vmatpush3.bf16.msra.mxu0 %v21425_v32  ;;  %20239 = vmatprep.mubr.msk.f32.mxu0 %vm21538_vm7, %v21537_v56  ;;  %v14015_v14 = vmax.f32 %v13975_v15, 0.0  ;;  %v13933_v59 = vmax.f32 %v13773_v43, %v13893_v58  ;;  %v13774_v61 = vmax.f32 %v13694_v39, %v13734_v0  ;;  %v13737_v31 = vld [vmem:[#allocation3 + $0x139] sm:$0x1f]  ;;  %v21435_v17 = vld [vmem:[%s25306_s1 + $0x8c] sm:$0xff]  }
 0x7ff   : > { %v13814_v34 = vld [vmem:[#allocation3 + $0x12e] sm:$0xff]  ;;  %20242 = vmatprep.subr.bf16.mxu0 %v21537_v56  ;;  %v21437_v62 = vld [vmem:[%s25306_s1 + $0xac] sm:$0xff]   ;;  %v14174_v57 = vld [vmem:[#allocation4 + $0x8] ss:$196 sm:$0x3] }
 0x800   : > { %v13854_v50 = vld [vmem:[#allocation3 + $0x12f] sm:$0xff]  ;;  %14055 = vst.msk [vmem:[#allocation4 + $0x100] sm:$0xff] %vm4474_vm5, %v14015_v14  ;;  %v13978_v6 = vadd.f32 %v24910_v36, %v13933_v59  ;;  %v13777_v36 = vmax.f32 %v13697_v42, %v13737_v31  ;;  %v21439_v51 = vld [vmem:[%s25306_s1 + $0xcc] sm:$0xff]   ;;  %v21449_v31 = vld [vmem:[%s25306_s1 + $0x164] sm:$0xff]  }
 0x801   : > { %v13736_v7 = vld [vmem:[#allocation3 + $0x131] sm:$0xff]  ;;  %v13894_v41 = vmax.f32 %v13814_v34, %v13854_v50  ;;  %v14178_v22 = vld [vmem:[#allocation4 + $0x1c] ss:$196 sm:$0x3]  ;;  %v21441_v39 = vld [vmem:[%s25306_s1 + $0xec] sm:$0xff]  }
 0x802   : > { %20240 = vmatmul.mubr.msk.f32.vlgmr.msra.gmra.mrb[30].mxu0 %vm4474_vm5, %v14178_v22  ;;  %v14288_v24 = vld [vmem:[#allocation4 + $0x24] ss:$196 sm:$0x3]  ;;  %v13816_v23 = vld [vmem:[#allocation3 + $0x13e] sm:$0xff]  ;;  %v13817_v46 = vld [vmem:[#allocation3 + $0x146] sm:$0x1f]  ;;  %v13776_v29 = vmax.f32 %v13696_v53, %v13736_v7 }
 0x803   : > { %v13934_v38 = vmax.f32 %v13774_v61, %v13894_v41  ;;  %v13856_v20 = vld [vmem:[#allocation3 + $0x13f] sm:$0xff]  ;;  %20250 = vmatmul.mubr.msk.f32.vlgmr.msra.gmra.mrb[126].mxu1 %vm4474_vm5, %v14288_v24  ;;  %20243 = vmatpush3.bf16.msra.mxu0 %v21426_v19  ;;  %v14018_v49 = vmax.f32 %v13978_v6, 0.0  ;;  %v13857_v45 = vld [vmem:[#allocation3 + $0x147] sm:$0x1f]  ;;  %v21440_v37 = vld [vmem:[%s25306_s1 + $0xdc] sm:$0xff]  }
 0x804   : > { %v13896_v30 = vmax.f32 %v13816_v23, %v13856_v20  ;;  %20244 = vmatprep.mubr.msk.f32.mxu0 %vm21538_vm7, %v21537_v56  ;;  %20252 = vmatprep.subr.bf16.mxu0 %v21537_v56  ;;  %v13897_v55 = vmax.f32 %v13817_v46, %v13857_v45  ;;  %v14233_v12 = vld [vmem:[#allocation4 + $0x20] ss:$196 sm:$0x3]  ;;  %v14343_v63 = vld [vmem:[#allocation4 + $0x3a] ss:$196 sm:$0x3] }
 0x805   : > { %v13979_v3 = vadd.f32 %v21471_v52, %v13934_v38  ;;  %20258 = vmatpush3.bf16.msra.mxu1 %v21428_v28  ;;  %20259 = vmatprep.mubr.msk.f32.mxu1 %vm21538_vm7, %v21537_v56  ;;  %14058 = vst.msk [vmem:[#allocation4 + $0x118] sm:$0xff] %vm4474_vm5, %v14018_v49  ;;  %v14064_v32 = vld [vmem:[#allocation4] ss:$196 sm:$0x3]  ;;  %v21443_v53 = vld [vmem:[%s25306_s1 + $0x10c] sm:$0xff]   ;;  %v21453_v20 = vld [vmem:[%s25306_s1 + $0x184] sm:$0xff]  }
 0x806   : > { %v13936_v8 = vmax.f32 %v13776_v29, %v13896_v30  ;;  %20245 = vmatmul.mubr.msk.f32.vlgmr.msra.gmra.mrb[32].mxu0 %vm4474_vm5, %v14233_v12  ;;  %20267 = vmatprep.subr.bf16.mxu1 %v21537_v56  ;;  %v13937_v9 = vmax.f32 %v13777_v36, %v13897_v55  ;;  %v14119_v43 = vld [vmem:[#allocation4 + $0x4] ss:$196 sm:$0x3]  ;;  %v14229_v15 = vld [vmem:[#allocation4 + $0x1e] ss:$196 sm:$0x3] }
 0x807   : > { %v14019_v4 = vmax.f32 %v13979_v3, 0.0  ;;  %20253 = vmatpush3.bf16.msra.mxu0 %v21427_v48  ;;  %20254 = vmatprep.mubr.msk.f32.mxu0 %vm21538_vm7, %v21537_v56  ;;  %v14398_v16 = vld [vmem:[#allocation4 + $0x3e] ss:$196 sm:$0x3]  ;;  %v21442_v58 = vld [vmem:[%s25306_s1 + $0xfc] sm:$0xff]   ;;  %v21445_v42 = vld [vmem:[%s25306_s1 + $0x12c] sm:$0xff]  }
 0x808   : > { %20262 = vmatprep.subr.bf16.mxu0 %v21537_v56  ;;  %v13981_v2 = vadd.f32 %v21471_v52, %v13936_v8  ;;  %v13982_v44 = vadd.f32 %v21471_v52, %v13937_v9  ;;  %20260 = vmatmul.mubr.msk.f32.vlgmr.msra.gmra.mrb[128].mxu1 %vm4474_vm5, %v14398_v16  ;;  %v14284_v0 = vld [vmem:[#allocation4 + $0x22] ss:$196 sm:$0x3]  ;;  %v14339_v19 = vld [vmem:[#allocation4 + $0x38] ss:$196 sm:$0x3] }
 0x809   : > { %14059 = vst.msk [vmem:[#allocation4 + $0x120] sm:$0xff] %vm4474_vm5, %v14019_v4  ;;  %20268 = vmatpush3.bf16.msra.mxu1 %v21430_v33  ;;  %20269 = vmatprep.mubr.msk.f32.mxu1 %vm21538_vm7, %v21537_v56  ;;  %v14394_v28 = vld [vmem:[#allocation4 + $0x3c] ss:$196 sm:$0x3]  ;;  %v21444_v14 = vld [vmem:[%s25306_s1 + $0x11c] sm:$0xff]   ;;  %v21450_v24 = vld [vmem:[%s25306_s1 + $0x16c] sm:$0xff]  }
 0x80a   : > { %20255 = vmatmul.mubr.msk.f32.vlgmr.msra.gmra.mrb[34].mxu0 %vm4474_vm5, %v14343_v63  ;;  %v14021_v54 = vmax.f32 %v13981_v2, 0.0  ;;  %v14022_v5 = vmax.f32 %v13982_v44, 0.0  ;;  %20277 = vmatprep.subr.bf16.mxu1 %v21537_v56  ;;  %v14449_v59 = vld [vmem:[#allocation4 + $0x40] ss:$196 sm:$0x3]  ;;  %v21455_v23 = vld [vmem:[%s25306_s1 + $0x190] sm:$0xff]  }
 0x80b   : > { %20263 = vmatpush3.bf16.msra.mxu0 %v21429_v60  ;;  %20264 = vmatprep.mubr.msk.f32.mxu0 %vm21538_vm7, %v21537_v56  ;;  %v21446_v50 = vld [vmem:[%s25306_s1 + $0x13c] sm:$0xff]   ;;  %v21447_v22 = vld [vmem:[%s25306_s1 + $0x154] sm:$0xff]   ;;  %v21454_v49 = vld [vmem:[%s25306_s1 + $0x18c] ss:$0 sps:$4 sm:$0xff]  }
 0x80c   : > { %20272 = vmatprep.subr.bf16.mxu0 %v21537_v56  ;;  %14061 = vst.msk [vmem:[#allocation4 + $0x130] sm:$0xff] %vm4474_vm5, %v14021_v54  ;;  %v14453_v26 = vld [vmem:[#allocation4 + $0x54] ss:$196 sm:$0x3]  ;;  %v21448_v6 = vld [vmem:[%s25306_s1 + $0x15c] sm:$0xff]   ;;  %v21451_v48 = vld [vmem:[%s25306_s1 + $0x174] sm:$0xff]  }
 0x80d   : > { %v14508_v40 = vld [vmem:[#allocation4 + $0x58] ss:$196 sm:$0x3]  ;;  %14063 = vst.msk [vmem:[#allocation4 + $0x138] sm:$0x1f] %vm14062_vm8, %v14022_v5  ;;  %v21452_v38 = vld [vmem:[%s25306_s1 + $0x17c] sm:$0xff]  }
 0x80e   : > { %20265 = vmatmul.mubr.msk.f32.vlgmr.msra.gmra.mrb[36].mxu0 %vm4474_vm5, %v14453_v26  ;;  %20270 = vmatmul.mubr.msk.f32.vlgmr.msra.gmra.mrb[130].mxu1 %vm4474_vm5, %v14508_v40  ;;  %v14504_v34 = vld [vmem:[#allocation4 + $0x56] ss:$196 sm:$0x3]  ;;  %v21456_v46 = vld [vmem:[%s25306_s1 + $0x198] sm:$0xff]   ;;  %v21457_v29 = vld [vmem:[%s25306_s1 + $0x1a0] sm:$0xff]   ;;  %v15428_v45 = vsel %vm15426_vm9, %v21454_v49, 0 }
 0x80f   : > { %20273 = vmatpush3.bf16.msra.mxu0 %v21431_v27  ;;  %20274 = vmatprep.mubr.msk.f32.mxu0 %vm21538_vm7, %v21537_v56  ;;  %v14559_v61 = vld [vmem:[#allocation4 + $0x5a] ss:$196 sm:$0x3]  ;;  %v21458_v30 = vld [vmem:[%s25306_s1 + $0x1a8] sm:$0xff]  }
 0x810   : > { %v14563_v13 = vld [vmem:[#allocation4 + $0x5c] ss:$196 sm:$0x3]  ;;  %20278 = vmatpush3.bf16.msra.mxu1 %v21432_v10  ;;  %20282 = vmatprep.subr.bf16.mxu0 %v21537_v56 }
 0x811   : > { %20279 = vmatprep.mubr.msk.f32.mxu1 %vm21538_vm7, %v21537_v56  ;;  %20287 = vmatprep.subr.bf16.mxu1 %v21537_v56  ;;  %v21459_v36 = vld [vmem:[%s25306_s1 + $0x1b0] sm:$0xff]  }
 0x812   : > { %20275 = vmatmul.mubr.msk.f32.vlgmr.msra.gmra.mrb[38].mxu0 %vm4474_vm5, %v14563_v13 }
 0x813   : > { %20283 = vmatpush3.bf16.msra.mxu0 %v21433_v35  ;;  %20284 = vmatprep.mubr.msk.f32.mxu0 %vm21538_vm7, %v21537_v56  ;;  %v14618_v18 = vld [vmem:[#allocation4 + $0x72] ss:$196 sm:$0x3]  ;;  %v14614_v7 = vld [vmem:[#allocation4 + $0x70] ss:$196 sm:$0x3] }
 0x814   : > { %20280 = vmatmul.mubr.msk.f32.vlgmr.msra.gmra.mrb[132].mxu1 %vm4474_vm5, %v14618_v18  ;;  %v14673_v11 = vld [vmem:[#allocation4 + $0x76] ss:$196 sm:$0x3]  ;;  %20292 = vmatprep.subr.bf16.mxu0 %v21537_v56  ;;  %v14724_v47 = vld [vmem:[#allocation4 + $0x78] ss:$196 sm:$0x3] }
 0x815   : > { %20288 = vmatpush3.bf16.msra.mxu1 %v21434_v1  ;;  %20289 = vmatprep.mubr.msk.f32.mxu1 %vm21538_vm7, %v21537_v56  ;;  %v14669_v41 = vld [vmem:[#allocation4 + $0x74] ss:$196 sm:$0x3] }
 0x816   : > { %20285 = vmatmul.mubr.msk.f32.vlgmr.msra.gmra.mrb[40].mxu0 %vm4474_vm5, %v14673_v11  ;;  %20297 = vmatprep.subr.bf16.mxu1 %v21537_v56 }
 0x817   : > { %20293 = vmatpush3.bf16.msra.mxu0 %v21435_v17  ;;  %20294 = vmatprep.mubr.msk.f32.mxu0 %vm21538_vm7, %v21537_v56 }
 0x818   : > { %20290 = vmatmul.mubr.msk.f32.vlgmr.msra.gmra.mrb[134].mxu1 %vm4474_vm5, %v14724_v47  ;;  %20302 = vmatprep.subr.bf16.mxu0 %v21537_v56 }
 0x819   : > { %20298 = vmatpush3.bf16.msra.mxu1 %v21436_v21  ;;  %20299 = vmatprep.mubr.msk.f32.mxu1 %vm21538_vm7, %v21537_v56 }
 0x81a   : > { %20295 = vmatmul.mubr.msk.f32.vlgmr.msra.gmra.mrb[42].mxu0 %vm4474_vm5, %v14064_v32  ;;  %20307 = vmatprep.subr.bf16.mxu1 %v21537_v56 }
 0x81b   : > { %20303 = vmatpush3.bf16.msra.mxu0 %v21437_v62  ;;  %20304 = vmatprep.mubr.msk.f32.mxu0 %vm21538_vm7, %v21537_v56 }
 0x81c   : > { %20300 = vmatmul.mubr.msk.f32.vlgmr.msra.gmra.mrb[136].mxu1 %vm4474_vm5, %v14119_v43  ;;  %20312 = vmatprep.subr.bf16.mxu0 %v21537_v56 }
 0x81d   : > { %20308 = vmatpush3.bf16.msra.mxu1 %v21438_v25  ;;  %20309 = vmatprep.mubr.msk.f32.mxu1 %vm21538_vm7, %v21537_v56 }
 0x81e   : > { %20305 = vmatmul.mubr.msk.f32.vlgmr.msra.gmra.mrb[44].mxu0 %vm4474_vm5, %v14174_v57  ;;  %20317 = vmatprep.subr.bf16.mxu1 %v21537_v56 }
 0x81f   : > { %20313 = vmatpush3.bf16.msra.mxu0 %v21439_v51  ;;  %20314 = vmatprep.mubr.msk.f32.mxu0 %vm21538_vm7, %v21537_v56 }
 0x820   : > { %20310 = vmatmul.mubr.msk.f32.vlgmr.msra.gmra.mrb[138].mxu1 %vm4474_vm5, %v14229_v15  ;;  %20322 = vmatprep.subr.bf16.mxu0 %v21537_v56 }
 0x821   : > { %20318 = vmatpush3.bf16.msra.mxu1 %v21440_v37  ;;  %20319 = vmatprep.mubr.msk.f32.mxu1 %vm21538_vm7, %v21537_v56 }
 0x822   : > { %20315 = vmatmul.mubr.msk.f32.vlgmr.msra.gmra.mrb[46].mxu0 %vm4474_vm5, %v14284_v0  ;;  %20327 = vmatprep.subr.bf16.mxu1 %v21537_v56 }
 0x823   : > { %20323 = vmatpush3.bf16.msra.mxu0 %v21441_v39  ;;  %20324 = vmatprep.mubr.msk.f32.mxu0 %vm21538_vm7, %v21537_v56 }
 0x824   : > { %20320 = vmatmul.mubr.msk.f32.vlgmr.msra.gmra.mrb[140].mxu1 %vm4474_vm5, %v14339_v19  ;;  %20332 = vmatprep.subr.bf16.mxu0 %v21537_v56 }
 0x825   : > { %20328 = vmatpush3.bf16.msra.mxu1 %v21442_v58  ;;  %20329 = vmatprep.mubr.msk.f32.mxu1 %vm21538_vm7, %v21537_v56 }
 0x826   : > { %20325 = vmatmul.mubr.msk.f32.vlgmr.msra.gmra.mrb[48].mxu0 %vm4474_vm5, %v14394_v28  ;;  %20337 = vmatprep.subr.bf16.mxu1 %v21537_v56 }
 0x827   : > { %20333 = vmatpush3.bf16.msra.mxu0 %v21443_v53  ;;  %20334 = vmatprep.mubr.msk.f32.mxu0 %vm21538_vm7, %v21537_v56 }
 0x828   : > { %20330 = vmatmul.mubr.msk.f32.vlgmr.msra.gmra.mrb[142].mxu1 %vm4474_vm5, %v14449_v59  ;;  %20342 = vmatprep.subr.bf16.mxu0 %v21537_v56 }
 0x829   : > { %20338 = vmatpush3.bf16.msra.mxu1 %v21444_v14  ;;  %20339 = vmatprep.mubr.msk.f32.mxu1 %vm21538_vm7, %v21537_v56 }
 0x82a   : > { %20335 = vmatmul.mubr.msk.f32.vlgmr.msra.gmra.mrb[50].mxu0 %vm4474_vm5, %v14504_v34  ;;  %20347 = vmatprep.subr.bf16.mxu1 %v21537_v56 }
 0x82b   : > { %20343 = vmatpush3.bf16.msra.mxu0 %v21445_v42  ;;  %20344 = vmatprep.mubr.msk.f32.mxu0 %vm21538_vm7, %v21537_v56 }
 0x82c   : > { %20340 = vmatmul.mubr.msk.f32.vlgmr.msra.gmra.mrb[144].mxu1 %vm4474_vm5, %v14559_v61  ;;  %20352 = vmatprep.subr.bf16.mxu0 %v21537_v56 }
 0x82d   : > { %20348 = vmatpush3.bf16.msra.mxu1 %v21446_v50  ;;  %20349 = vmatprep.mubr.msk.f32.mxu1 %vm21538_vm7, %v21537_v56 }
 0x82e   : > { %20345 = vmatmul.mubr.msk.f32.vlgmr.msra.gmra.mrb[52].mxu0 %vm4474_vm5, %v14614_v7  ;;  %20371 = vmatprep.subr.bf16.mxu1 %v21537_v56 }
 0x82f   : > { %20368 = vmatprep.mubr.msk.f32.mxu0 %vm21538_vm7, %v21537_v56  ;;  %20353 = vmatpush3.bf16.msra.mxu0 %v21447_v22 }
 0x830   : > { %20350 = vmatmul.mubr.msk.f32.vlgmr.msra.gmra.mrb[146].mxu1 %vm4474_vm5, %v14669_v41  ;;  %20354 = vmatprep.subr.bf16.mxu0 %v21537_v56 }
 0x831   : > { %20383 = vmatprep.mubr.msk.f32.mxu1 %vm21538_vm7, %v21537_v56  ;;  %20372 = vmatpush3.bf16.msra.mxu1 %v21455_v23 }
 0x832   : > { %20373 = vmatprep.subr.bf16.mxu1 %v21537_v56 }
 0x833   : > { %20355 = vmatpush3.bf16.msra.mxu0 %v21448_v6 }
 0x834   : > { %20356 = vmatprep.subr.bf16.mxu0 %v21537_v56 }
 0x835   : > { %20374 = vmatpush3.bf16.msra.mxu1 %v21456_v46 }
 0x836   : > { %20375 = vmatprep.subr.bf16.mxu1 %v21537_v56 }
 0x837   : > { %20357 = vmatpush3.bf16.msra.mxu0 %v21449_v31 }
 0x838   : > { %20358 = vmatprep.subr.bf16.mxu0 %v21537_v56 }
 0x839   : > { %20376 = vmatpush3.bf16.msra.mxu1 %v21457_v29 }
 0x83a   : > { %20377 = vmatprep.subr.bf16.mxu1 %v21537_v56 }
 0x83b   : > { %20359 = vmatpush3.bf16.msra.mxu0 %v21450_v24 }
 0x83c   : > { %20360 = vmatprep.subr.bf16.mxu0 %v21537_v56 }
 0x83d   : > { %20378 = vmatpush3.bf16.msra.mxu1 %v21458_v30 }
 0x83e   : > { %20379 = vmatprep.subr.bf16.mxu1 %v21537_v56 }
 0x83f   : > { %20361 = vmatpush3.bf16.msra.mxu0 %v21451_v48 }
 0x840   : > { %20362 = vmatprep.subr.bf16.mxu0 %v21537_v56 }
 0x841   : > { %20380 = vmatpush3.bf16.msra.mxu1 %v21459_v36 }
 0x842   : > { %20381 = vmatprep.subr.bf16.mxu1 %v21537_v56 }
 0x843   : > { %20363 = vmatpush3.bf16.msra.mxu0 %v21452_v38 }
 0x844   : > { %20364 = vmatprep.subr.bf16.mxu0 %v21537_v56 }
 0x847   : > { %20365 = vmatpush3.bf16.msra.mxu0 %v21453_v20 }
 0x848   : > { %20366 = vmatprep.subr.bf16.mxu0 %v21537_v56 }
 0x84b   : > { %20367 = vmatpush3.bf16.msra.mxu0 %v15428_v45 }
 0x84c   : > { %20401 = vmatprep.subr.bf16.mxu0 %v21537_v56 }
 0x8cc   : > { %v14114_v52 = vpop.f32.mrb[26].mxu0 }
 0x8cd   : > { %v20231_v3 = vpop.f32.mrb[27].mxu0 }
 0x8d0   : > { %v14169_v55 = vpop.f32.mrb[28].mxu0 }
 0x8d1   : > { %v20236_v12 = vpop.f32.mrb[29].mxu0 }
 0x8d5   : > { %v14224_v8 = vpop.f32.mrb[30].mxu0 }
 0x8d6   : > { %v14334_v33 = vpop.f32.mrb[126].mxu1  ;;  %v20241_v4 = vpop.f32.mrb[31].mxu0 }
 0x8d7   : > { %v20251_v9 = vpop.f32.mrb[127].mxu1 }
 0x8d9   : > { %v14279_v60 = vpop.f32.mrb[32].mxu0 }
 0x8da   : > { %v20246_v16 = vpop.f32.mrb[33].mxu0 }
 0x8db   : > { %v14444_v2 = vpop.f32.mrb[128].mxu1 }
 0x8dc   : > { %v20261_v63 = vpop.f32.mrb[129].mxu1 }
 0x8dd   : > { %v14389_v44 = vpop.f32.mrb[34].mxu0 }
 0x8de   : > { %v20256_v54 = vpop.f32.mrb[35].mxu0 }
 0x8e1   : > { %v14499_v5 = vpop.f32.mrb[36].mxu0  ;;  %v14554_v27 = vpop.f32.mrb[130].mxu1 }
 0x8e2   : > { %v20266_v10 = vpop.f32.mrb[37].mxu0  ;;  %v20271_v26 = vpop.f32.mrb[131].mxu1 }
 0x8e3   : > { %v17109_v10 = vld [vmem:[%s25307_s2 + $0x3] ss:$0 sm:$0xff] }
 0x8e5   : > { %v14609_v40 = vpop.f32.mrb[38].mxu0 }
 0x8e6   : > { %v20276_v35 = vpop.f32.mrb[39].mxu0 }
 0x8e7   : > { %v14664_v13 = vpop.f32.mrb[132].mxu1 }
 0x8e8   : > { %v20281_v1 = vpop.f32.mrb[133].mxu1 }
 0x8e9   : > { %v14719_v18 = vpop.f32.mrb[40].mxu0 }
 0x8ea   : > { %v20286_v17 = vpop.f32.mrb[41].mxu0 }
 0x8eb   : > { %v14770_v11 = vpop.f32.mrb[134].mxu1  ;;  %v21463_v17 = vld [vmem:[%s25306_s1 + $0x1cc] sm:$0xff]  }
 0x8ec   : > { %v20291_v21 = vpop.f32.mrb[135].mxu1 }
 0x8ed   : > { %v14817_v47 = vpop.f32.mrb[42].mxu0  ;;  %v21465_v21 = vld [vmem:[%s25306_s1 + $0x1dc] sm:$0xff]  }
 0x8ee   : > { %v14818_v62 = vadd.f32 %v14817_v47, %v14114_v52  ;;  %v20296_v32 = vpop.f32.mrb[43].mxu0  ;;  %v21466_v47 = vld [vmem:[%s25306_s1 + $0x1e4] ss:$0 sps:$4 sm:$0x33]  }
 0x8ef   : > { %v14864_v25 = vpop.f32.mrb[136].mxu1  ;;  %v17119_v32 = vld [vmem:[%s25307_s2 + $0x4] ss:$0 sm:$0xff] }
 0x8f0   : > { %v14865_v43 = vadd.f32 %v14864_v25, %v14169_v55  ;;  %v20301_v51 = vpop.f32.mrb[137].mxu1 }
 0x8f1   : > { %v14911_v57 = vpop.f32.mrb[44].mxu0 }
 0x8f2   : > { %v15338_v37 = vadd.f32 %v14865_v43, %v14818_v62  ;;  %v14912_v15 = vadd.f32 %v14911_v57, %v14224_v8  ;;  %v20306_v39 = vpop.f32.mrb[45].mxu0  ;;  %v15618_v62 = vsel %vm15522_vm11, %v21466_v47, 0 }
 0x8f3   : > { %v14958_v0 = vpop.f32.mrb[138].mxu1 }
 0x8f4   : > { %v14959_v58 = vadd.f32 %v14958_v0, %v14279_v60  ;;  %v20311_v19 = vpop.f32.mrb[139].mxu1 }
 0x8f5   : > { %v15005_v53 = vpop.f32.mrb[46].mxu0 }
 0x8f6   : > { %v15339_v28 = vadd.f32 %v14959_v58, %v14912_v15  ;;  %v15006_v14 = vadd.f32 %v15005_v53, %v14334_v33  ;;  %v20316_v59 = vpop.f32.mrb[47].mxu0  ;;  %v21467_v53 = vld [vmem:[%s25306_s1 + $0x1e8] sm:$0xff]  }
 0x8f7   : > { %v15052_v42 = vpop.f32.mrb[140].mxu1 }
 0x8f8   : > { %v15344_v34 = vadd.f32 %v15339_v28, %v15338_v37  ;;  %v15053_v50 = vadd.f32 %v15052_v42, %v14389_v44  ;;  %v20321_v61 = vpop.f32.mrb[141].mxu1  ;;  %v17127_v37 = vld [vmem:[%s25307_s2 + $0x5] ss:$0 sm:$0xff]  ;;  %v21468_v28 = vld [vmem:[%s25306_s1 + $0x1f0] sm:$0xff]  }
 0x8f9   : > { %v15099_v7 = vpop.f32.mrb[48].mxu0 }
 0x8fa   : > { %v15340_v41 = vadd.f32 %v15053_v50, %v15006_v14  ;;  %v15100_v22 = vadd.f32 %v15099_v7, %v14444_v2  ;;  %v20326_v6 = vpop.f32.mrb[49].mxu0  ;;  %v17108_v2 = vld [vmem:[%s25307_s2 + $0x2] ss:$0 sm:$0xff] }
 0x8fb   : > { %v15146_v31 = vpop.f32.mrb[142].mxu1 }
 0x8fc   : > { %v15147_v24 = vadd.f32 %v15146_v31, %v14499_v5  ;;  %v20331_v48 = vpop.f32.mrb[143].mxu1  ;;  %v21460_v5 = vld [vmem:[%s25306_s1 + $0x1b8] ss:$0 sps:$4 sm:$0x33]  }
 0x8fd   : > { %v15193_v38 = vpop.f32.mrb[50].mxu0 }
 0x8fe   : > { %v15341_v23 = vadd.f32 %v15147_v24, %v15100_v22  ;;  %v15194_v46 = vadd.f32 %v15193_v38, %v14554_v27  ;;  %v20336_v20 = vpop.f32.mrb[51].mxu0  ;;  %v15524_v27 = vsel %vm15522_vm11, %v21460_v5, 0 }
 0x8ff   : > { %v15240_v49 = vpop.f32.mrb[144].mxu1  ;;  %20382 = vmatpush3.bf16.msra.mxu1 %v15524_v27 }
 0x900   : > { %v15345_v29 = vadd.f32 %v15341_v23, %v15340_v41  ;;  %v15241_v45 = vadd.f32 %v15240_v49, %v14609_v40  ;;  %v20341_v30 = vpop.f32.mrb[145].mxu1  ;;  %20386 = vmatprep.subr.bf16.mxu1 %v21537_v56 }
 0x901   : > { %v15287_v36 = vpop.f32.mrb[52].mxu0 }
 0x902   : > { %v15347_v52 = vadd.f32 %v15345_v29, %v15344_v34  ;;  %v15342_v3 = vadd.f32 %v15241_v45, %v15194_v46  ;;  %v15288_v55 = vadd.f32 %v15287_v36, %v14664_v13  ;;  %v20346_v12 = vpop.f32.mrb[53].mxu0  ;;  %v21461_v13 = vld [vmem:[%s25306_s1 + $0x1bc] sm:$0xff]  }
 0x903   : > { %v15334_v8 = vpop.f32.mrb[146].mxu1 }
 0x904   : > { %v15335_v33 = vadd.f32 %v15334_v8, %v14719_v18  ;;  %v20351_v4 = vpop.f32.mrb[147].mxu1  ;;  %v21462_v18 = vld [vmem:[%s25306_s1 + $0x1c4] sm:$0xff]  }
 0x906   : > { %v15343_v9 = vadd.f32 %v15335_v33, %v15288_v55 }
 0x908   : > { %v15346_v60 = vadd.f32 %v15343_v9, %v15342_v3 }
 0x90a   : > { %v15348_v16 = vadd.f32 %v15346_v60, %v14770_v11  ;;  %v21464_v11 = vld [vmem:[%s25306_s1 + $0x1d4] sm:$0xff]  }
 0x90c   : > { %v15349_v44 = vadd.f32 %v15348_v16, %v15347_v52 }
 0x90e   : > { %v15355_v63 = vadd.f32 %v17108_v2, %v15349_v44 }
 0x910   : > { %v15356_v54 = vmax.f32 %v15355_v63, 0.0 }
 0x912   : > { %20369 = vmatmul.mubr.msk.f32.vlgmr.msra.gmra.mrb[54].mxu0 %vm15422_vm10, %v15356_v54 }
 0x913   : > { %20405 = vmatprep.mubr.msk.f32.mxu0 %vm21538_vm7, %v21537_v56  ;;  %20402 = vmatpush3.bf16.msra.mxu0 %v21467_v53 }
 0x914   : > { %20403 = vmatprep.subr.bf16.mxu0 %v21537_v56 }
 0x917   : > { %20404 = vmatpush3.bf16.msra.mxu0 %v21468_v28 }
 0x9e5   : > { %v15464_v26 = vpop.f32.mrb[54].mxu0 }
 0x9e6   : > { %v15465_v40 = vadd.f32 %v17109_v10, %v15464_v26  ;;  %v20370_v35 = vpop.f32.mrb[55].mxu0 }
 0x9e8   : > { %v15468_v1 = vmax.f32 %v15465_v40, 0.0 }
 0x9ea   : > { %20384 = vmatmul.mubr.msk.f32.vlgmr.msra.gmra.mrb[148].mxu1 %vm15518_vm12, %v15468_v1 }
 0x9eb   : > { %20387 = vmatpush3.bf16.msra.mxu1 %v21461_v13  ;;  %20398 = vmatprep.mubr.msk.f32.mxu1 %vm21538_vm7, %v21537_v56 }
 0x9ec   : > { %20388 = vmatprep.subr.bf16.mxu1 %v21537_v56 }
 0x9ef   : > { %20389 = vmatpush3.bf16.msra.mxu1 %v21462_v18 }
 0x9f0   : > { %20390 = vmatprep.subr.bf16.mxu1 %v21537_v56 }
 0x9f3   : > { %20391 = vmatpush3.bf16.msra.mxu1 %v21463_v17 }
 0x9f4   : > { %20392 = vmatprep.subr.bf16.mxu1 %v21537_v56 }
 0x9f7   : > { %20393 = vmatpush3.bf16.msra.mxu1 %v21464_v11 }
 0x9f8   : > { %20394 = vmatprep.subr.bf16.mxu1 %v21537_v56 }
 0x9fb   : > { %20395 = vmatpush3.bf16.msra.mxu1 %v21465_v21 }
 0x9fc   : > { %20396 = vmatprep.subr.bf16.mxu1 %v21537_v56 }
 0x9ff   : > { %20397 = vmatpush3.bf16.msra.mxu1 %v15618_v62 }
 0xabd   : > { %v15560_v25 = vpop.f32.mrb[148].mxu1 }
 0xabe   : > { %v15561_v43 = vadd.f32 %v17119_v32, %v15560_v25  ;;  %v20385_v51 = vpop.f32.mrb[149].mxu1 }
 0xac0   : > { %v15564_v57 = vmax.f32 %v15561_v43, 0.0 }
 0xac2   : > { %20399 = vmatmul.mubr.msk.f32.vlgmr.msra.gmra.mrb[150].mxu1 %vm15518_vm12, %v15564_v57 }
 0xb95   : > { %v15654_v15 = vpop.f32.mrb[150].mxu1 }
 0xb96   : > { %v15655_v39 = vadd.f32 %v17127_v37, %v15654_v15  ;;  %v20400_v0 = vpop.f32.mrb[151].mxu1 }
 0xb98   : > { %v15658_v58 = vmul.f32 %v15655_v39, %v15655_v39 }
 0xb9a   : > { %v15660_v19 = vsel %vm15659_vm13, %v15658_v58, 0.0 }
 0xb9b   : > { %15661 = vadd.xlane.f32.xlu0 %v15660_v19 }
 0xc28   : > { %v15662_v14 = vpop.xlane.xlu0 %15661 }
 0xc29   : > { %v15663_v59 = vmax.f32 %v15662_v14, 1e-24 }
 0xc2b   : > { %21469 = vrsqrt.f32 %v15663_v59 }
 0xc35   : > { %v21470_v42 = vpop.eup %21469 }
 0xc36   : > { %v15665_v34 = vmul.f32 %v21470_v42, %v15655_v39 }
 0xc38   : > { %20406 = vmatmul.mubr.msk.f32.vlgmr.msra.gmra.mrb[56].mxu0 %vm15682_vm14, %v15665_v34 }
 0xd0b   : > { %v15720_v56 = vpop.f32.mrb[56].mxu0 }
 0xd0c   : > { %15725 = vst.msk [vmem:[%s163_s11] sm:$0x3] %vm15724_vm15, %v15720_v56  ;;  %v20407_v50 = vpop.f32.mrb[57].mxu0 }
 0xd0d   : > { %21485 = shalt.err (!%p21482_p3)
}
 0xd0e   : > { %s21486_s29 = scalar_lea.hbm %s25263_s24, 32  ;;  %s21490_s5 = scalar_lea.hbm %s25308_s3, 64 }
 0xd0f   : > { %p21487_p4 = scmp.ne.s32.totalorder %s25263_s24, %s21486_s29  ;;  %p21491_p9 = scmp.lt.u32.totalorder %s25263_s24, %s25308_s3 }
 0xd10   : > { %p21492_p10 = scmp.lt.u32.totalorder %s21490_s5, %s21486_s29  ;;  %p21494_p12 = scmp.lt.u32.totalorder %s21486_s29, %s25263_s24 }
 0xd11   : > { %p21488_p7 = pnand %p21487_p4, %p21598_p5 }
 0xd12   : > { %p21493_p11 = por %p21492_p10, %p21491_p9 }
 0xd13   : > { %p21489_p8 = pneg %p21488_p7 }
 0xd14   : > { %p21495_p13 = por %p21494_p12, %p21493_p11 }
 0xd16   : > { %p21496_p0 = pnand %p21495_p13, %p21489_p8 }
 0xd18   : > { %21499 = shalt.err (!%p21496_p0)
}
 0xd19   : > { %21277 = dma.vmem_to_hbm [thread:$0]  (%p21598_p5), %s25265_s17, 32, %s25263_s24, %s15727_s25  }
 0xd1a PF: > { %p21283_p1 = scmp.ge.s32.totalorder %s21534_s15, 2  ;;  %s15752_s8 = sand.u32 1, %s21522_s12  }
 0xd1b   : > { %s15753_s9 = scalar_lea.sflag [#allocation6], %s15752_s8 }
 0xd1c   : > { %p21280_p2 = pnand %p21283_p1, %p21602_p6 }
 0xd1e   : > { %21517 = dma.done.wait (!%p21280_p2), %s15753_s9, 32  }
 0xd1f   : > { %21519 = vsyncadd (!%p21280_p2), %s15753_s9, 4294967264  ;;  %p13_p3 = scmp.ge.s32.totalorder %s21585_s18, 4   ;;  %s25771_s12 = smov %s21526_s13 }
 0xd20   : > { %s25772_s13 = smov %s21530_s14  ;;  %s25773_s14 = smov %s21596_s21 }
 0xd21   : > { %s25774_s15 = smov %s21585_s18  ;;  %15 = sbr.rel (!%p13_p3) target bundleno = 3 (0x3), region = 91 }
 0xd28   :  { %15758 = vsyncpa [#allocation6], 1 }
 0xd29   :  { %15760 = vsyncpa [#allocation6 + $0x1], 1 }

</bundles_post_ra>
